<compile_context>
chip_gen: v5e
topology: v5e:2x2
jax: 0.10.0
libtpu: 0.0.40
codegen_flags: <defaults>
</compile_context>

<pallas_src>
import jax
import jax.numpy as jnp
from jax.experimental import pallas as pl
from jax.experimental.pallas import tpu as pltpu

D_IN = 2048       # backbone embedding width (fixed by the module's fc)
D_H1 = 1024       # fc hidden 1
D_H2 = 256        # fc hidden 2
TN = 1024         # W1 column tile (bf16: fits double-buffered on v5e/v6e/v7x)
SLOPE = 0.01      # nn.LeakyReLU default negative_slope
EPS = 1e-12       # F.normalize default eps


def _leaky_relu(v):
    # valid for 0 < slope < 1 (differs from where() only in NaN propagation)
    return jnp.maximum(v, SLOPE * v)


def _l2norm(x):
    n = jnp.sqrt(jnp.sum(x * x, axis=1, keepdims=True))
    return x / jnp.maximum(n, EPS)


def siamese_head_kernel(x1_ref, x2_ref, w1t_ref, b1_ref, w2t_ref, b2_ref,
                        w3_ref, b3_ref, o_ref, n1_scr, diff_ref, h2_acc):
    # x1_ref, x2_ref : VMEM (B, 2048) f32    backbone features (resident)
    # w1t_ref        : VMEM (2048, TN) bf16  column tile of W1^T (streamed)
    # b1_ref         : VMEM (1, TN)    f32   bias tile of layer 1
    # w2t_ref        : VMEM (TN, 256)  bf16  row tile of W2^T (streamed)
    # b2_ref         : VMEM (1, 256)   f32
    # w3_ref         : VMEM (1, 256)   f32   layer-3 weight row (resident)
    # b3_ref         : VMEM (1, 1)     f32
    # o_ref          : VMEM (B, 1)     f32   sigmoid output
    # n1_scr         : VMEM scratch (B, 2048) f32   normalized f1
    # diff_ref       : VMEM scratch (B, 2048) bf16  normalized difference
    # h2_acc         : VMEM scratch (B, 256)  f32   fused layer-2 accumulator
    j = pl.program_id(0)

    @pl.when(j == 0)
    def _init():
        # L2-normalize the two feature sets sequentially (keeps live vregs
        # bounded instead of holding x1/x2/n1/n2 at once), cache bf16 diff.
        x1 = x1_ref[...].astype(jnp.float32)
        n1_scr[...] = x1 / jnp.maximum(
            jnp.sqrt(jnp.sum(x1 * x1, axis=1, keepdims=True)), EPS)
        x2 = x2_ref[...].astype(jnp.float32)
        n2 = x2 / jnp.maximum(
            jnp.sqrt(jnp.sum(x2 * x2, axis=1, keepdims=True)), EPS)
        diff_ref[...] = (n1_scr[...] - n2).astype(diff_ref.dtype)
        h2_acc[...] = jnp.zeros_like(h2_acc)

    # Layer 1 column tile on the MXU (bf16 x bf16 -> f32 accumulation),
    # LeakyReLU, then (Dropout(0.2) == identity at inference) the fused
    # layer-2 partial product accumulated into the (B, 256) f32 scratch.
    h = jnp.dot(diff_ref[...], w1t_ref[...],
                preferred_element_type=jnp.float32) + b1_ref[...]
    h = _leaky_relu(h).astype(w2t_ref.dtype)
    h2_acc[...] += jnp.dot(h, w2t_ref[...], preferred_element_type=jnp.float32)

    @pl.when(j == pl.num_programs(0) - 1)
    def _finalize():
        h2 = _leaky_relu(h2_acc[...] + b2_ref[...])
        # Layer 3 (256 -> 1) as broadcast-multiply + lane reduction.
        h3 = _leaky_relu(
            jnp.sum(h2 * w3_ref[...], axis=1, keepdims=True) + b3_ref[...])
        o_ref[...] = jax.nn.sigmoid(h3).astype(o_ref.dtype)


def prepare_params(params):
    """One-time (model-load) layout + dtype preparation. NOT in the hot path."""
    return dict(
        w1t=jnp.asarray(params["w1"]).T.astype(jnp.bfloat16),     # (2048, 1024)
        b1=jnp.asarray(params["b1"]).reshape(1, D_H1).astype(jnp.float32),
        w2t=jnp.asarray(params["w2"]).T.astype(jnp.bfloat16),     # (1024, 256)
        b2=jnp.asarray(params["b2"]).reshape(1, D_H2).astype(jnp.float32),
        w3=jnp.asarray(params["w3"]).reshape(1, D_H2).astype(jnp.float32),
        b3=jnp.asarray(params["b3"]).reshape(1, 1).astype(jnp.float32),
    )


def logistic_siamese_regression(f1, f2, prep, *, tn=TN):
    """Hot path: f1, f2 are (B, 2048) backbone embeddings; prep from
    prepare_params (already transposed / cast — no per-call weight reshuffle)."""
    assert D_H1 % tn == 0
    B = f1.shape[0]
    grid = (D_H1 // tn,)   # single step at tn=1024 (bf16 weights)
    return pl.pallas_call(
        siamese_head_kernel,
        out_shape=jax.ShapeDtypeStruct((B, 1), jnp.float32),
        grid_spec=pltpu.PrefetchScalarGridSpec(
            num_scalar_prefetch=0,
            grid=grid,
            in_specs=[
                pl.BlockSpec((B, D_IN), lambda j: (0, 0)),      # f1 (resident)
                pl.BlockSpec((B, D_IN), lambda j: (0, 0)),      # f2 (resident)
                pl.BlockSpec((D_IN, tn), lambda j: (0, j)),     # W1^T col tile
                pl.BlockSpec((1, tn), lambda j: (0, j)),        # b1 tile
                pl.BlockSpec((tn, D_H2), lambda j: (j, 0)),     # W2^T row tile
                pl.BlockSpec((1, D_H2), lambda j: (0, 0)),      # b2
                pl.BlockSpec((1, D_H2), lambda j: (0, 0)),      # W3 row
                pl.BlockSpec((1, 1), lambda j: (0, 0)),         # b3
            ],
            out_specs=pl.BlockSpec((B, 1), lambda j: (0, 0)),
            scratch_shapes=[
                pltpu.VMEM((B, D_IN), jnp.float32),    # normalized f1
                pltpu.VMEM((B, D_IN), jnp.bfloat16),   # normalized difference
                pltpu.VMEM((B, D_H2), jnp.float32),    # fused layer-2 acc
            ]),
        compiler_params=pltpu.CompilerParams(
            # Column axis is a dependency axis (layer-2 accumulation).
            dimension_semantics=("arbitrary",)),
    )(f1, f2, prep["w1t"], prep["b1"], prep["w2t"], prep["b2"],
      prep["w3"], prep["b3"])


# ---------------------------------------------------------------------------
# References for the self-test.
# ---------------------------------------------------------------------------
def reference_f32(f1, f2, p):
    """Module semantics in full f32 (Dropout(0.2) identity at eval)."""
    hp = jax.lax.Precision.HIGHEST
    def lrelu(v): return jnp.where(v > 0, v, SLOPE * v)
    d = _l2norm(f1) - _l2norm(f2)
    h = lrelu(jnp.dot(d, p["w1"].T, precision=hp) + p["b1"])
    h = lrelu(jnp.dot(h, p["w2"].T, precision=hp) + p["b2"])
    h = lrelu(jnp.dot(h, p["w3"].T, precision=hp) + p["b3"])
    return jax.nn.sigmoid(h)


def reference_bf16_matched(f1, f2, prep):
    """Mirrors the kernel's bf16 weight/activation quantization points."""
    d = (_l2norm(f1) - _l2norm(f2)).astype(jnp.bfloat16)
    h = _leaky_relu(jnp.dot(d, prep["w1t"],
                            preferred_element_type=jnp.float32) + prep["b1"])
    h = h.astype(jnp.bfloat16)
    h = _leaky_relu(jnp.dot(h, prep["w2t"],
                            preferred_element_type=jnp.float32) + prep["b2"])
    h = _leaky_relu(jnp.sum(h * prep["w3"], axis=1, keepdims=True) + prep["b3"])
    return jax.nn.sigmoid(h)


if __name__ == "__main__":
    key = jax.random.PRNGKey(0)
    ks = jax.random.split(key, 8)

    B = 8
    # TODO(synk): the backbone `self.model` is untranslatable generically; the
    # inputs below stand in for its (B, 2048) embeddings of x1 and x2.
    f1 = jax.random.normal(ks[0], (B, D_IN), jnp.float32)
    f2 = jax.random.normal(ks[1], (B, D_IN), jnp.float32)

    def linear_init(kw, kb, dout, din):
        bound = 1.0 / (din ** 0.5)
        w = jax.random.uniform(kw, (dout, din), jnp.float32, -bound, bound)
        b = jax.random.uniform(kb, (dout,), jnp.float32, -bound, bound)
        return w, b

    w1, b1 = linear_init(ks[2], ks[3], D_H1, D_IN)
    w2, b2 = linear_init(ks[4], ks[5], D_H2, D_H1)
    w3, b3 = linear_init(ks[6], ks[7], 1, D_H2)
    params = dict(w1=w1, b1=b1, w2=w2, b2=b2, w3=w3, b3=b3)

    # One-time weight preparation (model-load time) — out of the hot path.
    prep = jax.tree_util.tree_map(jax.block_until_ready, prepare_params(params))

    out = jax.block_until_ready(logistic_siamese_regression(f1, f2, prep))
    assert out.shape == (B, 1) and out.dtype == jnp.float32

    # Tight check vs a reference using identical bf16 quantization points.
    ref_bf = reference_bf16_matched(f1, f2, prep)
    assert jnp.allclose(out, ref_bf, rtol=1e-4, atol=1e-4), \
        float(jnp.max(jnp.abs(out - ref_bf)))

    # Loose check vs the pure-f32 module semantics (bf16 weight streaming is a
    # deliberate numerics change; error is a few 1e-4 on a sigmoid output).
    ref32 = reference_f32(f1, f2, params)
    assert jnp.allclose(out, ref32, rtol=2e-3, atol=2e-3), \
        float(jnp.max(jnp.abs(out - ref32)))

    print("KERNEL_OK")
</pallas_src>

<mosaic_0001>
module attributes {stable_mosaic.version = 11 : i64} {
  func.func @siamese_head_kernel(%arg0: i32, %arg1: memref<8x2048xf32, #tpu.memory_space<vmem>>, %arg2: memref<8x2048xf32, #tpu.memory_space<vmem>>, %arg3: memref<2048x1024xbf16, #tpu.memory_space<vmem>>, %arg4: memref<1x1024xf32, #tpu.memory_space<vmem>>, %arg5: memref<1024x256xbf16, #tpu.memory_space<vmem>>, %arg6: memref<1x256xf32, #tpu.memory_space<vmem>>, %arg7: memref<1x256xf32, #tpu.memory_space<vmem>>, %arg8: memref<1x1xf32, #tpu.memory_space<vmem>>, %arg9: memref<8x1xf32, #tpu.memory_space<vmem>>, %arg10: memref<8x2048xf32, #tpu.memory_space<vmem>>, %arg11: memref<8x2048xbf16, #tpu.memory_space<vmem>>, %arg12: memref<8x256xf32, #tpu.memory_space<vmem>>) attributes {dimension_semantics = [#tpu.dimension_semantics<arbitrary>], iteration_bounds = array<i64: 1>, scalar_prefetch = 0 : i64, scratch_operands = 3 : i64, tpu.core_type = #tpu.core_type<tc>, window_params = [{pipeline_mode = #tpu.pipeline_mode<synchronous>, transform_indices = @transform_0, window_bounds = array<i64: 8, 2048>}, {pipeline_mode = #tpu.pipeline_mode<synchronous>, transform_indices = @transform_1, window_bounds = array<i64: 8, 2048>}, {transform_indices = @transform_2, window_bounds = array<i64: 2048, 1024>}, {transform_indices = @transform_3, window_bounds = array<i64: 1, 1024>}, {transform_indices = @transform_4, window_bounds = array<i64: 1024, 256>}, {pipeline_mode = #tpu.pipeline_mode<synchronous>, transform_indices = @transform_5, window_bounds = array<i64: 1, 256>}, {pipeline_mode = #tpu.pipeline_mode<synchronous>, transform_indices = @transform_6, window_bounds = array<i64: 1, 256>}, {pipeline_mode = #tpu.pipeline_mode<synchronous>, transform_indices = @transform_7, window_bounds = array<i64: 1, 1>}, {pipeline_mode = #tpu.pipeline_mode<synchronous>, transform_indices = @transform_8, window_bounds = array<i64: 8, 1>}]} {
    %c0_i32 = arith.constant 0 : i32
    %0 = arith.cmpi eq, %arg0, %c0_i32 : i32
    %1 = arith.extui %0 : i1 to i32
    %c0_i32_0 = arith.constant 0 : i32
    %2 = arith.cmpi ne, %1, %c0_i32_0 : i32
    scf.if %2 {
      %c0_16 = arith.constant 0 : index
      %c0_17 = arith.constant 0 : index
      %21 = vector.load %arg1[%c0_16, %c0_17] : memref<8x2048xf32, #tpu.memory_space<vmem>>, vector<8x2048xf32>
      %22 = arith.mulf %21, %21 : vector<8x2048xf32>
      %cst_18 = arith.constant dense<0.000000e+00> : vector<8xf32>
      %23 = vector.multi_reduction <add>, %22, %cst_18 [1] : vector<8x2048xf32> to vector<8xf32>
      %24 = vector.shape_cast %23 : vector<8xf32> to vector<8x1xf32>
      %25 = math.sqrt %24 : vector<8x1xf32>
      %cst_19 = arith.constant 9.99999996E-13 : f32
      %26 = vector.broadcast %cst_19 : f32 to vector<8x1xf32>
      %27 = arith.maximumf %25, %26 : vector<8x1xf32>
      %28 = vector.broadcast %27 : vector<8x1xf32> to vector<8x2048xf32>
      %29 = arith.divf %21, %28 : vector<8x2048xf32>
      %c0_20 = arith.constant 0 : index
      %c0_21 = arith.constant 0 : index
      %30 = vector.load %arg10[%c0_20, %c0_21] : memref<8x2048xf32, #tpu.memory_space<vmem>>, vector<8x2048xf32>
      tpu.vector_store %arg10[%c0_20, %c0_21], %29 {strides = array<i32>} : memref<8x2048xf32, #tpu.memory_space<vmem>>, vector<8x2048xf32>,
      %c0_22 = arith.constant 0 : index
      %c0_23 = arith.constant 0 : index
      %31 = vector.load %arg2[%c0_22, %c0_23] : memref<8x2048xf32, #tpu.memory_space<vmem>>, vector<8x2048xf32>
      %32 = arith.mulf %31, %31 : vector<8x2048xf32>
      %cst_24 = arith.constant dense<0.000000e+00> : vector<8xf32>
      %33 = vector.multi_reduction <add>, %32, %cst_24 [1] : vector<8x2048xf32> to vector<8xf32>
      %34 = vector.shape_cast %33 : vector<8xf32> to vector<8x1xf32>
      %35 = math.sqrt %34 : vector<8x1xf32>
      %cst_25 = arith.constant 9.99999996E-13 : f32
      %36 = vector.broadcast %cst_25 : f32 to vector<8x1xf32>
      %37 = arith.maximumf %35, %36 : vector<8x1xf32>
      %38 = vector.broadcast %37 : vector<8x1xf32> to vector<8x2048xf32>
      %39 = arith.divf %31, %38 : vector<8x2048xf32>
      %c0_26 = arith.constant 0 : index
      %c0_27 = arith.constant 0 : index
      %40 = vector.load %arg10[%c0_26, %c0_27] : memref<8x2048xf32, #tpu.memory_space<vmem>>, vector<8x2048xf32>
      %41 = arith.subf %40, %39 : vector<8x2048xf32>
      %42 = arith.truncf %41 : vector<8x2048xf32> to vector<8x2048xbf16>
      %c0_28 = arith.constant 0 : index
      %c0_29 = arith.constant 0 : index
      %43 = vector.load %arg11[%c0_28, %c0_29] : memref<8x2048xbf16, #tpu.memory_space<vmem>>, vector<8x2048xbf16>
      tpu.vector_store %arg11[%c0_28, %c0_29], %42 {strides = array<i32>} : memref<8x2048xbf16, #tpu.memory_space<vmem>>, vector<8x2048xbf16>,
      %cst_30 = arith.constant 0.000000e+00 : f32
      %44 = vector.broadcast %cst_30 : f32 to vector<8x256xf32>
      %c0_31 = arith.constant 0 : index
      %c0_32 = arith.constant 0 : index
      %45 = vector.load %arg12[%c0_31, %c0_32] : memref<8x256xf32, #tpu.memory_space<vmem>>, vector<8x256xf32>
      tpu.vector_store %arg12[%c0_31, %c0_32], %44 {strides = array<i32>} : memref<8x256xf32, #tpu.memory_space<vmem>>, vector<8x256xf32>,
    } else {
    }
    %c0 = arith.constant 0 : index
    %c0_1 = arith.constant 0 : index
    %3 = vector.load %arg11[%c0, %c0_1] : memref<8x2048xbf16, #tpu.memory_space<vmem>>, vector<8x2048xbf16>
    %c0_2 = arith.constant 0 : index
    %c0_3 = arith.constant 0 : index
    %4 = vector.load %arg3[%c0_2, %c0_3] : memref<2048x1024xbf16, #tpu.memory_space<vmem>>, vector<2048x1024xbf16>
    %cst = arith.constant dense<0.000000e+00> : vector<8x1024xf32>
    %5 = tpu.matmul %3, %4, %cst {dimension_numbers = #tpu.dot_dimension_numbers<[1], [0], [0], [1], [0, 0, 1, 1], [], []>} : vector<8x2048xbf16>, vector<2048x1024xbf16>, vector<8x1024xf32> -> vector<8x1024xf32>
    %c0_4 = arith.constant 0 : index
    %c0_5 = arith.constant 0 : index
    %6 = vector.load %arg4[%c0_4, %c0_5] : memref<1x1024xf32, #tpu.memory_space<vmem>>, vector<1x1024xf32>
    %7 = vector.broadcast %6 : vector<1x1024xf32> to vector<8x1024xf32>
    %8 = arith.addf %5, %7 : vector<8x1024xf32>
    %cst_6 = arith.constant 0.00999999977 : f32
    %9 = vector.broadcast %cst_6 : f32 to vector<8x1024xf32>
    %10 = arith.mulf %9, %8 : vector<8x1024xf32>
    %11 = arith.maximumf %8, %10 : vector<8x1024xf32>
    %12 = arith.truncf %11 : vector<8x1024xf32> to vector<8x1024xbf16>
    %c0_7 = arith.constant 0 : index
    %c0_8 = arith.constant 0 : index
    %13 = vector.load %arg12[%c0_7, %c0_8] : memref<8x256xf32, #tpu.memory_space<vmem>>, vector<8x256xf32>
    %c0_9 = arith.constant 0 : index
    %c0_10 = arith.constant 0 : index
    %14 = vector.load %arg5[%c0_9, %c0_10] : memref<1024x256xbf16, #tpu.memory_space<vmem>>, vector<1024x256xbf16>
    %cst_11 = arith.constant dense<0.000000e+00> : vector<8x256xf32>
    %15 = tpu.matmul %12, %14, %cst_11 {dimension_numbers = #tpu.dot_dimension_numbers<[1], [0], [0], [1], [0, 0, 1, 1], [], []>} : vector<8x1024xbf16>, vector<1024x256xbf16>, vector<8x256xf32> -> vector<8x256xf32>
    %16 = arith.addf %13, %15 : vector<8x256xf32>
    %c0_12 = arith.constant 0 : index
    %c0_13 = arith.constant 0 : index
    %17 = vector.load %arg12[%c0_12, %c0_13] : memref<8x256xf32, #tpu.memory_space<vmem>>, vector<8x256xf32>
    tpu.vector_store %arg12[%c0_12, %c0_13], %16 {strides = array<i32>} : memref<8x256xf32, #tpu.memory_space<vmem>>, vector<8x256xf32>,
    %c0_i32_14 = arith.constant 0 : i32
    %18 = arith.cmpi eq, %arg0, %c0_i32_14 : i32
    %19 = arith.extui %18 : i1 to i32
    %c0_i32_15 = arith.constant 0 : i32
    %20 = arith.cmpi ne, %19, %c0_i32_15 : i32
    scf.if %20 {
      %c0_16 = arith.constant 0 : index
      %c0_17 = arith.constant 0 : index
      %21 = vector.load %arg12[%c0_16, %c0_17] : memref<8x256xf32, #tpu.memory_space<vmem>>, vector<8x256xf32>
      %c0_18 = arith.constant 0 : index
      %c0_19 = arith.constant 0 : index
      %22 = vector.load %arg6[%c0_18, %c0_19] : memref<1x256xf32, #tpu.memory_space<vmem>>, vector<1x256xf32>
      %23 = vector.broadcast %22 : vector<1x256xf32> to vector<8x256xf32>
      %24 = arith.addf %21, %23 : vector<8x256xf32>
      %cst_20 = arith.constant 0.00999999977 : f32
      %25 = vector.broadcast %cst_20 : f32 to vector<8x256xf32>
      %26 = arith.mulf %25, %24 : vector<8x256xf32>
      %27 = arith.maximumf %24, %26 : vector<8x256xf32>
      %c0_21 = arith.constant 0 : index
      %c0_22 = arith.constant 0 : index
      %28 = vector.load %arg7[%c0_21, %c0_22] : memref<1x256xf32, #tpu.memory_space<vmem>>, vector<1x256xf32>
      %29 = vector.broadcast %28 : vector<1x256xf32> to vector<8x256xf32>
      %30 = arith.mulf %27, %29 : vector<8x256xf32>
      %cst_23 = arith.constant dense<0.000000e+00> : vector<8xf32>
      %31 = vector.multi_reduction <add>, %30, %cst_23 [1] : vector<8x256xf32> to vector<8xf32>
      %32 = vector.shape_cast %31 : vector<8xf32> to vector<8x1xf32>
      %c0_24 = arith.constant 0 : index
      %c0_25 = arith.constant 0 : index
      %33 = vector.load %arg8[%c0_24, %c0_25] : memref<1x1xf32, #tpu.memory_space<vmem>>, vector<1x1xf32>
      %34 = vector.broadcast %33 : vector<1x1xf32> to vector<8x1xf32>
      %35 = arith.addf %32, %34 : vector<8x1xf32>
      %cst_26 = arith.constant 0.00999999977 : f32
      %36 = vector.broadcast %cst_26 : f32 to vector<8x1xf32>
      %37 = arith.mulf %36, %35 : vector<8x1xf32>
      %38 = arith.maximumf %35, %37 : vector<8x1xf32>
      %39 = arith.negf %38 : vector<8x1xf32>
      %40 = math.exp %39 : vector<8x1xf32>
      %cst_27 = arith.constant 1.000000e+00 : f32
      %41 = vector.broadcast %cst_27 : f32 to vector<8x1xf32>
      %42 = arith.addf %41, %40 : vector<8x1xf32>
      %43 = arith.divf %41, %42 : vector<8x1xf32>
      %c0_28 = arith.constant 0 : index
      %c0_29 = arith.constant 0 : index
      %44 = vector.load %arg9[%c0_28, %c0_29] : memref<8x1xf32, #tpu.memory_space<vmem>>, vector<8x1xf32>
      tpu.vector_store %arg9[%c0_28, %c0_29], %43 {strides = array<i32>} : memref<8x1xf32, #tpu.memory_space<vmem>>, vector<8x1xf32>,
    } else {
    }
    return
  }
  func.func @transform_0(%arg0: i32) -> (i32, i32) {
    %c0_i32 = arith.constant 0 : i32
    %c0_i32_0 = arith.constant 0 : i32
    %c0_i32_1 = arith.constant 0 : i32
    return %c0_i32, %c0_i32_0 : i32, i32
  }
  func.func @transform_1(%arg0: i32) -> (i32, i32) {
    %c0_i32 = arith.constant 0 : i32
    %c0_i32_0 = arith.constant 0 : i32
    %c0_i32_1 = arith.constant 0 : i32
    return %c0_i32, %c0_i32_0 : i32, i32
  }
  func.func @transform_2(%arg0: i32) -> (i32, i32) {
    %c0_i32 = arith.constant 0 : i32
    %c0_i32_0 = arith.constant 0 : i32
    return %c0_i32, %arg0 : i32, i32
  }
  func.func @transform_3(%arg0: i32) -> (i32, i32) {
    %c0_i32 = arith.constant 0 : i32
    %c0_i32_0 = arith.constant 0 : i32
    return %c0_i32, %arg0 : i32, i32
  }
  func.func @transform_4(%arg0: i32) -> (i32, i32) {
    %c0_i32 = arith.constant 0 : i32
    %c0_i32_0 = arith.constant 0 : i32
    return %arg0, %c0_i32 : i32, i32
  }
  func.func @transform_5(%arg0: i32) -> (i32, i32) {
    %c0_i32 = arith.constant 0 : i32
    %c0_i32_0 = arith.constant 0 : i32
    %c0_i32_1 = arith.constant 0 : i32
    return %c0_i32, %c0_i32_0 : i32, i32
  }
  func.func @transform_6(%arg0: i32) -> (i32, i32) {
    %c0_i32 = arith.constant 0 : i32
    %c0_i32_0 = arith.constant 0 : i32
    %c0_i32_1 = arith.constant 0 : i32
    return %c0_i32, %c0_i32_0 : i32, i32
  }
  func.func @transform_7(%arg0: i32) -> (i32, i32) {
    %c0_i32 = arith.constant 0 : i32
    %c0_i32_0 = arith.constant 0 : i32
    %c0_i32_1 = arith.constant 0 : i32
    return %c0_i32, %c0_i32_0 : i32, i32
  }
  func.func @transform_8(%arg0: i32) -> (i32, i32) {
    %c0_i32 = arith.constant 0 : i32
    %c0_i32_0 = arith.constant 0 : i32
    %c0_i32_1 = arith.constant 0 : i32
    return %c0_i32, %c0_i32_0 : i32, i32
  }
}

</mosaic_0001>

<bundles_post_ra>
// kernel: tpu_custom_call.1
= control target key start
LH: loop header
LB: loop body
LE: loop exit
PB: predicated region body
PF: predicated region fallthrough
CT: control target
= control target key end

     0   :  { %s15918_s0 = inlined_call_operand.hbm [shape: f32[8,2048], index: 0, kind: input, shape index: {}]   ;;  %s15919_s1 = inlined_call_operand.hbm [shape: f32[8,2048], index: 1, kind: input, shape index: {}]   ;;  %s15920_s2 = inlined_call_operand.hbm [shape: bf16[2048,1024], index: 2, kind: input, shape index: {}]   ;;  %s15921_s3 = inlined_call_operand.hbm [shape: f32[1,1024], index: 3, kind: input, shape index: {}]   ;;  %s15922_s4 = inlined_call_operand.hbm [shape: bf16[1024,256], index: 4, kind: input, shape index: {}]   ;;  %s15923_s5 = inlined_call_operand.hbm [shape: f32[1,256], index: 5, kind: input, shape index: {}]   ;;  %s15924_s6 = inlined_call_operand.hbm [shape: f32[1,256], index: 6, kind: input, shape index: {}]   ;;  %s15925_s7 = inlined_call_operand.<no memory space> [shape: f32[1,1], index: 7, kind: input, shape index: {}]   ;;  %s15926_s8 = inlined_call_operand.vmem [shape: f32[8,1], index: 8, kind: output, shape index: {}]  }
   0x1   :  { %v13_v0 = vstv %s15925_s7 }
   0x2   :  { %14 = vst [vmem:[#allocation5] sm:$0x1] %v13_v0 }
   0x3   :  { %15 = vsyncpa [#allocation7], 0 }
   0x4   :  { %16 = vsyncpa [#allocation9], 0 }
   0x5   :  { %17 = vsyncpa [#allocation12], 0  ;;  %s35_s9 = sshll.u32 %s15919_s1, 4  ;;  %s36_s9 = int_to_ptr.hbm [resolvable:$true] %s35_s9 }
   0x6   :  { %18 = vsyncpa [#allocation15], 0  ;;  %s15316_s10 = smov [#allocation8]   ;;  %s59_s14 = sshll.u32 %s15921_s3, 4  ;;  %s60_s14 = int_to_ptr.hbm [resolvable:$true] %s59_s14 }
   0x7   :  { %s37_s11 = sshll.u32 %s15316_s10, 4  ;;  %s15317_s7 = smov [#allocation11]   ;;  %s38_s11 = int_to_ptr.vmem [resolvable:$true] %s37_s11 }
   0x8   :  { %40 = dma.hbm_to_vmem [thread:$0]  %s36_s9, 2048, %s38_s11, [#allocation9]  }
   0x9   :  { %s61_s15 = sshll.u32 %s15317_s7, 4  ;;  %s83_s18 = sshll.u32 %s15923_s5, 4  ;;  %s62_s15 = int_to_ptr.vmem [resolvable:$true] %s61_s15  ;;  %s84_s18 = int_to_ptr.hbm [resolvable:$true] %s83_s18 }
   0xa   :  { %64 = dma.hbm_to_vmem [thread:$0]  %s60_s14, 128, %s62_s15, [#allocation12]  }
   0xb   :  { %s24_s20 = sshll.u32 %s15918_s0, 4  ;;  %s15318_s21 = smov [#allocation14]   ;;  %s25_s20 = int_to_ptr.hbm [resolvable:$true] %s24_s20 }
   0xc   :  { %s85_s22 = sshll.u32 %s15318_s21, 4  ;;  %s15319_s3 = smov [#allocation6]   ;;  %s86_s22 = int_to_ptr.vmem [resolvable:$true] %s85_s22 }
   0xd   :  { %88 = dma.hbm_to_vmem [thread:$0]  %s84_s18, 32, %s86_s22, [#allocation15]  }
   0xe   :  { %s26_s23 = sshll.u32 %s15319_s3, 4  ;;  %s45_s26 = sshll.u32 %s15920_s2, 4  ;;  %s27_s23 = int_to_ptr.vmem [resolvable:$true] %s26_s23  ;;  %s46_s26 = int_to_ptr.hbm [resolvable:$true] %s45_s26 }
   0xf   :  { %29 = dma.hbm_to_vmem [thread:$0]  %s25_s20, 2048, %s27_s23, [#allocation7]  }
  0x10   :  { %s15320_s5 = smov [#allocation10]   ;;  %s69_s0 = sshll.u32 %s15922_s4, 4  ;;  %s70_s0 = int_to_ptr.hbm [resolvable:$true] %s69_s0 }
  0x11   :  { %s47_s27 = sshll.u32 %s15320_s5, 4  ;;  %s15321_s30 = smov 512   ;;  %s48_s27 = int_to_ptr.vmem [resolvable:$true] %s47_s27 }
  0x12   :  { %s15322_s9 = smov 32   ;;  %s15323_s10 = smov [#allocation13]  }
  0x13   :  { %53 = dma.hbm_to_vmem [thread:$0]  %s46_s26, 131072, %s48_s27, [#allocation9], %s15321_s30, %s15321_s30, %s15322_s9  }
  0x14   :  { %s71_s11 = sshll.u32 %s15323_s10, 4  ;;  %s15324_s12 = smov 128   ;;  %s72_s11 = int_to_ptr.vmem [resolvable:$true] %s71_s11 }
  0x15   :  { %s15325_s13 = smov 8   ;;  %s94_s7 = sshll.u32 %s15924_s6, 4  ;;  %s95_s7 = int_to_ptr.hbm [resolvable:$true] %s94_s7 }
  0x16   :  { %77 = dma.hbm_to_vmem [thread:$0]  %s70_s0, 16384, %s72_s11, [#allocation12], %s15324_s12, %s15324_s12, %s15325_s13  }
  0x17   :  { %s15326_s15 = smov [#allocation16]  }
  0x18   :  { %s96_s16 = sshll.u32 %s15326_s15, 4  ;;  %s97_s16 = int_to_ptr.vmem [resolvable:$true] %s96_s16 }
  0x19   :  { %99 = dma.hbm_to_vmem [thread:$0]  %s95_s7, 32, %s97_s16, [#allocation15]  }
  0x1a   :  { %15308 = dma.done.wait [#allocation7], 2048  }
  0x1b   :  { %15309 = vsyncadd [#allocation7], 4294965248 }
  0x1c   :  { %15310 = dma.done.wait [#allocation9], 133120  }
  0x1d   :  { %15311 = vsyncadd [#allocation9], 4294834176 }
  0x1e   :  { %15312 = dma.done.wait [#allocation12], 16512  }
  0x1f   :  { %15313 = vsyncadd [#allocation12], 4294950784 }
  0x20   :  { %15314 = dma.done.wait [#allocation15], 64  }
  0x21   :  { %15315 = vsyncadd [#allocation15], 4294967232  ;;  %v15396_v1 = vld [vmem:[#allocation6] sm:$0xff]  ;;  %v15398_v2 = vld [vmem:[#allocation6 + $0x8] sm:$0xff]  ;;  %vm9334_vm14 = vcmask 7168  }
  0x22   :  { %v15400_v3 = vld [vmem:[#allocation6 + $0x10] sm:$0xff]  ;;  %v15402_v4 = vld [vmem:[#allocation6 + $0x18] sm:$0xff]  ;;  %v150_v5 = vmul.f32 %v15396_v1, %v15396_v1  ;;  %v151_v6 = vmul.f32 %v15398_v2, %v15398_v2  ;;  %v15410_v8 = vld [vmem:[#allocation6 + $0x20] sm:$0xff] }
  0x23   :  { %v152_v7 = vmul.f32 %v15400_v3, %v15400_v3  ;;  %v153_v9 = vmul.f32 %v15402_v4, %v15402_v4  ;;  %v15414_v11 = vld [vmem:[#allocation6 + $0x28] sm:$0xff]  ;;  %v154_v12 = vmul.f32 %v15410_v8, %v15410_v8  ;;  %v15418_v14 = vld [vmem:[#allocation8] sm:$0xff]  ;;  %v15422_v16 = vld [vmem:[#allocation6 + $0x30] sm:$0xff] }
  0x24   :  { %v166_v10 = vadd.f32 %v151_v6, %v150_v5  ;;  %v15420_v15 = vld [vmem:[#allocation8 + $0x8] sm:$0xff]  ;;  %v15424_v17 = vld [vmem:[#allocation8 + $0x10] sm:$0xff]  ;;  %v15426_v18 = vld [vmem:[#allocation8 + $0x18] sm:$0xff]  ;;  %v258_v19 = vmul.f32 %v15418_v14, %v15418_v14  ;;  %v155_v21 = vmul.f32 %v15414_v11, %v15414_v11  ;;  %v156_v28 = vmul.f32 %v15422_v16, %v15422_v16 }
  0x25   :  { %v259_v20 = vmul.f32 %v15420_v15, %v15420_v15  ;;  %v15434_v23 = vld [vmem:[#allocation8 + $0x20] sm:$0xff]  ;;  %v260_v24 = vmul.f32 %v15424_v17, %v15424_v17  ;;  %v15438_v25 = vld [vmem:[#allocation6 + $0x38] sm:$0xff]  ;;  %v261_v26 = vmul.f32 %v15426_v18, %v15426_v18  ;;  %v15444_v30 = vld [vmem:[#allocation8 + $0x28] sm:$0xff] }
  0x26   :  { %v167_v13 = vadd.f32 %v166_v10, %v152_v7  ;;  %v142_v31 = vld [vmem:[#allocation6 + $0x40] sm:$0xff]  ;;  %v262_v32 = vmul.f32 %v15434_v23, %v15434_v23  ;;  %v157_v34 = vmul.f32 %v15438_v25, %v15438_v25  ;;  %v15450_v36 = vld [vmem:[#allocation8 + $0x30] sm:$0xff]  ;;  %v143_v37 = vld [vmem:[#allocation6 + $0x48] sm:$0xff]  ;;  %v263_v38 = vmul.f32 %v15444_v30, %v15444_v30 }
  0x27   :  { %v274_v27 = vadd.f32 %v259_v20, %v258_v19  ;;  %v158_v40 = vmul.f32 %v142_v31, %v142_v31  ;;  %v15454_v42 = vld [vmem:[#allocation8 + $0x38] sm:$0xff]  ;;  %v144_v43 = vld [vmem:[#allocation6 + $0x50] sm:$0xff]  ;;  %v264_v44 = vmul.f32 %v15450_v36, %v15450_v36  ;;  %v159_v46 = vmul.f32 %v143_v37, %v143_v37  ;;  %v250_v48 = vld [vmem:[#allocation8 + $0x40] sm:$0xff] }
  0x28   :  { %v168_v22 = vadd.f32 %v167_v13, %v153_v9  ;;  %v145_v49 = vld [vmem:[#allocation6 + $0x58] sm:$0xff]  ;;  %v265_v50 = vmul.f32 %v15454_v42, %v15454_v42  ;;  %v160_v52 = vmul.f32 %v144_v43, %v144_v43  ;;  %v15460_v54 = vld [vmem:[#allocation8 + $0x48] sm:$0xff]  ;;  %v15462_v55 = vld [vmem:[#allocation6 + $0x60] sm:$0xff]  ;;  %v266_v56 = vmul.f32 %v250_v48, %v250_v48 }
  0x29   :  { %v275_v33 = vadd.f32 %v274_v27, %v260_v24  ;;  %v161_v58 = vmul.f32 %v145_v49, %v145_v49  ;;  %v15464_v60 = vld [vmem:[#allocation8 + $0x50] sm:$0xff]  ;;  %v15466_v61 = vld [vmem:[#allocation6 + $0x68] sm:$0xff]  ;;  %v267_v62 = vmul.f32 %v15460_v54, %v15460_v54  ;;  %v162_v0 = vmul.f32 %v15462_v55, %v15462_v55  ;;  %v15472_v6 = vld [vmem:[#allocation8 + $0x58] sm:$0xff] }
  0x2a   :  { %v169_v29 = vadd.f32 %v168_v22, %v154_v12  ;;  %v15474_v7 = vld [vmem:[#allocation6 + $0x70] sm:$0xff]  ;;  %v268_v9 = vmul.f32 %v15464_v60, %v15464_v60  ;;  %v163_v12 = vmul.f32 %v15466_v61, %v15466_v61  ;;  %v15480_v19 = vld [vmem:[#allocation8 + $0x60] sm:$0xff]  ;;  %v15482_v20 = vld [vmem:[#allocation6 + $0x78] sm:$0xff] }
  0x2b   :  { %v276_v39 = vadd.f32 %v275_v33, %v261_v26  ;;  %v164_v24 = vmul.f32 %v15474_v7, %v15474_v7  ;;  %v15488_v27 = vld [vmem:[#allocation8 + $0x68] sm:$0xff]  ;;  %v165_v31 = vmul.f32 %v15482_v20, %v15482_v20  ;;  %v15494_v33 = vld [vmem:[#allocation8 + $0x70] sm:$0xff]  ;;  %v14013_v48 = vld [vmem:[#allocation10 + $0x1dc] sm:$0xf0] }
  0x2c   :  { %v170_v35 = vadd.f32 %v169_v29, %v155_v21  ;;  %v269_v21 = vmul.f32 %v15472_v6, %v15472_v6  ;;  %v9826_v49 = vld [vmem:[#allocation10 + $0x3c0] sm:$0xf] }
  0x2d   :  { %v277_v45 = vadd.f32 %v276_v39, %v262_v32  ;;  %v272_v39 = vmul.f32 %v15494_v33, %v15494_v33 }
  0x2e   :  { %v171_v41 = vadd.f32 %v170_v35, %v156_v28  ;;  %v270_v28 = vmul.f32 %v15480_v19, %v15480_v19 }
  0x2f   :  { %v278_v51 = vadd.f32 %v277_v45, %v263_v38  ;;  %v15498_v38 = vld [vmem:[#allocation8 + $0x78] sm:$0xff] }
  0x30   :  { %v172_v47 = vadd.f32 %v171_v41, %v157_v34  ;;  %v271_v34 = vmul.f32 %v15488_v27, %v15488_v27 }
  0x31   :  { %v279_v57 = vadd.f32 %v278_v51, %v264_v44  ;;  %v273_v44 = vmul.f32 %v15498_v38, %v15498_v38  ;;  %v14077_v51 = vld [vmem:[#allocation10 + $0x3dc] sm:$0xf0] }
  0x32   :  { %v173_v53 = vadd.f32 %v172_v47, %v158_v40  ;;  %v9570_v47 = vld [vmem:[#allocation10 + $0x1c0] sm:$0xf] }
  0x33   :  { %v280_v63 = vadd.f32 %v279_v57, %v265_v50  ;;  %v9571_v50 = vor.u32 %v14013_v48, %v9570_v47  ;;  %v13989_v47 = vld [vmem:[#allocation10 + $0x11c] sm:$0xf0] }
  0x34   :  { %v174_v59 = vadd.f32 %v173_v53, %v159_v46  ;;  %v14141_v53 = vld [vmem:[#allocation10 + $0x5dc] sm:$0xf0] }
  0x35   :  { %v281_v10 = vadd.f32 %v280_v63, %v266_v56  ;;  %v9827_v56 = vor.u32 %v14077_v51, %v9826_v49  ;;  %6610 = vmatpush.bf16.msra.mxu0 %v9571_v50  ;;  %v9538_v63 = vld [vmem:[#allocation10 + $0x180] sm:$0xf] }
  0x36   :  { %v175_v5 = vadd.f32 %v174_v59, %v160_v52  ;;  %v10082_v52 = vld [vmem:[#allocation10 + $0x5c0] sm:$0xf] }
  0x37   :  { %v282_v22 = vadd.f32 %v281_v10, %v267_v62  ;;  %v10083_v57 = vor.u32 %v14141_v53, %v10082_v52  ;;  %v14205_v59 = vld [vmem:[#allocation10 + $0x7dc] sm:$0xf0]  ;;  %6623 = vmatpush.bf16.msra.mxu1 %v9827_v56 }
  0x38   :  { %v176_v13 = vadd.f32 %v175_v5, %v161_v58  ;;  %v10338_v58 = vld [vmem:[#allocation10 + $0x7c0] sm:$0xf] }
  0x39   :  { %v283_v29 = vadd.f32 %v282_v22, %v268_v9  ;;  %v10339_v62 = vor.u32 %v14205_v59, %v10338_v58  ;;  %6636 = vmatpush.bf16.msra.mxu2 %v10083_v57  ;;  %v9794_v5 = vld [vmem:[#allocation10 + $0x380] sm:$0xf] }
  0x3a   :  { %v177_v26 = vadd.f32 %v176_v13, %v162_v0  ;;  %v14005_v0 = vld [vmem:[#allocation10 + $0x19c] sm:$0xf0] }
  0x3b   :  { %v284_v35 = vadd.f32 %v283_v29, %v269_v21  ;;  %6649 = vmatpush.bf16.msra.mxu3 %v10339_v62  ;;  %v9539_v9 = vor.u32 %v14005_v0, %v9538_v63  ;;  %v14069_v10 = vld [vmem:[#allocation10 + $0x39c] sm:$0xf0] }
  0x3c   :  { %v178_v32 = vadd.f32 %v177_v26, %v163_v12  ;;  %v10050_v12 = vld [vmem:[#allocation10 + $0x580] sm:$0xf]  ;;  %v9795_v21 = vor.u32 %v14069_v10, %v9794_v5 }
  0x3d   :  { %v285_v40 = vadd.f32 %v284_v35, %v270_v28  ;;  %v14133_v13 = vld [vmem:[#allocation10 + $0x59c] sm:$0xf0]  ;;  %6611 = vmatpush.bf16.msra.mxu0 %v9539_v9 }
  0x3e   :  { %v179_v37 = vadd.f32 %v178_v32, %v164_v24  ;;  %v10051_v22 = vor.u32 %v14133_v13, %v10050_v12  ;;  %v10306_v24 = vld [vmem:[#allocation10 + $0x780] sm:$0xf]  ;;  %6624 = vmatpush.bf16.msra.mxu1 %v9795_v21 }
  0x3f   :  { %v286_v43 = vadd.f32 %v285_v40, %v271_v34  ;;  %v14197_v26 = vld [vmem:[#allocation10 + $0x79c] sm:$0xf0] }
  0x40   :  { %v180_v41 = vadd.f32 %v179_v37, %v165_v31  ;;  %v10307_v28 = vor.u32 %v14197_v26, %v10306_v24  ;;  %6637 = vmatpush.bf16.msra.mxu2 %v10051_v22  ;;  %v9506_v29 = vld [vmem:[#allocation10 + $0x140] sm:$0xf] }
  0x41   :  { %v287_v45 = vadd.f32 %v286_v43, %v272_v39  ;;  %v13997_v31 = vld [vmem:[#allocation10 + $0x15c] sm:$0xf0] }
  0x42   :  { %181 = vadd.xlane.f32.xlu0 %v180_v41  ;;  %6650 = vmatpush.bf16.msra.mxu3 %v10307_v28  ;;  %v9762_v32 = vld [vmem:[#allocation10 + $0x340] sm:$0xf]  ;;  %v9507_v34 = vor.u32 %v13997_v31, %v9506_v29 }
  0x43   :  { %v288_v46 = vadd.f32 %v287_v45, %v273_v44  ;;  %v14061_v35 = vld [vmem:[#allocation10 + $0x35c] sm:$0xf0] }
  0x44   :  { %v10018_v37 = vld [vmem:[#allocation10 + $0x540] sm:$0xf]  ;;  %v9763_v40 = vor.u32 %v14061_v35, %v9762_v32  ;;  %6612 = vmatpush.bf16.msra.mxu0 %v9507_v34 }
  0x45   :  { %v14125_v39 = vld [vmem:[#allocation10 + $0x55c] sm:$0xf0] }
  0x46   :  { %v10019_v41 = vor.u32 %v14125_v39, %v10018_v37  ;;  %v10274_v43 = vld [vmem:[#allocation10 + $0x740] sm:$0xf]  ;;  %6625 = vmatpush.bf16.msra.mxu1 %v9763_v40 }
  0x47   :  { %v14189_v44 = vld [vmem:[#allocation10 + $0x75c] sm:$0xf0] }
  0x48   :  { %v10275_v45 = vor.u32 %v14189_v44, %v10274_v43  ;;  %6638 = vmatpush.bf16.msra.mxu2 %v10019_v41  ;;  %v9730_v48 = vld [vmem:[#allocation10 + $0x300] sm:$0xf] }
  0x49   :  { %v14053_v50 = vld [vmem:[#allocation10 + $0x31c] sm:$0xf0] }
  0x4a   :  { %289 = vadd.xlane.f32.xlu0 %v288_v46  ;;  %v9474_v46 = vld [vmem:[#allocation10 + $0x100] sm:$0xf]  ;;  %6651 = vmatpush.bf16.msra.mxu3 %v10275_v45  ;;  %v9731_v53 = vor.u32 %v14053_v50, %v9730_v48 }
  0x4b   :  { %v9475_v49 = vor.u32 %v13989_v47, %v9474_v46  ;;  %v9986_v51 = vld [vmem:[#allocation10 + $0x500] sm:$0xf] }
  0x4c   :  { %v14117_v52 = vld [vmem:[#allocation10 + $0x51c] sm:$0xf0]  ;;  %6626 = vmatpush.bf16.msra.mxu1 %v9731_v53 }
  0x4d   :  { %v9987_v56 = vor.u32 %v14117_v52, %v9986_v51  ;;  %v10242_v57 = vld [vmem:[#allocation10 + $0x700] sm:$0xf]  ;;  %6613 = vmatpush.bf16.msra.mxu0 %v9475_v49 }
  0x4e   :  { %v14181_v58 = vld [vmem:[#allocation10 + $0x71c] sm:$0xf0] }
  0x4f   :  { %v10243_v59 = vor.u32 %v14181_v58, %v10242_v57  ;;  %6639 = vmatpush.bf16.msra.mxu2 %v9987_v56  ;;  %v9442_v62 = vld [vmem:[#allocation10 + $0xc0] sm:$0xf] }
  0x50   :  { %v13981_v63 = vld [vmem:[#allocation10 + $0xdc] sm:$0xf0] }
  0x51   :  { %v9698_v0 = vld [vmem:[#allocation10 + $0x2c0] sm:$0xf]  ;;  %6652 = vmatpush.bf16.msra.mxu3 %v10243_v59  ;;  %v9443_v5 = vor.u32 %v13981_v63, %v9442_v62 }
  0x52   :  { %v14045_v9 = vld [vmem:[#allocation10 + $0x2dc] sm:$0xf0] }
  0x53   :  { %v9954_v10 = vld [vmem:[#allocation10 + $0x4c0] sm:$0xf]  ;;  %v9699_v13 = vor.u32 %v14045_v9, %v9698_v0  ;;  %6614 = vmatpush.bf16.msra.mxu0 %v9443_v5 }
  0x54   :  { %v14109_v12 = vld [vmem:[#allocation10 + $0x4dc] sm:$0xf0] }
  0x55   :  { %v9955_v21 = vor.u32 %v14109_v12, %v9954_v10  ;;  %v10210_v22 = vld [vmem:[#allocation10 + $0x6c0] sm:$0xf]  ;;  %6627 = vmatpush.bf16.msra.mxu1 %v9699_v13 }
  0x56   :  { %v14173_v24 = vld [vmem:[#allocation10 + $0x6dc] sm:$0xf0] }
  0x57   :  { %v10211_v26 = vor.u32 %v14173_v24, %v10210_v22  ;;  %6640 = vmatpush.bf16.msra.mxu2 %v9955_v21  ;;  %v9410_v28 = vld [vmem:[#allocation10 + $0x80] sm:$0xf] }
  0x58   :  { %v13973_v29 = vld [vmem:[#allocation10 + $0x9c] sm:$0xf0] }
  0x59   :  { %v9666_v31 = vld [vmem:[#allocation10 + $0x280] sm:$0xf]  ;;  %6653 = vmatpush.bf16.msra.mxu3 %v10211_v26  ;;  %v9411_v32 = vor.u32 %v13973_v29, %v9410_v28 }
  0x5a   :  { %v14037_v34 = vld [vmem:[#allocation10 + $0x29c] sm:$0xf0] }
  0x5b   :  { %v9922_v35 = vld [vmem:[#allocation10 + $0x480] sm:$0xf]  ;;  %v9667_v39 = vor.u32 %v14037_v34, %v9666_v31  ;;  %6615 = vmatpush.bf16.msra.mxu0 %v9411_v32 }
  0x5c   :  { %v14101_v37 = vld [vmem:[#allocation10 + $0x49c] sm:$0xf0] }
  0x5d   :  { %v9923_v40 = vor.u32 %v14101_v37, %v9922_v35  ;;  %v10178_v41 = vld [vmem:[#allocation10 + $0x680] sm:$0xf]  ;;  %6628 = vmatpush.bf16.msra.mxu1 %v9667_v39 }
  0x5e   :  { %v14165_v43 = vld [vmem:[#allocation10 + $0x69c] sm:$0xf0] }
  0x5f   :  { %v10179_v44 = vor.u32 %v14165_v43, %v10178_v41  ;;  %6641 = vmatpush.bf16.msra.mxu2 %v9923_v40  ;;  %v9378_v45 = vld [vmem:[#allocation10 + $0x40] sm:$0xf] }
  0x60   :  { %v13965_v46 = vld [vmem:[#allocation10 + $0x5c] sm:$0xf0] }
  0x61   :  { %v9634_v47 = vld [vmem:[#allocation10 + $0x240] sm:$0xf]  ;;  %6654 = vmatpush.bf16.msra.mxu3 %v10179_v44  ;;  %v9379_v48 = vor.u32 %v13965_v46, %v9378_v45 }
  0x62   :  { %v14029_v49 = vld [vmem:[#allocation10 + $0x25c] sm:$0xf0] }
  0x63   :  { %v9890_v50 = vld [vmem:[#allocation10 + $0x440] sm:$0xf]  ;;  %v9635_v52 = vor.u32 %v14029_v49, %v9634_v47  ;;  %6616 = vmatpush.bf16.msra.mxu0 %v9379_v48 }
  0x64   :  { %v14093_v51 = vld [vmem:[#allocation10 + $0x45c] sm:$0xf0] }
  0x65   :  { %v9891_v53 = vor.u32 %v14093_v51, %v9890_v50  ;;  %v10146_v56 = vld [vmem:[#allocation10 + $0x640] sm:$0xf]  ;;  %6629 = vmatpush.bf16.msra.mxu1 %v9635_v52 }
  0x66   :  { %v14157_v57 = vld [vmem:[#allocation10 + $0x65c] sm:$0xf0] }
  0x67   :  { %v10147_v58 = vor.u32 %v14157_v57, %v10146_v56  ;;  %6642 = vmatpush.bf16.msra.mxu2 %v9891_v53  ;;  %v9346_v59 = vld [vmem:[#allocation10] sm:$0xf] }
  0x68   :  { %v13957_v62 = vld [vmem:[#allocation10 + $0x1c] sm:$0xf0] }
  0x69   :  { %v9602_v63 = vld [vmem:[#allocation10 + $0x200] sm:$0xf]  ;;  %6655 = vmatpush.bf16.msra.mxu3 %v10147_v58  ;;  %v9347_v0 = vor.u32 %v13957_v62, %v9346_v59 }
  0x6a   :  { %v14021_v5 = vld [vmem:[#allocation10 + $0x21c] sm:$0xf0] }
  0x6b   :  { %v9858_v9 = vld [vmem:[#allocation10 + $0x400] sm:$0xf]  ;;  %v9603_v12 = vor.u32 %v14021_v5, %v9602_v63  ;;  %6617 = vmatpush.bf16.msra.mxu0 %v9347_v0 }
  0x6c   :  { %v14085_v10 = vld [vmem:[#allocation10 + $0x41c] sm:$0xf0] }
  0x6d   :  { %v9859_v13 = vor.u32 %v14085_v10, %v9858_v9  ;;  %v10114_v21 = vld [vmem:[#allocation10 + $0x600] sm:$0xf]  ;;  %6630 = vmatpush.bf16.msra.mxu1 %v9603_v12 }
  0x6e   :  { %v14149_v22 = vld [vmem:[#allocation10 + $0x61c] sm:$0xf0] }
  0x6f   :  { %v10594_v24 = vld [vmem:[#allocation10 + $0x9c0] sm:$0xf]  ;;  %v10115_v26 = vor.u32 %v14149_v22, %v10114_v21  ;;  %6643 = vmatpush.bf16.msra.mxu2 %v9859_v13 }
  0x70   :  { %v14269_v28 = vld [vmem:[#allocation10 + $0x9dc] sm:$0xf0] }
  0x71   :  { %v10850_v29 = vld [vmem:[#allocation10 + $0xbc0] sm:$0xf]  ;;  %v10595_v34 = vor.u32 %v14269_v28, %v10594_v24  ;;  %6656 = vmatpush.bf16.msra.mxu3 %v10115_v26 }
  0x72   :  { %v14333_v31 = vld [vmem:[#allocation10 + $0xbdc] sm:$0xf0] }
  0x73   :  { %v10851_v35 = vor.u32 %v14333_v31, %v10850_v29  ;;  %v11106_v37 = vld [vmem:[#allocation10 + $0xdc0] sm:$0xf]  ;;  %6662 = vmatpush.bf16.msrb.mxu0 %v10595_v34 }
  0x74   :  { %v14397_v39 = vld [vmem:[#allocation10 + $0xddc] sm:$0xf0] }
  0x75   :  { %v11362_v40 = vld [vmem:[#allocation10 + $0xfc0] sm:$0xf]  ;;  %6675 = vmatpush.bf16.msrb.mxu1 %v10851_v35  ;;  %v11107_v43 = vor.u32 %v14397_v39, %v11106_v37 }
  0x76   :  { %v14461_v41 = vld [vmem:[#allocation10 + $0xfdc] sm:$0xf0] }
  0x77   :  { %v11363_v44 = vor.u32 %v14461_v41, %v11362_v40  ;;  %v10562_v45 = vld [vmem:[#allocation10 + $0x980] sm:$0xf]  ;;  %6688 = vmatpush.bf16.msrb.mxu2 %v11107_v43 }
  0x78   :  { %v14261_v46 = vld [vmem:[#allocation10 + $0x99c] sm:$0xf0] }
  0x79   :  { %v10818_v47 = vld [vmem:[#allocation10 + $0xb80] sm:$0xf]  ;;  %v10563_v48 = vor.u32 %v14261_v46, %v10562_v45  ;;  %6701 = vmatpush.bf16.msrb.mxu3 %v11363_v44 }
  0x7a   :  { %v14325_v49 = vld [vmem:[#allocation10 + $0xb9c] sm:$0xf0] }
  0x7b   :  { %v11074_v50 = vld [vmem:[#allocation10 + $0xd80] sm:$0xf]  ;;  %v10819_v52 = vor.u32 %v14325_v49, %v10818_v47  ;;  %6663 = vmatpush.bf16.msrb.mxu0 %v10563_v48 }
  0x7c   :  { %v14389_v51 = vld [vmem:[#allocation10 + $0xd9c] sm:$0xf0] }
  0x7d   :  { %v11075_v53 = vor.u32 %v14389_v51, %v11074_v50  ;;  %v11330_v56 = vld [vmem:[#allocation10 + $0xf80] sm:$0xf]  ;;  %6676 = vmatpush.bf16.msrb.mxu1 %v10819_v52 }
  0x7e   :  { %v14453_v57 = vld [vmem:[#allocation10 + $0xf9c] sm:$0xf0] }
  0x7f   :  { %v11331_v58 = vor.u32 %v14453_v57, %v11330_v56  ;;  %v10530_v59 = vld [vmem:[#allocation10 + $0x940] sm:$0xf]  ;;  %6689 = vmatpush.bf16.msrb.mxu2 %v11075_v53 }
  0x80   :  { %v14253_v62 = vld [vmem:[#allocation10 + $0x95c] sm:$0xf0] }
  0x81   :  { %v10786_v63 = vld [vmem:[#allocation10 + $0xb40] sm:$0xf]  ;;  %v10531_v0 = vor.u32 %v14253_v62, %v10530_v59  ;;  %6702 = vmatpush.bf16.msrb.mxu3 %v11331_v58 }
  0x82   :  { %v14317_v5 = vld [vmem:[#allocation10 + $0xb5c] sm:$0xf0] }
  0x83   :  { %v11042_v9 = vld [vmem:[#allocation10 + $0xd40] sm:$0xf]  ;;  %v10787_v13 = vor.u32 %v14317_v5, %v10786_v63  ;;  %6664 = vmatpush.bf16.msrb.mxu0 %v10531_v0 }
  0x84   :  { %v14381_v10 = vld [vmem:[#allocation10 + $0xd5c] sm:$0xf0] }
  0x85   :  { %v11298_v21 = vld [vmem:[#allocation10 + $0xf40] sm:$0xf]  ;;  %v11043_v28 = vor.u32 %v14381_v10, %v11042_v9  ;;  %6677 = vmatpush.bf16.msrb.mxu1 %v10787_v13 }
  0x86   :  { %v14445_v22 = vld [vmem:[#allocation10 + $0xf5c] sm:$0xf0] }
  0x87   :  { %v11299_v29 = vor.u32 %v14445_v22, %v11298_v21  ;;  %v10498_v31 = vld [vmem:[#allocation10 + $0x900] sm:$0xf]  ;;  %6690 = vmatpush.bf16.msrb.mxu2 %v11043_v28 }
  0x88   :  { %v14245_v35 = vld [vmem:[#allocation10 + $0x91c] sm:$0xf0] }
  0x89   :  { %v10754_v37 = vld [vmem:[#allocation10 + $0xb00] sm:$0xf]  ;;  %v10499_v40 = vor.u32 %v14245_v35, %v10498_v31  ;;  %6703 = vmatpush.bf16.msrb.mxu3 %v11299_v29 }
  0x8a   :  { %v14309_v39 = vld [vmem:[#allocation10 + $0xb1c] sm:$0xf0] }
  0x8b   :  { %v10755_v41 = vor.u32 %v14309_v39, %v10754_v37  ;;  %v11010_v43 = vld [vmem:[#allocation10 + $0xd00] sm:$0xf]  ;;  %6665 = vmatpush.bf16.msrb.mxu0 %v10499_v40 }
  0x8c   :  { %v14373_v44 = vld [vmem:[#allocation10 + $0xd1c] sm:$0xf0] }
  0x8d   :  { %v11266_v45 = vld [vmem:[#allocation10 + $0xf00] sm:$0xf]  ;;  %v11011_v47 = vor.u32 %v14373_v44, %v11010_v43  ;;  %6678 = vmatpush.bf16.msrb.mxu1 %v10755_v41 }
  0x8e   :  { %v14437_v48 = vld [vmem:[#allocation10 + $0xf1c] sm:$0xf0] }
  0x8f   :  { %v11267_v49 = vor.u32 %v14437_v48, %v11266_v45  ;;  %v10466_v50 = vld [vmem:[#allocation10 + $0x8c0] sm:$0xf]  ;;  %6691 = vmatpush.bf16.msrb.mxu2 %v11011_v47 }
  0x90   :  { %v14237_v51 = vld [vmem:[#allocation10 + $0x8dc] sm:$0xf0] }
  0x91   :  { %v10722_v52 = vld [vmem:[#allocation10 + $0xac0] sm:$0xf]  ;;  %v10467_v56 = vor.u32 %v14237_v51, %v10466_v50  ;;  %6704 = vmatpush.bf16.msrb.mxu3 %v11267_v49 }
  0x92   :  { %v14301_v57 = vld [vmem:[#allocation10 + $0xadc] sm:$0xf0] }
  0x93   :  { %v10978_v58 = vld [vmem:[#allocation10 + $0xcc0] sm:$0xf]  ;;  %v10723_v62 = vor.u32 %v14301_v57, %v10722_v52  ;;  %6666 = vmatpush.bf16.msrb.mxu0 %v10467_v56 }
  0x94   :  { %v14365_v63 = vld [vmem:[#allocation10 + $0xcdc] sm:$0xf0] }
  0x95   :  { %v11234_v0 = vld [vmem:[#allocation10 + $0xec0] sm:$0xf]  ;;  %v10979_v21 = vor.u32 %v14365_v63, %v10978_v58  ;;  %6679 = vmatpush.bf16.msrb.mxu1 %v10723_v62 }
  0x96   :  { %v14429_v5 = vld [vmem:[#allocation10 + $0xedc] sm:$0xf0] }
  0x97   :  { %v11235_v22 = vor.u32 %v14429_v5, %v11234_v0  ;;  %v14229_v28 = vld [vmem:[#allocation10 + $0x89c] sm:$0xf0]  ;;  %6692 = vmatpush.bf16.msrb.mxu2 %v10979_v21 }
  0x98   :  { %v10690_v29 = vld [vmem:[#allocation10 + $0xa80] sm:$0xf] }
  0x99   :  { %v14293_v37 = vld [vmem:[#allocation10 + $0xa9c] sm:$0xf0]  ;;  %6705 = vmatpush.bf16.msrb.mxu3 %v11235_v22 }
  0x9a   :  { %v10946_v39 = vld [vmem:[#allocation10 + $0xc80] sm:$0xf]  ;;  %v10691_v40 = vor.u32 %v14293_v37, %v10690_v29 }
  0x9b   :  { %v11202_v41 = vld [vmem:[#allocation10 + $0xe80] sm:$0xf] }
  0x9c   :  { %v14421_v43 = vld [vmem:[#allocation10 + $0xe9c] sm:$0xf0]  ;;  %6680 = vmatpush.bf16.msrb.mxu1 %v10691_v40 }
  0x9d   :  { %v10402_v44 = vld [vmem:[#allocation10 + $0x840] sm:$0xf]  ;;  %v11203_v48 = vor.u32 %v14421_v43, %v11202_v41 }
  0x9e   :  { %v14221_v49 = vld [vmem:[#allocation10 + $0x85c] sm:$0xf0] }
  0x9f   :  { %v10658_v50 = vld [vmem:[#allocation10 + $0xa40] sm:$0xf]  ;;  %v10403_v62 = vor.u32 %v14221_v49, %v10402_v44  ;;  %6706 = vmatpush.bf16.msrb.mxu3 %v11203_v48 }
  0xa0   :  { %v14285_v52 = vld [vmem:[#allocation10 + $0xa5c] sm:$0xf0] }
  0xa1   :  { %v14349_v56 = vld [vmem:[#allocation10 + $0xc5c] sm:$0xf0]  ;;  %v10659_v63 = vor.u32 %v14285_v52, %v10658_v50 }
  0xa2   :  { %v11170_v0 = vld [vmem:[#allocation10 + $0xe40] sm:$0xf] }
  0xa3   :  { %v14413_v5 = vld [vmem:[#allocation10 + $0xe5c] sm:$0xf0]  ;;  %6681 = vmatpush.bf16.msrb.mxu1 %v10659_v63 }
  0xa4   :  { %v10626_v22 = vld [vmem:[#allocation10 + $0xa00] sm:$0xf] }
  0xa5   :  { %v14341_v29 = vld [vmem:[#allocation10 + $0xc1c] sm:$0xf0] }
  0xa6   :  { %v14405_v37 = vld [vmem:[#allocation10 + $0xe1c] sm:$0xf0] }
  0xb5   :  { %v15504_v32 = vpop.xlane.xlu0 %181 }
  0xb6   :  { %15117 = vrsqrt.f32 %v15504_v32  ;;  %vm190_vm0 = vcmp.eq.f32.partialorder %v15504_v32, inf  ;;  %vm192_vm1 = vcmp.eq.f32.partialorder %v15504_v32, 0.0  ;;  %v193_v10 = vand.u32 2147483648, %v15504_v32 }
  0xbc   :  { %v15118_v12 = vpop.eup %15117 }
  0xbd   :  { %v184_v24 = vmul.f32 %v15118_v12, %v15504_v32  ;;  %v15508_v26 = vpop.xlane.xlu0 %289 }
  0xbe   :  { %15119 = vrsqrt.f32 %v15508_v26  ;;  %vm298_vm2 = vcmp.eq.f32.partialorder %v15508_v26, inf  ;;  %vm300_vm3 = vcmp.eq.f32.partialorder %v15508_v26, 0.0 }
  0xbf   :  { %v185_v34 = vmul.f32 %v15118_v12, %v184_v24  ;;  %v10434_v24 = vld [vmem:[#allocation10 + $0x880] sm:$0xf] }
  0xc0   :  { %v10435_v35 = vor.u32 %v14229_v28, %v10434_v24  ;;  %v14277_v24 = vld [vmem:[#allocation10 + $0xa1c] sm:$0xf0] }
  0xc1   :  { %v186_v46 = vmul.f32 0.5, %v185_v34  ;;  %v10882_v28 = vld [vmem:[#allocation10 + $0xc00] sm:$0xf] }
  0xc2   :  { %6667 = vmatpush.bf16.msrb.mxu0 %v10435_v35  ;;  %v11138_v35 = vld [vmem:[#allocation10 + $0xe00] sm:$0xf]  ;;  %v10883_v40 = vor.u32 %v14341_v29, %v10882_v28 }
  0xc3   :  { %v187_v53 = vsub.f32 1.5, %v186_v46 }
  0xc4   :  { %v15120_v59 = vpop.eup %15119 }
  0xc5   :  { %v188_v9 = vmul.f32 %v15118_v12, %v187_v53  ;;  %v292_v13 = vmul.f32 %v15120_v59, %v15508_v26  ;;  %v14357_v12 = vld [vmem:[#allocation10 + $0xc9c] sm:$0xf0] }
  0xc6   :  { %v10947_v47 = vor.u32 %v14357_v12, %v10946_v39  ;;  %v10914_v53 = vld [vmem:[#allocation10 + $0xc40] sm:$0xf]  ;;  %6668 = vmatpush.bf16.msrb.mxu0 %v10403_v62  ;;  %v301_v12 = vand.u32 2147483648, %v15508_v26 }
  0xc7   :  { %v189_v31 = vmul.f32 %v188_v9, %v15504_v32  ;;  %v293_v34 = vmul.f32 %v15120_v59, %v292_v13  ;;  %v10370_v9 = vld [vmem:[#allocation10 + $0x800] sm:$0xf]  ;;  %v10915_v21 = vor.u32 %v14349_v56, %v10914_v53 }
  0xc8   :  { %v14213_v13 = vld [vmem:[#allocation10 + $0x81c] sm:$0xf0]  ;;  %6693 = vmatpush.bf16.msrb.mxu2 %v10947_v47 }
  0xc9   :  { %v191_v45 = vsel %vm190_vm0, %v15504_v32, %v189_v31  ;;  %v294_v46 = vmul.f32 0.5, %v293_v34  ;;  %v10371_v31 = vor.u32 %v14213_v13, %v10370_v9  ;;  %v10627_v34 = vor.u32 %v14277_v24, %v10626_v22 }
  0xca   :  { %v194_v51 = vsel %vm192_vm1, %v193_v10, %v191_v45  ;;  %v11171_v10 = vor.u32 %v14413_v5, %v11170_v0 }
  0xcb   :  { %v195_v57 = vmax.f32 %v194_v51, 1e-12  ;;  %v295_v58 = vsub.f32 1.5, %v294_v46  ;;  %6669 = vmatpush.bf16.msrb.mxu0 %v10371_v31  ;;  %6682 = vmatpush.bf16.msrb.mxu1 %v10627_v34 }
  0xcc   :  { %6694 = vmatpush.bf16.msrb.mxu2 %v10915_v21  ;;  %6707 = vmatpush.bf16.msrb.mxu3 %v11171_v10 }
  0xcd   :  { %15121 = vrcp.f32 %v195_v57  ;;  %v296_v32 = vmul.f32 %v15120_v59, %v295_v58  ;;  %v11139_v59 = vor.u32 %v14405_v37, %v11138_v35  ;;  %v207_v51 = vand.u32 2147483648, %v195_v57 }
  0xce   :  { %vm201_vm5 = vweird.f32 %v195_v57  ;;  %v205_v52 = vand.u32 2147483647, %v195_v57 }
  0xcf   :  { %v297_v39 = vmul.f32 %v296_v32, %v15508_v26  ;;  %v208_v58 = vor.u32 1.1754944e-38, %v207_v51 }
  0xd0   :  { %6695 = vmatpush.bf16.msrb.mxu2 %v10883_v40  ;;  %6708 = vmatpush.bf16.msrb.mxu3 %v11139_v59  ;;  %vm206_vm7 = vcmp.eq.f32.partialorder %v205_v52, 8.507059e+37  ;;  %v11874_v40 = vld [vmem:[#allocation10 + $0x13c0] sm:$0xf] }
  0xd1   :  { %v299_v41 = vsel %vm298_vm2, %v15508_v26, %v297_v39  ;;  %v14589_v59 = vld [vmem:[#allocation10 + $0x13dc] sm:$0xf0] }
  0xd2   :  { %v302_v44 = vsel %vm300_vm3, %v301_v12, %v299_v41 }
  0xd3   :  { %v15122_v43 = vpop.eup %15121  ;;  %v303_v46 = vmax.f32 %v302_v44, 1e-12 }
  0xd4   :  { %v197_v45 = vmul.f32 %v15122_v43, %v195_v57  ;;  %vm202_vm4 = vweird.f32 %v15122_v43 }
  0xd5   :  { %15123 = vrcp.f32 %v303_v46  ;;  %vm203_vm6 = vmor %vm201_vm5, %vm202_vm4  ;;  %v315_v62 = vand.u32 2147483648, %v303_v46  ;;  %v313_v0 = vand.u32 2147483647, %v303_v46  ;;  %vm309_vm9 = vweird.f32 %v303_v46 }
  0xd6   :  { %v198_v47 = vsub.f32 1.0, %v197_v45  ;;  %v14653_v45 = vld [vmem:[#allocation10 + $0x15dc] sm:$0xf0] }
  0xd7   :  { %v316_v13 = vor.u32 1.1754944e-38, %v315_v62  ;;  %vm314_vm11 = vcmp.eq.f32.partialorder %v313_v0, 8.507059e+37  ;;  %v14581_v62 = vld [vmem:[#allocation10 + $0x139c] sm:$0xf0] }
  0xd8   :  { %v199_v48 = vmul.f32 %v15122_v43, %v198_v47 }
  0xda   :  { %v200_v49 = vadd.f32 %v15122_v43, %v199_v48  ;;  %v11586_v48 = vld [vmem:[#allocation10 + $0x1180] sm:$0xf] }
  0xdb   :  { %v15124_v50 = vpop.eup %15123 }
  0xdc   :  { %v305_v53 = vmul.f32 %v15124_v50, %v303_v46  ;;  %v204_v26 = vsel %vm203_vm6, %v15122_v43, %v200_v49  ;;  %vm310_vm8 = vweird.f32 %v15124_v50  ;;  %v14717_v46 = vld [vmem:[#allocation10 + $0x17dc] sm:$0xf0] }
  0xdd   :  { %v15526_v5 = vsel %vm206_vm7, %v208_v58, %v204_v26  ;;  %vm311_vm10 = vmor %vm309_vm9, %vm310_vm8  ;;  %v14517_v49 = vld [vmem:[#allocation10 + $0x119c] sm:$0xf0] }
  0xde   :  { %v306_v56 = vsub.f32 1.0, %v305_v53  ;;  %v210_v57 = vmul.f32 %v15526_v5, %v15396_v1  ;;  %v211_v32 = vmul.f32 %v15526_v5, %v15398_v2  ;;  %v212_v10 = vmul.f32 %v15526_v5, %v15400_v3  ;;  %v11618_v3 = vld [vmem:[#allocation10 + $0x11c0] sm:$0xf] }
  0xdf   :  { %v213_v24 = vmul.f32 %v15526_v5, %v15402_v4  ;;  %v14525_v4 = vld [vmem:[#allocation10 + $0x11dc] sm:$0xf0] }
  0xe0   :  { %v307_v63 = vmul.f32 %v15124_v50, %v306_v56  ;;  %v11619_v47 = vor.u32 %v14525_v4, %v11618_v3  ;;  %v11842_v58 = vld [vmem:[#allocation10 + $0x1380] sm:$0xf] }
  0xe1   :  { %v12322_v4 = vld [vmem:[#allocation10 + $0x1740] sm:$0xf] }
  0xe2   :  { %v308_v9 = vadd.f32 %v15124_v50, %v307_v63 }
  0xe4   :  { %v312_v21 = vsel %vm311_vm10, %v15124_v50, %v308_v9  ;;  %v12098_v9 = vld [vmem:[#allocation10 + $0x1580] sm:$0xf] }
  0xe5   :  { %v15530_v22 = vsel %vm314_vm11, %v316_v13, %v312_v21  ;;  %v14645_v13 = vld [vmem:[#allocation10 + $0x159c] sm:$0xf0]  ;;  %v11587_v21 = vor.u32 %v14517_v49, %v11586_v48 }
  0xe6   :  { %v318_v28 = vmul.f32 %v15530_v22, %v15418_v14  ;;  %v319_v29 = vmul.f32 %v15530_v22, %v15420_v15  ;;  %v320_v1 = vmul.f32 %v15530_v22, %v15424_v17  ;;  %v321_v31 = vmul.f32 %v15530_v22, %v15426_v18  ;;  %v12130_v14 = vld [vmem:[#allocation10 + $0x15c0] sm:$0xf] }
  0xe7   :  { %v12386_v17 = vld [vmem:[#allocation10 + $0x17c0] sm:$0xf]  ;;  %v11875_v18 = vor.u32 %v14589_v59, %v11874_v40  ;;  %v322_v50 = vmul.f32 %v15530_v22, %v15434_v23  ;;  %v323_v51 = vmul.f32 %v15530_v22, %v15444_v30  ;;  %v12131_v63 = vor.u32 %v14653_v45, %v12130_v14 }
  0xe8   :  { %v350_v34 = vsub.f32 %v210_v57, %v318_v28  ;;  %v351_v2 = vsub.f32 %v211_v32, %v319_v29  ;;  %v352_v35 = vsub.f32 %v212_v10, %v320_v1  ;;  %v353_v37 = vsub.f32 %v213_v24, %v321_v31  ;;  %v12354_v57 = vld [vmem:[#allocation10 + $0x1780] sm:$0xf] }
  0xe9   :  { %v12387_v0 = vor.u32 %v14717_v46, %v12386_v17  ;;  %v324_v23 = vmul.f32 %v15530_v22, %v15450_v36  ;;  %v325_v30 = vmul.f32 %v15530_v22, %v15454_v42  ;;  %v14709_v32 = vld [vmem:[#allocation10 + $0x179c] sm:$0xf0]  ;;  %v214_v10 = vmul.f32 %v15526_v5, %v15410_v8 }
  0xea   :  { %v366_v39 = vpack.c.bf16 %v351_v2, %v350_v34  ;;  %v367_v12 = vpack.c.bf16 %v353_v37, %v352_v35  ;;  %v215_v24 = vmul.f32 %v15526_v5, %v15414_v11  ;;  %v11843_v36 = vor.u32 %v14581_v62, %v11842_v58  ;;  %v11554_v28 = vld [vmem:[#allocation10 + $0x1140] sm:$0xf] }
  0xeb   :  { %v216_v42 = vmul.f32 %v15526_v5, %v15422_v16  ;;  %v217_v29 = vmul.f32 %v15526_v5, %v15438_v25  ;;  %v12099_v1 = vor.u32 %v14645_v13, %v12098_v9  ;;  %v14509_v31 = vld [vmem:[#allocation10 + $0x115c] sm:$0xf0]  ;;  %v354_v2 = vsub.f32 %v214_v10, %v322_v50 }
  0xec   :  { %v1442_v41 = vunpack.c.l.b16 %v366_v39  ;;  %v1443_v43 = vunpack.c.h.b16 %v366_v39  ;;  %v1444_v15 = vunpack.c.l.b16 %v367_v12  ;;  %v1445_v44 = vunpack.c.h.b16 %v367_v12  ;;  %v11810_v8 = vld [vmem:[#allocation10 + $0x1340] sm:$0xf] }
  0xed   :  { %v14573_v34 = vld [vmem:[#allocation10 + $0x135c] sm:$0xf0]  ;;  %v355_v11 = vsub.f32 %v215_v24, %v323_v51  ;;  %v12355_v35 = vor.u32 %v14709_v32, %v12354_v57  ;;  %v356_v3 = vsub.f32 %v216_v42, %v324_v23  ;;  %v357_v39 = vsub.f32 %v217_v29, %v325_v30 }
  0xee   :  { %v15550_v52 = vpack.c.b16 %v1442_v41, %v1442_v41  ;;  %v15552_v53 = vpack.c.b16 %v1443_v43, %v1443_v43  ;;  %v15554_v26 = vpack.c.b16 %v1444_v15, %v1444_v15  ;;  %v15556_v56 = vpack.c.b16 %v1445_v44, %v1445_v44  ;;  %v12066_v37 = vld [vmem:[#allocation10 + $0x1540] sm:$0xf] }
  0xef   :  { %v14637_v12 = vld [vmem:[#allocation10 + $0x155c] sm:$0xf0]  ;;  %v330_v25 = vmul.f32 %v15530_v22, %v15480_v19  ;;  %v11555_v40 = vor.u32 %v14509_v31, %v11554_v28  ;;  %v11811_v59 = vor.u32 %v14573_v34, %v11810_v8  ;;  %v331_v41 = vmul.f32 %v15530_v22, %v15488_v27 }
  0xf0   :  { %6618 = vmatmul.bf16.vlgmr.msra.gmra.mxu0 %v15550_v52  ;;  %6631 = vmatmul.bf16.vlgmr.msra.gmra.mxu1 %v15552_v53  ;;  %v14701_v16 = vld [vmem:[#allocation10 + $0x175c] sm:$0xf0]  ;;  %v368_v45 = vpack.c.bf16 %v355_v11, %v354_v2  ;;  %v222_v17 = vmul.f32 %v15526_v5, %v15462_v55  ;;  %v223_v46 = vmul.f32 %v15526_v5, %v15466_v61 }
  0xf1   :  { %6644 = vmatmul.bf16.vlgmr.msra.gmra.mxu2 %v15554_v26  ;;  %6657 = vmatmul.bf16.vlgmr.msra.gmra.mxu3 %v15556_v56  ;;  %v11522_v14 = vld [vmem:[#allocation10 + $0x1100] sm:$0xf]  ;;  %v12067_v19 = vor.u32 %v14637_v12, %v12066_v37  ;;  %v369_v49 = vpack.c.bf16 %v357_v39, %v356_v3  ;;  %v332_v62 = vmul.f32 %v15530_v22, %v15494_v33 }
  0xf2   :  { %6714 = vmatpush.bf16.msra.mxu0 %v11619_v47  ;;  %6727 = vmatpush.bf16.msra.mxu1 %v11875_v18  ;;  %v14501_v43 = vld [vmem:[#allocation10 + $0x111c] sm:$0xf0]  ;;  %v12323_v47 = vor.u32 %v14701_v16, %v12322_v4  ;;  %v362_v51 = vsub.f32 %v222_v17, %v330_v25  ;;  %v363_v58 = vsub.f32 %v223_v46, %v331_v41  ;;  %v1446_v30 = vunpack.c.l.b16 %v368_v45  ;;  %v15131_v46 = vld [vmem:[#allocation6 + $0x48] sm:$0xff] }
  0xf3   :  { %6740 = vmatpush.bf16.msra.mxu2 %v12131_v63  ;;  %6753 = vmatpush.bf16.msra.mxu3 %v12387_v0  ;;  %v11778_v15 = vld [vmem:[#allocation10 + $0x1300] sm:$0xf]  ;;  %v11523_v63 = vor.u32 %v14501_v43, %v11522_v14  ;;  %v333_v61 = vmul.f32 %v15530_v22, %v15498_v38  ;;  %v224_v24 = vmul.f32 %v15526_v5, %v15474_v7  ;;  %v1449_v28 = vunpack.c.h.b16 %v369_v49 }
  0xf4   :  { %v14565_v44 = vld [vmem:[#allocation10 + $0x131c] sm:$0xf0]  ;;  %v225_v38 = vmul.f32 %v15526_v5, %v15482_v20  ;;  %v15592_v7 = vpack.c.b16 %v1446_v30, %v1446_v30  ;;  %v327_v17 = vmul.f32 %v15530_v22, %v15460_v54  ;;  %v15132_v54 = vld [vmem:[#allocation6 + $0x50] sm:$0xff] }
  0xf5   :  { %v12034_v18 = vld [vmem:[#allocation10 + $0x1500] sm:$0xf]  ;;  %v11779_v0 = vor.u32 %v14565_v44, %v11778_v15  ;;  %v364_v31 = vsub.f32 %v224_v24, %v332_v62  ;;  %v15598_v20 = vpack.c.b16 %v1449_v28, %v1449_v28 }
  0xf6   :  { %6715 = vmatpush.bf16.msra.mxu0 %v11587_v21  ;;  %6728 = vmatpush.bf16.msra.mxu1 %v11843_v36  ;;  %v14629_v48 = vld [vmem:[#allocation10 + $0x151c] sm:$0xf0]  ;;  %v1447_v21 = vunpack.c.h.b16 %v368_v45  ;;  %v1448_v36 = vunpack.c.l.b16 %v369_v49  ;;  %v365_v11 = vsub.f32 %v225_v38, %v333_v61 }
  0xf7   :  { %6741 = vmatpush.bf16.msra.mxu2 %v12099_v1  ;;  %6754 = vmatpush.bf16.msra.mxu3 %v12355_v35  ;;  %v12290_v27 = vld [vmem:[#allocation10 + $0x1700] sm:$0xf]  ;;  %v12035_v23 = vor.u32 %v14629_v48, %v12034_v18  ;;  %v15590_v1 = vpack.c.bf16 %v363_v58, %v362_v51  ;;  %v329_v18 = vmul.f32 %v15530_v22, %v15472_v6 }
  0xf8   :  { %v14693_v50 = vld [vmem:[#allocation10 + $0x171c] sm:$0xf0]  ;;  %v15594_v35 = vpack.c.b16 %v1447_v21, %v1447_v21  ;;  %v15596_v12 = vpack.c.b16 %v1448_v36, %v1448_v36  ;;  %v220_v51 = vmul.f32 %v15132_v54, %v15526_v5 }
  0xf9   :  { %v11490_v55 = vld [vmem:[#allocation10 + $0x10c0] sm:$0xf]  ;;  %v12291_v33 = vor.u32 %v14693_v50, %v12290_v27 }
  0xfa   :  { %v14493_v9 = vld [vmem:[#allocation10 + $0x10dc] sm:$0xf0]  ;;  %6716 = vmatpush.bf16.msra.mxu0 %v11555_v40  ;;  %6729 = vmatpush.bf16.msra.mxu1 %v11811_v59  ;;  %v15600_v40 = vpack.c.bf16 %v365_v11, %v364_v31 }
  0xfb   :  { %v11746_v13 = vld [vmem:[#allocation10 + $0x12c0] sm:$0xf]  ;;  %6742 = vmatpush.bf16.msra.mxu2 %v12067_v19  ;;  %6755 = vmatpush.bf16.msra.mxu3 %v12323_v47  ;;  %v11491_v8 = vor.u32 %v14493_v9, %v11490_v55  ;;  %v219_v19 = vmul.f32 %v15131_v46, %v15526_v5  ;;  %v328_v47 = vmul.f32 %v15530_v22, %v15464_v60  ;;  %v15133_v60 = vld [vmem:[#allocation6 + $0x58] sm:$0xff] }
  0xfc   :  { %v14557_v57 = vld [vmem:[#allocation10 + $0x12dc] sm:$0xf0]  ;;  %v221_v9 = vmul.f32 %v15133_v60, %v15526_v5 }
  0xfd   :  { %v12002_v32 = vld [vmem:[#allocation10 + $0x14c0] sm:$0xf]  ;;  %v11747_v34 = vor.u32 %v14557_v57, %v11746_v13  ;;  %v360_v21 = vsub.f32 %v220_v51, %v328_v47 }
  0xfe   :  { %v14621_v10 = vld [vmem:[#allocation10 + $0x14dc] sm:$0xf0]  ;;  %6717 = vmatpush.bf16.msra.mxu0 %v11523_v63  ;;  %6730 = vmatpush.bf16.msra.mxu1 %v11779_v0  ;;  %v361_v57 = vsub.f32 %v221_v9, %v329_v18 }
  0xff   :  { %v12258_v42 = vld [vmem:[#allocation10 + $0x16c0] sm:$0xf]  ;;  %v12003_v2 = vor.u32 %v14621_v10, %v12002_v32  ;;  %6743 = vmatpush.bf16.msra.mxu2 %v12035_v23  ;;  %6756 = vmatpush.bf16.msra.mxu3 %v12291_v33  ;;  %v359_v23 = vsub.f32 %v219_v19, %v327_v17 }
 0x100   :  { %v14685_v29 = vld [vmem:[#allocation10 + $0x16dc] sm:$0xf0]  ;;  %6670 = vmatmul.bf16.vlgmr.msrb.gmra.mxu0 %v15592_v7  ;;  %6683 = vmatmul.bf16.vlgmr.msrb.gmra.mxu1 %v15594_v35 }
 0x101   :  { %v12259_v37 = vor.u32 %v14685_v29, %v12258_v42  ;;  %v11458_v3 = vld [vmem:[#allocation10 + $0x1080] sm:$0xf]  ;;  %6696 = vmatmul.bf16.vlgmr.msrb.gmra.mxu2 %v15596_v12  ;;  %6709 = vmatmul.bf16.vlgmr.msrb.gmra.mxu3 %v15598_v20 }
 0x102   :  { %v14485_v39 = vld [vmem:[#allocation10 + $0x109c] sm:$0xf0]  ;;  %6718 = vmatpush.bf16.msra.mxu0 %v11491_v8  ;;  %6731 = vmatpush.bf16.msra.mxu1 %v11747_v34 }
 0x103   :  { %v11714_v4 = vld [vmem:[#allocation10 + $0x1280] sm:$0xf]  ;;  %v11459_v48 = vor.u32 %v14485_v39, %v11458_v3  ;;  %6744 = vmatpush.bf16.msra.mxu2 %v12003_v2  ;;  %6757 = vmatpush.bf16.msra.mxu3 %v12259_v37  ;;  %v371_v39 = vpack.c.bf16 %v361_v57, %v360_v21 }
 0x104   :  { %v14549_v16 = vld [vmem:[#allocation10 + $0x129c] sm:$0xf0] }
 0x105   :  { %v11970_v25 = vld [vmem:[#allocation10 + $0x1480] sm:$0xf]  ;;  %v11715_v49 = vor.u32 %v14549_v16, %v11714_v4 }
 0x106   :  { %v14613_v59 = vld [vmem:[#allocation10 + $0x149c] sm:$0xf0]  ;;  %6719 = vmatpush.bf16.msra.mxu0 %v11459_v48 }
 0x107   :  { %v12226_v14 = vld [vmem:[#allocation10 + $0x1680] sm:$0xf]  ;;  %v11971_v58 = vor.u32 %v14613_v59, %v11970_v25  ;;  %6732 = vmatpush.bf16.msra.mxu1 %v11715_v49 }
 0x108   :  { %v14677_v41 = vld [vmem:[#allocation10 + $0x169c] sm:$0xf0] }
 0x109   :  { %v15129_v43 = vld [vmem:[#allocation6 + $0x40] sm:$0xff]  ;;  %v12227_v62 = vor.u32 %v14677_v41, %v12226_v14  ;;  %6745 = vmatpush.bf16.msra.mxu2 %v11971_v58 }
 0x10a   :  { %v218_v15 = vmul.f32 %v15129_v43, %v15526_v5  ;;  %v15130_v44 = vld [vmem:[#allocation8 + $0x40] sm:$0xff] }
 0x10b   :  { %v326_v45 = vmul.f32 %v15130_v44, %v15530_v22  ;;  %v11426_v27 = vld [vmem:[#allocation10 + $0x1040] sm:$0xf]  ;;  %6758 = vmatpush.bf16.msra.mxu3 %v12227_v62 }
 0x10c   :  { %v14477_v50 = vld [vmem:[#allocation10 + $0x105c] sm:$0xf0] }
 0x10d   :  { %v11682_v63 = vld [vmem:[#allocation10 + $0x1240] sm:$0xf]  ;;  %v358_v61 = vsub.f32 %v218_v15, %v326_v45  ;;  %v11427_v32 = vor.u32 %v14477_v50, %v11426_v27  ;;  %v1452_v27 = vunpack.c.l.b16 %v371_v39  ;;  %v1453_v50 = vunpack.c.h.b16 %v371_v39 }
 0x10e   :  { %v14541_v0 = vld [vmem:[#allocation10 + $0x125c] sm:$0xf0] }
 0x10f   :  { %v11938_v55 = vld [vmem:[#allocation10 + $0x1440] sm:$0xf]  ;;  %v11683_v10 = vor.u32 %v14541_v0, %v11682_v63  ;;  %v370_v2 = vpack.c.bf16 %v359_v23, %v358_v61  ;;  %6720 = vmatpush.bf16.msra.mxu0 %v11427_v32  ;;  %v15623_v61 = vpack.c.b16 %v1453_v50, %v1453_v50 }
 0x110   :  { %v14605_v6 = vld [vmem:[#allocation10 + $0x145c] sm:$0xf0] }
 0x111   :  { %v12194_v22 = vld [vmem:[#allocation10 + $0x1640] sm:$0xf]  ;;  %v11939_v28 = vor.u32 %v14605_v6, %v11938_v55  ;;  %6733 = vmatpush.bf16.msra.mxu1 %v11683_v10  ;;  %v1450_v17 = vunpack.c.l.b16 %v370_v2  ;;  %v1451_v46 = vunpack.c.h.b16 %v370_v2 }
 0x112   :  { %v14669_v13 = vld [vmem:[#allocation10 + $0x165c] sm:$0xf0] }
 0x113   :  { %v11394_v30 = vld [vmem:[#allocation10 + $0x1000] sm:$0xf]  ;;  %v12195_v42 = vor.u32 %v14669_v13, %v12194_v22  ;;  %6746 = vmatpush.bf16.msra.mxu2 %v11939_v28  ;;  %v15617_v55 = vpack.c.b16 %v1450_v17, %v1450_v17  ;;  %v15619_v60 = vpack.c.b16 %v1451_v46, %v1451_v46  ;;  %v15621_v13 = vpack.c.b16 %v1452_v27, %v1452_v27 }
 0x114   :  { %v14469_v24 = vld [vmem:[#allocation10 + $0x101c] sm:$0xf0] }
 0x115   :  { %v11650_v33 = vld [vmem:[#allocation10 + $0x1200] sm:$0xf]  ;;  %v11395_v4 = vor.u32 %v14469_v24, %v11394_v30  ;;  %6759 = vmatpush.bf16.msra.mxu3 %v12195_v42 }
 0x116   :  { %v14533_v36 = vld [vmem:[#allocation10 + $0x121c] sm:$0xf0] }
 0x117   :  { %v11906_v5 = vld [vmem:[#allocation10 + $0x1400] sm:$0xf]  ;;  %v11651_v16 = vor.u32 %v14533_v36, %v11650_v33  ;;  %6721 = vmatpush.bf16.msra.mxu0 %v11395_v4 }
 0x118   :  { %v14597_v29 = vld [vmem:[#allocation10 + $0x141c] sm:$0xf0] }
 0x119   :  { %v12162_v38 = vld [vmem:[#allocation10 + $0x1600] sm:$0xf]  ;;  %v11907_v41 = vor.u32 %v14597_v29, %v11906_v5  ;;  %6734 = vmatpush.bf16.msra.mxu1 %v11651_v16 }
 0x11a   :  { %v14661_v31 = vld [vmem:[#allocation10 + $0x161c] sm:$0xf0]  ;;  %6722 = vmatmul.bf16.vlgmr.msra.gmra.mxu0 %v15617_v55 }
 0x11b   :  { %v12642_v8 = vld [vmem:[#allocation10 + $0x19c0] sm:$0xf]  ;;  %v12163_v43 = vor.u32 %v14661_v31, %v12162_v38  ;;  %6747 = vmatpush.bf16.msra.mxu2 %v11907_v41 }
 0x11c   :  { %v14781_v34 = vld [vmem:[#allocation10 + $0x19dc] sm:$0xf0]  ;;  %6735 = vmatmul.bf16.vlgmr.msra.gmra.mxu1 %v15619_v60 }
 0x11d   :  { %v12898_v11 = vld [vmem:[#allocation10 + $0x1bc0] sm:$0xf]  ;;  %v12643_v44 = vor.u32 %v14781_v34, %v12642_v8  ;;  %6760 = vmatpush.bf16.msra.mxu3 %v12163_v43 }
 0x11e   :  { %v14845_v37 = vld [vmem:[#allocation10 + $0x1bdc] sm:$0xf0]  ;;  %6748 = vmatmul.bf16.vlgmr.msra.gmra.mxu2 %v15621_v13 }
 0x11f   :  { %v13154_v3 = vld [vmem:[#allocation10 + $0x1dc0] sm:$0xf]  ;;  %v12899_v45 = vor.u32 %v14845_v37, %v12898_v11  ;;  %6766 = vmatpush.bf16.msrb.mxu0 %v12643_v44 }
 0x120   :  { %v14909_v25 = vld [vmem:[#allocation10 + $0x1ddc] sm:$0xf0]  ;;  %6761 = vmatmul.bf16.vlgmr.msra.gmra.mxu3 %v15623_v61 }
 0x121   :  { %v13410_v59 = vld [vmem:[#allocation10 + $0x1fc0] sm:$0xf]  ;;  %v13155_v48 = vor.u32 %v14909_v25, %v13154_v3  ;;  %6779 = vmatpush.bf16.msrb.mxu1 %v12899_v45 }
 0x122   :  { %v14973_v14 = vld [vmem:[#allocation10 + $0x1fdc] sm:$0xf0] }
 0x123   :  { %v12610_v15 = vld [vmem:[#allocation10 + $0x1980] sm:$0xf]  ;;  %v13411_v49 = vor.u32 %v14973_v14, %v13410_v59  ;;  %6792 = vmatpush.bf16.msrb.mxu2 %v13155_v48 }
 0x124   :  { %v14773_v19 = vld [vmem:[#allocation10 + $0x199c] sm:$0xf0] }
 0x125   :  { %v12866_v47 = vld [vmem:[#allocation10 + $0x1b80] sm:$0xf]  ;;  %v12611_v63 = vor.u32 %v14773_v19, %v12610_v15  ;;  %6805 = vmatpush.bf16.msrb.mxu3 %v13411_v49 }
 0x126   :  { %v14837_v18 = vld [vmem:[#allocation10 + $0x1b9c] sm:$0xf0] }
 0x127   :  { %v13122_v54 = vld [vmem:[#allocation10 + $0x1d80] sm:$0xf]  ;;  %v12867_v0 = vor.u32 %v14837_v18, %v12866_v47  ;;  %6767 = vmatpush.bf16.msrb.mxu0 %v12611_v63 }
 0x128   :  { %v14901_v51 = vld [vmem:[#allocation10 + $0x1d9c] sm:$0xf0] }
 0x129   :  { %v13378_v58 = vld [vmem:[#allocation10 + $0x1f80] sm:$0xf]  ;;  %v13123_v9 = vor.u32 %v14901_v51, %v13122_v54  ;;  %6780 = vmatpush.bf16.msrb.mxu1 %v12867_v0 }
 0x12a   :  { %v14965_v62 = vld [vmem:[#allocation10 + $0x1f9c] sm:$0xf0] }
 0x12b   :  { %v12578_v6 = vld [vmem:[#allocation10 + $0x1940] sm:$0xf]  ;;  %v13379_v23 = vor.u32 %v14965_v62, %v13378_v58  ;;  %6793 = vmatpush.bf16.msrb.mxu2 %v13123_v9 }
 0x12c   :  { %v14765_v22 = vld [vmem:[#allocation10 + $0x195c] sm:$0xf0] }
 0x12d   :  { %v12834_v30 = vld [vmem:[#allocation10 + $0x1b40] sm:$0xf]  ;;  %v12579_v33 = vor.u32 %v14765_v22, %v12578_v6  ;;  %6806 = vmatpush.bf16.msrb.mxu3 %v13379_v23 }
 0x12e   :  { %v14829_v21 = vld [vmem:[#allocation10 + $0x1b5c] sm:$0xf0] }
 0x12f   :  { %v13090_v57 = vld [vmem:[#allocation10 + $0x1d40] sm:$0xf]  ;;  %v12835_v36 = vor.u32 %v14829_v21, %v12834_v30  ;;  %6768 = vmatpush.bf16.msrb.mxu0 %v12579_v33 }
 0x130   :  { %v14893_v32 = vld [vmem:[#allocation10 + $0x1d5c] sm:$0xf0] }
 0x131   :  { %v13346_v10 = vld [vmem:[#allocation10 + $0x1f40] sm:$0xf]  ;;  %v13091_v5 = vor.u32 %v14893_v32, %v13090_v57  ;;  %6781 = vmatpush.bf16.msrb.mxu1 %v12835_v36 }
 0x132   :  { %v14957_v24 = vld [vmem:[#allocation10 + $0x1f5c] sm:$0xf0] }
 0x133   :  { %v12546_v28 = vld [vmem:[#allocation10 + $0x1900] sm:$0xf]  ;;  %v13347_v29 = vor.u32 %v14957_v24, %v13346_v10  ;;  %6794 = vmatpush.bf16.msrb.mxu2 %v13091_v5 }
 0x134   :  { %v14757_v42 = vld [vmem:[#allocation10 + $0x191c] sm:$0xf0] }
 0x135   :  { %v12802_v38 = vld [vmem:[#allocation10 + $0x1b00] sm:$0xf]  ;;  %v12547_v37 = vor.u32 %v14757_v42, %v12546_v28  ;;  %6807 = vmatpush.bf16.msrb.mxu3 %v13347_v29 }
 0x136   :  { %v14821_v31 = vld [vmem:[#allocation10 + $0x1b1c] sm:$0xf0] }
 0x137   :  { %v13058_v8 = vld [vmem:[#allocation10 + $0x1d00] sm:$0xf]  ;;  %v12803_v3 = vor.u32 %v14821_v31, %v12802_v38  ;;  %6769 = vmatpush.bf16.msrb.mxu0 %v12547_v37  ;;  %v14073_v37 = vld [vmem:[#allocation10 + $0x3c4] sm:$0xf] }
 0x138   :  { %v14885_v34 = vld [vmem:[#allocation10 + $0x1d1c] sm:$0xf0] }
 0x139   :  { %v13314_v2 = vld [vmem:[#allocation10 + $0x1f00] sm:$0xf]  ;;  %v13059_v16 = vor.u32 %v14885_v34, %v13058_v8  ;;  %6782 = vmatpush.bf16.msrb.mxu1 %v12803_v3  ;;  %v9828_v3 = vld [vmem:[#allocation10 + $0x3e0] sm:$0xf0] }
 0x13a   :  { %v14949_v11 = vld [vmem:[#allocation10 + $0x1f1c] sm:$0xf0] }
 0x13b   :  { %v12514_v39 = vld [vmem:[#allocation10 + $0x18c0] sm:$0xf]  ;;  %v13315_v25 = vor.u32 %v14949_v11, %v13314_v2  ;;  %6795 = vmatpush.bf16.msrb.mxu2 %v13059_v16  ;;  %v14009_v2 = vld [vmem:[#allocation10 + $0x1c4] sm:$0xf] }
 0x13c   :  { %v14749_v4 = vld [vmem:[#allocation10 + $0x18dc] sm:$0xf0]  ;;  %v9572_v11 = vld [vmem:[#allocation10 + $0x1e0] sm:$0xf0] }
 0x13d   :  { %v12770_v59 = vld [vmem:[#allocation10 + $0x1ac0] sm:$0xf]  ;;  %v12515_v45 = vor.u32 %v14749_v4, %v12514_v39  ;;  %6808 = vmatpush.bf16.msrb.mxu3 %v13315_v25  ;;  %v14137_v39 = vld [vmem:[#allocation10 + $0x5c4] sm:$0xf] }
 0x13e   :  { %v14813_v14 = vld [vmem:[#allocation10 + $0x1adc] sm:$0xf0]  ;;  %v10084_v25 = vld [vmem:[#allocation10 + $0x5e0] sm:$0xf0] }
 0x13f   :  { %v13026_v41 = vld [vmem:[#allocation10 + $0x1cc0] sm:$0xf]  ;;  %v12771_v17 = vor.u32 %v14813_v14, %v12770_v59  ;;  %6770 = vmatpush.bf16.msrb.mxu0 %v12515_v45  ;;  %v14201_v59 = vld [vmem:[#allocation10 + $0x7c4] sm:$0xf]  ;;  %v9575_v45 = vor.u32 %v14009_v2, %v9572_v11 }
 0x140   :  { %v14877_v43 = vld [vmem:[#allocation10 + $0x1cdc] sm:$0xf0]  ;;  %v10340_v14 = vld [vmem:[#allocation10 + $0x7e0] sm:$0xf0] }
 0x141   :  { %v13282_v15 = vld [vmem:[#allocation10 + $0x1ec0] sm:$0xf]  ;;  %v13027_v47 = vor.u32 %v14877_v43, %v13026_v41  ;;  %6783 = vmatpush.bf16.msrb.mxu1 %v12771_v17  ;;  %v9831_v17 = vor.u32 %v14073_v37, %v9828_v3  ;;  %v14113_v2 = vld [vmem:[#allocation10 + $0x504] sm:$0xf] }
 0x142   :  { %v14941_v44 = vld [vmem:[#allocation10 + $0x1edc] sm:$0xf0]  ;;  %v9988_v11 = vld [vmem:[#allocation10 + $0x520] sm:$0xf0] }
 0x143   :  { %v12482_v46 = vld [vmem:[#allocation10 + $0x1880] sm:$0xf]  ;;  %v13283_v18 = vor.u32 %v14941_v44, %v13282_v15  ;;  %6796 = vmatpush.bf16.msrb.mxu2 %v13027_v47  ;;  %v1454_v15 = vunpack.c.l.b16 %v15590_v1  ;;  %v1455_v44 = vunpack.c.h.b16 %v15590_v1  ;;  %v9540_v47 = vld [vmem:[#allocation10 + $0x1a0] sm:$0xf0] }
 0x144   :  { %v14741_v19 = vld [vmem:[#allocation10 + $0x189c] sm:$0xf0]  ;;  %v14177_v37 = vld [vmem:[#allocation10 + $0x704] sm:$0xf] }
 0x145   :  { %v12738_v48 = vld [vmem:[#allocation10 + $0x1a80] sm:$0xf]  ;;  %v12483_v58 = vor.u32 %v14741_v19, %v12482_v46  ;;  %6809 = vmatpush.bf16.msrb.mxu3 %v13283_v18  ;;  %v1456_v46 = vunpack.c.l.b16 %v15600_v40  ;;  %v14001_v19 = vld [vmem:[#allocation10 + $0x184] sm:$0xf]  ;;  %v10087_v18 = vor.u32 %v14137_v39, %v10084_v25  ;;  %v15633_v1 = vpack.c.b16 %v1454_v15, %v1454_v15 }
 0x146   :  { %v14805_v49 = vld [vmem:[#allocation10 + $0x1a9c] sm:$0xf0]  ;;  %v10244_v3 = vld [vmem:[#allocation10 + $0x720] sm:$0xf0] }
 0x147   :  { %v12994_v27 = vld [vmem:[#allocation10 + $0x1c80] sm:$0xf]  ;;  %v12739_v62 = vor.u32 %v14805_v49, %v12738_v48  ;;  %6771 = vmatpush.bf16.msrb.mxu0 %v12483_v58  ;;  %v10343_v48 = vor.u32 %v14201_v59, %v10340_v14  ;;  %v1457_v49 = vunpack.c.h.b16 %v15600_v40  ;;  %v14193_v58 = vld [vmem:[#allocation10 + $0x784] sm:$0xf]  ;;  %v9991_v59 = vor.u32 %v14113_v2, %v9988_v11 }
 0x148   :  { %v14869_v50 = vld [vmem:[#allocation10 + $0x1c9c] sm:$0xf0]  ;;  %v9444_v25 = vld [vmem:[#allocation10 + $0xe0] sm:$0xf0]  ;;  %v10247_v14 = vor.u32 %v14177_v37, %v10244_v3 }
 0x149   :  { %v13250_v54 = vld [vmem:[#allocation10 + $0x1e80] sm:$0xf]  ;;  %v12995_v9 = vor.u32 %v14869_v50, %v12994_v27  ;;  %6784 = vmatpush.bf16.msrb.mxu1 %v12739_v62  ;;  %v14065_v27 = vld [vmem:[#allocation10 + $0x384] sm:$0xf] }
 0x14a   :  { %v14933_v51 = vld [vmem:[#allocation10 + $0x1e9c] sm:$0xf0]  ;;  %v9796_v50 = vld [vmem:[#allocation10 + $0x3a0] sm:$0xf0] }
 0x14b   :  { %v12450_v63 = vld [vmem:[#allocation10 + $0x1840] sm:$0xf]  ;;  %v13251_v6 = vor.u32 %v14933_v51, %v13250_v54  ;;  %6797 = vmatpush.bf16.msrb.mxu2 %v12995_v9  ;;  %v14129_v54 = vld [vmem:[#allocation10 + $0x584] sm:$0xf]  ;;  %v9543_v9 = vor.u32 %v14001_v19, %v9540_v47  ;;  %v9799_v40 = vor.u32 %v14065_v27, %v9796_v50 }
 0x14c   :  { %v14733_v0 = vld [vmem:[#allocation10 + $0x185c] sm:$0xf0]  ;;  %v10052_v51 = vld [vmem:[#allocation10 + $0x5a0] sm:$0xf0] }
 0x14d   :  { %v12706_v22 = vld [vmem:[#allocation10 + $0x1a40] sm:$0xf]  ;;  %v12451_v24 = vor.u32 %v14733_v0, %v12450_v63  ;;  %6810 = vmatpush.bf16.msrb.mxu3 %v13251_v6  ;;  %v10308_v62 = vld [vmem:[#allocation10 + $0x7a0] sm:$0xf0]  ;;  %v15635_v63 = vpack.c.b16 %v1455_v44, %v1455_v44  ;;  %v15637_v0 = vpack.c.b16 %v1456_v46, %v1456_v46 }
 0x14e   :  { %v14797_v23 = vld [vmem:[#allocation10 + $0x1a5c] sm:$0xf0]  ;;  %v13993_v6 = vld [vmem:[#allocation10 + $0x144] sm:$0xf] }
 0x14f   :  { %v12962_v30 = vld [vmem:[#allocation10 + $0x1c40] sm:$0xf]  ;;  %v12707_v33 = vor.u32 %v14797_v23, %v12706_v22  ;;  %6772 = vmatpush.bf16.msrb.mxu0 %v12451_v24  ;;  %v9508_v22 = vld [vmem:[#allocation10 + $0x160] sm:$0xf0]  ;;  %v15639_v23 = vpack.c.b16 %v1457_v49, %v1457_v49 }
 0x150   :  { %v14861_v21 = vld [vmem:[#allocation10 + $0x1c5c] sm:$0xf0]  ;;  %v10020_v24 = vld [vmem:[#allocation10 + $0x560] sm:$0xf0] }
 0x151   :  { %v13218_v57 = vld [vmem:[#allocation10 + $0x1e40] sm:$0xf]  ;;  %v12963_v5 = vor.u32 %v14861_v21, %v12962_v30  ;;  %6785 = vmatpush.bf16.msrb.mxu1 %v12707_v33  ;;  %v10055_v30 = vor.u32 %v14129_v54, %v10052_v51  ;;  %v10311_v21 = vor.u32 %v14193_v58, %v10308_v62  ;;  %v14185_v33 = vld [vmem:[#allocation10 + $0x744] sm:$0xf] }
 0x152   :  { %v14925_v32 = vld [vmem:[#allocation10 + $0x1e5c] sm:$0xf0]  ;;  %v14105_v15 = vld [vmem:[#allocation10 + $0x4c4] sm:$0xf] }
 0x153   :  { %v12418_v10 = vld [vmem:[#allocation10 + $0x1800] sm:$0xf]  ;;  %v13219_v29 = vor.u32 %v14925_v32, %v13218_v57  ;;  %6798 = vmatpush.bf16.msrb.mxu2 %v12963_v5  ;;  %v14057_v57 = vld [vmem:[#allocation10 + $0x344] sm:$0xf] }
 0x154   :  { %v14725_v36 = vld [vmem:[#allocation10 + $0x181c] sm:$0xf0]  ;;  %v9764_v32 = vld [vmem:[#allocation10 + $0x360] sm:$0xf0] }
 0x155   :  { %v12674_v28 = vld [vmem:[#allocation10 + $0x1a00] sm:$0xf]  ;;  %v12419_v4 = vor.u32 %v14725_v36, %v12418_v10  ;;  %6811 = vmatpush.bf16.msrb.mxu3 %v13219_v29  ;;  %v14121_v10 = vld [vmem:[#allocation10 + $0x544] sm:$0xf] }
 0x156   :  { %v14789_v42 = vld [vmem:[#allocation10 + $0x1a1c] sm:$0xf0]  ;;  %v10276_v36 = vld [vmem:[#allocation10 + $0x760] sm:$0xf0] }
 0x157   :  { %v12930_v38 = vld [vmem:[#allocation10 + $0x1c00] sm:$0xf]  ;;  %v12675_v16 = vor.u32 %v14789_v42, %v12674_v28  ;;  %6773 = vmatpush.bf16.msrb.mxu0 %v12419_v4  ;;  %v9511_v28 = vor.u32 %v13993_v6, %v9508_v22  ;;  %v9767_v42 = vor.u32 %v14057_v57, %v9764_v32  ;;  %v13985_v5 = vld [vmem:[#allocation10 + $0x104] sm:$0xf] }
 0x158   :  { %v14853_v31 = vld [vmem:[#allocation10 + $0x1c1c] sm:$0xf0]  ;;  %v9476_v29 = vld [vmem:[#allocation10 + $0x120] sm:$0xf0] }
 0x159   :  { %v13186_v8 = vld [vmem:[#allocation10 + $0x1e00] sm:$0xf]  ;;  %v12931_v41 = vor.u32 %v14853_v31, %v12930_v38  ;;  %6786 = vmatpush.bf16.msrb.mxu1 %v12675_v16  ;;  %v10023_v38 = vor.u32 %v14121_v10, %v10020_v24  ;;  %v10279_v31 = vor.u32 %v14185_v33, %v10276_v36  ;;  %v9479_v39 = vor.u32 %v13985_v5, %v9476_v29  ;;  %v13977_v16 = vld [vmem:[#allocation10 + $0xc4] sm:$0xf] }
 0x15a   :  { %v14917_v34 = vld [vmem:[#allocation10 + $0x1e1c] sm:$0xf0]  ;;  %6774 = vmatmul.bf16.vlgmr.msrb.gmra.mxu0 %v15633_v1  ;;  %v9956_v44 = vld [vmem:[#allocation10 + $0x4e0] sm:$0xf0]  ;;  %v9447_v46 = vor.u32 %v13977_v16, %v9444_v25 }
 0x15b   :  { %v13187_v43 = vor.u32 %v14917_v34, %v13186_v8  ;;  %6799 = vmatpush.bf16.msrb.mxu2 %v12931_v41  ;;  %6818 = vmatpush.bf16.msra.mxu0 %v9575_v45  ;;  %v14049_v8 = vld [vmem:[#allocation10 + $0x304] sm:$0xf] }
 0x15c   :  { %6787 = vmatmul.bf16.vlgmr.msrb.gmra.mxu1 %v15635_v63  ;;  %v9732_v34 = vld [vmem:[#allocation10 + $0x320] sm:$0xf0] }
 0x15d   :  { %6812 = vmatpush.bf16.msrb.mxu3 %v13187_v43  ;;  %6831 = vmatpush.bf16.msra.mxu1 %v9831_v17  ;;  %v9735_v4 = vor.u32 %v14049_v8, %v9732_v34  ;;  %v14041_v41 = vld [vmem:[#allocation10 + $0x2c4] sm:$0xf] }
 0x15e   :  { %6800 = vmatmul.bf16.vlgmr.msrb.gmra.mxu2 %v15637_v0  ;;  %v9700_v43 = vld [vmem:[#allocation10 + $0x2e0] sm:$0xf0] }
 0x15f   :  { %6844 = vmatpush.bf16.msra.mxu2 %v10087_v18  ;;  %6819 = vmatpush.bf16.msra.mxu0 %v9543_v9  ;;  %v14169_v45 = vld [vmem:[#allocation10 + $0x6c4] sm:$0xf]  ;;  %v9703_v19 = vor.u32 %v14041_v41, %v9700_v43 }
 0x160   :  { %6813 = vmatmul.bf16.vlgmr.msrb.gmra.mxu3 %v15639_v23  ;;  %v10212_v17 = vld [vmem:[#allocation10 + $0x6e0] sm:$0xf0] }
 0x161   :  { %6857 = vmatpush.bf16.msra.mxu3 %v10343_v48  ;;  %6832 = vmatpush.bf16.msra.mxu1 %v9799_v40  ;;  %v13969_v47 = vld [vmem:[#allocation10 + $0x84] sm:$0xf]  ;;  %v9959_v48 = vor.u32 %v14105_v15, %v9956_v44  ;;  %v10215_v49 = vor.u32 %v14169_v45, %v10212_v17 }
 0x162   :  { %v9412_v18 = vld [vmem:[#allocation10 + $0xa0] sm:$0xf0] }
 0x163   :  { %6845 = vmatpush.bf16.msra.mxu2 %v10055_v30  ;;  %6820 = vmatpush.bf16.msra.mxu0 %v9511_v28  ;;  %v14033_v27 = vld [vmem:[#allocation10 + $0x284] sm:$0xf]  ;;  %v9415_v9 = vor.u32 %v13969_v47, %v9412_v18 }
 0x164   :  { %v9668_v50 = vld [vmem:[#allocation10 + $0x2a0] sm:$0xf0] }
 0x165   :  { %6858 = vmatpush.bf16.msra.mxu3 %v10311_v21  ;;  %6833 = vmatpush.bf16.msra.mxu1 %v9767_v42  ;;  %v14097_v54 = vld [vmem:[#allocation10 + $0x484] sm:$0xf]  ;;  %v9671_v40 = vor.u32 %v14033_v27, %v9668_v50 }
 0x166   :  { %v9924_v51 = vld [vmem:[#allocation10 + $0x4a0] sm:$0xf0] }
 0x167   :  { %6846 = vmatpush.bf16.msra.mxu2 %v10023_v38  ;;  %6821 = vmatpush.bf16.msra.mxu0 %v9479_v39  ;;  %v14161_v58 = vld [vmem:[#allocation10 + $0x684] sm:$0xf]  ;;  %v9927_v30 = vor.u32 %v14097_v54, %v9924_v51 }
 0x168   :  { %v10180_v62 = vld [vmem:[#allocation10 + $0x6a0] sm:$0xf0] }
 0x169   :  { %6859 = vmatpush.bf16.msra.mxu3 %v10279_v31  ;;  %6834 = vmatpush.bf16.msra.mxu1 %v9735_v4  ;;  %v13961_v6 = vld [vmem:[#allocation10 + $0x44] sm:$0xf]  ;;  %v10183_v21 = vor.u32 %v14161_v58, %v10180_v62 }
 0x16a   :  { %v9380_v22 = vld [vmem:[#allocation10 + $0x60] sm:$0xf0] }
 0x16b   :  { %6847 = vmatpush.bf16.msra.mxu2 %v9991_v59  ;;  %6822 = vmatpush.bf16.msra.mxu0 %v9447_v46  ;;  %v14025_v57 = vld [vmem:[#allocation10 + $0x244] sm:$0xf]  ;;  %v9383_v42 = vor.u32 %v13961_v6, %v9380_v22 }
 0x16c   :  { %v9636_v32 = vld [vmem:[#allocation10 + $0x260] sm:$0xf0] }
 0x16d   :  { %6860 = vmatpush.bf16.msra.mxu3 %v10247_v14  ;;  %6835 = vmatpush.bf16.msra.mxu1 %v9703_v19  ;;  %v14089_v10 = vld [vmem:[#allocation10 + $0x444] sm:$0xf]  ;;  %v9639_v5 = vor.u32 %v14025_v57, %v9636_v32 }
 0x16e   :  { %v9892_v24 = vld [vmem:[#allocation10 + $0x460] sm:$0xf0] }
 0x16f   :  { %6848 = vmatpush.bf16.msra.mxu2 %v9959_v48  ;;  %v14153_v33 = vld [vmem:[#allocation10 + $0x644] sm:$0xf]  ;;  %6823 = vmatpush.bf16.msra.mxu0 %v9415_v9  ;;  %v9895_v8 = vor.u32 %v14089_v10, %v9892_v24 }
 0x170   :  { %v10148_v36 = vld [vmem:[#allocation10 + $0x660] sm:$0xf0] }
 0x171   :  { %6861 = vmatpush.bf16.msra.mxu3 %v10215_v49  ;;  %v13953_v28 = vld [vmem:[#allocation10 + $0x4] sm:$0xf]  ;;  %6836 = vmatpush.bf16.msra.mxu1 %v9671_v40  ;;  %v10151_v34 = vor.u32 %v14153_v33, %v10148_v36 }
 0x172   :  { %v9348_v29 = vld [vmem:[#allocation10 + $0x20] sm:$0xf0] }
 0x173   :  { %v14017_v38 = vld [vmem:[#allocation10 + $0x204] sm:$0xf]  ;;  %6849 = vmatpush.bf16.msra.mxu2 %v9927_v30  ;;  %6824 = vmatpush.bf16.msra.mxu0 %v9383_v42  ;;  %v9351_v14 = vor.u32 %v13953_v28, %v9348_v29 }
 0x174   :  { %v9604_v31 = vld [vmem:[#allocation10 + $0x220] sm:$0xf0] }
 0x175   :  { %6862 = vmatpush.bf16.msra.mxu3 %v10183_v21  ;;  %v14081_v2 = vld [vmem:[#allocation10 + $0x404] sm:$0xf]  ;;  %6837 = vmatpush.bf16.msra.mxu1 %v9639_v5  ;;  %v9607_v41 = vor.u32 %v14017_v38, %v9604_v31 }
 0x176   :  { %v9860_v11 = vld [vmem:[#allocation10 + $0x420] sm:$0xf0] }
 0x177   :  { %v14145_v37 = vld [vmem:[#allocation10 + $0x604] sm:$0xf]  ;;  %6850 = vmatpush.bf16.msra.mxu2 %v9895_v8  ;;  %v9863_v45 = vor.u32 %v14081_v2, %v9860_v11  ;;  %6825 = vmatpush.bf16.msra.mxu0 %v9351_v14 }
 0x178   :  { %v10116_v3 = vld [vmem:[#allocation10 + $0x620] sm:$0xf0] }
 0x179   :  { %v14265_v39 = vld [vmem:[#allocation10 + $0x9c4] sm:$0xf]  ;;  %6863 = vmatpush.bf16.msra.mxu3 %v10151_v34  ;;  %v10119_v17 = vor.u32 %v14145_v37, %v10116_v3  ;;  %6838 = vmatpush.bf16.msra.mxu1 %v9607_v41 }
 0x17a   :  { %v10596_v4 = vld [vmem:[#allocation10 + $0x9e0] sm:$0xf0]  ;;  %6826 = vmatmul.bf16.vlgmr.msra.gmra.mxu0 %v15550_v52 }
 0x17b   :  { %v14329_v16 = vld [vmem:[#allocation10 + $0xbc4] sm:$0xf]  ;;  %v10599_v46 = vor.u32 %v14265_v39, %v10596_v4  ;;  %6851 = vmatpush.bf16.msra.mxu2 %v9863_v45 }
 0x17c   :  { %v10852_v25 = vld [vmem:[#allocation10 + $0xbe0] sm:$0xf0]  ;;  %6839 = vmatmul.bf16.vlgmr.msra.gmra.mxu1 %v15552_v53 }
 0x17d   :  { %v14393_v59 = vld [vmem:[#allocation10 + $0xdc4] sm:$0xf]  ;;  %v10855_v19 = vor.u32 %v14329_v16, %v10852_v25  ;;  %6864 = vmatpush.bf16.msra.mxu3 %v10119_v17  ;;  %6870 = vmatpush.bf16.msrb.mxu0 %v10599_v46 }
 0x17e   :  { %v11108_v43 = vld [vmem:[#allocation10 + $0xde0] sm:$0xf0]  ;;  %6852 = vmatmul.bf16.vlgmr.msra.gmra.mxu2 %v15554_v26 }
 0x17f   :  { %v14457_v15 = vld [vmem:[#allocation10 + $0xfc4] sm:$0xf]  ;;  %v11111_v48 = vor.u32 %v14393_v59, %v11108_v43  ;;  %6883 = vmatpush.bf16.msrb.mxu1 %v10855_v19 }
 0x180   :  { %v11364_v44 = vld [vmem:[#allocation10 + $0xfe0] sm:$0xf0]  ;;  %6865 = vmatmul.bf16.vlgmr.msra.gmra.mxu3 %v15556_v56 }
 0x181   :  { %v14257_v47 = vld [vmem:[#allocation10 + $0x984] sm:$0xf]  ;;  %v11367_v49 = vor.u32 %v14457_v15, %v11364_v44  ;;  %6896 = vmatpush.bf16.msrb.mxu2 %v11111_v48 }
 0x182   :  { %v10564_v18 = vld [vmem:[#allocation10 + $0x9a0] sm:$0xf0] }
 0x183   :  { %v14321_v27 = vld [vmem:[#allocation10 + $0xb84] sm:$0xf]  ;;  %v10567_v9 = vor.u32 %v14257_v47, %v10564_v18  ;;  %6909 = vmatpush.bf16.msrb.mxu3 %v11367_v49 }
 0x184   :  { %v10820_v50 = vld [vmem:[#allocation10 + $0xba0] sm:$0xf0] }
 0x185   :  { %v14385_v54 = vld [vmem:[#allocation10 + $0xd84] sm:$0xf]  ;;  %v10823_v40 = vor.u32 %v14321_v27, %v10820_v50  ;;  %6871 = vmatpush.bf16.msrb.mxu0 %v10567_v9 }
 0x186   :  { %v11076_v51 = vld [vmem:[#allocation10 + $0xda0] sm:$0xf0] }
 0x187   :  { %v14449_v58 = vld [vmem:[#allocation10 + $0xf84] sm:$0xf]  ;;  %v11079_v30 = vor.u32 %v14385_v54, %v11076_v51  ;;  %6884 = vmatpush.bf16.msrb.mxu1 %v10823_v40 }
 0x188   :  { %v11332_v62 = vld [vmem:[#allocation10 + $0xfa0] sm:$0xf0] }
 0x189   :  { %v14249_v6 = vld [vmem:[#allocation10 + $0x944] sm:$0xf]  ;;  %v11335_v21 = vor.u32 %v14449_v58, %v11332_v62  ;;  %6897 = vmatpush.bf16.msrb.mxu2 %v11079_v30 }
 0x18a   :  { %v10532_v22 = vld [vmem:[#allocation10 + $0x960] sm:$0xf0] }
 0x18b   :  { %v14313_v57 = vld [vmem:[#allocation10 + $0xb44] sm:$0xf]  ;;  %v10535_v28 = vor.u32 %v14249_v6, %v10532_v22  ;;  %6910 = vmatpush.bf16.msrb.mxu3 %v11335_v21 }
 0x18c   :  { %v10788_v32 = vld [vmem:[#allocation10 + $0xb60] sm:$0xf0] }
 0x18d   :  { %v14377_v10 = vld [vmem:[#allocation10 + $0xd44] sm:$0xf]  ;;  %v10791_v42 = vor.u32 %v14313_v57, %v10788_v32  ;;  %6872 = vmatpush.bf16.msrb.mxu0 %v10535_v28 }
 0x18e   :  { %v11044_v24 = vld [vmem:[#allocation10 + $0xd60] sm:$0xf0] }
 0x18f   :  { %v14441_v33 = vld [vmem:[#allocation10 + $0xf44] sm:$0xf]  ;;  %v11047_v38 = vor.u32 %v14377_v10, %v11044_v24  ;;  %6885 = vmatpush.bf16.msrb.mxu1 %v10791_v42 }
 0x190   :  { %v11300_v36 = vld [vmem:[#allocation10 + $0xf60] sm:$0xf0] }
 0x191   :  { %v14241_v5 = vld [vmem:[#allocation10 + $0x904] sm:$0xf]  ;;  %v11303_v31 = vor.u32 %v14441_v33, %v11300_v36  ;;  %6898 = vmatpush.bf16.msrb.mxu2 %v11047_v38 }
 0x192   :  { %v10500_v29 = vld [vmem:[#allocation10 + $0x920] sm:$0xf0] }
 0x193   :  { %v14305_v8 = vld [vmem:[#allocation10 + $0xb04] sm:$0xf]  ;;  %v10503_v39 = vor.u32 %v14241_v5, %v10500_v29  ;;  %6911 = vmatpush.bf16.msrb.mxu3 %v11303_v31 }
 0x194   :  { %v10756_v34 = vld [vmem:[#allocation10 + $0xb20] sm:$0xf0] }
 0x195   :  { %v14369_v2 = vld [vmem:[#allocation10 + $0xd04] sm:$0xf]  ;;  %v10759_v4 = vor.u32 %v14305_v8, %v10756_v34  ;;  %6873 = vmatpush.bf16.msrb.mxu0 %v10503_v39 }
 0x196   :  { %v11012_v11 = vld [vmem:[#allocation10 + $0xd20] sm:$0xf0] }
 0x197   :  { %v14433_v37 = vld [vmem:[#allocation10 + $0xf04] sm:$0xf]  ;;  %v11015_v59 = vor.u32 %v14369_v2, %v11012_v11  ;;  %6886 = vmatpush.bf16.msrb.mxu1 %v10759_v4 }
 0x198   :  { %v11268_v3 = vld [vmem:[#allocation10 + $0xf20] sm:$0xf0] }
 0x199   :  { %v14233_v16 = vld [vmem:[#allocation10 + $0x8c4] sm:$0xf]  ;;  %v11271_v14 = vor.u32 %v14433_v37, %v11268_v3  ;;  %6899 = vmatpush.bf16.msrb.mxu2 %v11015_v59 }
 0x19a   :  { %v10468_v25 = vld [vmem:[#allocation10 + $0x8e0] sm:$0xf0] }
 0x19b   :  { %v14297_v41 = vld [vmem:[#allocation10 + $0xac4] sm:$0xf]  ;;  %v10471_v46 = vor.u32 %v14233_v16, %v10468_v25  ;;  %6912 = vmatpush.bf16.msrb.mxu3 %v11271_v14 }
 0x19c   :  { %v10724_v43 = vld [vmem:[#allocation10 + $0xae0] sm:$0xf0] }
 0x19d   :  { %v14361_v15 = vld [vmem:[#allocation10 + $0xcc4] sm:$0xf]  ;;  %v10727_v19 = vor.u32 %v14297_v41, %v10724_v43  ;;  %6874 = vmatpush.bf16.msrb.mxu0 %v10471_v46 }
 0x19e   :  { %v10980_v44 = vld [vmem:[#allocation10 + $0xce0] sm:$0xf0] }
 0x19f   :  { %v14425_v45 = vld [vmem:[#allocation10 + $0xec4] sm:$0xf]  ;;  %v10983_v48 = vor.u32 %v14361_v15, %v10980_v44  ;;  %6887 = vmatpush.bf16.msrb.mxu1 %v10727_v19 }
 0x1a0   :  { %v11236_v17 = vld [vmem:[#allocation10 + $0xee0] sm:$0xf0] }
 0x1a1   :  { %v14225_v47 = vld [vmem:[#allocation10 + $0x884] sm:$0xf]  ;;  %v11239_v49 = vor.u32 %v14425_v45, %v11236_v17  ;;  %6900 = vmatpush.bf16.msrb.mxu2 %v10983_v48 }
 0x1a2   :  { %v10436_v18 = vld [vmem:[#allocation10 + $0x8a0] sm:$0xf0] }
 0x1a3   :  { %v14289_v27 = vld [vmem:[#allocation10 + $0xa84] sm:$0xf]  ;;  %v10439_v9 = vor.u32 %v14225_v47, %v10436_v18  ;;  %6913 = vmatpush.bf16.msrb.mxu3 %v11239_v49 }
 0x1a4   :  { %v10692_v50 = vld [vmem:[#allocation10 + $0xaa0] sm:$0xf0] }
 0x1a5   :  { %v14353_v54 = vld [vmem:[#allocation10 + $0xc84] sm:$0xf]  ;;  %v10695_v40 = vor.u32 %v14289_v27, %v10692_v50  ;;  %6875 = vmatpush.bf16.msrb.mxu0 %v10439_v9 }
 0x1a6   :  { %v10948_v51 = vld [vmem:[#allocation10 + $0xca0] sm:$0xf0] }
 0x1a7   :  { %v14417_v58 = vld [vmem:[#allocation10 + $0xe84] sm:$0xf]  ;;  %v10951_v30 = vor.u32 %v14353_v54, %v10948_v51  ;;  %6888 = vmatpush.bf16.msrb.mxu1 %v10695_v40 }
 0x1a8   :  { %v11204_v62 = vld [vmem:[#allocation10 + $0xea0] sm:$0xf0] }
 0x1a9   :  { %v14217_v6 = vld [vmem:[#allocation10 + $0x844] sm:$0xf]  ;;  %v11207_v21 = vor.u32 %v14417_v58, %v11204_v62  ;;  %6901 = vmatpush.bf16.msrb.mxu2 %v10951_v30 }
 0x1aa   :  { %v10404_v22 = vld [vmem:[#allocation10 + $0x860] sm:$0xf0] }
 0x1ab   :  { %v14281_v57 = vld [vmem:[#allocation10 + $0xa44] sm:$0xf]  ;;  %v10407_v42 = vor.u32 %v14217_v6, %v10404_v22  ;;  %6914 = vmatpush.bf16.msrb.mxu3 %v11207_v21 }
 0x1ac   :  { %v10660_v32 = vld [vmem:[#allocation10 + $0xa60] sm:$0xf0] }
 0x1ad   :  { %v14345_v10 = vld [vmem:[#allocation10 + $0xc44] sm:$0xf]  ;;  %v10663_v5 = vor.u32 %v14281_v57, %v10660_v32  ;;  %6876 = vmatpush.bf16.msrb.mxu0 %v10407_v42 }
 0x1ae   :  { %v10916_v24 = vld [vmem:[#allocation10 + $0xc60] sm:$0xf0] }
 0x1af   :  { %v14409_v33 = vld [vmem:[#allocation10 + $0xe44] sm:$0xf]  ;;  %v10919_v8 = vor.u32 %v14345_v10, %v10916_v24  ;;  %6889 = vmatpush.bf16.msrb.mxu1 %v10663_v5  ;;  %v6619_v5 = vpop.f32.mrf.mxu0 }
 0x1b0   :  { %v11172_v36 = vld [vmem:[#allocation10 + $0xe60] sm:$0xf0] }
 0x1b1   :  { %v14209_v28 = vld [vmem:[#allocation10 + $0x804] sm:$0xf]  ;;  %v11175_v34 = vor.u32 %v14409_v33, %v11172_v36  ;;  %6902 = vmatpush.bf16.msrb.mxu2 %v10919_v8 }
 0x1b2   :  { %v10372_v29 = vld [vmem:[#allocation10 + $0x820] sm:$0xf0] }
 0x1b3   :  { %v14273_v38 = vld [vmem:[#allocation10 + $0xa04] sm:$0xf]  ;;  %v10375_v14 = vor.u32 %v14209_v28, %v10372_v29  ;;  %6915 = vmatpush.bf16.msrb.mxu3 %v11175_v34  ;;  %v6632_v29 = vpop.f32.mrf.mxu1 }
 0x1b4   :  { %v10628_v31 = vld [vmem:[#allocation10 + $0xa20] sm:$0xf0] }
 0x1b5   :  { %v14337_v2 = vld [vmem:[#allocation10 + $0xc04] sm:$0xf]  ;;  %v10631_v41 = vor.u32 %v14273_v38, %v10628_v31  ;;  %6877 = vmatpush.bf16.msrb.mxu0 %v10375_v14 }
 0x1b6   :  { %v10884_v11 = vld [vmem:[#allocation10 + $0xc20] sm:$0xf0] }
 0x1b7   :  { %v14401_v37 = vld [vmem:[#allocation10 + $0xe04] sm:$0xf]  ;;  %v10887_v45 = vor.u32 %v14337_v2, %v10884_v11  ;;  %6890 = vmatpush.bf16.msrb.mxu1 %v10631_v41 }
 0x1b8   :  { %v11140_v3 = vld [vmem:[#allocation10 + $0xe20] sm:$0xf0]  ;;  %6878 = vmatmul.bf16.vlgmr.msrb.gmra.mxu0 %v15592_v7 }
 0x1b9   :  { %v14521_v39 = vld [vmem:[#allocation10 + $0x11c4] sm:$0xf]  ;;  %v11143_v17 = vor.u32 %v14401_v37, %v11140_v3  ;;  %6903 = vmatpush.bf16.msrb.mxu2 %v10887_v45 }
 0x1ba   :  { %v11620_v4 = vld [vmem:[#allocation10 + $0x11e0] sm:$0xf0]  ;;  %6891 = vmatmul.bf16.vlgmr.msrb.gmra.mxu1 %v15594_v35 }
 0x1bb   :  { %v14585_v16 = vld [vmem:[#allocation10 + $0x13c4] sm:$0xf]  ;;  %v11623_v46 = vor.u32 %v14521_v39, %v11620_v4  ;;  %6916 = vmatpush.bf16.msrb.mxu3 %v11143_v17 }
 0x1bc   :  { %v11876_v25 = vld [vmem:[#allocation10 + $0x13e0] sm:$0xf0]  ;;  %6904 = vmatmul.bf16.vlgmr.msrb.gmra.mxu2 %v15596_v12 }
 0x1bd   :  { %v14649_v59 = vld [vmem:[#allocation10 + $0x15c4] sm:$0xf]  ;;  %v11879_v19 = vor.u32 %v14585_v16, %v11876_v25  ;;  %6922 = vmatpush.bf16.msra.mxu0 %v11623_v46 }
 0x1be   :  { %v12132_v43 = vld [vmem:[#allocation10 + $0x15e0] sm:$0xf0]  ;;  %6917 = vmatmul.bf16.vlgmr.msrb.gmra.mxu3 %v15598_v20 }
 0x1bf   :  { %v14713_v15 = vld [vmem:[#allocation10 + $0x17c4] sm:$0xf]  ;;  %v12135_v49 = vor.u32 %v14649_v59, %v12132_v43  ;;  %6935 = vmatpush.bf16.msra.mxu1 %v11879_v19 }
 0x1c0   :  { %v12388_v44 = vld [vmem:[#allocation10 + $0x17e0] sm:$0xf0] }
 0x1c1   :  { %v14513_v47 = vld [vmem:[#allocation10 + $0x1184] sm:$0xf]  ;;  %v12391_v27 = vor.u32 %v14713_v15, %v12388_v44  ;;  %6948 = vmatpush.bf16.msra.mxu2 %v12135_v49 }
 0x1c2   :  { %v11588_v18 = vld [vmem:[#allocation10 + $0x11a0] sm:$0xf0] }
 0x1c3   :  { %v14577_v48 = vld [vmem:[#allocation10 + $0x1384] sm:$0xf]  ;;  %v11591_v40 = vor.u32 %v14513_v47, %v11588_v18  ;;  %6961 = vmatpush.bf16.msra.mxu3 %v12391_v27  ;;  %v6645_v18 = vpop.f32.mrf.mxu2 }
 0x1c4   :  { %v11844_v50 = vld [vmem:[#allocation10 + $0x13a0] sm:$0xf0] }
 0x1c5   :  { %v14641_v54 = vld [vmem:[#allocation10 + $0x1584] sm:$0xf]  ;;  %v11847_v6 = vor.u32 %v14577_v48, %v11844_v50  ;;  %6923 = vmatpush.bf16.msra.mxu0 %v11591_v40  ;;  %v6658_v48 = vpop.f32.mrf.mxu3 }
 0x1c6   :  { %v15649_v51 = vld [vmem:[#allocation11] sm:$0xff] }
 0x1c7   :  { %v12100_v58 = vld [vmem:[#allocation10 + $0x15a0] sm:$0xf0]  ;;  %v1418_v21 = vperm.slane %v15649_v51, 0  ;;  %6936 = vmatpush.bf16.msra.mxu1 %v11847_v6 }
 0x1c8   :  { %v14705_v62 = vld [vmem:[#allocation10 + $0x1784] sm:$0xf]  ;;  %v12103_v57 = vor.u32 %v14641_v54, %v12100_v58  ;;  %v6621_v58 = vpop.f32.mrf.mxu0 }
 0x1c9   :  { %v12356_v9 = vld [vmem:[#allocation10 + $0x17a0] sm:$0xf0]  ;;  %v6620_v8 = vadd.f32 %v6619_v5, %v1418_v21 }
 0x1ca   :  { %v14505_v22 = vld [vmem:[#allocation10 + $0x1144] sm:$0xf]  ;;  %v12359_v32 = vor.u32 %v14705_v62, %v12356_v9  ;;  %6949 = vmatpush.bf16.msra.mxu2 %v12103_v57  ;;  %v6634_v62 = vpop.f32.mrf.mxu1 }
 0x1cb   :  { %v11556_v30 = vld [vmem:[#allocation10 + $0x1160] sm:$0xf0]  ;;  %v6633_v16 = vadd.f32 %v6632_v29, %v6620_v8 }
 0x1cc   :  { %v14569_v10 = vld [vmem:[#allocation10 + $0x1344] sm:$0xf]  ;;  %v11559_v38 = vor.u32 %v14505_v22, %v11556_v30  ;;  %6962 = vmatpush.bf16.msra.mxu3 %v12359_v32 }
 0x1cd   :  { %v11812_v24 = vld [vmem:[#allocation10 + $0x1360] sm:$0xf0]  ;;  %v6646_v54 = vadd.f32 %v6645_v18, %v6633_v16 }
 0x1ce   :  { %v14633_v33 = vld [vmem:[#allocation10 + $0x1544] sm:$0xf]  ;;  %v11815_v31 = vor.u32 %v14569_v10, %v11812_v24  ;;  %6924 = vmatpush.bf16.msra.mxu0 %v11559_v38 }
 0x1cf   :  { %v12068_v36 = vld [vmem:[#allocation10 + $0x1560] sm:$0xf0]  ;;  %v6659_v30 = vadd.f32 %v6658_v48, %v6646_v54 }
 0x1d0   :  { %v14697_v28 = vld [vmem:[#allocation10 + $0x1744] sm:$0xf]  ;;  %v12071_v11 = vor.u32 %v14633_v33, %v12068_v36  ;;  %6937 = vmatpush.bf16.msra.mxu1 %v11815_v31 }
 0x1d1   :  { %v12324_v42 = vld [vmem:[#allocation10 + $0x1760] sm:$0xf0] }
 0x1d2   :  { %v14497_v34 = vld [vmem:[#allocation10 + $0x1104] sm:$0xf]  ;;  %v12327_v37 = vor.u32 %v14697_v28, %v12324_v42  ;;  %6950 = vmatpush.bf16.msra.mxu2 %v12071_v11 }
 0x1d3   :  { %v11524_v2 = vld [vmem:[#allocation10 + $0x1120] sm:$0xf0] }
 0x1d4   :  { %v14561_v3 = vld [vmem:[#allocation10 + $0x1304] sm:$0xf]  ;;  %v11527_v41 = vor.u32 %v14497_v34, %v11524_v2  ;;  %6963 = vmatpush.bf16.msra.mxu3 %v12327_v37  ;;  %v6647_v37 = vpop.f32.mrf.mxu2 }
 0x1d5   :  { %v11780_v39 = vld [vmem:[#allocation10 + $0x1320] sm:$0xf0] }
 0x1d6   :  { %v14625_v4 = vld [vmem:[#allocation10 + $0x1504] sm:$0xf]  ;;  %v11783_v43 = vor.u32 %v14561_v3, %v11780_v39  ;;  %6925 = vmatpush.bf16.msra.mxu0 %v11527_v41  ;;  %v6660_v3 = vpop.f32.mrf.mxu3 }
 0x1d7   :  { %v12036_v25 = vld [vmem:[#allocation10 + $0x1520] sm:$0xf0] }
 0x1d8   :  { %v14689_v59 = vld [vmem:[#allocation10 + $0x1704] sm:$0xf]  ;;  %v12039_v45 = vor.u32 %v14625_v4, %v12036_v25  ;;  %6938 = vmatpush.bf16.msra.mxu1 %v11783_v43  ;;  %v6671_v25 = vpop.f32.mrf.mxu0 }
 0x1d9   :  { %v12292_v14 = vld [vmem:[#allocation10 + $0x1720] sm:$0xf0] }
 0x1da   :  { %v14489_v15 = vld [vmem:[#allocation10 + $0x10c4] sm:$0xf]  ;;  %v12295_v17 = vor.u32 %v14689_v59, %v12292_v14  ;;  %6951 = vmatpush.bf16.msra.mxu2 %v12039_v45  ;;  %v6684_v59 = vpop.f32.mrf.mxu1 }
 0x1db   :  { %v11492_v44 = vld [vmem:[#allocation10 + $0x10e0] sm:$0xf0] }
 0x1dc   :  { %v14553_v46 = vld [vmem:[#allocation10 + $0x12c4] sm:$0xf]  ;;  %v11495_v9 = vor.u32 %v14489_v15, %v11492_v44  ;;  %6964 = vmatpush.bf16.msra.mxu3 %v12295_v17  ;;  %v6672_v15 = vadd.f32 %v6671_v25, %v6659_v30 }
 0x1dd   :  { %v11748_v19 = vld [vmem:[#allocation10 + $0x12e0] sm:$0xf0] }
 0x1de   :  { %v14617_v47 = vld [vmem:[#allocation10 + $0x14c4] sm:$0xf]  ;;  %v11751_v40 = vor.u32 %v14553_v46, %v11748_v19  ;;  %6926 = vmatpush.bf16.msra.mxu0 %v11495_v9 }
 0x1df   :  { %v12004_v49 = vld [vmem:[#allocation10 + $0x14e0] sm:$0xf0] }
 0x1e0   :  { %v14681_v27 = vld [vmem:[#allocation10 + $0x16c4] sm:$0xf]  ;;  %v12007_v21 = vor.u32 %v14617_v47, %v12004_v49  ;;  %6939 = vmatpush.bf16.msra.mxu1 %v11751_v40  ;;  %v6685_v49 = vadd.f32 %v6684_v59, %v6672_v15 }
 0x1e1   :  { %v12260_v50 = vld [vmem:[#allocation10 + $0x16e0] sm:$0xf0] }
 0x1e2   :  { %v14481_v6 = vld [vmem:[#allocation10 + $0x1084] sm:$0xf]  ;;  %v12263_v57 = vor.u32 %v14681_v27, %v12260_v50  ;;  %6952 = vmatpush.bf16.msra.mxu2 %v12007_v21 }
 0x1e3   :  { %v11460_v22 = vld [vmem:[#allocation10 + $0x10a0] sm:$0xf0] }
 0x1e4   :  { %v14545_v32 = vld [vmem:[#allocation10 + $0x1284] sm:$0xf]  ;;  %v11463_v42 = vor.u32 %v14481_v6, %v11460_v22  ;;  %6965 = vmatpush.bf16.msra.mxu3 %v12263_v57 }
 0x1e5   :  { %v11716_v10 = vld [vmem:[#allocation10 + $0x12a0] sm:$0xf0] }
 0x1e6   :  { %v14609_v24 = vld [vmem:[#allocation10 + $0x1484] sm:$0xf]  ;;  %v11719_v5 = vor.u32 %v14545_v32, %v11716_v10  ;;  %6927 = vmatpush.bf16.msra.mxu0 %v11463_v42 }
 0x1e7   :  { %v11972_v33 = vld [vmem:[#allocation10 + $0x14a0] sm:$0xf0] }
 0x1e8   :  { %v14673_v36 = vld [vmem:[#allocation10 + $0x1684] sm:$0xf]  ;;  %v11975_v31 = vor.u32 %v14609_v24, %v11972_v33  ;;  %6940 = vmatpush.bf16.msra.mxu1 %v11719_v5  ;;  %v6697_v33 = vpop.f32.mrf.mxu2 }
 0x1e9   :  { %v12228_v28 = vld [vmem:[#allocation10 + $0x16a0] sm:$0xf0] }
 0x1ea   :  { %v14473_v29 = vld [vmem:[#allocation10 + $0x1044] sm:$0xf]  ;;  %v12231_v8 = vor.u32 %v14673_v36, %v12228_v28  ;;  %6953 = vmatpush.bf16.msra.mxu2 %v11975_v31  ;;  %v6710_v36 = vpop.f32.mrf.mxu3  ;;  %v6673_v31 = vpop.f32.mrf.mxu0 }
 0x1eb   :  { %v11428_v38 = vld [vmem:[#allocation10 + $0x1060] sm:$0xf0] }
 0x1ec   :  { %v14537_v34 = vld [vmem:[#allocation10 + $0x1244] sm:$0xf]  ;;  %v11431_v41 = vor.u32 %v14473_v29, %v11428_v38  ;;  %6966 = vmatpush.bf16.msra.mxu3 %v12231_v8  ;;  %v6698_v38 = vadd.f32 %v6697_v33, %v6685_v49  ;;  %v6686_v8 = vpop.f32.mrf.mxu1 }
 0x1ed   :  { %v11684_v2 = vld [vmem:[#allocation10 + $0x1260] sm:$0xf0] }
 0x1ee   :  { %v14601_v11 = vld [vmem:[#allocation10 + $0x1444] sm:$0xf]  ;;  %v11687_v43 = vor.u32 %v14537_v34, %v11684_v2  ;;  %6928 = vmatpush.bf16.msra.mxu0 %v11431_v41 }
 0x1ef   :  { %v11940_v39 = vld [vmem:[#allocation10 + $0x1460] sm:$0xf0] }
 0x1f0   :  { %v14665_v4 = vld [vmem:[#allocation10 + $0x1644] sm:$0xf]  ;;  %v11943_v46 = vor.u32 %v14601_v11, %v11940_v39  ;;  %6941 = vmatpush.bf16.msra.mxu1 %v11687_v43 }
 0x1f1   :  { %v12196_v16 = vld [vmem:[#allocation10 + $0x1660] sm:$0xf0] }
 0x1f2   :  { %v14465_v14 = vld [vmem:[#allocation10 + $0x1004] sm:$0xf]  ;;  %v12199_v19 = vor.u32 %v14665_v4, %v12196_v16  ;;  %6954 = vmatpush.bf16.msra.mxu2 %v11943_v46  ;;  %v6711_v4 = vadd.f32 %v6710_v36, %v6698_v38  ;;  %v6712_v49 = vpop.f32.mrf.mxu3 }
 0x1f3   :  { %v11396_v44 = vld [vmem:[#allocation10 + $0x1020] sm:$0xf0] }
 0x1f4   :  { %v14529_v45 = vld [vmem:[#allocation10 + $0x1204] sm:$0xf]  ;;  %v11399_v40 = vor.u32 %v14465_v14, %v11396_v44  ;;  %6967 = vmatpush.bf16.msra.mxu3 %v12199_v19 }
 0x1f5   :  { %v11652_v17 = vld [vmem:[#allocation10 + $0x1220] sm:$0xf0] }
 0x1f6   :  { %v14593_v47 = vld [vmem:[#allocation10 + $0x1404] sm:$0xf]  ;;  %v11655_v6 = vor.u32 %v14529_v45, %v11652_v17  ;;  %6929 = vmatpush.bf16.msra.mxu0 %v11399_v40 }
 0x1f7   :  { %v11908_v18 = vld [vmem:[#allocation10 + $0x1420] sm:$0xf0] }
 0x1f8   :  { %v14657_v48 = vld [vmem:[#allocation10 + $0x1604] sm:$0xf]  ;;  %v11911_v57 = vor.u32 %v14593_v47, %v11908_v18  ;;  %6942 = vmatpush.bf16.msra.mxu1 %v11655_v6 }
 0x1f9   :  { %v12164_v27 = vld [vmem:[#allocation10 + $0x1620] sm:$0xf0]  ;;  %6930 = vmatmul.bf16.vlgmr.msra.gmra.mxu0 %v15617_v55 }
 0x1fa   :  { %v14777_v50 = vld [vmem:[#allocation10 + $0x19c4] sm:$0xf]  ;;  %v12167_v32 = vor.u32 %v14657_v48, %v12164_v27  ;;  %6955 = vmatpush.bf16.msra.mxu2 %v11911_v57  ;;  %v6699_v48 = vpop.f32.mrf.mxu2  ;;  %v6736_v57 = vpop.f32.mrf.mxu1 }
 0x1fb   :  { %v12644_v54 = vld [vmem:[#allocation10 + $0x19e0] sm:$0xf0]  ;;  %6943 = vmatmul.bf16.vlgmr.msra.gmra.mxu1 %v15619_v60 }
 0x1fc   :  { %v14841_v58 = vld [vmem:[#allocation10 + $0x1bc4] sm:$0xf]  ;;  %v12647_v10 = vor.u32 %v14777_v50, %v12644_v54  ;;  %6968 = vmatpush.bf16.msra.mxu3 %v12167_v32 }
 0x1fd   :  { %v12900_v62 = vld [vmem:[#allocation10 + $0x1be0] sm:$0xf0]  ;;  %6956 = vmatmul.bf16.vlgmr.msra.gmra.mxu2 %v15621_v13 }
 0x1fe   :  { %v14905_v9 = vld [vmem:[#allocation10 + $0x1dc4] sm:$0xf]  ;;  %v12903_v24 = vor.u32 %v14841_v58, %v12900_v62  ;;  %6974 = vmatpush.bf16.msrb.mxu0 %v12647_v10 }
 0x1ff   :  { %v13156_v22 = vld [vmem:[#allocation10 + $0x1de0] sm:$0xf0]  ;;  %6969 = vmatmul.bf16.vlgmr.msra.gmra.mxu3 %v15623_v61 }
 0x200   :  { %v14969_v30 = vld [vmem:[#allocation10 + $0x1fc4] sm:$0xf]  ;;  %v13159_v5 = vor.u32 %v14905_v9, %v13156_v22  ;;  %6987 = vmatpush.bf16.msrb.mxu1 %v12903_v24 }
 0x201   :  { %v13412_v21 = vld [vmem:[#allocation10 + $0x1fe0] sm:$0xf0] }
 0x202   :  { %v14769_v28 = vld [vmem:[#allocation10 + $0x1984] sm:$0xf]  ;;  %v13415_v29 = vor.u32 %v14969_v30, %v13412_v21  ;;  %7000 = vmatpush.bf16.msrb.mxu2 %v13159_v5  ;;  %v6723_v21 = vpop.f32.mrf.mxu0 }
 0x203   :  { %v12612_v42 = vld [vmem:[#allocation10 + $0x19a0] sm:$0xf0]  ;;  %v6724_v32 = vadd.f32 %v6723_v21, %v6711_v4 }
 0x204   :  { %v14833_v34 = vld [vmem:[#allocation10 + $0x1b84] sm:$0xf]  ;;  %v12615_v16 = vor.u32 %v14769_v28, %v12612_v42  ;;  %7013 = vmatpush.bf16.msrb.mxu3 %v13415_v29 }
 0x205   :  { %v12868_v2 = vld [vmem:[#allocation10 + $0x1ba0] sm:$0xf0]  ;;  %v6737_v31 = vadd.f32 %v6736_v57, %v6724_v32 }
 0x206   :  { %v14897_v11 = vld [vmem:[#allocation10 + $0x1d84] sm:$0xf]  ;;  %v12871_v25 = vor.u32 %v14833_v34, %v12868_v2  ;;  %6975 = vmatpush.bf16.msrb.mxu0 %v12615_v16 }
 0x207   :  { %v13124_v37 = vld [vmem:[#allocation10 + $0x1da0] sm:$0xf0] }
 0x208   :  { %v14961_v3 = vld [vmem:[#allocation10 + $0x1f84] sm:$0xf]  ;;  %v13127_v41 = vor.u32 %v14897_v11, %v13124_v37  ;;  %6988 = vmatpush.bf16.msrb.mxu1 %v12871_v25 }
 0x209   :  { %v13380_v39 = vld [vmem:[#allocation10 + $0x1fa0] sm:$0xf0] }
 0x20a   :  { %v14761_v59 = vld [vmem:[#allocation10 + $0x1944] sm:$0xf]  ;;  %v13383_v43 = vor.u32 %v14961_v3, %v13380_v39  ;;  %7001 = vmatpush.bf16.msrb.mxu2 %v13127_v41  ;;  %v6749_v41 = vpop.f32.mrf.mxu2 }
 0x20b   :  { %v12580_v14 = vld [vmem:[#allocation10 + $0x1960] sm:$0xf0] }
 0x20c   :  { %v14825_v15 = vld [vmem:[#allocation10 + $0x1b44] sm:$0xf]  ;;  %v12583_v47 = vor.u32 %v14761_v59, %v12580_v14  ;;  %7014 = vmatpush.bf16.msrb.mxu3 %v13383_v43  ;;  %v6762_v43 = vpop.f32.mrf.mxu3 }
 0x20d   :  { %v12836_v44 = vld [vmem:[#allocation10 + $0x1b60] sm:$0xf0] }
 0x20e   :  { %v14889_v45 = vld [vmem:[#allocation10 + $0x1d44] sm:$0xf]  ;;  %v12839_v18 = vor.u32 %v14825_v15, %v12836_v44  ;;  %6976 = vmatpush.bf16.msrb.mxu0 %v12583_v47 }
 0x20f   :  { %v13092_v17 = vld [vmem:[#allocation10 + $0x1d60] sm:$0xf0] }
 0x210   :  { %v14953_v46 = vld [vmem:[#allocation10 + $0x1f44] sm:$0xf]  ;;  %v13095_v54 = vor.u32 %v14889_v45, %v13092_v17  ;;  %6989 = vmatpush.bf16.msrb.mxu1 %v12839_v18  ;;  %v6750_v17 = vadd.f32 %v6749_v41, %v6737_v31 }
 0x211   :  { %v13348_v19 = vld [vmem:[#allocation10 + $0x1f60] sm:$0xf0] }
 0x212   :  { %v14753_v27 = vld [vmem:[#allocation10 + $0x1904] sm:$0xf]  ;;  %v13351_v58 = vor.u32 %v14953_v46, %v13348_v19  ;;  %7002 = vmatpush.bf16.msrb.mxu2 %v13095_v54  ;;  %v6725_v46 = vpop.f32.mrf.mxu0  ;;  %v6738_v19 = vpop.f32.mrf.mxu1 }
 0x213   :  { %v12548_v50 = vld [vmem:[#allocation10 + $0x1920] sm:$0xf0]  ;;  %v9802_v46 = vld [vmem:[#allocation10 + $0x388] sm:$0xf] }
 0x214   :  { %v14817_v62 = vld [vmem:[#allocation10 + $0x1b04] sm:$0xf]  ;;  %v12551_v10 = vor.u32 %v14753_v27, %v12548_v50  ;;  %7015 = vmatpush.bf16.msrb.mxu3 %v13351_v58  ;;  %v15660_v27 = vadd.f32 %v6762_v43, %v6750_v17  ;;  %v14070_v19 = vld [vmem:[#allocation10 + $0x3a4] sm:$0xf0] }
 0x215   :  { %v12804_v9 = vld [vmem:[#allocation10 + $0x1b20] sm:$0xf0] }
 0x216   :  { %v14881_v40 = vld [vmem:[#allocation10 + $0x1d04] sm:$0xf]  ;;  %v12807_v24 = vor.u32 %v14817_v62, %v12804_v9  ;;  %6977 = vmatpush.bf16.msrb.mxu0 %v12551_v10 }
 0x217   :  { %v13060_v6 = vld [vmem:[#allocation10 + $0x1d20] sm:$0xf0] }
 0x218   :  { %v14945_v22 = vld [vmem:[#allocation10 + $0x1f04] sm:$0xf]  ;;  %v13063_v28 = vor.u32 %v14881_v40, %v13060_v6  ;;  %6990 = vmatpush.bf16.msrb.mxu1 %v12807_v24 }
 0x219   :  { %v13316_v30 = vld [vmem:[#allocation10 + $0x1f20] sm:$0xf0] }
 0x21a   :  { %v14745_v33 = vld [vmem:[#allocation10 + $0x18c4] sm:$0xf]  ;;  %v13319_v42 = vor.u32 %v14945_v22, %v13316_v30  ;;  %7003 = vmatpush.bf16.msrb.mxu2 %v13063_v28 }
 0x21b   :  { %v12516_v36 = vld [vmem:[#allocation10 + $0x18e0] sm:$0xf0] }
 0x21c   :  { %v14809_v5 = vld [vmem:[#allocation10 + $0x1ac4] sm:$0xf]  ;;  %v12519_v11 = vor.u32 %v14745_v33, %v12516_v36  ;;  %7016 = vmatpush.bf16.msrb.mxu3 %v13319_v42 }
 0x21d   :  { %v12772_v29 = vld [vmem:[#allocation10 + $0x1ae0] sm:$0xf0] }
 0x21e   :  { %v14873_v38 = vld [vmem:[#allocation10 + $0x1cc4] sm:$0xf]  ;;  %v12775_v37 = vor.u32 %v14809_v5, %v12772_v29  ;;  %6978 = vmatpush.bf16.msrb.mxu0 %v12519_v11  ;;  %v6751_v29 = vpop.f32.mrf.mxu2  ;;  %v14078_v11 = vld [vmem:[#allocation10 + $0x3e4] sm:$0xf0] }
 0x21f   :  { %v13028_v8 = vld [vmem:[#allocation10 + $0x1ce0] sm:$0xf0]  ;;  %v14054_v29 = vld [vmem:[#allocation10 + $0x324] sm:$0xf0] }
 0x220   :  { %v14937_v34 = vld [vmem:[#allocation10 + $0x1ec4] sm:$0xf]  ;;  %v13031_v4 = vor.u32 %v14873_v38, %v13028_v8  ;;  %6991 = vmatpush.bf16.msrb.mxu1 %v12775_v37  ;;  %v6764_v38 = vpop.f32.mrf.mxu3  ;;  %v9578_v8 = vld [vmem:[#allocation10 + $0x1c8] sm:$0xf] }
 0x221   :  { %v13284_v2 = vld [vmem:[#allocation10 + $0x1ee0] sm:$0xf0]  ;;  %v10090_v37 = vld [vmem:[#allocation10 + $0x5c8] sm:$0xf] }
 0x222   :  { %v14737_v3 = vld [vmem:[#allocation10 + $0x1884] sm:$0xf]  ;;  %v13287_v16 = vor.u32 %v14937_v34, %v13284_v2  ;;  %7004 = vmatpush.bf16.msrb.mxu2 %v13031_v4  ;;  %v14014_v34 = vld [vmem:[#allocation10 + $0x1e4] sm:$0xf0] }
 0x223   :  { %v12484_v39 = vld [vmem:[#allocation10 + $0x18a0] sm:$0xf0]  ;;  %v9834_v2 = vld [vmem:[#allocation10 + $0x3c8] sm:$0xf]  ;;  %v9579_v41 = vor.u32 %v14014_v34, %v9578_v8 }
 0x224   :  { %v14801_v25 = vld [vmem:[#allocation10 + $0x1a84] sm:$0xf]  ;;  %v12487_v47 = vor.u32 %v14737_v3, %v12484_v39  ;;  %7017 = vmatpush.bf16.msrb.mxu3 %v13287_v16  ;;  %v14142_v4 = vld [vmem:[#allocation10 + $0x5e4] sm:$0xf0]  ;;  %v9835_v43 = vor.u32 %v14078_v11, %v9834_v2  ;;  %v6775_v2 = vpop.f32.mrf.mxu0  ;;  %v6788_v11 = vpop.f32.mrf.mxu1 }
 0x225   :  { %v12740_v59 = vld [vmem:[#allocation10 + $0x1aa0] sm:$0xf0]  ;;  %v10346_v16 = vld [vmem:[#allocation10 + $0x7c8] sm:$0xf] }
 0x226   :  { %v14865_v14 = vld [vmem:[#allocation10 + $0x1c84] sm:$0xf]  ;;  %v12743_v18 = vor.u32 %v14801_v25, %v12740_v59  ;;  %6979 = vmatpush.bf16.msrb.mxu0 %v12487_v47  ;;  %v14206_v25 = vld [vmem:[#allocation10 + $0x7e4] sm:$0xf0] }
 0x227   :  { %v12996_v15 = vld [vmem:[#allocation10 + $0x1ca0] sm:$0xf0]  ;;  %v10347_v17 = vor.u32 %v14206_v25, %v10346_v16  ;;  %v10058_v47 = vld [vmem:[#allocation10 + $0x588] sm:$0xf] }
 0x228   :  { %v14929_v44 = vld [vmem:[#allocation10 + $0x1e84] sm:$0xf]  ;;  %v12999_v50 = vor.u32 %v14865_v14, %v12996_v15  ;;  %6992 = vmatpush.bf16.msrb.mxu1 %v12743_v18  ;;  %v9546_v15 = vld [vmem:[#allocation10 + $0x188] sm:$0xf] }
 0x229   :  { %v13252_v45 = vld [vmem:[#allocation10 + $0x1ea0] sm:$0xf0]  ;;  %v14134_v18 = vld [vmem:[#allocation10 + $0x5a4] sm:$0xf0] }
 0x22a   :  { %v14729_v48 = vld [vmem:[#allocation10 + $0x1844] sm:$0xf]  ;;  %v13255_v54 = vor.u32 %v14929_v44, %v13252_v45  ;;  %7005 = vmatpush.bf16.msrb.mxu2 %v12999_v50  ;;  %v14006_v44 = vld [vmem:[#allocation10 + $0x1a4] sm:$0xf0]  ;;  %v10091_v45 = vor.u32 %v14142_v4, %v10090_v37  ;;  %v6776_v37 = vadd.f32 %v6775_v2, %v15660_v27 }
 0x22b   :  { %v12452_v49 = vld [vmem:[#allocation10 + $0x1860] sm:$0xf0]  ;;  %v9547_v50 = vor.u32 %v14006_v44, %v9546_v15  ;;  %v9994_v38 = vld [vmem:[#allocation10 + $0x508] sm:$0xf] }
 0x22c   :  { %v14793_v58 = vld [vmem:[#allocation10 + $0x1a44] sm:$0xf]  ;;  %v12455_v21 = vor.u32 %v14729_v48, %v12452_v49  ;;  %7018 = vmatpush.bf16.msrb.mxu3 %v13255_v54  ;;  %v10314_v48 = vld [vmem:[#allocation10 + $0x788] sm:$0xf]  ;;  %v9803_v54 = vor.u32 %v14070_v19, %v9802_v46  ;;  %v6789_v15 = vadd.f32 %v6788_v11, %v6776_v37 }
 0x22d   :  { %v12708_v62 = vld [vmem:[#allocation10 + $0x1a60] sm:$0xf0]  ;;  %v14198_v49 = vld [vmem:[#allocation10 + $0x7a4] sm:$0xf0] }
 0x22e   :  { %v14857_v9 = vld [vmem:[#allocation10 + $0x1c44] sm:$0xf]  ;;  %v12711_v57 = vor.u32 %v14793_v58, %v12708_v62  ;;  %6980 = vmatpush.bf16.msrb.mxu0 %v12455_v21  ;;  %v9514_v58 = vld [vmem:[#allocation10 + $0x148] sm:$0xf] }
 0x22f   :  { %v12964_v40 = vld [vmem:[#allocation10 + $0x1c60] sm:$0xf0]  ;;  %v13998_v62 = vld [vmem:[#allocation10 + $0x164] sm:$0xf0] }
 0x230   :  { %v14921_v6 = vld [vmem:[#allocation10 + $0x1e44] sm:$0xf]  ;;  %v12967_v33 = vor.u32 %v14857_v9, %v12964_v40  ;;  %6993 = vmatpush.bf16.msrb.mxu1 %v12711_v57  ;;  %v10059_v9 = vor.u32 %v14134_v18, %v10058_v47  ;;  %v10315_v40 = vor.u32 %v14198_v49, %v10314_v48  ;;  %v14126_v21 = vld [vmem:[#allocation10 + $0x564] sm:$0xf0] }
 0x231   :  { %v13220_v22 = vld [vmem:[#allocation10 + $0x1e60] sm:$0xf0]  ;;  %v10282_v57 = vld [vmem:[#allocation10 + $0x748] sm:$0xf] }
 0x232   :  { %v14721_v30 = vld [vmem:[#allocation10 + $0x1804] sm:$0xf]  ;;  %v13223_v36 = vor.u32 %v14921_v6, %v13220_v22  ;;  %7006 = vmatpush.bf16.msrb.mxu2 %v12967_v33  ;;  %v9770_v6 = vld [vmem:[#allocation10 + $0x348] sm:$0xf] }
 0x233   :  { %v12420_v32 = vld [vmem:[#allocation10 + $0x1820] sm:$0xf0]  ;;  %v14062_v22 = vld [vmem:[#allocation10 + $0x364] sm:$0xf0] }
 0x234   :  { %v14785_v10 = vld [vmem:[#allocation10 + $0x1a04] sm:$0xf]  ;;  %v12423_v3 = vor.u32 %v14721_v30, %v12420_v32  ;;  %7019 = vmatpush.bf16.msrb.mxu3 %v13223_v36  ;;  %v10026_v30 = vld [vmem:[#allocation10 + $0x548] sm:$0xf] }
 0x235   :  { %v12676_v24 = vld [vmem:[#allocation10 + $0x1a20] sm:$0xf0]  ;;  %v14190_v32 = vld [vmem:[#allocation10 + $0x764] sm:$0xf0] }
 0x236   :  { %v14849_v28 = vld [vmem:[#allocation10 + $0x1c04] sm:$0xf]  ;;  %v12679_v39 = vor.u32 %v14785_v10, %v12676_v24  ;;  %6981 = vmatpush.bf16.msrb.mxu0 %v12423_v3  ;;  %v9515_v10 = vor.u32 %v13998_v62, %v9514_v58  ;;  %v9771_v24 = vor.u32 %v14062_v22, %v9770_v6  ;;  %v9482_v33 = vld [vmem:[#allocation10 + $0x108] sm:$0xf]  ;;  %v6801_v58 = vpop.f32.mrf.mxu2  ;;  %v6814_v62 = vpop.f32.mrf.mxu3 }
 0x237   :  { %v12932_v42 = vld [vmem:[#allocation10 + $0x1c20] sm:$0xf0]  ;;  %v13990_v36 = vld [vmem:[#allocation10 + $0x124] sm:$0xf0]  ;;  %v6802_v22 = vadd.f32 %v6801_v58, %v6789_v15 }
 0x238   :  { %v14913_v5 = vld [vmem:[#allocation10 + $0x1e04] sm:$0xf]  ;;  %v12935_v59 = vor.u32 %v14849_v28, %v12932_v42  ;;  %6994 = vmatpush.bf16.msrb.mxu1 %v12679_v39  ;;  %v10027_v28 = vor.u32 %v14126_v21, %v10026_v30  ;;  %v10283_v42 = vor.u32 %v14190_v32, %v10282_v57  ;;  %v10250_v8 = vld [vmem:[#allocation10 + $0x708] sm:$0xf]  ;;  %v9483_v3 = vor.u32 %v13990_v36, %v9482_v33  ;;  %v6777_v30 = vpop.f32.mrf.mxu0  ;;  %v6790_v21 = vpop.f32.mrf.mxu1 }
 0x239   :  { %v13188_v31 = vld [vmem:[#allocation10 + $0x1e20] sm:$0xf0]  ;;  %6982 = vmatmul.bf16.vlgmr.msrb.gmra.mxu0 %v15633_v1  ;;  %v14182_v34 = vld [vmem:[#allocation10 + $0x724] sm:$0xf0]  ;;  %v15667_v33 = vadd.f32 %v6814_v62, %v6802_v22 }
 0x23a   :  { %v13191_v14 = vor.u32 %v14913_v5, %v13188_v31  ;;  %7007 = vmatpush.bf16.msrb.mxu2 %v12935_v59  ;;  %7026 = vmatpush.bf16.msra.mxu0 %v9579_v41  ;;  %v9738_v5 = vld [vmem:[#allocation10 + $0x308] sm:$0xf]  ;;  %v10251_v59 = vor.u32 %v14182_v34, %v10250_v8 }
 0x23b   :  { %6995 = vmatmul.bf16.vlgmr.msrb.gmra.mxu1 %v15635_v63  ;;  %v14118_v31 = vld [vmem:[#allocation10 + $0x524] sm:$0xf0]  ;;  %v9739_v39 = vor.u32 %v14054_v29, %v9738_v5 }
 0x23c   :  { %7020 = vmatpush.bf16.msrb.mxu3 %v13191_v14  ;;  %7039 = vmatpush.bf16.msra.mxu1 %v9835_v43  ;;  %v9450_v4 = vld [vmem:[#allocation10 + $0xc8] sm:$0xf]  ;;  %v9995_v25 = vor.u32 %v14118_v31, %v9994_v38 }
 0x23d   :  { %7008 = vmatmul.bf16.vlgmr.msrb.gmra.mxu2 %v15637_v0  ;;  %v13982_v16 = vld [vmem:[#allocation10 + $0xe4] sm:$0xf0] }
 0x23e   :  { %7052 = vmatpush.bf16.msra.mxu2 %v10091_v45  ;;  %7027 = vmatpush.bf16.msra.mxu0 %v9547_v50  ;;  %v9706_v14 = vld [vmem:[#allocation10 + $0x2c8] sm:$0xf]  ;;  %v9451_v46 = vor.u32 %v13982_v16, %v9450_v4 }
 0x23f   :  { %7021 = vmatmul.bf16.vlgmr.msrb.gmra.mxu3 %v15639_v23  ;;  %v14046_v41 = vld [vmem:[#allocation10 + $0x2e4] sm:$0xf0] }
 0x240   :  { %7065 = vmatpush.bf16.msra.mxu3 %v10347_v17  ;;  %7040 = vmatpush.bf16.msra.mxu1 %v9803_v54  ;;  %v9962_v43 = vld [vmem:[#allocation10 + $0x4c8] sm:$0xf]  ;;  %v9707_v19 = vor.u32 %v14046_v41, %v9706_v14  ;;  %v6803_v41 = vpop.f32.mrf.mxu2 }
 0x241   :  { %v14110_v44 = vld [vmem:[#allocation10 + $0x4e4] sm:$0xf0] }
 0x242   :  { %7053 = vmatpush.bf16.msra.mxu2 %v10059_v9  ;;  %7028 = vmatpush.bf16.msra.mxu0 %v9515_v10  ;;  %v10218_v45 = vld [vmem:[#allocation10 + $0x6c8] sm:$0xf]  ;;  %v9963_v18 = vor.u32 %v14110_v44, %v9962_v43  ;;  %v6816_v43 = vpop.f32.mrf.mxu3 }
 0x243   :  { %v14174_v17 = vld [vmem:[#allocation10 + $0x6e4] sm:$0xf0] }
 0x244   :  { %7066 = vmatpush.bf16.msra.mxu3 %v10315_v40  ;;  %7041 = vmatpush.bf16.msra.mxu1 %v9771_v24  ;;  %v9418_v27 = vld [vmem:[#allocation10 + $0x88] sm:$0xf]  ;;  %v10219_v48 = vor.u32 %v14174_v17, %v10218_v45 }
 0x245   :  { %v13974_v47 = vld [vmem:[#allocation10 + $0xa4] sm:$0xf0] }
 0x246   :  { %7054 = vmatpush.bf16.msra.mxu2 %v10027_v28  ;;  %7029 = vmatpush.bf16.msra.mxu0 %v9483_v3  ;;  %v9674_v49 = vld [vmem:[#allocation10 + $0x288] sm:$0xf]  ;;  %v9419_v57 = vor.u32 %v13974_v47, %v9418_v27 }
 0x247   :  { %v14038_v50 = vld [vmem:[#allocation10 + $0x2a4] sm:$0xf0] }
 0x248   :  { %7067 = vmatpush.bf16.msra.mxu3 %v10283_v42  ;;  %7042 = vmatpush.bf16.msra.mxu1 %v9739_v39  ;;  %v9930_v54 = vld [vmem:[#allocation10 + $0x488] sm:$0xf]  ;;  %v9675_v32 = vor.u32 %v14038_v50, %v9674_v49 }
 0x249   :  { %v14102_v9 = vld [vmem:[#allocation10 + $0x4a4] sm:$0xf0] }
 0x24a   :  { %7055 = vmatpush.bf16.msra.mxu2 %v9995_v25  ;;  %v10186_v40 = vld [vmem:[#allocation10 + $0x688] sm:$0xf]  ;;  %7030 = vmatpush.bf16.msra.mxu0 %v9451_v46  ;;  %v9931_v36 = vor.u32 %v14102_v9, %v9930_v54 }
 0x24b   :  { %v14166_v6 = vld [vmem:[#allocation10 + $0x6a4] sm:$0xf0] }
 0x24c   :  { %7068 = vmatpush.bf16.msra.mxu3 %v10251_v59  ;;  %7043 = vmatpush.bf16.msra.mxu1 %v9707_v19  ;;  %v9386_v10 = vld [vmem:[#allocation10 + $0x48] sm:$0xf]  ;;  %v10187_v28 = vor.u32 %v14166_v6, %v10186_v40 }
 0x24d   :  { %v13966_v24 = vld [vmem:[#allocation10 + $0x64] sm:$0xf0] }
 0x24e   :  { %7056 = vmatpush.bf16.msra.mxu2 %v9963_v18  ;;  %v9642_v42 = vld [vmem:[#allocation10 + $0x248] sm:$0xf]  ;;  %7031 = vmatpush.bf16.msra.mxu0 %v9419_v57  ;;  %v9387_v2 = vor.u32 %v13966_v24, %v9386_v10 }
 0x24f   :  { %v14030_v5 = vld [vmem:[#allocation10 + $0x264] sm:$0xf0] }
 0x250   :  { %7069 = vmatpush.bf16.msra.mxu3 %v10219_v48  ;;  %v9898_v29 = vld [vmem:[#allocation10 + $0x448] sm:$0xf]  ;;  %7044 = vmatpush.bf16.msra.mxu1 %v9675_v32  ;;  %v9643_v11 = vor.u32 %v14030_v5, %v9642_v42 }
 0x251   :  { %v14094_v38 = vld [vmem:[#allocation10 + $0x464] sm:$0xf0] }
 0x252   :  { %v10154_v31 = vld [vmem:[#allocation10 + $0x648] sm:$0xf]  ;;  %7057 = vmatpush.bf16.msra.mxu2 %v9931_v36  ;;  %v9899_v4 = vor.u32 %v14094_v38, %v9898_v29  ;;  %7032 = vmatpush.bf16.msra.mxu0 %v9387_v2 }
 0x253   :  { %v14158_v8 = vld [vmem:[#allocation10 + $0x664] sm:$0xf0] }
 0x254   :  { %v9354_v34 = vld [vmem:[#allocation10 + $0x8] sm:$0xf]  ;;  %7070 = vmatpush.bf16.msra.mxu3 %v10187_v28  ;;  %v10155_v16 = vor.u32 %v14158_v8, %v10154_v31  ;;  %7045 = vmatpush.bf16.msra.mxu1 %v9643_v11 }
 0x255   :  { %v13958_v37 = vld [vmem:[#allocation10 + $0x24] sm:$0xf0] }
 0x256   :  { %v9610_v3 = vld [vmem:[#allocation10 + $0x208] sm:$0xf]  ;;  %v9355_v27 = vor.u32 %v13958_v37, %v9354_v34  ;;  %7058 = vmatpush.bf16.msra.mxu2 %v9899_v4  ;;  %v1419_v4 = vperm.slane %v15649_v51, 1 }
 0x257   :  { %v14022_v39 = vld [vmem:[#allocation10 + $0x224] sm:$0xf0] }
 0x258   :  { %v9866_v25 = vld [vmem:[#allocation10 + $0x408] sm:$0xf]  ;;  %v9611_v47 = vor.u32 %v14022_v39, %v9610_v3  ;;  %7071 = vmatpush.bf16.msra.mxu3 %v10155_v16  ;;  %7033 = vmatpush.bf16.msra.mxu0 %v9355_v27 }
 0x259   :  { %v14086_v59 = vld [vmem:[#allocation10 + $0x424] sm:$0xf0] }
 0x25a   :  { %v10122_v14 = vld [vmem:[#allocation10 + $0x608] sm:$0xf]  ;;  %v9867_v50 = vor.u32 %v14086_v59, %v9866_v25  ;;  %7046 = vmatpush.bf16.msra.mxu1 %v9611_v47 }
 0x25b   :  { %v14150_v15 = vld [vmem:[#allocation10 + $0x624] sm:$0xf0]  ;;  %7034 = vmatmul.bf16.vlgmr.msra.gmra.mxu0 %v15550_v52 }
 0x25c   :  { %v10602_v44 = vld [vmem:[#allocation10 + $0x9c8] sm:$0xf]  ;;  %v10123_v54 = vor.u32 %v14150_v15, %v10122_v14  ;;  %7059 = vmatpush.bf16.msra.mxu2 %v9867_v50 }
 0x25d   :  { %v14270_v45 = vld [vmem:[#allocation10 + $0x9e4] sm:$0xf0]  ;;  %7047 = vmatmul.bf16.vlgmr.msra.gmra.mxu1 %v15552_v53 }
 0x25e   :  { %v10858_v17 = vld [vmem:[#allocation10 + $0xbc8] sm:$0xf]  ;;  %v10603_v58 = vor.u32 %v14270_v45, %v10602_v44  ;;  %7072 = vmatpush.bf16.msra.mxu3 %v10123_v54 }
 0x25f   :  { %v14334_v46 = vld [vmem:[#allocation10 + $0xbe4] sm:$0xf0]  ;;  %7060 = vmatmul.bf16.vlgmr.msra.gmra.mxu2 %v15554_v26 }
 0x260   :  { %v11114_v19 = vld [vmem:[#allocation10 + $0xdc8] sm:$0xf]  ;;  %v10859_v62 = vor.u32 %v14334_v46, %v10858_v17  ;;  %7078 = vmatpush.bf16.msrb.mxu0 %v10603_v58  ;;  %v6827_v46 = vpop.f32.mrf.mxu0 }
 0x261   :  { %v14398_v18 = vld [vmem:[#allocation10 + $0xde4] sm:$0xf0]  ;;  %7073 = vmatmul.bf16.vlgmr.msra.gmra.mxu3 %v15556_v56  ;;  %v6828_v27 = vadd.f32 %v6827_v46, %v1419_v4 }
 0x262   :  { %v11370_v48 = vld [vmem:[#allocation10 + $0xfc8] sm:$0xf]  ;;  %v11115_v6 = vor.u32 %v14398_v18, %v11114_v19  ;;  %7091 = vmatpush.bf16.msrb.mxu1 %v10859_v62  ;;  %v6840_v19 = vpop.f32.mrf.mxu1 }
 0x263   :  { %v14462_v49 = vld [vmem:[#allocation10 + $0xfe4] sm:$0xf0] }
 0x264   :  { %v10570_v9 = vld [vmem:[#allocation10 + $0x988] sm:$0xf]  ;;  %v11371_v22 = vor.u32 %v14462_v49, %v11370_v48  ;;  %7104 = vmatpush.bf16.msrb.mxu2 %v11115_v6 }
 0x265   :  { %v14262_v40 = vld [vmem:[#allocation10 + $0x9a4] sm:$0xf0] }
 0x266   :  { %v10826_v30 = vld [vmem:[#allocation10 + $0xb88] sm:$0xf]  ;;  %v10571_v36 = vor.u32 %v14262_v40, %v10570_v9  ;;  %7117 = vmatpush.bf16.msrb.mxu3 %v11371_v22  ;;  %v6841_v9 = vadd.f32 %v6840_v19, %v6828_v27 }
 0x267   :  { %v14326_v21 = vld [vmem:[#allocation10 + $0xba4] sm:$0xf0] }
 0x268   :  { %v11082_v57 = vld [vmem:[#allocation10 + $0xd88] sm:$0xf]  ;;  %v10827_v28 = vor.u32 %v14326_v21, %v10826_v30  ;;  %7079 = vmatpush.bf16.msrb.mxu0 %v10571_v36 }
 0x269   :  { %v14390_v32 = vld [vmem:[#allocation10 + $0xda4] sm:$0xf0] }
 0x26a   :  { %v11338_v10 = vld [vmem:[#allocation10 + $0xf88] sm:$0xf]  ;;  %v11083_v29 = vor.u32 %v14390_v32, %v11082_v57  ;;  %7092 = vmatpush.bf16.msrb.mxu1 %v10827_v28 }
 0x26b   :  { %v14454_v24 = vld [vmem:[#allocation10 + $0xfa4] sm:$0xf0] }
 0x26c   :  { %v10538_v42 = vld [vmem:[#allocation10 + $0x948] sm:$0xf]  ;;  %v11339_v38 = vor.u32 %v14454_v24, %v11338_v10  ;;  %7105 = vmatpush.bf16.msrb.mxu2 %v11083_v29  ;;  %v6866_v29 = vpop.f32.mrf.mxu3 }
 0x26d   :  { %v14254_v5 = vld [vmem:[#allocation10 + $0x964] sm:$0xf0] }
 0x26e   :  { %v10794_v31 = vld [vmem:[#allocation10 + $0xb48] sm:$0xf]  ;;  %v10539_v3 = vor.u32 %v14254_v5, %v10538_v42  ;;  %7118 = vmatpush.bf16.msrb.mxu3 %v11339_v38  ;;  %v6853_v5 = vpop.f32.mrf.mxu2 }
 0x26f   :  { %v14318_v8 = vld [vmem:[#allocation10 + $0xb64] sm:$0xf0] }
 0x270   :  { %v11050_v34 = vld [vmem:[#allocation10 + $0xd48] sm:$0xf]  ;;  %v10795_v39 = vor.u32 %v14318_v8, %v10794_v31  ;;  %7080 = vmatpush.bf16.msrb.mxu0 %v10539_v3 }
 0x271   :  { %v14382_v2 = vld [vmem:[#allocation10 + $0xd64] sm:$0xf0] }
 0x272   :  { %v11306_v11 = vld [vmem:[#allocation10 + $0xf48] sm:$0xf]  ;;  %v11051_v59 = vor.u32 %v14382_v2, %v11050_v34  ;;  %7093 = vmatpush.bf16.msrb.mxu1 %v10795_v39  ;;  %v6854_v34 = vadd.f32 %v6853_v5, %v6841_v9  ;;  %v6829_v2 = vpop.f32.mrf.mxu0 }
 0x273   :  { %v14446_v37 = vld [vmem:[#allocation10 + $0xf64] sm:$0xf0] }
 0x274   :  { %v10506_v16 = vld [vmem:[#allocation10 + $0x908] sm:$0xf]  ;;  %v11307_v14 = vor.u32 %v14446_v37, %v11306_v11  ;;  %7106 = vmatpush.bf16.msrb.mxu2 %v11051_v59  ;;  %v6842_v11 = vpop.f32.mrf.mxu1 }
 0x275   :  { %v14246_v25 = vld [vmem:[#allocation10 + $0x924] sm:$0xf0] }
 0x276   :  { %v10762_v41 = vld [vmem:[#allocation10 + $0xb08] sm:$0xf]  ;;  %v10507_v47 = vor.u32 %v14246_v25, %v10506_v16  ;;  %7119 = vmatpush.bf16.msrb.mxu3 %v11307_v14  ;;  %v15674_v16 = vadd.f32 %v6866_v29, %v6854_v34 }
 0x277   :  { %v14310_v43 = vld [vmem:[#allocation10 + $0xb24] sm:$0xf0] }
 0x278   :  { %v11018_v15 = vld [vmem:[#allocation10 + $0xd08] sm:$0xf]  ;;  %v10763_v18 = vor.u32 %v14310_v43, %v10762_v41  ;;  %7081 = vmatpush.bf16.msrb.mxu0 %v10507_v47 }
 0x279   :  { %v14374_v44 = vld [vmem:[#allocation10 + $0xd24] sm:$0xf0] }
 0x27a   :  { %v11274_v45 = vld [vmem:[#allocation10 + $0xf08] sm:$0xf]  ;;  %v11019_v49 = vor.u32 %v14374_v44, %v11018_v15  ;;  %7094 = vmatpush.bf16.msrb.mxu1 %v10763_v18 }
 0x27b   :  { %v14438_v17 = vld [vmem:[#allocation10 + $0xf24] sm:$0xf0] }
 0x27c   :  { %v10474_v51 = vld [vmem:[#allocation10 + $0x8c8] sm:$0xf]  ;;  %v11275_v50 = vor.u32 %v14438_v17, %v11274_v45  ;;  %7107 = vmatpush.bf16.msrb.mxu2 %v11019_v49 }
 0x27d   :  { %v14238_v48 = vld [vmem:[#allocation10 + $0x8e4] sm:$0xf0] }
 0x27e   :  { %v10730_v54 = vld [vmem:[#allocation10 + $0xac8] sm:$0xf]  ;;  %v10475_v30 = vor.u32 %v14238_v48, %v10474_v51  ;;  %7120 = vmatpush.bf16.msrb.mxu3 %v11275_v50 }
 0x27f   :  { %v14302_v58 = vld [vmem:[#allocation10 + $0xae4] sm:$0xf0] }
 0x280   :  { %v10986_v62 = vld [vmem:[#allocation10 + $0xcc8] sm:$0xf]  ;;  %v10731_v21 = vor.u32 %v14302_v58, %v10730_v54  ;;  %7082 = vmatpush.bf16.msrb.mxu0 %v10475_v30  ;;  %v6855_v58 = vpop.f32.mrf.mxu2 }
 0x281   :  { %v14366_v40 = vld [vmem:[#allocation10 + $0xce4] sm:$0xf0] }
 0x282   :  { %v11242_v6 = vld [vmem:[#allocation10 + $0xec8] sm:$0xf]  ;;  %v10987_v10 = vor.u32 %v14366_v40, %v10986_v62  ;;  %7095 = vmatpush.bf16.msrb.mxu1 %v10731_v21  ;;  %v6868_v62 = vpop.f32.mrf.mxu3 }
 0x283   :  { %v14430_v22 = vld [vmem:[#allocation10 + $0xee4] sm:$0xf0] }
 0x284   :  { %v10442_v57 = vld [vmem:[#allocation10 + $0x888] sm:$0xf]  ;;  %v11243_v24 = vor.u32 %v14430_v22, %v11242_v6  ;;  %7108 = vmatpush.bf16.msrb.mxu2 %v10987_v10 }
 0x285   :  { %v14230_v32 = vld [vmem:[#allocation10 + $0x8a4] sm:$0xf0] }
 0x286   :  { %v10698_v36 = vld [vmem:[#allocation10 + $0xa88] sm:$0xf]  ;;  %v10443_v37 = vor.u32 %v14230_v32, %v10442_v57  ;;  %7121 = vmatpush.bf16.msrb.mxu3 %v11243_v24 }
 0x287   :  { %v14294_v28 = vld [vmem:[#allocation10 + $0xaa4] sm:$0xf0] }
 0x288   :  { %v10954_v42 = vld [vmem:[#allocation10 + $0xc88] sm:$0xf]  ;;  %v10699_v3 = vor.u32 %v14294_v28, %v10698_v36  ;;  %7083 = vmatpush.bf16.msrb.mxu0 %v10443_v37 }
 0x289   :  { %v14358_v38 = vld [vmem:[#allocation10 + $0xca4] sm:$0xf0] }
 0x28a   :  { %v11210_v31 = vld [vmem:[#allocation10 + $0xe88] sm:$0xf]  ;;  %v10955_v25 = vor.u32 %v14358_v38, %v10954_v42  ;;  %7096 = vmatpush.bf16.msrb.mxu1 %v10699_v3 }
 0x28b   :  { %v14422_v8 = vld [vmem:[#allocation10 + $0xea4] sm:$0xf0] }
 0x28c   :  { %v10410_v39 = vld [vmem:[#allocation10 + $0x848] sm:$0xf]  ;;  %v11211_v59 = vor.u32 %v14422_v8, %v11210_v31  ;;  %7109 = vmatpush.bf16.msrb.mxu2 %v10955_v25 }
 0x28d   :  { %v14222_v4 = vld [vmem:[#allocation10 + $0x864] sm:$0xf0] }
 0x28e   :  { %v10666_v14 = vld [vmem:[#allocation10 + $0xa48] sm:$0xf]  ;;  %v10411_v46 = vor.u32 %v14222_v4, %v10410_v39  ;;  %7122 = vmatpush.bf16.msrb.mxu3 %v11211_v59 }
 0x28f   :  { %v14286_v41 = vld [vmem:[#allocation10 + $0xa64] sm:$0xf0] }
 0x290   :  { %v10922_v43 = vld [vmem:[#allocation10 + $0xc48] sm:$0xf]  ;;  %v10667_v19 = vor.u32 %v14286_v41, %v10666_v14  ;;  %7084 = vmatpush.bf16.msrb.mxu0 %v10411_v46 }
 0x291   :  { %v14350_v15 = vld [vmem:[#allocation10 + $0xc64] sm:$0xf0] }
 0x292   :  { %v11178_v44 = vld [vmem:[#allocation10 + $0xe48] sm:$0xf]  ;;  %v10923_v51 = vor.u32 %v14350_v15, %v10922_v43  ;;  %7097 = vmatpush.bf16.msrb.mxu1 %v10667_v19 }
 0x293   :  { %v14414_v45 = vld [vmem:[#allocation10 + $0xe64] sm:$0xf0] }
 0x294   :  { %v10378_v17 = vld [vmem:[#allocation10 + $0x808] sm:$0xf]  ;;  %v11179_v48 = vor.u32 %v14414_v45, %v11178_v44  ;;  %7110 = vmatpush.bf16.msrb.mxu2 %v10923_v51 }
 0x295   :  { %v14214_v27 = vld [vmem:[#allocation10 + $0x824] sm:$0xf0] }
 0x296   :  { %v10634_v47 = vld [vmem:[#allocation10 + $0xa08] sm:$0xf]  ;;  %v10379_v57 = vor.u32 %v14214_v27, %v10378_v17  ;;  %7123 = vmatpush.bf16.msrb.mxu3 %v11179_v48 }
 0x297   :  { %v14278_v18 = vld [vmem:[#allocation10 + $0xa24] sm:$0xf0] }
 0x298   :  { %v10890_v49 = vld [vmem:[#allocation10 + $0xc08] sm:$0xf]  ;;  %v10635_v32 = vor.u32 %v14278_v18, %v10634_v47  ;;  %7085 = vmatpush.bf16.msrb.mxu0 %v10379_v57 }
 0x299   :  { %v14342_v50 = vld [vmem:[#allocation10 + $0xc24] sm:$0xf0] }
 0x29a   :  { %v11146_v54 = vld [vmem:[#allocation10 + $0xe08] sm:$0xf]  ;;  %v10891_v28 = vor.u32 %v14342_v50, %v10890_v49  ;;  %7098 = vmatpush.bf16.msrb.mxu1 %v10635_v32 }
 0x29b   :  { %v14406_v9 = vld [vmem:[#allocation10 + $0xe24] sm:$0xf0]  ;;  %7086 = vmatmul.bf16.vlgmr.msrb.gmra.mxu0 %v15592_v7 }
 0x29c   :  { %v11626_v40 = vld [vmem:[#allocation10 + $0x11c8] sm:$0xf]  ;;  %v11147_v42 = vor.u32 %v14406_v9, %v11146_v54  ;;  %7111 = vmatpush.bf16.msrb.mxu2 %v10891_v28 }
 0x29d   :  { %v14526_v6 = vld [vmem:[#allocation10 + $0x11e4] sm:$0xf0]  ;;  %7099 = vmatmul.bf16.vlgmr.msrb.gmra.mxu1 %v15594_v35 }
 0x29e   :  { %v11882_v22 = vld [vmem:[#allocation10 + $0x13c8] sm:$0xf]  ;;  %v11627_v5 = vor.u32 %v14526_v6, %v11626_v40  ;;  %7124 = vmatpush.bf16.msrb.mxu3 %v11147_v42 }
 0x29f   :  { %v14590_v30 = vld [vmem:[#allocation10 + $0x13e4] sm:$0xf0]  ;;  %7112 = vmatmul.bf16.vlgmr.msrb.gmra.mxu2 %v15596_v12 }
 0x2a0   :  { %v12138_v21 = vld [vmem:[#allocation10 + $0x15c8] sm:$0xf]  ;;  %v11883_v29 = vor.u32 %v14590_v30, %v11882_v22  ;;  %7130 = vmatpush.bf16.msra.mxu0 %v11627_v5  ;;  %v6879_v22 = vpop.f32.mrf.mxu0  ;;  %v6892_v30 = vpop.f32.mrf.mxu1 }
 0x2a1   :  { %v14654_v10 = vld [vmem:[#allocation10 + $0x15e4] sm:$0xf0]  ;;  %7125 = vmatmul.bf16.vlgmr.msrb.gmra.mxu3 %v15598_v20 }
 0x2a2   :  { %v12394_v24 = vld [vmem:[#allocation10 + $0x17c8] sm:$0xf]  ;;  %v12139_v8 = vor.u32 %v14654_v10, %v12138_v21  ;;  %7143 = vmatpush.bf16.msra.mxu1 %v11883_v29  ;;  %v6880_v21 = vadd.f32 %v6879_v22, %v15674_v16 }
 0x2a3   :  { %v14718_v36 = vld [vmem:[#allocation10 + $0x17e4] sm:$0xf0] }
 0x2a4   :  { %v11594_v38 = vld [vmem:[#allocation10 + $0x1188] sm:$0xf]  ;;  %v12395_v34 = vor.u32 %v14718_v36, %v12394_v24  ;;  %7156 = vmatpush.bf16.msra.mxu2 %v12139_v8 }
 0x2a5   :  { %v14518_v31 = vld [vmem:[#allocation10 + $0x11a4] sm:$0xf0] }
 0x2a6   :  { %v11850_v2 = vld [vmem:[#allocation10 + $0x1388] sm:$0xf]  ;;  %v11595_v25 = vor.u32 %v14518_v31, %v11594_v38  ;;  %7169 = vmatpush.bf16.msra.mxu3 %v12395_v34  ;;  %v6893_v38 = vadd.f32 %v6892_v30, %v6880_v21 }
 0x2a7   :  { %v14582_v11 = vld [vmem:[#allocation10 + $0x13a4] sm:$0xf0] }
 0x2a8   :  { %v12106_v37 = vld [vmem:[#allocation10 + $0x1588] sm:$0xf]  ;;  %v11851_v59 = vor.u32 %v14582_v11, %v11850_v2  ;;  %7131 = vmatpush.bf16.msra.mxu0 %v11595_v25 }
 0x2a9   :  { %v14646_v3 = vld [vmem:[#allocation10 + $0x15a4] sm:$0xf0] }
 0x2aa   :  { %v12362_v39 = vld [vmem:[#allocation10 + $0x1788] sm:$0xf]  ;;  %v12107_v43 = vor.u32 %v14646_v3, %v12106_v37  ;;  %7144 = vmatpush.bf16.msra.mxu1 %v11851_v59 }
 0x2ab   :  { %v14710_v4 = vld [vmem:[#allocation10 + $0x17a4] sm:$0xf0] }
 0x2ac   :  { %v11562_v14 = vld [vmem:[#allocation10 + $0x1148] sm:$0xf]  ;;  %v12363_v15 = vor.u32 %v14710_v4, %v12362_v39  ;;  %7157 = vmatpush.bf16.msra.mxu2 %v12107_v43 }
 0x2ad   :  { %v14510_v41 = vld [vmem:[#allocation10 + $0x1164] sm:$0xf0] }
 0x2ae   :  { %v11818_v44 = vld [vmem:[#allocation10 + $0x1348] sm:$0xf]  ;;  %v11563_v47 = vor.u32 %v14510_v41, %v11562_v14  ;;  %7170 = vmatpush.bf16.msra.mxu3 %v12363_v15  ;;  %v6905_v14 = vpop.f32.mrf.mxu2  ;;  %v6918_v41 = vpop.f32.mrf.mxu3 }
 0x2af   :  { %v14574_v45 = vld [vmem:[#allocation10 + $0x1364] sm:$0xf0] }
 0x2b0   :  { %v12074_v17 = vld [vmem:[#allocation10 + $0x1548] sm:$0xf]  ;;  %v11819_v18 = vor.u32 %v14574_v45, %v11818_v44  ;;  %7132 = vmatpush.bf16.msra.mxu0 %v11563_v47  ;;  %v6906_v45 = vadd.f32 %v6905_v14, %v6893_v38 }
 0x2b1   :  { %v14638_v46 = vld [vmem:[#allocation10 + $0x1564] sm:$0xf0] }
 0x2b2   :  { %v12330_v19 = vld [vmem:[#allocation10 + $0x1748] sm:$0xf]  ;;  %v12075_v49 = vor.u32 %v14638_v46, %v12074_v17  ;;  %7145 = vmatpush.bf16.msra.mxu1 %v11819_v18  ;;  %v6881_v17 = vpop.f32.mrf.mxu0  ;;  %v6894_v46 = vpop.f32.mrf.mxu1 }
 0x2b3   :  { %v14702_v27 = vld [vmem:[#allocation10 + $0x1764] sm:$0xf0] }
 0x2b4   :  { %v11530_v51 = vld [vmem:[#allocation10 + $0x1108] sm:$0xf]  ;;  %v12331_v50 = vor.u32 %v14702_v27, %v12330_v19  ;;  %7158 = vmatpush.bf16.msra.mxu2 %v12075_v49 }
 0x2b5   :  { %v14502_v48 = vld [vmem:[#allocation10 + $0x1124] sm:$0xf0] }
 0x2b6   :  { %v11786_v54 = vld [vmem:[#allocation10 + $0x1308] sm:$0xf]  ;;  %v11531_v57 = vor.u32 %v14502_v48, %v11530_v51  ;;  %7171 = vmatpush.bf16.msra.mxu3 %v12331_v50  ;;  %v15681_v51 = vadd.f32 %v6918_v41, %v6906_v45 }
 0x2b7   :  { %v14566_v58 = vld [vmem:[#allocation10 + $0x1324] sm:$0xf0] }
 0x2b8   :  { %v12042_v62 = vld [vmem:[#allocation10 + $0x1508] sm:$0xf]  ;;  %v11787_v32 = vor.u32 %v14566_v58, %v11786_v54  ;;  %7133 = vmatpush.bf16.msra.mxu0 %v11531_v57 }
 0x2b9   :  { %v14630_v9 = vld [vmem:[#allocation10 + $0x1524] sm:$0xf0] }
 0x2ba   :  { %v12298_v40 = vld [vmem:[#allocation10 + $0x1708] sm:$0xf]  ;;  %v12043_v36 = vor.u32 %v14630_v9, %v12042_v62  ;;  %7146 = vmatpush.bf16.msra.mxu1 %v11787_v32 }
 0x2bb   :  { %v14694_v6 = vld [vmem:[#allocation10 + $0x1724] sm:$0xf0] }
 0x2bc   :  { %v11498_v10 = vld [vmem:[#allocation10 + $0x10c8] sm:$0xf]  ;;  %v12299_v28 = vor.u32 %v14694_v6, %v12298_v40  ;;  %7159 = vmatpush.bf16.msra.mxu2 %v12043_v36 }
 0x2bd   :  { %v14494_v24 = vld [vmem:[#allocation10 + $0x10e4] sm:$0xf0] }
 0x2be   :  { %v11754_v42 = vld [vmem:[#allocation10 + $0x12c8] sm:$0xf]  ;;  %v11499_v2 = vor.u32 %v14494_v24, %v11498_v10  ;;  %7172 = vmatpush.bf16.msra.mxu3 %v12299_v28 }
 0x2bf   :  { %v14558_v5 = vld [vmem:[#allocation10 + $0x12e4] sm:$0xf0] }
 0x2c0   :  { %v12010_v29 = vld [vmem:[#allocation10 + $0x14c8] sm:$0xf]  ;;  %v11755_v11 = vor.u32 %v14558_v5, %v11754_v42  ;;  %7134 = vmatpush.bf16.msra.mxu0 %v11499_v2  ;;  %v6907_v5 = vpop.f32.mrf.mxu2 }
 0x2c1   :  { %v14622_v31 = vld [vmem:[#allocation10 + $0x14e4] sm:$0xf0] }
 0x2c2   :  { %v12266_v8 = vld [vmem:[#allocation10 + $0x16c8] sm:$0xf]  ;;  %v12011_v3 = vor.u32 %v14622_v31, %v12010_v29  ;;  %7147 = vmatpush.bf16.msra.mxu1 %v11755_v11  ;;  %v6920_v29 = vpop.f32.mrf.mxu3 }
 0x2c3   :  { %v14686_v34 = vld [vmem:[#allocation10 + $0x16e4] sm:$0xf0] }
 0x2c4   :  { %v11466_v16 = vld [vmem:[#allocation10 + $0x1088] sm:$0xf]  ;;  %v12267_v39 = vor.u32 %v14686_v34, %v12266_v8  ;;  %7160 = vmatpush.bf16.msra.mxu2 %v12011_v3 }
 0x2c5   :  { %v14486_v37 = vld [vmem:[#allocation10 + $0x10a4] sm:$0xf0] }
 0x2c6   :  { %v11722_v4 = vld [vmem:[#allocation10 + $0x1288] sm:$0xf]  ;;  %v11467_v19 = vor.u32 %v14486_v37, %v11466_v16  ;;  %7173 = vmatpush.bf16.msra.mxu3 %v12267_v39 }
 0x2c7   :  { %v14550_v25 = vld [vmem:[#allocation10 + $0x12a4] sm:$0xf0] }
 0x2c8   :  { %v11978_v59 = vld [vmem:[#allocation10 + $0x1488] sm:$0xf]  ;;  %v11723_v27 = vor.u32 %v14550_v25, %v11722_v4  ;;  %7135 = vmatpush.bf16.msra.mxu0 %v11467_v19 }
 0x2c9   :  { %v14614_v43 = vld [vmem:[#allocation10 + $0x14a4] sm:$0xf0] }
 0x2ca   :  { %v12234_v15 = vld [vmem:[#allocation10 + $0x1688] sm:$0xf]  ;;  %v11979_v48 = vor.u32 %v14614_v43, %v11978_v59  ;;  %7148 = vmatpush.bf16.msra.mxu1 %v11723_v27 }
 0x2cb   :  { %v14678_v44 = vld [vmem:[#allocation10 + $0x16a4] sm:$0xf0] }
 0x2cc   :  { %v11434_v47 = vld [vmem:[#allocation10 + $0x1048] sm:$0xf]  ;;  %v12235_v49 = vor.u32 %v14678_v44, %v12234_v15  ;;  %7161 = vmatpush.bf16.msra.mxu2 %v11979_v48 }
 0x2cd   :  { %v14478_v18 = vld [vmem:[#allocation10 + $0x1064] sm:$0xf0] }
 0x2ce   :  { %v11690_v50 = vld [vmem:[#allocation10 + $0x1248] sm:$0xf]  ;;  %v11435_v22 = vor.u32 %v14478_v18, %v11434_v47  ;;  %7174 = vmatpush.bf16.msra.mxu3 %v12235_v49 }
 0x2cf   :  { %v14542_v54 = vld [vmem:[#allocation10 + $0x1264] sm:$0xf0] }
 0x2d0   :  { %v11946_v58 = vld [vmem:[#allocation10 + $0x1448] sm:$0xf]  ;;  %v11691_v30 = vor.u32 %v14542_v54, %v11690_v50  ;;  %7136 = vmatpush.bf16.msra.mxu0 %v11435_v22 }
 0x2d1   :  { %v14606_v62 = vld [vmem:[#allocation10 + $0x1464] sm:$0xf0] }
 0x2d2   :  { %v12202_v9 = vld [vmem:[#allocation10 + $0x1648] sm:$0xf]  ;;  %v11947_v10 = vor.u32 %v14606_v62, %v11946_v58  ;;  %7149 = vmatpush.bf16.msra.mxu1 %v11691_v30 }
 0x2d3   :  { %v14670_v40 = vld [vmem:[#allocation10 + $0x1664] sm:$0xf0] }
 0x2d4   :  { %v11402_v6 = vld [vmem:[#allocation10 + $0x1008] sm:$0xf]  ;;  %v12203_v24 = vor.u32 %v14670_v40, %v12202_v9  ;;  %7162 = vmatpush.bf16.msra.mxu2 %v11947_v10 }
 0x2d5   :  { %v14470_v21 = vld [vmem:[#allocation10 + $0x1024] sm:$0xf0] }
 0x2d6   :  { %v11658_v57 = vld [vmem:[#allocation10 + $0x1208] sm:$0xf]  ;;  %v11403_v16 = vor.u32 %v14470_v21, %v11402_v6  ;;  %7175 = vmatpush.bf16.msra.mxu3 %v12203_v24 }
 0x2d7   :  { %v14534_v32 = vld [vmem:[#allocation10 + $0x1224] sm:$0xf0] }
 0x2d8   :  { %v11914_v36 = vld [vmem:[#allocation10 + $0x1408] sm:$0xf]  ;;  %v11659_v37 = vor.u32 %v14534_v32, %v11658_v57  ;;  %7137 = vmatpush.bf16.msra.mxu0 %v11403_v16 }
 0x2d9   :  { %v14598_v28 = vld [vmem:[#allocation10 + $0x1424] sm:$0xf0] }
 0x2da   :  { %v12170_v42 = vld [vmem:[#allocation10 + $0x1608] sm:$0xf]  ;;  %v11915_v25 = vor.u32 %v14598_v28, %v11914_v36  ;;  %7150 = vmatpush.bf16.msra.mxu1 %v11659_v37 }
 0x2db   :  { %v14662_v38 = vld [vmem:[#allocation10 + $0x1624] sm:$0xf0]  ;;  %7138 = vmatmul.bf16.vlgmr.msra.gmra.mxu0 %v15617_v55 }
 0x2dc   :  { %v12650_v31 = vld [vmem:[#allocation10 + $0x19c8] sm:$0xf]  ;;  %v12171_v59 = vor.u32 %v14662_v38, %v12170_v42  ;;  %7163 = vmatpush.bf16.msra.mxu2 %v11915_v25 }
 0x2dd   :  { %v14782_v8 = vld [vmem:[#allocation10 + $0x19e4] sm:$0xf0]  ;;  %7151 = vmatmul.bf16.vlgmr.msra.gmra.mxu1 %v15619_v60 }
 0x2de   :  { %v12906_v34 = vld [vmem:[#allocation10 + $0x1bc8] sm:$0xf]  ;;  %v12651_v14 = vor.u32 %v14782_v8, %v12650_v31  ;;  %7176 = vmatpush.bf16.msra.mxu3 %v12171_v59 }
 0x2df   :  { %v14846_v2 = vld [vmem:[#allocation10 + $0x1be4] sm:$0xf0]  ;;  %7164 = vmatmul.bf16.vlgmr.msra.gmra.mxu2 %v15621_v13 }
 0x2e0   :  { %v13162_v11 = vld [vmem:[#allocation10 + $0x1dc8] sm:$0xf]  ;;  %v12907_v41 = vor.u32 %v14846_v2, %v12906_v34  ;;  %7182 = vmatpush.bf16.msrb.mxu0 %v12651_v14  ;;  %v6931_v34 = vpop.f32.mrf.mxu0  ;;  %v6944_v2 = vpop.f32.mrf.mxu1 }
 0x2e1   :  { %v14910_v3 = vld [vmem:[#allocation10 + $0x1de4] sm:$0xf0]  ;;  %7177 = vmatmul.bf16.vlgmr.msra.gmra.mxu3 %v15623_v61 }
 0x2e2   :  { %v13418_v39 = vld [vmem:[#allocation10 + $0x1fc8] sm:$0xf]  ;;  %v13163_v44 = vor.u32 %v14910_v3, %v13162_v11  ;;  %7195 = vmatpush.bf16.msrb.mxu1 %v12907_v41  ;;  %v6932_v11 = vadd.f32 %v6931_v34, %v15681_v51 }
 0x2e3   :  { %v14974_v4 = vld [vmem:[#allocation10 + $0x1fe4] sm:$0xf0] }
 0x2e4   :  { %v12618_v43 = vld [vmem:[#allocation10 + $0x1988] sm:$0xf]  ;;  %v13419_v45 = vor.u32 %v14974_v4, %v13418_v39  ;;  %7208 = vmatpush.bf16.msrb.mxu2 %v13163_v44 }
 0x2e5   :  { %v14774_v15 = vld [vmem:[#allocation10 + $0x19a4] sm:$0xf0] }
 0x2e6   :  { %v12874_v17 = vld [vmem:[#allocation10 + $0x1b88] sm:$0xf]  ;;  %v12619_v48 = vor.u32 %v14774_v15, %v12618_v43  ;;  %7221 = vmatpush.bf16.msrb.mxu3 %v13419_v45  ;;  %v6945_v43 = vadd.f32 %v6944_v2, %v6932_v11 }
 0x2e7   :  { %v14838_v46 = vld [vmem:[#allocation10 + $0x1ba4] sm:$0xf0] }
 0x2e8   :  { %v13130_v19 = vld [vmem:[#allocation10 + $0x1d88] sm:$0xf]  ;;  %v12875_v49 = vor.u32 %v14838_v46, %v12874_v17  ;;  %7183 = vmatpush.bf16.msrb.mxu0 %v12619_v48 }
 0x2e9   :  { %v14902_v27 = vld [vmem:[#allocation10 + $0x1da4] sm:$0xf0] }
 0x2ea   :  { %v13386_v47 = vld [vmem:[#allocation10 + $0x1f88] sm:$0xf]  ;;  %v13131_v58 = vor.u32 %v14902_v27, %v13130_v19  ;;  %7196 = vmatpush.bf16.msrb.mxu1 %v12875_v49 }
 0x2eb   :  { %v14966_v18 = vld [vmem:[#allocation10 + $0x1fa4] sm:$0xf0] }
 0x2ec   :  { %v12586_v50 = vld [vmem:[#allocation10 + $0x1948] sm:$0xf]  ;;  %v13387_v62 = vor.u32 %v14966_v18, %v13386_v47  ;;  %7209 = vmatpush.bf16.msrb.mxu2 %v13131_v58 }
 0x2ed   :  { %v14766_v54 = vld [vmem:[#allocation10 + $0x1964] sm:$0xf0] }
 0x2ee   :  { %v12842_v9 = vld [vmem:[#allocation10 + $0x1b48] sm:$0xf]  ;;  %v12587_v57 = vor.u32 %v14766_v54, %v12586_v50  ;;  %7222 = vmatpush.bf16.msrb.mxu3 %v13387_v62  ;;  %v6957_v50 = vpop.f32.mrf.mxu2  ;;  %v6970_v54 = vpop.f32.mrf.mxu3 }
 0x2ef   :  { %v14830_v40 = vld [vmem:[#allocation10 + $0x1b64] sm:$0xf0] }
 0x2f0   :  { %v13098_v6 = vld [vmem:[#allocation10 + $0x1d48] sm:$0xf]  ;;  %v12843_v32 = vor.u32 %v14830_v40, %v12842_v9  ;;  %7184 = vmatpush.bf16.msrb.mxu0 %v12587_v57  ;;  %v6958_v40 = vadd.f32 %v6957_v50, %v6945_v43 }
 0x2f1   :  { %v14894_v22 = vld [vmem:[#allocation10 + $0x1d64] sm:$0xf0] }
 0x2f2   :  { %v13354_v30 = vld [vmem:[#allocation10 + $0x1f48] sm:$0xf]  ;;  %v13099_v36 = vor.u32 %v14894_v22, %v13098_v6  ;;  %7197 = vmatpush.bf16.msrb.mxu1 %v12843_v32  ;;  %v6933_v6 = vpop.f32.mrf.mxu0  ;;  %v6946_v22 = vpop.f32.mrf.mxu1 }
 0x2f3   :  { %v14958_v21 = vld [vmem:[#allocation10 + $0x1f64] sm:$0xf0]  ;;  %v14066_v6 = vld [vmem:[#allocation10 + $0x38c] sm:$0xf] }
 0x2f4   :  { %v12554_v10 = vld [vmem:[#allocation10 + $0x1908] sm:$0xf]  ;;  %v13355_v28 = vor.u32 %v14958_v21, %v13354_v30  ;;  %7210 = vmatpush.bf16.msrb.mxu2 %v13099_v36  ;;  %v9804_v22 = vld [vmem:[#allocation10 + $0x3a8] sm:$0xf0] }
 0x2f5   :  { %v14758_v24 = vld [vmem:[#allocation10 + $0x1924] sm:$0xf0] }
 0x2f6   :  { %v12810_v42 = vld [vmem:[#allocation10 + $0x1b08] sm:$0xf]  ;;  %v12555_v16 = vor.u32 %v14758_v24, %v12554_v10  ;;  %7223 = vmatpush.bf16.msrb.mxu3 %v13355_v28  ;;  %v15688_v10 = vadd.f32 %v6970_v54, %v6958_v40 }
 0x2f7   :  { %v14822_v5 = vld [vmem:[#allocation10 + $0x1b24] sm:$0xf0] }
 0x2f8   :  { %v13066_v29 = vld [vmem:[#allocation10 + $0x1d08] sm:$0xf]  ;;  %v12811_v37 = vor.u32 %v14822_v5, %v12810_v42  ;;  %7185 = vmatpush.bf16.msrb.mxu0 %v12555_v16 }
 0x2f9   :  { %v14886_v38 = vld [vmem:[#allocation10 + $0x1d24] sm:$0xf0] }
 0x2fa   :  { %v13322_v31 = vld [vmem:[#allocation10 + $0x1f08] sm:$0xf]  ;;  %v13067_v4 = vor.u32 %v14886_v38, %v13066_v29  ;;  %7198 = vmatpush.bf16.msrb.mxu1 %v12811_v37 }
 0x2fb   :  { %v14950_v8 = vld [vmem:[#allocation10 + $0x1f24] sm:$0xf0] }
 0x2fc   :  { %v12522_v3 = vld [vmem:[#allocation10 + $0x18c8] sm:$0xf]  ;;  %v13323_v25 = vor.u32 %v14950_v8, %v13322_v31  ;;  %7211 = vmatpush.bf16.msrb.mxu2 %v13067_v4 }
 0x2fd   :  { %v14750_v39 = vld [vmem:[#allocation10 + $0x18e4] sm:$0xf0] }
 0x2fe   :  { %v12778_v59 = vld [vmem:[#allocation10 + $0x1ac8] sm:$0xf]  ;;  %v12523_v17 = vor.u32 %v14750_v39, %v12522_v3  ;;  %7224 = vmatpush.bf16.msrb.mxu3 %v13323_v25 }
 0x2ff   :  { %v14814_v14 = vld [vmem:[#allocation10 + $0x1ae4] sm:$0xf0] }
 0x300   :  { %v13034_v41 = vld [vmem:[#allocation10 + $0x1cc8] sm:$0xf]  ;;  %v12779_v46 = vor.u32 %v14814_v14, %v12778_v59  ;;  %7186 = vmatpush.bf16.msrb.mxu0 %v12523_v17  ;;  %v6959_v14 = vpop.f32.mrf.mxu2  ;;  %v9836_v17 = vld [vmem:[#allocation10 + $0x3e8] sm:$0xf0] }
 0x301   :  { %v14878_v15 = vld [vmem:[#allocation10 + $0x1ce4] sm:$0xf0]  ;;  %v9740_v14 = vld [vmem:[#allocation10 + $0x328] sm:$0xf0] }
 0x302   :  { %v13290_v44 = vld [vmem:[#allocation10 + $0x1ec8] sm:$0xf]  ;;  %v13035_v27 = vor.u32 %v14878_v15, %v13034_v41  ;;  %7199 = vmatpush.bf16.msrb.mxu1 %v12779_v46  ;;  %v6972_v41 = vpop.f32.mrf.mxu3  ;;  %v14010_v15 = vld [vmem:[#allocation10 + $0x1cc] sm:$0xf] }
 0x303   :  { %v14942_v45 = vld [vmem:[#allocation10 + $0x1ee4] sm:$0xf0]  ;;  %v14138_v46 = vld [vmem:[#allocation10 + $0x5cc] sm:$0xf] }
 0x304   :  { %v12490_v51 = vld [vmem:[#allocation10 + $0x1888] sm:$0xf]  ;;  %v13291_v47 = vor.u32 %v14942_v45, %v13290_v44  ;;  %7212 = vmatpush.bf16.msrb.mxu2 %v13035_v27  ;;  %v9580_v44 = vld [vmem:[#allocation10 + $0x1e8] sm:$0xf0] }
 0x305   :  { %v14742_v19 = vld [vmem:[#allocation10 + $0x18a4] sm:$0xf0]  ;;  %v14074_v45 = vld [vmem:[#allocation10 + $0x3cc] sm:$0xf]  ;;  %v9583_v50 = vor.u32 %v14010_v15, %v9580_v44 }
 0x306   :  { %v12746_v18 = vld [vmem:[#allocation10 + $0x1a88] sm:$0xf]  ;;  %v12491_v30 = vor.u32 %v14742_v19, %v12490_v51  ;;  %7225 = vmatpush.bf16.msrb.mxu3 %v13291_v47  ;;  %v10092_v27 = vld [vmem:[#allocation10 + $0x5e8] sm:$0xf0]  ;;  %v9839_v54 = vor.u32 %v14074_v45, %v9836_v17  ;;  %v6983_v45 = vpop.f32.mrf.mxu0  ;;  %v6996_v17 = vpop.f32.mrf.mxu1 }
 0x307   :  { %v14806_v48 = vld [vmem:[#allocation10 + $0x1aa4] sm:$0xf0]  ;;  %v14202_v47 = vld [vmem:[#allocation10 + $0x7cc] sm:$0xf] }
 0x308   :  { %v13002_v49 = vld [vmem:[#allocation10 + $0x1c88] sm:$0xf]  ;;  %v12747_v21 = vor.u32 %v14806_v48, %v12746_v18  ;;  %7187 = vmatpush.bf16.msrb.mxu0 %v12491_v30  ;;  %v10348_v18 = vld [vmem:[#allocation10 + $0x7e8] sm:$0xf0] }
 0x309   :  { %v14870_v58 = vld [vmem:[#allocation10 + $0x1ca4] sm:$0xf0]  ;;  %v10351_v40 = vor.u32 %v14202_v47, %v10348_v18  ;;  %v14130_v30 = vld [vmem:[#allocation10 + $0x58c] sm:$0xf] }
 0x30a   :  { %v13258_v62 = vld [vmem:[#allocation10 + $0x1e88] sm:$0xf]  ;;  %v13003_v24 = vor.u32 %v14870_v58, %v13002_v49  ;;  %7200 = vmatpush.bf16.msrb.mxu1 %v12747_v21  ;;  %v14002_v58 = vld [vmem:[#allocation10 + $0x18c] sm:$0xf] }
 0x30b   :  { %v14934_v9 = vld [vmem:[#allocation10 + $0x1ea4] sm:$0xf0]  ;;  %v10060_v21 = vld [vmem:[#allocation10 + $0x5a8] sm:$0xf0] }
 0x30c   :  { %v12458_v57 = vld [vmem:[#allocation10 + $0x1848] sm:$0xf]  ;;  %v13259_v36 = vor.u32 %v14934_v9, %v13258_v62  ;;  %7213 = vmatpush.bf16.msrb.mxu2 %v13003_v24  ;;  %v9548_v62 = vld [vmem:[#allocation10 + $0x1a8] sm:$0xf0]  ;;  %v10095_v9 = vor.u32 %v14138_v46, %v10092_v27  ;;  %v6984_v46 = vadd.f32 %v6983_v45, %v15688_v10 }
 0x30d   :  { %v14734_v32 = vld [vmem:[#allocation10 + $0x1864] sm:$0xf0]  ;;  %v9551_v24 = vor.u32 %v14002_v58, %v9548_v62  ;;  %v14114_v41 = vld [vmem:[#allocation10 + $0x50c] sm:$0xf] }
 0x30e   :  { %v12714_v28 = vld [vmem:[#allocation10 + $0x1a48] sm:$0xf]  ;;  %v12459_v34 = vor.u32 %v14734_v32, %v12458_v57  ;;  %7226 = vmatpush.bf16.msrb.mxu3 %v13259_v36  ;;  %v14194_v57 = vld [vmem:[#allocation10 + $0x78c] sm:$0xf]  ;;  %v9807_v36 = vor.u32 %v14066_v6, %v9804_v22  ;;  %v6997_v58 = vadd.f32 %v6996_v17, %v6984_v46 }
 0x30f   :  { %v14798_v42 = vld [vmem:[#allocation10 + $0x1a64] sm:$0xf0]  ;;  %v10316_v32 = vld [vmem:[#allocation10 + $0x7a8] sm:$0xf0] }
 0x310   :  { %v12970_v5 = vld [vmem:[#allocation10 + $0x1c48] sm:$0xf]  ;;  %v12715_v2 = vor.u32 %v14798_v42, %v12714_v28  ;;  %7188 = vmatpush.bf16.msrb.mxu0 %v12459_v34  ;;  %v13994_v28 = vld [vmem:[#allocation10 + $0x14c] sm:$0xf] }
 0x311   :  { %v14862_v29 = vld [vmem:[#allocation10 + $0x1c64] sm:$0xf0]  ;;  %v9516_v42 = vld [vmem:[#allocation10 + $0x168] sm:$0xf0] }
 0x312   :  { %v13226_v38 = vld [vmem:[#allocation10 + $0x1e48] sm:$0xf]  ;;  %v12971_v3 = vor.u32 %v14862_v29, %v12970_v5  ;;  %7201 = vmatpush.bf16.msrb.mxu1 %v12715_v2  ;;  %v10063_v5 = vor.u32 %v14130_v30, %v10060_v21  ;;  %v10319_v29 = vor.u32 %v14194_v57, %v10316_v32  ;;  %v10028_v34 = vld [vmem:[#allocation10 + $0x568] sm:$0xf0] }
 0x313   :  { %v14926_v31 = vld [vmem:[#allocation10 + $0x1e64] sm:$0xf0]  ;;  %v14186_v2 = vld [vmem:[#allocation10 + $0x74c] sm:$0xf] }
 0x314   :  { %v12426_v8 = vld [vmem:[#allocation10 + $0x1808] sm:$0xf]  ;;  %v13227_v39 = vor.u32 %v14926_v31, %v13226_v38  ;;  %7214 = vmatpush.bf16.msrb.mxu2 %v12971_v3  ;;  %v14058_v38 = vld [vmem:[#allocation10 + $0x34c] sm:$0xf] }
 0x315   :  { %v14726_v11 = vld [vmem:[#allocation10 + $0x1824] sm:$0xf0]  ;;  %v9772_v31 = vld [vmem:[#allocation10 + $0x368] sm:$0xf0] }
 0x316   :  { %v12682_v16 = vld [vmem:[#allocation10 + $0x1a08] sm:$0xf]  ;;  %v12427_v51 = vor.u32 %v14726_v11, %v12426_v8  ;;  %7227 = vmatpush.bf16.msrb.mxu3 %v13227_v39  ;;  %v14122_v8 = vld [vmem:[#allocation10 + $0x54c] sm:$0xf] }
 0x317   :  { %v14790_v37 = vld [vmem:[#allocation10 + $0x1a24] sm:$0xf0]  ;;  %v10284_v11 = vld [vmem:[#allocation10 + $0x768] sm:$0xf0] }
 0x318   :  { %v12938_v4 = vld [vmem:[#allocation10 + $0x1c08] sm:$0xf]  ;;  %v12683_v19 = vor.u32 %v14790_v37, %v12682_v16  ;;  %7189 = vmatpush.bf16.msrb.mxu0 %v12427_v51  ;;  %v9519_v16 = vor.u32 %v13994_v28, %v9516_v42  ;;  %v9775_v37 = vor.u32 %v14058_v38, %v9772_v31  ;;  %v13986_v3 = vld [vmem:[#allocation10 + $0x10c] sm:$0xf]  ;;  %v7009_v28 = vpop.f32.mrf.mxu2  ;;  %v7022_v42 = vpop.f32.mrf.mxu3 }
 0x319   :  { %v14854_v25 = vld [vmem:[#allocation10 + $0x1c24] sm:$0xf0]  ;;  %v9484_v39 = vld [vmem:[#allocation10 + $0x128] sm:$0xf0]  ;;  %v7010_v31 = vadd.f32 %v7009_v28, %v6997_v58 }
 0x31a   :  { %v13194_v59 = vld [vmem:[#allocation10 + $0x1e08] sm:$0xf]  ;;  %v12939_v48 = vor.u32 %v14854_v25, %v12938_v4  ;;  %7202 = vmatpush.bf16.msrb.mxu1 %v12683_v19  ;;  %v10031_v4 = vor.u32 %v14122_v8, %v10028_v34  ;;  %v10287_v25 = vor.u32 %v14186_v2, %v10284_v11  ;;  %v14178_v15 = vld [vmem:[#allocation10 + $0x70c] sm:$0xf]  ;;  %v9487_v51 = vor.u32 %v13986_v3, %v9484_v39  ;;  %v6985_v8 = vpop.f32.mrf.mxu0  ;;  %v6998_v34 = vpop.f32.mrf.mxu1 }
 0x31b   :  { %v14918_v43 = vld [vmem:[#allocation10 + $0x1e24] sm:$0xf0]  ;;  %7190 = vmatmul.bf16.vlgmr.msrb.gmra.mxu0 %v15633_v1  ;;  %v10252_v44 = vld [vmem:[#allocation10 + $0x728] sm:$0xf0]  ;;  %v15695_v3 = vadd.f32 %v7022_v42, %v7010_v31 }
 0x31c   :  { %v13195_v49 = vor.u32 %v14918_v43, %v13194_v59  ;;  %7215 = vmatpush.bf16.msrb.mxu2 %v12939_v48  ;;  %7234 = vmatpush.bf16.msra.mxu0 %v9583_v50  ;;  %v14050_v59 = vld [vmem:[#allocation10 + $0x30c] sm:$0xf]  ;;  %v10255_v48 = vor.u32 %v14178_v15, %v10252_v44 }
 0x31d   :  { %7203 = vmatmul.bf16.vlgmr.msrb.gmra.mxu1 %v15635_v63  ;;  %v9996_v43 = vld [vmem:[#allocation10 + $0x528] sm:$0xf0]  ;;  %v9743_v19 = vor.u32 %v14050_v59, %v9740_v14 }
 0x31e   :  { %7228 = vmatpush.bf16.msrb.mxu3 %v13195_v49  ;;  %7247 = vmatpush.bf16.msra.mxu1 %v9839_v54  ;;  %v13978_v27 = vld [vmem:[#allocation10 + $0xcc] sm:$0xf]  ;;  %v9999_v18 = vor.u32 %v14114_v41, %v9996_v43 }
 0x31f   :  { %7216 = vmatmul.bf16.vlgmr.msrb.gmra.mxu2 %v15637_v0  ;;  %v9452_v47 = vld [vmem:[#allocation10 + $0xe8] sm:$0xf0] }
 0x320   :  { %7260 = vmatpush.bf16.msra.mxu2 %v10095_v9  ;;  %7235 = vmatpush.bf16.msra.mxu0 %v9551_v24  ;;  %v14042_v49 = vld [vmem:[#allocation10 + $0x2cc] sm:$0xf]  ;;  %v9455_v6 = vor.u32 %v13978_v27, %v9452_v47 }
 0x321   :  { %7229 = vmatmul.bf16.vlgmr.msrb.gmra.mxu3 %v15639_v23  ;;  %v9708_v50 = vld [vmem:[#allocation10 + $0x2e8] sm:$0xf0] }
 0x322   :  { %7273 = vmatpush.bf16.msra.mxu3 %v10351_v40  ;;  %7248 = vmatpush.bf16.msra.mxu1 %v9807_v36  ;;  %v14106_v54 = vld [vmem:[#allocation10 + $0x4cc] sm:$0xf]  ;;  %v9711_v22 = vor.u32 %v14042_v49, %v9708_v50  ;;  %v7011_v50 = vpop.f32.mrf.mxu2 }
 0x323   :  { %v9964_v62 = vld [vmem:[#allocation10 + $0x4e8] sm:$0xf0] }
 0x324   :  { %7261 = vmatpush.bf16.msra.mxu2 %v10063_v5  ;;  %7236 = vmatpush.bf16.msra.mxu0 %v9519_v16  ;;  %v14170_v9 = vld [vmem:[#allocation10 + $0x6cc] sm:$0xf]  ;;  %v9967_v21 = vor.u32 %v14106_v54, %v9964_v62  ;;  %v7024_v54 = vpop.f32.mrf.mxu3 }
 0x325   :  { %v10220_v40 = vld [vmem:[#allocation10 + $0x6e8] sm:$0xf0] }
 0x326   :  { %7274 = vmatpush.bf16.msra.mxu3 %v10319_v29  ;;  %7249 = vmatpush.bf16.msra.mxu1 %v9775_v37  ;;  %v13970_v10 = vld [vmem:[#allocation10 + $0x8c] sm:$0xf]  ;;  %v10223_v57 = vor.u32 %v14170_v9, %v10220_v40 }
 0x327   :  { %v9420_v30 = vld [vmem:[#allocation10 + $0xa8] sm:$0xf0] }
 0x328   :  { %7262 = vmatpush.bf16.msra.mxu2 %v10031_v4  ;;  %7237 = vmatpush.bf16.msra.mxu0 %v9487_v51  ;;  %v14034_v32 = vld [vmem:[#allocation10 + $0x28c] sm:$0xf]  ;;  %v9423_v2 = vor.u32 %v13970_v10, %v9420_v30 }
 0x329   :  { %v9676_v24 = vld [vmem:[#allocation10 + $0x2a8] sm:$0xf0] }
 0x32a   :  { %7275 = vmatpush.bf16.msra.mxu3 %v10287_v25  ;;  %7250 = vmatpush.bf16.msra.mxu1 %v9743_v19  ;;  %v14098_v36 = vld [vmem:[#allocation10 + $0x48c] sm:$0xf]  ;;  %v9679_v11 = vor.u32 %v14034_v32, %v9676_v24 }
 0x32b   :  { %v9932_v5 = vld [vmem:[#allocation10 + $0x4a8] sm:$0xf0] }
 0x32c   :  { %7263 = vmatpush.bf16.msra.mxu2 %v9999_v18  ;;  %v14162_v29 = vld [vmem:[#allocation10 + $0x68c] sm:$0xf]  ;;  %7238 = vmatpush.bf16.msra.mxu0 %v9455_v6  ;;  %v9935_v39 = vor.u32 %v14098_v36, %v9932_v5 }
 0x32d   :  { %v10188_v38 = vld [vmem:[#allocation10 + $0x6a8] sm:$0xf0] }
 0x32e   :  { %7276 = vmatpush.bf16.msra.mxu3 %v10255_v48  ;;  %7251 = vmatpush.bf16.msra.mxu1 %v9711_v22  ;;  %v13962_v16 = vld [vmem:[#allocation10 + $0x4c] sm:$0xf]  ;;  %v10191_v4 = vor.u32 %v14162_v29, %v10188_v38 }
 0x32f   :  { %v9388_v37 = vld [vmem:[#allocation10 + $0x68] sm:$0xf0] }
 0x330   :  { %7264 = vmatpush.bf16.msra.mxu2 %v9967_v21  ;;  %v14026_v25 = vld [vmem:[#allocation10 + $0x24c] sm:$0xf]  ;;  %7239 = vmatpush.bf16.msra.mxu0 %v9423_v2  ;;  %v9391_v45 = vor.u32 %v13962_v16, %v9388_v37 }
 0x331   :  { %v9644_v59 = vld [vmem:[#allocation10 + $0x268] sm:$0xf0] }
 0x332   :  { %7277 = vmatpush.bf16.msra.mxu3 %v10223_v57  ;;  %v14090_v14 = vld [vmem:[#allocation10 + $0x44c] sm:$0xf]  ;;  %7252 = vmatpush.bf16.msra.mxu1 %v9679_v11  ;;  %v9647_v17 = vor.u32 %v14026_v25, %v9644_v59 }
 0x333   :  { %v9900_v41 = vld [vmem:[#allocation10 + $0x468] sm:$0xf0] }
 0x334   :  { %v14154_v43 = vld [vmem:[#allocation10 + $0x64c] sm:$0xf]  ;;  %7265 = vmatpush.bf16.msra.mxu2 %v9935_v39  ;;  %v9903_v27 = vor.u32 %v14090_v14, %v9900_v41  ;;  %7240 = vmatpush.bf16.msra.mxu0 %v9391_v45 }
 0x335   :  { %v10156_v15 = vld [vmem:[#allocation10 + $0x668] sm:$0xf0] }
 0x336   :  { %v13954_v44 = vld [vmem:[#allocation10 + $0xc] sm:$0xf]  ;;  %7278 = vmatpush.bf16.msra.mxu3 %v10191_v4  ;;  %v10159_v47 = vor.u32 %v14154_v43, %v10156_v15  ;;  %7253 = vmatpush.bf16.msra.mxu1 %v9647_v17 }
 0x337   :  { %v9356_v46 = vld [vmem:[#allocation10 + $0x28] sm:$0xf0] }
 0x338   :  { %v14018_v51 = vld [vmem:[#allocation10 + $0x20c] sm:$0xf]  ;;  %v9359_v10 = vor.u32 %v13954_v44, %v9356_v46  ;;  %7266 = vmatpush.bf16.msra.mxu2 %v9903_v27  ;;  %v15134_v27 = vld [vmem:[#allocation11] sm:$0xff] }
 0x339   :  { %v9612_v19 = vld [vmem:[#allocation10 + $0x228] sm:$0xf0] }
 0x33a   :  { %v14082_v18 = vld [vmem:[#allocation10 + $0x40c] sm:$0xf]  ;;  %v9615_v30 = vor.u32 %v14018_v51, %v9612_v19  ;;  %7279 = vmatpush.bf16.msra.mxu3 %v10159_v47  ;;  %7241 = vmatpush.bf16.msra.mxu0 %v9359_v10  ;;  %v1420_v47 = vperm.slane %v15134_v27, 2  ;;  %v7048_v10 = vpop.f32.mrf.mxu1 }
 0x33b   :  { %v9868_v48 = vld [vmem:[#allocation10 + $0x428] sm:$0xf0] }
 0x33c   :  { %v14146_v49 = vld [vmem:[#allocation10 + $0x60c] sm:$0xf]  ;;  %v9871_v24 = vor.u32 %v14082_v18, %v9868_v48  ;;  %7254 = vmatpush.bf16.msra.mxu1 %v9615_v30 }
 0x33d   :  { %v10124_v58 = vld [vmem:[#allocation10 + $0x628] sm:$0xf0]  ;;  %7242 = vmatmul.bf16.vlgmr.msra.gmra.mxu0 %v15550_v52 }
 0x33e   :  { %v14266_v62 = vld [vmem:[#allocation10 + $0x9cc] sm:$0xf]  ;;  %v10127_v36 = vor.u32 %v14146_v49, %v10124_v58  ;;  %7267 = vmatpush.bf16.msra.mxu2 %v9871_v24 }
 0x33f   :  { %v10604_v9 = vld [vmem:[#allocation10 + $0x9e8] sm:$0xf0]  ;;  %7255 = vmatmul.bf16.vlgmr.msra.gmra.mxu1 %v15552_v53 }
 0x340   :  { %v14330_v40 = vld [vmem:[#allocation10 + $0xbcc] sm:$0xf]  ;;  %v10607_v28 = vor.u32 %v14266_v62, %v10604_v9  ;;  %7280 = vmatpush.bf16.msra.mxu3 %v10127_v36 }
 0x341   :  { %v10860_v6 = vld [vmem:[#allocation10 + $0xbe8] sm:$0xf0]  ;;  %7268 = vmatmul.bf16.vlgmr.msra.gmra.mxu2 %v15554_v26 }
 0x342   :  { %v14394_v22 = vld [vmem:[#allocation10 + $0xdcc] sm:$0xf]  ;;  %v10863_v42 = vor.u32 %v14330_v40, %v10860_v6  ;;  %7286 = vmatpush.bf16.msrb.mxu0 %v10607_v28 }
 0x343   :  { %v11116_v21 = vld [vmem:[#allocation10 + $0xde8] sm:$0xf0]  ;;  %7281 = vmatmul.bf16.vlgmr.msra.gmra.mxu3 %v15556_v56 }
 0x344   :  { %v14458_v57 = vld [vmem:[#allocation10 + $0xfcc] sm:$0xf]  ;;  %v11119_v38 = vor.u32 %v14394_v22, %v11116_v21  ;;  %7299 = vmatpush.bf16.msrb.mxu1 %v10863_v42  ;;  %v7035_v22 = vpop.f32.mrf.mxu0 }
 0x345   :  { %v11372_v32 = vld [vmem:[#allocation10 + $0xfe8] sm:$0xf0]  ;;  %v7036_v30 = vadd.f32 %v7035_v22, %v1420_v47 }
 0x346   :  { %v14258_v5 = vld [vmem:[#allocation10 + $0x98c] sm:$0xf]  ;;  %v11375_v31 = vor.u32 %v14458_v57, %v11372_v32  ;;  %7312 = vmatpush.bf16.msrb.mxu2 %v11119_v38 }
 0x347   :  { %v10572_v29 = vld [vmem:[#allocation10 + $0x9a8] sm:$0xf0]  ;;  %v7049_v38 = vadd.f32 %v7048_v10, %v7036_v30 }
 0x348   :  { %v14322_v8 = vld [vmem:[#allocation10 + $0xb8c] sm:$0xf]  ;;  %v10575_v39 = vor.u32 %v14258_v5, %v10572_v29  ;;  %7325 = vmatpush.bf16.msrb.mxu3 %v11375_v31 }
 0x349   :  { %v10828_v34 = vld [vmem:[#allocation10 + $0xba8] sm:$0xf0] }
 0x34a   :  { %v14386_v2 = vld [vmem:[#allocation10 + $0xd8c] sm:$0xf]  ;;  %v10831_v4 = vor.u32 %v14322_v8, %v10828_v34  ;;  %7287 = vmatpush.bf16.msrb.mxu0 %v10575_v39 }
 0x34b   :  { %v11084_v11 = vld [vmem:[#allocation10 + $0xda8] sm:$0xf0] }
 0x34c   :  { %v14450_v16 = vld [vmem:[#allocation10 + $0xf8c] sm:$0xf]  ;;  %v11087_v14 = vor.u32 %v14386_v2, %v11084_v11  ;;  %7300 = vmatpush.bf16.msrb.mxu1 %v10831_v4 }
 0x34d   :  { %v11340_v37 = vld [vmem:[#allocation10 + $0xfa8] sm:$0xf0] }
 0x34e   :  { %v14250_v25 = vld [vmem:[#allocation10 + $0x94c] sm:$0xf]  ;;  %v11343_v41 = vor.u32 %v14450_v16, %v11340_v37  ;;  %7313 = vmatpush.bf16.msrb.mxu2 %v11087_v14 }
 0x34f   :  { %v10540_v59 = vld [vmem:[#allocation10 + $0x968] sm:$0xf0] }
 0x350   :  { %v14314_v43 = vld [vmem:[#allocation10 + $0xb4c] sm:$0xf]  ;;  %v10543_v51 = vor.u32 %v14250_v25, %v10540_v59  ;;  %7326 = vmatpush.bf16.msrb.mxu3 %v11343_v41  ;;  %v7061_v41 = vpop.f32.mrf.mxu2 }
 0x351   :  { %v10796_v15 = vld [vmem:[#allocation10 + $0xb68] sm:$0xf0] }
 0x352   :  { %v14378_v44 = vld [vmem:[#allocation10 + $0xd4c] sm:$0xf]  ;;  %v10799_v19 = vor.u32 %v14314_v43, %v10796_v15  ;;  %7288 = vmatpush.bf16.msrb.mxu0 %v10543_v51  ;;  %v7074_v43 = vpop.f32.mrf.mxu3  ;;  %v7050_v51 = vpop.f32.mrf.mxu1 }
 0x353   :  { %v11052_v45 = vld [vmem:[#allocation10 + $0xd68] sm:$0xf0] }
 0x354   :  { %v14442_v17 = vld [vmem:[#allocation10 + $0xf4c] sm:$0xf]  ;;  %v11055_v49 = vor.u32 %v14378_v44, %v11052_v45  ;;  %7301 = vmatpush.bf16.msrb.mxu1 %v10799_v19 }
 0x355   :  { %v11308_v46 = vld [vmem:[#allocation10 + $0xf68] sm:$0xf0] }
 0x356   :  { %v14242_v18 = vld [vmem:[#allocation10 + $0x90c] sm:$0xf]  ;;  %v11311_v50 = vor.u32 %v14442_v17, %v11308_v46  ;;  %7314 = vmatpush.bf16.msrb.mxu2 %v11055_v49  ;;  %v7062_v17 = vadd.f32 %v7061_v41, %v7049_v38  ;;  %v7037_v46 = vpop.f32.mrf.mxu0 }
 0x357   :  { %v10508_v48 = vld [vmem:[#allocation10 + $0x928] sm:$0xf0] }
 0x358   :  { %v14306_v54 = vld [vmem:[#allocation10 + $0xb0c] sm:$0xf]  ;;  %v10511_v21 = vor.u32 %v14242_v18, %v10508_v48  ;;  %7327 = vmatpush.bf16.msrb.mxu3 %v11311_v50  ;;  %v15701_v48 = vadd.f32 %v7074_v43, %v7062_v17 }
 0x359   :  { %v10764_v58 = vld [vmem:[#allocation10 + $0xb28] sm:$0xf0] }
 0x35a   :  { %v14370_v62 = vld [vmem:[#allocation10 + $0xd0c] sm:$0xf]  ;;  %v10767_v57 = vor.u32 %v14306_v54, %v10764_v58  ;;  %7289 = vmatpush.bf16.msrb.mxu0 %v10511_v21  ;;  %v7076_v38 = vpop.f32.mrf.mxu3 }
 0x35b   :  { %v11020_v9 = vld [vmem:[#allocation10 + $0xd28] sm:$0xf0] }
 0x35c   :  { %v14434_v40 = vld [vmem:[#allocation10 + $0xf0c] sm:$0xf]  ;;  %v11023_v36 = vor.u32 %v14370_v62, %v11020_v9  ;;  %7302 = vmatpush.bf16.msrb.mxu1 %v10767_v57 }
 0x35d   :  { %v11276_v6 = vld [vmem:[#allocation10 + $0xf28] sm:$0xf0] }
 0x35e   :  { %v14234_v32 = vld [vmem:[#allocation10 + $0x8cc] sm:$0xf]  ;;  %v11279_v28 = vor.u32 %v14434_v40, %v11276_v6  ;;  %7315 = vmatpush.bf16.msrb.mxu2 %v11023_v36 }
 0x35f   :  { %v10476_v24 = vld [vmem:[#allocation10 + $0x8e8] sm:$0xf0] }
 0x360   :  { %v14298_v42 = vld [vmem:[#allocation10 + $0xacc] sm:$0xf]  ;;  %v10479_v2 = vor.u32 %v14234_v32, %v10476_v24  ;;  %7328 = vmatpush.bf16.msrb.mxu3 %v11279_v28 }
 0x361   :  { %v10732_v5 = vld [vmem:[#allocation10 + $0xae8] sm:$0xf0] }
 0x362   :  { %v14362_v29 = vld [vmem:[#allocation10 + $0xccc] sm:$0xf]  ;;  %v10735_v11 = vor.u32 %v14298_v42, %v10732_v5  ;;  %7290 = vmatpush.bf16.msrb.mxu0 %v10479_v2 }
 0x363   :  { %v10988_v31 = vld [vmem:[#allocation10 + $0xce8] sm:$0xf0] }
 0x364   :  { %v14426_v8 = vld [vmem:[#allocation10 + $0xecc] sm:$0xf]  ;;  %v10991_v39 = vor.u32 %v14362_v29, %v10988_v31  ;;  %7303 = vmatpush.bf16.msrb.mxu1 %v10735_v11  ;;  %v7063_v29 = vpop.f32.mrf.mxu2 }
 0x365   :  { %v11244_v34 = vld [vmem:[#allocation10 + $0xee8] sm:$0xf0] }
 0x366   :  { %v14226_v16 = vld [vmem:[#allocation10 + $0x88c] sm:$0xf]  ;;  %v11247_v4 = vor.u32 %v14426_v8, %v11244_v34  ;;  %7316 = vmatpush.bf16.msrb.mxu2 %v10991_v39 }
 0x367   :  { %v10444_v37 = vld [vmem:[#allocation10 + $0x8a8] sm:$0xf0] }
 0x368   :  { %v14290_v25 = vld [vmem:[#allocation10 + $0xa8c] sm:$0xf]  ;;  %v10447_v19 = vor.u32 %v14226_v16, %v10444_v37  ;;  %7329 = vmatpush.bf16.msrb.mxu3 %v11247_v4 }
 0x369   :  { %v10700_v59 = vld [vmem:[#allocation10 + $0xaa8] sm:$0xf0] }
 0x36a   :  { %v14354_v14 = vld [vmem:[#allocation10 + $0xc8c] sm:$0xf]  ;;  %v10703_v27 = vor.u32 %v14290_v25, %v10700_v59  ;;  %7291 = vmatpush.bf16.msrb.mxu0 %v10447_v19 }
 0x36b   :  { %v10956_v15 = vld [vmem:[#allocation10 + $0xca8] sm:$0xf0] }
 0x36c   :  { %v14418_v44 = vld [vmem:[#allocation10 + $0xe8c] sm:$0xf]  ;;  %v10959_v49 = vor.u32 %v14354_v14, %v10956_v15  ;;  %7304 = vmatpush.bf16.msrb.mxu1 %v10703_v27 }
 0x36d   :  { %v11212_v45 = vld [vmem:[#allocation10 + $0xea8] sm:$0xf0] }
 0x36e   :  { %v14218_v47 = vld [vmem:[#allocation10 + $0x84c] sm:$0xf]  ;;  %v11215_v50 = vor.u32 %v14418_v44, %v11212_v45  ;;  %7317 = vmatpush.bf16.msrb.mxu2 %v10959_v49 }
 0x36f   :  { %v10412_v18 = vld [vmem:[#allocation10 + $0x868] sm:$0xf0] }
 0x370   :  { %v14282_v54 = vld [vmem:[#allocation10 + $0xa4c] sm:$0xf]  ;;  %v10415_v10 = vor.u32 %v14218_v47, %v10412_v18  ;;  %7330 = vmatpush.bf16.msrb.mxu3 %v11215_v50 }
 0x371   :  { %v10668_v58 = vld [vmem:[#allocation10 + $0xa68] sm:$0xf0] }
 0x372   :  { %v14346_v62 = vld [vmem:[#allocation10 + $0xc4c] sm:$0xf]  ;;  %v10671_v30 = vor.u32 %v14282_v54, %v10668_v58  ;;  %7292 = vmatpush.bf16.msrb.mxu0 %v10415_v10 }
 0x373   :  { %v10924_v9 = vld [vmem:[#allocation10 + $0xc68] sm:$0xf0] }
 0x374   :  { %v14410_v40 = vld [vmem:[#allocation10 + $0xe4c] sm:$0xf]  ;;  %v10927_v24 = vor.u32 %v14346_v62, %v10924_v9  ;;  %7305 = vmatpush.bf16.msrb.mxu1 %v10671_v30 }
 0x375   :  { %v11180_v6 = vld [vmem:[#allocation10 + $0xe68] sm:$0xf0] }
 0x376   :  { %v14210_v22 = vld [vmem:[#allocation10 + $0x80c] sm:$0xf]  ;;  %v11183_v36 = vor.u32 %v14410_v40, %v11180_v6  ;;  %7318 = vmatpush.bf16.msrb.mxu2 %v10927_v24 }
 0x377   :  { %v10380_v21 = vld [vmem:[#allocation10 + $0x828] sm:$0xf0] }
 0x378   :  { %v14274_v57 = vld [vmem:[#allocation10 + $0xa0c] sm:$0xf]  ;;  %v10383_v37 = vor.u32 %v14210_v22, %v10380_v21  ;;  %7331 = vmatpush.bf16.msrb.mxu3 %v11183_v36 }
 0x379   :  { %v10636_v32 = vld [vmem:[#allocation10 + $0xa28] sm:$0xf0] }
 0x37a   :  { %v14338_v28 = vld [vmem:[#allocation10 + $0xc0c] sm:$0xf]  ;;  %v10639_v39 = vor.u32 %v14274_v57, %v10636_v32  ;;  %7293 = vmatpush.bf16.msrb.mxu0 %v10383_v37 }
 0x37b   :  { %v10892_v42 = vld [vmem:[#allocation10 + $0xc28] sm:$0xf0] }
 0x37c   :  { %v14402_v5 = vld [vmem:[#allocation10 + $0xe0c] sm:$0xf]  ;;  %v10895_v14 = vor.u32 %v14338_v28, %v10892_v42  ;;  %7306 = vmatpush.bf16.msrb.mxu1 %v10639_v39 }
 0x37d   :  { %v11148_v31 = vld [vmem:[#allocation10 + $0xe28] sm:$0xf0]  ;;  %7294 = vmatmul.bf16.vlgmr.msrb.gmra.mxu0 %v15592_v7 }
 0x37e   :  { %v14522_v8 = vld [vmem:[#allocation10 + $0x11cc] sm:$0xf]  ;;  %v11151_v41 = vor.u32 %v14402_v5, %v11148_v31  ;;  %7319 = vmatpush.bf16.msrb.mxu2 %v10895_v14 }
 0x37f   :  { %v11628_v34 = vld [vmem:[#allocation10 + $0x11e8] sm:$0xf0]  ;;  %7307 = vmatmul.bf16.vlgmr.msrb.gmra.mxu1 %v15594_v35 }
 0x380   :  { %v14586_v2 = vld [vmem:[#allocation10 + $0x13cc] sm:$0xf]  ;;  %v11631_v43 = vor.u32 %v14522_v8, %v11628_v34  ;;  %7332 = vmatpush.bf16.msrb.mxu3 %v11151_v41 }
 0x381   :  { %v11884_v11 = vld [vmem:[#allocation10 + $0x13e8] sm:$0xf0]  ;;  %7320 = vmatmul.bf16.vlgmr.msrb.gmra.mxu2 %v15596_v12 }
 0x382   :  { %v14650_v16 = vld [vmem:[#allocation10 + $0x15cc] sm:$0xf]  ;;  %v11887_v15 = vor.u32 %v14586_v2, %v11884_v11  ;;  %7338 = vmatpush.bf16.msra.mxu0 %v11631_v43  ;;  %v7087_v11 = vpop.f32.mrf.mxu0 }
 0x383   :  { %v12140_v4 = vld [vmem:[#allocation10 + $0x15e8] sm:$0xf0]  ;;  %7333 = vmatmul.bf16.vlgmr.msrb.gmra.mxu3 %v15598_v20  ;;  %v7088_v37 = vadd.f32 %v7087_v11, %v15701_v48 }
 0x384   :  { %v14714_v25 = vld [vmem:[#allocation10 + $0x17cc] sm:$0xf]  ;;  %v12143_v17 = vor.u32 %v14650_v16, %v12140_v4  ;;  %7351 = vmatpush.bf16.msra.mxu1 %v11887_v15  ;;  %v7100_v16 = vpop.f32.mrf.mxu1 }
 0x385   :  { %v12396_v59 = vld [vmem:[#allocation10 + $0x17e8] sm:$0xf0] }
 0x386   :  { %v14514_v44 = vld [vmem:[#allocation10 + $0x118c] sm:$0xf]  ;;  %v12399_v46 = vor.u32 %v14714_v25, %v12396_v59  ;;  %7364 = vmatpush.bf16.msra.mxu2 %v12143_v17 }
 0x387   :  { %v11596_v45 = vld [vmem:[#allocation10 + $0x11a8] sm:$0xf0] }
 0x388   :  { %v14578_v51 = vld [vmem:[#allocation10 + $0x138c] sm:$0xf]  ;;  %v11599_v50 = vor.u32 %v14514_v44, %v11596_v45  ;;  %7377 = vmatpush.bf16.msra.mxu3 %v12399_v46  ;;  %v7101_v45 = vadd.f32 %v7100_v16, %v7088_v37 }
 0x389   :  { %v11852_v19 = vld [vmem:[#allocation10 + $0x13a8] sm:$0xf0] }
 0x38a   :  { %v14642_v27 = vld [vmem:[#allocation10 + $0x158c] sm:$0xf]  ;;  %v11855_v54 = vor.u32 %v14578_v51, %v11852_v19  ;;  %7339 = vmatpush.bf16.msra.mxu0 %v11599_v50 }
 0x38b   :  { %v12108_v47 = vld [vmem:[#allocation10 + $0x15a8] sm:$0xf0] }
 0x38c   :  { %v14706_v18 = vld [vmem:[#allocation10 + $0x178c] sm:$0xf]  ;;  %v12111_v9 = vor.u32 %v14642_v27, %v12108_v47  ;;  %7352 = vmatpush.bf16.msra.mxu1 %v11855_v54 }
 0x38d   :  { %v12364_v49 = vld [vmem:[#allocation10 + $0x17a8] sm:$0xf0] }
 0x38e   :  { %v14506_v58 = vld [vmem:[#allocation10 + $0x114c] sm:$0xf]  ;;  %v12367_v40 = vor.u32 %v14706_v18, %v12364_v49  ;;  %7365 = vmatpush.bf16.msra.mxu2 %v12111_v9  ;;  %v7126_v9 = vpop.f32.mrf.mxu3 }
 0x38f   :  { %v11564_v62 = vld [vmem:[#allocation10 + $0x1168] sm:$0xf0] }
 0x390   :  { %v14570_v6 = vld [vmem:[#allocation10 + $0x134c] sm:$0xf]  ;;  %v11567_v32 = vor.u32 %v14506_v58, %v11564_v62  ;;  %7378 = vmatpush.bf16.msra.mxu3 %v12367_v40  ;;  %v7113_v62 = vpop.f32.mrf.mxu2 }
 0x391   :  { %v11820_v22 = vld [vmem:[#allocation10 + $0x1368] sm:$0xf0] }
 0x392   :  { %v14634_v10 = vld [vmem:[#allocation10 + $0x154c] sm:$0xf]  ;;  %v11823_v24 = vor.u32 %v14570_v6, %v11820_v22  ;;  %7340 = vmatpush.bf16.msra.mxu0 %v11567_v32 }
 0x393   :  { %v12076_v30 = vld [vmem:[#allocation10 + $0x1568] sm:$0xf0] }
 0x394   :  { %v14698_v21 = vld [vmem:[#allocation10 + $0x174c] sm:$0xf]  ;;  %v12079_v42 = vor.u32 %v14634_v10, %v12076_v30  ;;  %7353 = vmatpush.bf16.msra.mxu1 %v11823_v24  ;;  %v7114_v10 = vadd.f32 %v7113_v62, %v7101_v45  ;;  %v7089_v30 = vpop.f32.mrf.mxu0 }
 0x395   :  { %v12332_v57 = vld [vmem:[#allocation10 + $0x1768] sm:$0xf0] }
 0x396   :  { %v14498_v36 = vld [vmem:[#allocation10 + $0x110c] sm:$0xf]  ;;  %v12335_v5 = vor.u32 %v14698_v21, %v12332_v57  ;;  %7366 = vmatpush.bf16.msra.mxu2 %v12079_v42  ;;  %v7102_v21 = vpop.f32.mrf.mxu1  ;;  %v7128_v45 = vpop.f32.mrf.mxu3 }
 0x397   :  { %v11532_v28 = vld [vmem:[#allocation10 + $0x1128] sm:$0xf0] }
 0x398   :  { %v14562_v29 = vld [vmem:[#allocation10 + $0x130c] sm:$0xf]  ;;  %v11535_v39 = vor.u32 %v14498_v36, %v11532_v28  ;;  %7379 = vmatpush.bf16.msra.mxu3 %v12335_v5  ;;  %v15708_v28 = vadd.f32 %v7126_v9, %v7114_v10 }
 0x399   :  { %v11788_v38 = vld [vmem:[#allocation10 + $0x1328] sm:$0xf0] }
 0x39a   :  { %v14626_v31 = vld [vmem:[#allocation10 + $0x150c] sm:$0xf]  ;;  %v11791_v4 = vor.u32 %v14562_v29, %v11788_v38  ;;  %7341 = vmatpush.bf16.msra.mxu0 %v11535_v39 }
 0x39b   :  { %v12044_v8 = vld [vmem:[#allocation10 + $0x1528] sm:$0xf0] }
 0x39c   :  { %v14690_v34 = vld [vmem:[#allocation10 + $0x170c] sm:$0xf]  ;;  %v12047_v14 = vor.u32 %v14626_v31, %v12044_v8  ;;  %7354 = vmatpush.bf16.msra.mxu1 %v11791_v4 }
 0x39d   :  { %v12300_v2 = vld [vmem:[#allocation10 + $0x1728] sm:$0xf0] }
 0x39e   :  { %v14490_v25 = vld [vmem:[#allocation10 + $0x10cc] sm:$0xf]  ;;  %v12303_v41 = vor.u32 %v14690_v34, %v12300_v2  ;;  %7367 = vmatpush.bf16.msra.mxu2 %v12047_v14 }
 0x39f   :  { %v11500_v59 = vld [vmem:[#allocation10 + $0x10e8] sm:$0xf0] }
 0x3a0   :  { %v14554_v43 = vld [vmem:[#allocation10 + $0x12cc] sm:$0xf]  ;;  %v11503_v19 = vor.u32 %v14490_v25, %v11500_v59  ;;  %7380 = vmatpush.bf16.msra.mxu3 %v12303_v41 }
 0x3a1   :  { %v11756_v15 = vld [vmem:[#allocation10 + $0x12e8] sm:$0xf0] }
 0x3a2   :  { %v14618_v44 = vld [vmem:[#allocation10 + $0x14cc] sm:$0xf]  ;;  %v11759_v27 = vor.u32 %v14554_v43, %v11756_v15  ;;  %7342 = vmatpush.bf16.msra.mxu0 %v11503_v19 }
 0x3a3   :  { %v12012_v17 = vld [vmem:[#allocation10 + $0x14e8] sm:$0xf0] }
 0x3a4   :  { %v14682_v46 = vld [vmem:[#allocation10 + $0x16cc] sm:$0xf]  ;;  %v12015_v18 = vor.u32 %v14618_v44, %v12012_v17  ;;  %7355 = vmatpush.bf16.msra.mxu1 %v11759_v27  ;;  %v7115_v44 = vpop.f32.mrf.mxu2 }
 0x3a5   :  { %v12268_v51 = vld [vmem:[#allocation10 + $0x16e8] sm:$0xf0] }
 0x3a6   :  { %v14482_v48 = vld [vmem:[#allocation10 + $0x108c] sm:$0xf]  ;;  %v12271_v49 = vor.u32 %v14682_v46, %v12268_v51  ;;  %7368 = vmatpush.bf16.msra.mxu2 %v12015_v18 }
 0x3a7   :  { %v11468_v47 = vld [vmem:[#allocation10 + $0x10a8] sm:$0xf0] }
 0x3a8   :  { %v14546_v50 = vld [vmem:[#allocation10 + $0x128c] sm:$0xf]  ;;  %v11471_v57 = vor.u32 %v14482_v48, %v11468_v47  ;;  %7381 = vmatpush.bf16.msra.mxu3 %v12271_v49 }
 0x3a9   :  { %v11724_v54 = vld [vmem:[#allocation10 + $0x12a8] sm:$0xf0] }
 0x3aa   :  { %v14610_v58 = vld [vmem:[#allocation10 + $0x148c] sm:$0xf]  ;;  %v11727_v32 = vor.u32 %v14546_v50, %v11724_v54  ;;  %7343 = vmatpush.bf16.msra.mxu0 %v11471_v57 }
 0x3ab   :  { %v11980_v40 = vld [vmem:[#allocation10 + $0x14a8] sm:$0xf0] }
 0x3ac   :  { %v14674_v6 = vld [vmem:[#allocation10 + $0x168c] sm:$0xf]  ;;  %v11983_v42 = vor.u32 %v14610_v58, %v11980_v40  ;;  %7356 = vmatpush.bf16.msra.mxu1 %v11727_v32 }
 0x3ad   :  { %v12236_v22 = vld [vmem:[#allocation10 + $0x16a8] sm:$0xf0] }
 0x3ae   :  { %v14474_v24 = vld [vmem:[#allocation10 + $0x104c] sm:$0xf]  ;;  %v12239_v5 = vor.u32 %v14674_v6, %v12236_v22  ;;  %7369 = vmatpush.bf16.msra.mxu2 %v11983_v42 }
 0x3af   :  { %v11436_v36 = vld [vmem:[#allocation10 + $0x1068] sm:$0xf0] }
 0x3b0   :  { %v14538_v29 = vld [vmem:[#allocation10 + $0x124c] sm:$0xf]  ;;  %v11439_v16 = vor.u32 %v14474_v24, %v11436_v36  ;;  %7382 = vmatpush.bf16.msra.mxu3 %v12239_v5 }
 0x3b1   :  { %v11692_v38 = vld [vmem:[#allocation10 + $0x1268] sm:$0xf0] }
 0x3b2   :  { %v14602_v31 = vld [vmem:[#allocation10 + $0x144c] sm:$0xf]  ;;  %v11695_v37 = vor.u32 %v14538_v29, %v11692_v38  ;;  %7344 = vmatpush.bf16.msra.mxu0 %v11439_v16 }
 0x3b3   :  { %v11948_v8 = vld [vmem:[#allocation10 + $0x1468] sm:$0xf0] }
 0x3b4   :  { %v14666_v34 = vld [vmem:[#allocation10 + $0x164c] sm:$0xf]  ;;  %v11951_v59 = vor.u32 %v14602_v31, %v11948_v8  ;;  %7357 = vmatpush.bf16.msra.mxu1 %v11695_v37 }
 0x3b5   :  { %v12204_v2 = vld [vmem:[#allocation10 + $0x1668] sm:$0xf0] }
 0x3b6   :  { %v14466_v11 = vld [vmem:[#allocation10 + $0x100c] sm:$0xf]  ;;  %v12207_v14 = vor.u32 %v14666_v34, %v12204_v2  ;;  %7370 = vmatpush.bf16.msra.mxu2 %v11951_v59 }
 0x3b7   :  { %v11404_v39 = vld [vmem:[#allocation10 + $0x1028] sm:$0xf0] }
 0x3b8   :  { %v14530_v4 = vld [vmem:[#allocation10 + $0x120c] sm:$0xf]  ;;  %v11407_v47 = vor.u32 %v14466_v11, %v11404_v39  ;;  %7383 = vmatpush.bf16.msra.mxu3 %v12207_v14 }
 0x3b9   :  { %v11660_v25 = vld [vmem:[#allocation10 + $0x1228] sm:$0xf0] }
 0x3ba   :  { %v14594_v41 = vld [vmem:[#allocation10 + $0x140c] sm:$0xf]  ;;  %v11663_v18 = vor.u32 %v14530_v4, %v11660_v25  ;;  %7345 = vmatpush.bf16.msra.mxu0 %v11407_v47 }
 0x3bb   :  { %v11916_v43 = vld [vmem:[#allocation10 + $0x1428] sm:$0xf0] }
 0x3bc   :  { %v14658_v15 = vld [vmem:[#allocation10 + $0x160c] sm:$0xf]  ;;  %v11919_v58 = vor.u32 %v14594_v41, %v11916_v43  ;;  %7358 = vmatpush.bf16.msra.mxu1 %v11663_v18 }
 0x3bd   :  { %v12172_v17 = vld [vmem:[#allocation10 + $0x1628] sm:$0xf0]  ;;  %7346 = vmatmul.bf16.vlgmr.msra.gmra.mxu0 %v15617_v55 }
 0x3be   :  { %v14778_v46 = vld [vmem:[#allocation10 + $0x19cc] sm:$0xf]  ;;  %v12175_v62 = vor.u32 %v14658_v15, %v12172_v17  ;;  %7371 = vmatpush.bf16.msra.mxu2 %v11919_v58 }
 0x3bf   :  { %v12652_v51 = vld [vmem:[#allocation10 + $0x19e8] sm:$0xf0]  ;;  %7359 = vmatmul.bf16.vlgmr.msra.gmra.mxu1 %v15619_v60 }
 0x3c0   :  { %v14842_v19 = vld [vmem:[#allocation10 + $0x1bcc] sm:$0xf]  ;;  %v12655_v9 = vor.u32 %v14778_v46, %v12652_v51  ;;  %7384 = vmatpush.bf16.msra.mxu3 %v12175_v62 }
 0x3c1   :  { %v12908_v27 = vld [vmem:[#allocation10 + $0x1be8] sm:$0xf0]  ;;  %7372 = vmatmul.bf16.vlgmr.msra.gmra.mxu2 %v15621_v13 }
 0x3c2   :  { %v14906_v48 = vld [vmem:[#allocation10 + $0x1dcc] sm:$0xf]  ;;  %v12911_v40 = vor.u32 %v14842_v19, %v12908_v27  ;;  %7390 = vmatpush.bf16.msrb.mxu0 %v12655_v9  ;;  %v7139_v27 = vpop.f32.mrf.mxu0 }
 0x3c3   :  { %v13164_v49 = vld [vmem:[#allocation10 + $0x1de8] sm:$0xf0]  ;;  %7385 = vmatmul.bf16.vlgmr.msra.gmra.mxu3 %v15623_v61  ;;  %v7140_v47 = vadd.f32 %v7139_v27, %v15708_v28 }
 0x3c4   :  { %v14970_v50 = vld [vmem:[#allocation10 + $0x1fcc] sm:$0xf]  ;;  %v13167_v10 = vor.u32 %v14906_v48, %v13164_v49  ;;  %7403 = vmatpush.bf16.msrb.mxu1 %v12911_v40  ;;  %v7152_v48 = vpop.f32.mrf.mxu1 }
 0x3c5   :  { %v13420_v54 = vld [vmem:[#allocation10 + $0x1fe8] sm:$0xf0] }
 0x3c6   :  { %v14770_v6 = vld [vmem:[#allocation10 + $0x198c] sm:$0xf]  ;;  %v13423_v30 = vor.u32 %v14970_v50, %v13420_v54  ;;  %7416 = vmatpush.bf16.msrb.mxu2 %v13167_v10 }
 0x3c7   :  { %v12620_v22 = vld [vmem:[#allocation10 + $0x19a8] sm:$0xf0] }
 0x3c8   :  { %v14834_v21 = vld [vmem:[#allocation10 + $0x1b8c] sm:$0xf]  ;;  %v12623_v5 = vor.u32 %v14770_v6, %v12620_v22  ;;  %7429 = vmatpush.bf16.msrb.mxu3 %v13423_v30  ;;  %v7153_v22 = vadd.f32 %v7152_v48, %v7140_v47 }
 0x3c9   :  { %v12876_v57 = vld [vmem:[#allocation10 + $0x1ba8] sm:$0xf0] }
 0x3ca   :  { %v14898_v32 = vld [vmem:[#allocation10 + $0x1d8c] sm:$0xf]  ;;  %v12879_v29 = vor.u32 %v14834_v21, %v12876_v57  ;;  %7391 = vmatpush.bf16.msrb.mxu0 %v12623_v5 }
 0x3cb   :  { %v13132_v24 = vld [vmem:[#allocation10 + $0x1da8] sm:$0xf0] }
 0x3cc   :  { %v14962_v36 = vld [vmem:[#allocation10 + $0x1f8c] sm:$0xf]  ;;  %v13135_v8 = vor.u32 %v14898_v32, %v13132_v24  ;;  %7404 = vmatpush.bf16.msrb.mxu1 %v12879_v29 }
 0x3cd   :  { %v13388_v42 = vld [vmem:[#allocation10 + $0x1fa8] sm:$0xf0] }
 0x3ce   :  { %v14762_v38 = vld [vmem:[#allocation10 + $0x194c] sm:$0xf]  ;;  %v13391_v34 = vor.u32 %v14962_v36, %v13388_v42  ;;  %7417 = vmatpush.bf16.msrb.mxu2 %v13135_v8  ;;  %v7178_v8 = vpop.f32.mrf.mxu3 }
 0x3cf   :  { %v12588_v31 = vld [vmem:[#allocation10 + $0x1968] sm:$0xf0] }
 0x3d0   :  { %v14826_v2 = vld [vmem:[#allocation10 + $0x1b4c] sm:$0xf]  ;;  %v12591_v25 = vor.u32 %v14762_v38, %v12588_v31  ;;  %7430 = vmatpush.bf16.msrb.mxu3 %v13391_v34  ;;  %v7165_v31 = vpop.f32.mrf.mxu2 }
 0x3d1   :  { %v12844_v11 = vld [vmem:[#allocation10 + $0x1b68] sm:$0xf0] }
 0x3d2   :  { %v14890_v16 = vld [vmem:[#allocation10 + $0x1d4c] sm:$0xf]  ;;  %v12847_v59 = vor.u32 %v14826_v2, %v12844_v11  ;;  %7392 = vmatpush.bf16.msrb.mxu0 %v12591_v25 }
 0x3d3   :  { %v13100_v37 = vld [vmem:[#allocation10 + $0x1d68] sm:$0xf0] }
 0x3d4   :  { %v14954_v39 = vld [vmem:[#allocation10 + $0x1f4c] sm:$0xf]  ;;  %v13103_v43 = vor.u32 %v14890_v16, %v13100_v37  ;;  %7405 = vmatpush.bf16.msrb.mxu1 %v12847_v59  ;;  %v7166_v16 = vadd.f32 %v7165_v31, %v7153_v22  ;;  %v7141_v37 = vpop.f32.mrf.mxu0 }
 0x3d5   :  { %v13356_v4 = vld [vmem:[#allocation10 + $0x1f68] sm:$0xf0] }
 0x3d6   :  { %v14754_v14 = vld [vmem:[#allocation10 + $0x190c] sm:$0xf]  ;;  %v13359_v15 = vor.u32 %v14954_v39, %v13356_v4  ;;  %7418 = vmatpush.bf16.msrb.mxu2 %v13103_v43  ;;  %v7154_v39 = vpop.f32.mrf.mxu1  ;;  %v7180_v22 = vpop.f32.mrf.mxu3 }
 0x3d7   :  { %v12556_v41 = vld [vmem:[#allocation10 + $0x1928] sm:$0xf0]  ;;  %v9810_v39 = vld [vmem:[#allocation10 + $0x390] sm:$0xf] }
 0x3d8   :  { %v14818_v44 = vld [vmem:[#allocation10 + $0x1b0c] sm:$0xf]  ;;  %v12559_v18 = vor.u32 %v14754_v14, %v12556_v41  ;;  %7431 = vmatpush.bf16.msrb.mxu3 %v13359_v15  ;;  %v15715_v41 = vadd.f32 %v7178_v8, %v7166_v16  ;;  %v14055_v22 = vld [vmem:[#allocation10 + $0x32c] sm:$0xf0] }
 0x3d9   :  { %v12812_v45 = vld [vmem:[#allocation10 + $0x1b28] sm:$0xf0] }
 0x3da   :  { %v14882_v17 = vld [vmem:[#allocation10 + $0x1d0c] sm:$0xf]  ;;  %v12815_v49 = vor.u32 %v14818_v44, %v12812_v45  ;;  %7393 = vmatpush.bf16.msrb.mxu0 %v12559_v18 }
 0x3db   :  { %v13068_v46 = vld [vmem:[#allocation10 + $0x1d28] sm:$0xf0] }
 0x3dc   :  { %v14946_v51 = vld [vmem:[#allocation10 + $0x1f0c] sm:$0xf]  ;;  %v13071_v58 = vor.u32 %v14882_v17, %v13068_v46  ;;  %7406 = vmatpush.bf16.msrb.mxu1 %v12815_v49 }
 0x3dd   :  { %v13324_v19 = vld [vmem:[#allocation10 + $0x1f28] sm:$0xf0] }
 0x3de   :  { %v14746_v50 = vld [vmem:[#allocation10 + $0x18cc] sm:$0xf]  ;;  %v13327_v62 = vor.u32 %v14946_v51, %v13324_v19  ;;  %7419 = vmatpush.bf16.msrb.mxu2 %v13071_v58 }
 0x3df   :  { %v12524_v54 = vld [vmem:[#allocation10 + $0x18e8] sm:$0xf0] }
 0x3e0   :  { %v14810_v9 = vld [vmem:[#allocation10 + $0x1acc] sm:$0xf]  ;;  %v12527_v57 = vor.u32 %v14746_v50, %v12524_v54  ;;  %7432 = vmatpush.bf16.msrb.mxu3 %v13327_v62 }
 0x3e1   :  { %v12780_v40 = vld [vmem:[#allocation10 + $0x1ae8] sm:$0xf0] }
 0x3e2   :  { %v14874_v6 = vld [vmem:[#allocation10 + $0x1ccc] sm:$0xf]  ;;  %v12783_v32 = vor.u32 %v14810_v9, %v12780_v40  ;;  %7394 = vmatpush.bf16.msrb.mxu0 %v12527_v57  ;;  %v9842_v57 = vld [vmem:[#allocation10 + $0x3d0] sm:$0xf] }
 0x3e3   :  { %v13036_v10 = vld [vmem:[#allocation10 + $0x1ce8] sm:$0xf0] }
 0x3e4   :  { %v14938_v30 = vld [vmem:[#allocation10 + $0x1ecc] sm:$0xf]  ;;  %v13039_v36 = vor.u32 %v14874_v6, %v13036_v10  ;;  %7407 = vmatpush.bf16.msrb.mxu1 %v12783_v32  ;;  %v7167_v6 = vpop.f32.mrf.mxu2  ;;  %v14079_v32 = vld [vmem:[#allocation10 + $0x3ec] sm:$0xf0] }
 0x3e5   :  { %v13292_v21 = vld [vmem:[#allocation10 + $0x1ee8] sm:$0xf0]  ;;  %v9746_v6 = vld [vmem:[#allocation10 + $0x310] sm:$0xf] }
 0x3e6   :  { %v14738_v28 = vld [vmem:[#allocation10 + $0x188c] sm:$0xf]  ;;  %v13295_v42 = vor.u32 %v14938_v30, %v13292_v21  ;;  %7420 = vmatpush.bf16.msrb.mxu2 %v13039_v36  ;;  %v9586_v30 = vld [vmem:[#allocation10 + $0x1d0] sm:$0xf] }
 0x3e7   :  { %v12492_v24 = vld [vmem:[#allocation10 + $0x18a8] sm:$0xf0]  ;;  %v14015_v21 = vld [vmem:[#allocation10 + $0x1ec] sm:$0xf0] }
 0x3e8   :  { %v14802_v5 = vld [vmem:[#allocation10 + $0x1a8c] sm:$0xf]  ;;  %v12495_v4 = vor.u32 %v14738_v28, %v12492_v24  ;;  %7433 = vmatpush.bf16.msrb.mxu3 %v13295_v42  ;;  %v10098_v28 = vld [vmem:[#allocation10 + $0x5d0] sm:$0xf]  ;;  %v9587_v8 = vor.u32 %v14015_v21, %v9586_v30 }
 0x3e9   :  { %v12748_v29 = vld [vmem:[#allocation10 + $0x1aa8] sm:$0xf0]  ;;  %v14143_v42 = vld [vmem:[#allocation10 + $0x5ec] sm:$0xf0] }
 0x3ea   :  { %v14866_v38 = vld [vmem:[#allocation10 + $0x1c8c] sm:$0xf]  ;;  %v12751_v25 = vor.u32 %v14802_v5, %v12748_v29  ;;  %7395 = vmatpush.bf16.msrb.mxu0 %v12495_v4  ;;  %v10354_v5 = vld [vmem:[#allocation10 + $0x7d0] sm:$0xf]  ;;  %v10099_v16 = vor.u32 %v14143_v42, %v10098_v28  ;;  %v7204_v28 = vpop.f32.mrf.mxu1  ;;  %v9747_v42 = vor.u32 %v14055_v22, %v9746_v6 }
 0x3eb   :  { %v13004_v34 = vld [vmem:[#allocation10 + $0x1ca8] sm:$0xf0]  ;;  %v14207_v29 = vld [vmem:[#allocation10 + $0x7ec] sm:$0xf0] }
 0x3ec   :  { %v14930_v2 = vld [vmem:[#allocation10 + $0x1e8c] sm:$0xf]  ;;  %v13007_v43 = vor.u32 %v14866_v38, %v13004_v34  ;;  %7408 = vmatpush.bf16.msrb.mxu1 %v12751_v25  ;;  %v9843_v34 = vor.u32 %v14079_v32, %v9842_v57  ;;  %v10355_v37 = vor.u32 %v14207_v29, %v10354_v5  ;;  %v14071_v4 = vld [vmem:[#allocation10 + $0x3ac] sm:$0xf0]  ;;  %v7191_v32 = vpop.f32.mrf.mxu0 }
 0x3ed   :  { %v13260_v11 = vld [vmem:[#allocation10 + $0x1ea8] sm:$0xf0]  ;;  %v10066_v25 = vld [vmem:[#allocation10 + $0x590] sm:$0xf] }
 0x3ee   :  { %v14730_v59 = vld [vmem:[#allocation10 + $0x184c] sm:$0xf]  ;;  %v13263_v15 = vor.u32 %v14930_v2, %v13260_v11  ;;  %7421 = vmatpush.bf16.msrb.mxu2 %v13007_v43  ;;  %v9554_v2 = vld [vmem:[#allocation10 + $0x190] sm:$0xf] }
 0x3ef   :  { %v12460_v14 = vld [vmem:[#allocation10 + $0x1868] sm:$0xf0]  ;;  %v14007_v11 = vld [vmem:[#allocation10 + $0x1ac] sm:$0xf0] }
 0x3f0   :  { %v14794_v44 = vld [vmem:[#allocation10 + $0x1a4c] sm:$0xf]  ;;  %v12463_v48 = vor.u32 %v14730_v59, %v12460_v14  ;;  %7434 = vmatpush.bf16.msrb.mxu3 %v13263_v15  ;;  %v14135_v59 = vld [vmem:[#allocation10 + $0x5ac] sm:$0xf0]  ;;  %v9555_v15 = vor.u32 %v14007_v11, %v9554_v2 }
 0x3f1   :  { %v12716_v45 = vld [vmem:[#allocation10 + $0x1a68] sm:$0xf0]  ;;  %v10322_v14 = vld [vmem:[#allocation10 + $0x790] sm:$0xf] }
 0x3f2   :  { %v14858_v17 = vld [vmem:[#allocation10 + $0x1c4c] sm:$0xf]  ;;  %v12719_v47 = vor.u32 %v14794_v44, %v12716_v45  ;;  %7396 = vmatpush.bf16.msrb.mxu0 %v12463_v48  ;;  %v14199_v43 = vld [vmem:[#allocation10 + $0x7ac] sm:$0xf0]  ;;  %v9811_v44 = vor.u32 %v14071_v4, %v9810_v39 }
 0x3f3   :  { %v12972_v46 = vld [vmem:[#allocation10 + $0x1c68] sm:$0xf0]  ;;  %v9522_v45 = vld [vmem:[#allocation10 + $0x150] sm:$0xf] }
 0x3f4   :  { %v14922_v51 = vld [vmem:[#allocation10 + $0x1e4c] sm:$0xf]  ;;  %v12975_v54 = vor.u32 %v14858_v17, %v12972_v46  ;;  %7409 = vmatpush.bf16.msrb.mxu1 %v12719_v47  ;;  %v13999_v17 = vld [vmem:[#allocation10 + $0x16c] sm:$0xf0]  ;;  %v10067_v46 = vor.u32 %v14135_v59, %v10066_v25 }
 0x3f5   :  { %v13228_v19 = vld [vmem:[#allocation10 + $0x1e68] sm:$0xf0]  ;;  %v10034_v48 = vld [vmem:[#allocation10 + $0x550] sm:$0xf] }
 0x3f6   :  { %v14722_v27 = vld [vmem:[#allocation10 + $0x180c] sm:$0xf]  ;;  %v13231_v58 = vor.u32 %v14922_v51, %v13228_v19  ;;  %7422 = vmatpush.bf16.msrb.mxu2 %v12975_v54  ;;  %v10323_v51 = vor.u32 %v14199_v43, %v10322_v14  ;;  %v9778_v19 = vld [vmem:[#allocation10 + $0x350] sm:$0xf] }
 0x3f7   :  { %v12428_v18 = vld [vmem:[#allocation10 + $0x1828] sm:$0xf0]  ;;  %v14127_v47 = vld [vmem:[#allocation10 + $0x56c] sm:$0xf0] }
 0x3f8   :  { %v14786_v49 = vld [vmem:[#allocation10 + $0x1a0c] sm:$0xf]  ;;  %v12431_v24 = vor.u32 %v14722_v27, %v12428_v18  ;;  %7435 = vmatpush.bf16.msrb.mxu3 %v13231_v58  ;;  %v14063_v27 = vld [vmem:[#allocation10 + $0x36c] sm:$0xf0] }
 0x3f9   :  { %v12684_v50 = vld [vmem:[#allocation10 + $0x1a28] sm:$0xf0]  ;;  %v10290_v18 = vld [vmem:[#allocation10 + $0x750] sm:$0xf]  ;;  %v9779_v54 = vor.u32 %v14063_v27, %v9778_v19 }
 0x3fa   :  { %v14850_v62 = vld [vmem:[#allocation10 + $0x1c0c] sm:$0xf]  ;;  %v12687_v36 = vor.u32 %v14786_v49, %v12684_v50  ;;  %7397 = vmatpush.bf16.msrb.mxu0 %v12431_v24  ;;  %v14191_v49 = vld [vmem:[#allocation10 + $0x76c] sm:$0xf0]  ;;  %v9523_v50 = vor.u32 %v13999_v17, %v9522_v45  ;;  %v7192_v24 = vadd.f32 %v7191_v32, %v15715_v41  ;;  %v7217_v17 = vpop.f32.mrf.mxu2 }
 0x3fb   :  { %v12940_v9 = vld [vmem:[#allocation10 + $0x1c28] sm:$0xf0]  ;;  %v9490_v58 = vld [vmem:[#allocation10 + $0x110] sm:$0xf] }
 0x3fc   :  { %v14914_v40 = vld [vmem:[#allocation10 + $0x1e0c] sm:$0xf]  ;;  %v12943_v38 = vor.u32 %v14850_v62, %v12940_v9  ;;  %7410 = vmatpush.bf16.msrb.mxu1 %v12687_v36  ;;  %v13991_v62 = vld [vmem:[#allocation10 + $0x12c] sm:$0xf0]  ;;  %v10035_v9 = vor.u32 %v14127_v47, %v10034_v48  ;;  %v7205_v11 = vadd.f32 %v7204_v28, %v7192_v24  ;;  %v7193_v47 = vpop.f32.mrf.mxu0 }
 0x3fd   :  { %v13196_v10 = vld [vmem:[#allocation10 + $0x1e28] sm:$0xf0]  ;;  %7398 = vmatmul.bf16.vlgmr.msrb.gmra.mxu0 %v15633_v1  ;;  %v14119_v30 = vld [vmem:[#allocation10 + $0x52c] sm:$0xf0]  ;;  %v9491_v36 = vor.u32 %v13991_v62, %v9490_v58 }
 0x3fe   :  { %v13199_v31 = vor.u32 %v14914_v40, %v13196_v10  ;;  %7423 = vmatpush.bf16.msrb.mxu2 %v12943_v38  ;;  %7442 = vmatpush.bf16.msra.mxu0 %v9587_v8  ;;  %v10291_v40 = vor.u32 %v14191_v49, %v10290_v18  ;;  %v10002_v10 = vld [vmem:[#allocation10 + $0x510] sm:$0xf]  ;;  %v7218_v48 = vadd.f32 %v7217_v17, %v7205_v11  ;;  %v7206_v18 = vpop.f32.mrf.mxu1 }
 0x3ff   :  { %7411 = vmatmul.bf16.vlgmr.msrb.gmra.mxu1 %v15635_v63  ;;  %v10258_v21 = vld [vmem:[#allocation10 + $0x710] sm:$0xf]  ;;  %v10003_v38 = vor.u32 %v14119_v30, %v10002_v10 }
 0x400   :  { %7436 = vmatpush.bf16.msrb.mxu3 %v13199_v31  ;;  %7455 = vmatpush.bf16.msra.mxu1 %v9843_v34  ;;  %v14183_v57 = vld [vmem:[#allocation10 + $0x72c] sm:$0xf0] }
 0x401   :  { %7424 = vmatmul.bf16.vlgmr.msrb.gmra.mxu2 %v15637_v0  ;;  %v9458_v5 = vld [vmem:[#allocation10 + $0xd0] sm:$0xf]  ;;  %v10259_v31 = vor.u32 %v14183_v57, %v10258_v21 }
 0x402   :  { %7468 = vmatpush.bf16.msra.mxu2 %v10099_v16  ;;  %7443 = vmatpush.bf16.msra.mxu0 %v9555_v15  ;;  %v13983_v29 = vld [vmem:[#allocation10 + $0xec] sm:$0xf0] }
 0x403   :  { %7437 = vmatmul.bf16.vlgmr.msrb.gmra.mxu3 %v15639_v23  ;;  %v9714_v8 = vld [vmem:[#allocation10 + $0x2d0] sm:$0xf]  ;;  %v9459_v4 = vor.u32 %v13983_v29, %v9458_v5 }
 0x404   :  { %7481 = vmatpush.bf16.msra.mxu3 %v10355_v37  ;;  %7456 = vmatpush.bf16.msra.mxu1 %v9811_v44  ;;  %v14047_v34 = vld [vmem:[#allocation10 + $0x2ec] sm:$0xf0] }
 0x405   :  { %v9970_v2 = vld [vmem:[#allocation10 + $0x4d0] sm:$0xf]  ;;  %v9715_v25 = vor.u32 %v14047_v34, %v9714_v8 }
 0x406   :  { %7469 = vmatpush.bf16.msra.mxu2 %v10067_v46  ;;  %7444 = vmatpush.bf16.msra.mxu0 %v9523_v50  ;;  %v14111_v16 = vld [vmem:[#allocation10 + $0x4ec] sm:$0xf0]  ;;  %v7230_v46 = vpop.f32.mrf.mxu3 }
 0x407   :  { %v10226_v37 = vld [vmem:[#allocation10 + $0x6d0] sm:$0xf]  ;;  %v9971_v14 = vor.u32 %v14111_v16, %v9970_v2  ;;  %v15722_v62 = vadd.f32 %v7230_v46, %v7218_v48  ;;  %v7219_v2 = vpop.f32.mrf.mxu2 }
 0x408   :  { %7482 = vmatpush.bf16.msra.mxu3 %v10323_v51  ;;  %7457 = vmatpush.bf16.msra.mxu1 %v9779_v54  ;;  %v14175_v39 = vld [vmem:[#allocation10 + $0x6ec] sm:$0xf0] }
 0x409   :  { %v9426_v41 = vld [vmem:[#allocation10 + $0x90] sm:$0xf]  ;;  %v10227_v43 = vor.u32 %v14175_v39, %v10226_v37 }
 0x40a   :  { %7470 = vmatpush.bf16.msra.mxu2 %v10035_v9  ;;  %7445 = vmatpush.bf16.msra.mxu0 %v9491_v36  ;;  %v13975_v59 = vld [vmem:[#allocation10 + $0xac] sm:$0xf0] }
 0x40b   :  { %v9682_v15 = vld [vmem:[#allocation10 + $0x290] sm:$0xf]  ;;  %v9427_v49 = vor.u32 %v13975_v59, %v9426_v41 }
 0x40c   :  { %7483 = vmatpush.bf16.msra.mxu3 %v10291_v40  ;;  %7458 = vmatpush.bf16.msra.mxu1 %v9747_v42  ;;  %v14039_v44 = vld [vmem:[#allocation10 + $0x2ac] sm:$0xf0] }
 0x40d   :  { %v9938_v45 = vld [vmem:[#allocation10 + $0x490] sm:$0xf]  ;;  %v9683_v50 = vor.u32 %v14039_v44, %v9682_v15 }
 0x40e   :  { %7471 = vmatpush.bf16.msra.mxu2 %v10003_v38  ;;  %v14103_v51 = vld [vmem:[#allocation10 + $0x4ac] sm:$0xf0]  ;;  %7446 = vmatpush.bf16.msra.mxu0 %v9459_v4  ;;  %v7232_v11 = vpop.f32.mrf.mxu3 }
 0x40f   :  { %v10194_v19 = vld [vmem:[#allocation10 + $0x690] sm:$0xf]  ;;  %v9939_v9 = vor.u32 %v14103_v51, %v9938_v45 }
 0x410   :  { %7484 = vmatpush.bf16.msra.mxu3 %v10259_v31  ;;  %v14167_v27 = vld [vmem:[#allocation10 + $0x6ac] sm:$0xf0]  ;;  %7459 = vmatpush.bf16.msra.mxu1 %v9715_v25 }
 0x411   :  { %v9394_v54 = vld [vmem:[#allocation10 + $0x50] sm:$0xf]  ;;  %v10195_v40 = vor.u32 %v14167_v27, %v10194_v19 }
 0x412   :  { %v13967_v58 = vld [vmem:[#allocation10 + $0x6c] sm:$0xf0]  ;;  %7472 = vmatpush.bf16.msra.mxu2 %v9971_v14  ;;  %7447 = vmatpush.bf16.msra.mxu0 %v9427_v49 }
 0x413   :  { %v9650_v6 = vld [vmem:[#allocation10 + $0x250] sm:$0xf]  ;;  %v9395_v28 = vor.u32 %v13967_v58, %v9394_v54 }
 0x414   :  { %7485 = vmatpush.bf16.msra.mxu3 %v10227_v43  ;;  %v14031_v22 = vld [vmem:[#allocation10 + $0x26c] sm:$0xf0]  ;;  %7460 = vmatpush.bf16.msra.mxu1 %v9683_v50 }
 0x415   :  { %v9906_v10 = vld [vmem:[#allocation10 + $0x450] sm:$0xf]  ;;  %v9651_v24 = vor.u32 %v14031_v22, %v9650_v6 }
 0x416   :  { %v14095_v30 = vld [vmem:[#allocation10 + $0x46c] sm:$0xf0]  ;;  %7473 = vmatpush.bf16.msra.mxu2 %v9939_v9  ;;  %7448 = vmatpush.bf16.msra.mxu0 %v9395_v28 }
 0x417   :  { %v10162_v21 = vld [vmem:[#allocation10 + $0x650] sm:$0xf]  ;;  %v9907_v29 = vor.u32 %v14095_v30, %v9906_v10 }
 0x418   :  { %v14159_v57 = vld [vmem:[#allocation10 + $0x66c] sm:$0xf0]  ;;  %7486 = vmatpush.bf16.msra.mxu3 %v10195_v40  ;;  %7461 = vmatpush.bf16.msra.mxu1 %v9651_v24 }
 0x419   :  { %v9362_v32 = vld [vmem:[#allocation10 + $0x10] sm:$0xf]  ;;  %v10163_v38 = vor.u32 %v14159_v57, %v10162_v21 }
 0x41a   :  { %v13959_v36 = vld [vmem:[#allocation10 + $0x2c] sm:$0xf0]  ;;  %7474 = vmatpush.bf16.msra.mxu2 %v9907_v29 }
 0x41b   :  { %v9618_v42 = vld [vmem:[#allocation10 + $0x210] sm:$0xf]  ;;  %v9363_v59 = vor.u32 %v13959_v36, %v9362_v32 }
 0x41c   :  { %v14023_v5 = vld [vmem:[#allocation10 + $0x22c] sm:$0xf0]  ;;  %7487 = vmatpush.bf16.msra.mxu3 %v10163_v38  ;;  %v15135_v38 = vld [vmem:[#allocation11] sm:$0xff] }
 0x41d   :  { %v9874_v31 = vld [vmem:[#allocation10 + $0x410] sm:$0xf]  ;;  %v9619_v14 = vor.u32 %v14023_v5, %v9618_v42  ;;  %7449 = vmatpush.bf16.msra.mxu0 %v9363_v59  ;;  %v7243_v59 = vpop.f32.mrf.mxu0 }
 0x41e   :  { %v14087_v8 = vld [vmem:[#allocation10 + $0x42c] sm:$0xf0] }
 0x41f   :  { %v10130_v34 = vld [vmem:[#allocation10 + $0x610] sm:$0xf]  ;;  %v9875_v45 = vor.u32 %v14087_v8, %v9874_v31  ;;  %7462 = vmatpush.bf16.msra.mxu1 %v9619_v14  ;;  %v1421_v31 = vperm.slane %v15135_v38, 3  ;;  %v7256_v14 = vpop.f32.mrf.mxu1 }
 0x420   :  { %v14151_v16 = vld [vmem:[#allocation10 + $0x62c] sm:$0xf0]  ;;  %7450 = vmatmul.bf16.vlgmr.msra.gmra.mxu0 %v15550_v52 }
 0x421   :  { %v10610_v37 = vld [vmem:[#allocation10 + $0x9d0] sm:$0xf]  ;;  %v10131_v17 = vor.u32 %v14151_v16, %v10130_v34  ;;  %7475 = vmatpush.bf16.msra.mxu2 %v9875_v45 }
 0x422   :  { %v14271_v39 = vld [vmem:[#allocation10 + $0x9ec] sm:$0xf0]  ;;  %7463 = vmatmul.bf16.vlgmr.msra.gmra.mxu1 %v15552_v53 }
 0x423   :  { %v10866_v4 = vld [vmem:[#allocation10 + $0xbd0] sm:$0xf]  ;;  %v10611_v46 = vor.u32 %v14271_v39, %v10610_v37  ;;  %7488 = vmatpush.bf16.msra.mxu3 %v10131_v17 }
 0x424   :  { %v14335_v25 = vld [vmem:[#allocation10 + $0xbec] sm:$0xf0]  ;;  %7476 = vmatmul.bf16.vlgmr.msra.gmra.mxu2 %v15554_v26 }
 0x425   :  { %v11122_v41 = vld [vmem:[#allocation10 + $0xdd0] sm:$0xf]  ;;  %v10867_v51 = vor.u32 %v14335_v25, %v10866_v4  ;;  %7494 = vmatpush.bf16.msrb.mxu0 %v10611_v46 }
 0x426   :  { %v14399_v43 = vld [vmem:[#allocation10 + $0xdec] sm:$0xf0]  ;;  %7489 = vmatmul.bf16.vlgmr.msra.gmra.mxu3 %v15556_v56 }
 0x427   :  { %v11378_v15 = vld [vmem:[#allocation10 + $0xfd0] sm:$0xf]  ;;  %v11123_v48 = vor.u32 %v14399_v43, %v11122_v41  ;;  %7507 = vmatpush.bf16.msrb.mxu1 %v10867_v51  ;;  %v7244_v43 = vadd.f32 %v7243_v59, %v1421_v31 }
 0x428   :  { %v14463_v44 = vld [vmem:[#allocation10 + $0xfec] sm:$0xf0] }
 0x429   :  { %v10578_v19 = vld [vmem:[#allocation10 + $0x990] sm:$0xf]  ;;  %v11379_v47 = vor.u32 %v14463_v44, %v11378_v15  ;;  %7520 = vmatpush.bf16.msrb.mxu2 %v11123_v48 }
 0x42a   :  { %v14263_v27 = vld [vmem:[#allocation10 + $0x9ac] sm:$0xf0] }
 0x42b   :  { %v10834_v18 = vld [vmem:[#allocation10 + $0xb90] sm:$0xf]  ;;  %v10579_v40 = vor.u32 %v14263_v27, %v10578_v19  ;;  %7533 = vmatpush.bf16.msrb.mxu3 %v11379_v47  ;;  %v7257_v47 = vadd.f32 %v7256_v14, %v7244_v43 }
 0x42c   :  { %v14327_v49 = vld [vmem:[#allocation10 + $0xbac] sm:$0xf0] }
 0x42d   :  { %v11090_v50 = vld [vmem:[#allocation10 + $0xd90] sm:$0xf]  ;;  %v10835_v6 = vor.u32 %v14327_v49, %v10834_v18  ;;  %7495 = vmatpush.bf16.msrb.mxu0 %v10579_v40 }
 0x42e   :  { %v14391_v54 = vld [vmem:[#allocation10 + $0xdac] sm:$0xf0] }
 0x42f   :  { %v11346_v58 = vld [vmem:[#allocation10 + $0xf90] sm:$0xf]  ;;  %v11091_v30 = vor.u32 %v14391_v54, %v11090_v50  ;;  %7508 = vmatpush.bf16.msrb.mxu1 %v10835_v6 }
 0x430   :  { %v14455_v9 = vld [vmem:[#allocation10 + $0xfac] sm:$0xf0] }
 0x431   :  { %v10546_v22 = vld [vmem:[#allocation10 + $0x950] sm:$0xf]  ;;  %v11347_v21 = vor.u32 %v14455_v9, %v11346_v58  ;;  %7521 = vmatpush.bf16.msrb.mxu2 %v11091_v30 }
 0x432   :  { %v14255_v10 = vld [vmem:[#allocation10 + $0x96c] sm:$0xf0] }
 0x433   :  { %v10802_v57 = vld [vmem:[#allocation10 + $0xb50] sm:$0xf]  ;;  %v10547_v5 = vor.u32 %v14255_v10, %v10546_v22  ;;  %7534 = vmatpush.bf16.msrb.mxu3 %v11347_v21 }
 0x434   :  { %v14319_v32 = vld [vmem:[#allocation10 + $0xb6c] sm:$0xf0] }
 0x435   :  { %v11058_v28 = vld [vmem:[#allocation10 + $0xd50] sm:$0xf]  ;;  %v10803_v29 = vor.u32 %v14319_v32, %v10802_v57  ;;  %7496 = vmatpush.bf16.msrb.mxu0 %v10547_v5  ;;  %v7269_v57 = vpop.f32.mrf.mxu2  ;;  %v7282_v32 = vpop.f32.mrf.mxu3 }
 0x436   :  { %v14383_v24 = vld [vmem:[#allocation10 + $0xd6c] sm:$0xf0]  ;;  %v7245_v5 = vpop.f32.mrf.mxu0 }
 0x437   :  { %v11314_v36 = vld [vmem:[#allocation10 + $0xf50] sm:$0xf]  ;;  %v11059_v2 = vor.u32 %v14383_v24, %v11058_v28  ;;  %7509 = vmatpush.bf16.msrb.mxu1 %v10803_v29  ;;  %v7258_v29 = vpop.f32.mrf.mxu1 }
 0x438   :  { %v14447_v42 = vld [vmem:[#allocation10 + $0xf6c] sm:$0xf0] }
 0x439   :  { %v10514_v8 = vld [vmem:[#allocation10 + $0x910] sm:$0xf]  ;;  %v11315_v11 = vor.u32 %v14447_v42, %v11314_v36  ;;  %7522 = vmatpush.bf16.msrb.mxu2 %v11059_v2  ;;  %v7270_v42 = vadd.f32 %v7269_v57, %v7257_v47 }
 0x43a   :  { %v14247_v34 = vld [vmem:[#allocation10 + $0x92c] sm:$0xf0] }
 0x43b   :  { %v10770_v16 = vld [vmem:[#allocation10 + $0xb10] sm:$0xf]  ;;  %v10515_v15 = vor.u32 %v14247_v34, %v10514_v8  ;;  %7535 = vmatpush.bf16.msrb.mxu3 %v11315_v11  ;;  %v15728_v2 = vadd.f32 %v7282_v32, %v7270_v42 }
 0x43c   :  { %v14311_v37 = vld [vmem:[#allocation10 + $0xb2c] sm:$0xf0] }
 0x43d   :  { %v11026_v39 = vld [vmem:[#allocation10 + $0xd10] sm:$0xf]  ;;  %v10771_v44 = vor.u32 %v14311_v37, %v10770_v16  ;;  %7497 = vmatpush.bf16.msrb.mxu0 %v10515_v15  ;;  %v7271_v47 = vpop.f32.mrf.mxu2 }
 0x43e   :  { %v14375_v4 = vld [vmem:[#allocation10 + $0xd2c] sm:$0xf0] }
 0x43f   :  { %v11282_v25 = vld [vmem:[#allocation10 + $0xf10] sm:$0xf]  ;;  %v11027_v46 = vor.u32 %v14375_v4, %v11026_v39  ;;  %7510 = vmatpush.bf16.msrb.mxu1 %v10771_v44 }
 0x440   :  { %v14439_v41 = vld [vmem:[#allocation10 + $0xf2c] sm:$0xf0] }
 0x441   :  { %v10482_v45 = vld [vmem:[#allocation10 + $0x8d0] sm:$0xf]  ;;  %v11283_v51 = vor.u32 %v14439_v41, %v11282_v25  ;;  %7523 = vmatpush.bf16.msrb.mxu2 %v11027_v46 }
 0x442   :  { %v14239_v17 = vld [vmem:[#allocation10 + $0x8ec] sm:$0xf0] }
 0x443   :  { %v10738_v19 = vld [vmem:[#allocation10 + $0xad0] sm:$0xf]  ;;  %v10483_v54 = vor.u32 %v14239_v17, %v10482_v45  ;;  %7536 = vmatpush.bf16.msrb.mxu3 %v11283_v51 }
 0x444   :  { %v14303_v27 = vld [vmem:[#allocation10 + $0xaec] sm:$0xf0] }
 0x445   :  { %v10994_v48 = vld [vmem:[#allocation10 + $0xcd0] sm:$0xf]  ;;  %v10739_v58 = vor.u32 %v14303_v27, %v10738_v19  ;;  %7498 = vmatpush.bf16.msrb.mxu0 %v10483_v54 }
 0x446   :  { %v14367_v18 = vld [vmem:[#allocation10 + $0xcec] sm:$0xf0] }
 0x447   :  { %v11250_v49 = vld [vmem:[#allocation10 + $0xed0] sm:$0xf]  ;;  %v10995_v6 = vor.u32 %v14367_v18, %v10994_v48  ;;  %7511 = vmatpush.bf16.msrb.mxu1 %v10739_v58  ;;  %v7284_v18 = vpop.f32.mrf.mxu3 }
 0x448   :  { %v14431_v50 = vld [vmem:[#allocation10 + $0xeec] sm:$0xf0] }
 0x449   :  { %v10450_v9 = vld [vmem:[#allocation10 + $0x890] sm:$0xf]  ;;  %v11251_v22 = vor.u32 %v14431_v50, %v11250_v49  ;;  %7524 = vmatpush.bf16.msrb.mxu2 %v10995_v6 }
 0x44a   :  { %v14231_v40 = vld [vmem:[#allocation10 + $0x8ac] sm:$0xf0] }
 0x44b   :  { %v10706_v10 = vld [vmem:[#allocation10 + $0xa90] sm:$0xf]  ;;  %v10451_v38 = vor.u32 %v14231_v40, %v10450_v9  ;;  %7537 = vmatpush.bf16.msrb.mxu3 %v11251_v22 }
 0x44c   :  { %v14295_v30 = vld [vmem:[#allocation10 + $0xaac] sm:$0xf0] }
 0x44d   :  { %v10962_v21 = vld [vmem:[#allocation10 + $0xc90] sm:$0xf]  ;;  %v10707_v31 = vor.u32 %v14295_v30, %v10706_v10  ;;  %7499 = vmatpush.bf16.msrb.mxu0 %v10451_v38 }
 0x44e   :  { %v14359_v28 = vld [vmem:[#allocation10 + $0xcac] sm:$0xf0] }
 0x44f   :  { %v11218_v24 = vld [vmem:[#allocation10 + $0xe90] sm:$0xf]  ;;  %v10963_v11 = vor.u32 %v14359_v28, %v10962_v21  ;;  %7512 = vmatpush.bf16.msrb.mxu1 %v10707_v31 }
 0x450   :  { %v14423_v36 = vld [vmem:[#allocation10 + $0xeac] sm:$0xf0] }
 0x451   :  { %v10418_v8 = vld [vmem:[#allocation10 + $0x850] sm:$0xf]  ;;  %v11219_v16 = vor.u32 %v14423_v36, %v11218_v24  ;;  %7525 = vmatpush.bf16.msrb.mxu2 %v10963_v11 }
 0x452   :  { %v14223_v34 = vld [vmem:[#allocation10 + $0x86c] sm:$0xf0] }
 0x453   :  { %v10674_v37 = vld [vmem:[#allocation10 + $0xa50] sm:$0xf]  ;;  %v10419_v43 = vor.u32 %v14223_v34, %v10418_v8  ;;  %7538 = vmatpush.bf16.msrb.mxu3 %v11219_v16 }
 0x454   :  { %v14287_v39 = vld [vmem:[#allocation10 + $0xa6c] sm:$0xf0] }
 0x455   :  { %v10930_v4 = vld [vmem:[#allocation10 + $0xc50] sm:$0xf]  ;;  %v10675_v15 = vor.u32 %v14287_v39, %v10674_v37  ;;  %7500 = vmatpush.bf16.msrb.mxu0 %v10419_v43 }
 0x456   :  { %v14351_v25 = vld [vmem:[#allocation10 + $0xc6c] sm:$0xf0] }
 0x457   :  { %v11186_v41 = vld [vmem:[#allocation10 + $0xe50] sm:$0xf]  ;;  %v10931_v46 = vor.u32 %v14351_v25, %v10930_v4  ;;  %7513 = vmatpush.bf16.msrb.mxu1 %v10675_v15 }
 0x458   :  { %v14415_v59 = vld [vmem:[#allocation10 + $0xe6c] sm:$0xf0] }
 0x459   :  { %v10386_v14 = vld [vmem:[#allocation10 + $0x810] sm:$0xf]  ;;  %v11187_v51 = vor.u32 %v14415_v59, %v11186_v41  ;;  %7526 = vmatpush.bf16.msrb.mxu2 %v10931_v46 }
 0x45a   :  { %v14215_v44 = vld [vmem:[#allocation10 + $0x82c] sm:$0xf0] }
 0x45b   :  { %v10642_v45 = vld [vmem:[#allocation10 + $0xa10] sm:$0xf]  ;;  %v10387_v6 = vor.u32 %v14215_v44, %v10386_v14  ;;  %7539 = vmatpush.bf16.msrb.mxu3 %v11187_v51 }
 0x45c   :  { %v14279_v17 = vld [vmem:[#allocation10 + $0xa2c] sm:$0xf0] }
 0x45d   :  { %v10898_v19 = vld [vmem:[#allocation10 + $0xc10] sm:$0xf]  ;;  %v10643_v22 = vor.u32 %v14279_v17, %v10642_v45  ;;  %7501 = vmatpush.bf16.msrb.mxu0 %v10387_v6  ;;  %v7308_v6 = vpop.f32.mrf.mxu1 }
 0x45e   :  { %v14343_v27 = vld [vmem:[#allocation10 + $0xc2c] sm:$0xf0] }
 0x45f   :  { %v11154_v48 = vld [vmem:[#allocation10 + $0xe10] sm:$0xf]  ;;  %v10899_v57 = vor.u32 %v14343_v27, %v10898_v19  ;;  %7514 = vmatpush.bf16.msrb.mxu1 %v10643_v22 }
 0x460   :  { %v14407_v49 = vld [vmem:[#allocation10 + $0xe2c] sm:$0xf0]  ;;  %7502 = vmatmul.bf16.vlgmr.msrb.gmra.mxu0 %v15592_v7 }
 0x461   :  { %v11634_v50 = vld [vmem:[#allocation10 + $0x11d0] sm:$0xf]  ;;  %v11155_v32 = vor.u32 %v14407_v49, %v11154_v48  ;;  %7527 = vmatpush.bf16.msrb.mxu2 %v10899_v57 }
 0x462   :  { %v14527_v54 = vld [vmem:[#allocation10 + $0x11ec] sm:$0xf0]  ;;  %7515 = vmatmul.bf16.vlgmr.msrb.gmra.mxu1 %v15594_v35 }
 0x463   :  { %v11890_v58 = vld [vmem:[#allocation10 + $0x13d0] sm:$0xf]  ;;  %v11635_v28 = vor.u32 %v14527_v54, %v11634_v50  ;;  %7540 = vmatpush.bf16.msrb.mxu3 %v11155_v32 }
 0x464   :  { %v14591_v9 = vld [vmem:[#allocation10 + $0x13ec] sm:$0xf0]  ;;  %7528 = vmatmul.bf16.vlgmr.msrb.gmra.mxu2 %v15596_v12 }
 0x465   :  { %v12146_v40 = vld [vmem:[#allocation10 + $0x15d0] sm:$0xf]  ;;  %v11891_v24 = vor.u32 %v14591_v9, %v11890_v58  ;;  %7546 = vmatpush.bf16.msra.mxu0 %v11635_v28 }
 0x466   :  { %v14655_v10 = vld [vmem:[#allocation10 + $0x15ec] sm:$0xf0]  ;;  %7541 = vmatmul.bf16.vlgmr.msrb.gmra.mxu3 %v15598_v20 }
 0x467   :  { %v12402_v30 = vld [vmem:[#allocation10 + $0x17d0] sm:$0xf]  ;;  %v12147_v5 = vor.u32 %v14655_v10, %v12146_v40  ;;  %7559 = vmatpush.bf16.msra.mxu1 %v11891_v24  ;;  %v7295_v40 = vpop.f32.mrf.mxu0 }
 0x468   :  { %v14719_v21 = vld [vmem:[#allocation10 + $0x17ec] sm:$0xf0]  ;;  %v7296_v22 = vadd.f32 %v7295_v40, %v15728_v2 }
 0x469   :  { %v11602_v36 = vld [vmem:[#allocation10 + $0x1190] sm:$0xf]  ;;  %v12403_v29 = vor.u32 %v14719_v21, %v12402_v30  ;;  %7572 = vmatpush.bf16.msra.mxu2 %v12147_v5 }
 0x46a   :  { %v14519_v42 = vld [vmem:[#allocation10 + $0x11ac] sm:$0xf0]  ;;  %v7309_v5 = vadd.f32 %v7308_v6, %v7296_v22 }
 0x46b   :  { %v11858_v38 = vld [vmem:[#allocation10 + $0x1390] sm:$0xf]  ;;  %v11603_v37 = vor.u32 %v14519_v42, %v11602_v36  ;;  %7585 = vmatpush.bf16.msra.mxu3 %v12403_v29 }
 0x46c   :  { %v14583_v31 = vld [vmem:[#allocation10 + $0x13ac] sm:$0xf0] }
 0x46d   :  { %v12114_v8 = vld [vmem:[#allocation10 + $0x1590] sm:$0xf]  ;;  %v11859_v39 = vor.u32 %v14583_v31, %v11858_v38  ;;  %7547 = vmatpush.bf16.msra.mxu0 %v11603_v37 }
 0x46e   :  { %v14647_v34 = vld [vmem:[#allocation10 + $0x15ac] sm:$0xf0] }
 0x46f   :  { %v12370_v11 = vld [vmem:[#allocation10 + $0x1790] sm:$0xf]  ;;  %v12115_v41 = vor.u32 %v14647_v34, %v12114_v8  ;;  %7560 = vmatpush.bf16.msra.mxu1 %v11859_v39 }
 0x470   :  { %v14711_v16 = vld [vmem:[#allocation10 + $0x17ac] sm:$0xf0] }
 0x471   :  { %v11570_v4 = vld [vmem:[#allocation10 + $0x1150] sm:$0xf]  ;;  %v12371_v59 = vor.u32 %v14711_v16, %v12370_v11  ;;  %7573 = vmatpush.bf16.msra.mxu2 %v12115_v41  ;;  %v7321_v41 = vpop.f32.mrf.mxu2 }
 0x472   :  { %v14511_v25 = vld [vmem:[#allocation10 + $0x116c] sm:$0xf0] }
 0x473   :  { %v11826_v14 = vld [vmem:[#allocation10 + $0x1350] sm:$0xf]  ;;  %v11571_v46 = vor.u32 %v14511_v25, %v11570_v4  ;;  %7586 = vmatpush.bf16.msra.mxu3 %v12371_v59  ;;  %v7334_v59 = vpop.f32.mrf.mxu3 }
 0x474   :  { %v14575_v43 = vld [vmem:[#allocation10 + $0x136c] sm:$0xf0] }
 0x475   :  { %v12082_v15 = vld [vmem:[#allocation10 + $0x1550] sm:$0xf]  ;;  %v11827_v51 = vor.u32 %v14575_v43, %v11826_v14  ;;  %7548 = vmatpush.bf16.msra.mxu0 %v11571_v46 }
 0x476   :  { %v14639_v44 = vld [vmem:[#allocation10 + $0x156c] sm:$0xf0] }
 0x477   :  { %v12338_v45 = vld [vmem:[#allocation10 + $0x1750] sm:$0xf]  ;;  %v12083_v48 = vor.u32 %v14639_v44, %v12082_v15  ;;  %7561 = vmatpush.bf16.msra.mxu1 %v11827_v51  ;;  %v7322_v44 = vadd.f32 %v7321_v41, %v7309_v5 }
 0x478   :  { %v14703_v17 = vld [vmem:[#allocation10 + $0x176c] sm:$0xf0] }
 0x479   :  { %v11538_v19 = vld [vmem:[#allocation10 + $0x1110] sm:$0xf]  ;;  %v12339_v47 = vor.u32 %v14703_v17, %v12338_v45  ;;  %7574 = vmatpush.bf16.msra.mxu2 %v12083_v48  ;;  %v7297_v45 = vpop.f32.mrf.mxu0  ;;  %v7310_v17 = vpop.f32.mrf.mxu1  ;;  %v15735_v48 = vadd.f32 %v7334_v59, %v7322_v44 }
 0x47a   :  { %v14503_v27 = vld [vmem:[#allocation10 + $0x112c] sm:$0xf0]  ;;  %v7323_v5 = vpop.f32.mrf.mxu2 }
 0x47b   :  { %v11794_v18 = vld [vmem:[#allocation10 + $0x1310] sm:$0xf]  ;;  %v11539_v10 = vor.u32 %v14503_v27, %v11538_v19  ;;  %7587 = vmatpush.bf16.msra.mxu3 %v12339_v47 }
 0x47c   :  { %v14567_v49 = vld [vmem:[#allocation10 + $0x132c] sm:$0xf0] }
 0x47d   :  { %v12050_v50 = vld [vmem:[#allocation10 + $0x1510] sm:$0xf]  ;;  %v11795_v30 = vor.u32 %v14567_v49, %v11794_v18  ;;  %7549 = vmatpush.bf16.msra.mxu0 %v11539_v10 }
 0x47e   :  { %v14631_v54 = vld [vmem:[#allocation10 + $0x152c] sm:$0xf0] }
 0x47f   :  { %v12306_v58 = vld [vmem:[#allocation10 + $0x1710] sm:$0xf]  ;;  %v12051_v32 = vor.u32 %v14631_v54, %v12050_v50  ;;  %7562 = vmatpush.bf16.msra.mxu1 %v11795_v30 }
 0x480   :  { %v14695_v9 = vld [vmem:[#allocation10 + $0x172c] sm:$0xf0] }
 0x481   :  { %v11506_v21 = vld [vmem:[#allocation10 + $0x10d0] sm:$0xf]  ;;  %v12307_v28 = vor.u32 %v14695_v9, %v12306_v58  ;;  %7575 = vmatpush.bf16.msra.mxu2 %v12051_v32 }
 0x482   :  { %v14495_v57 = vld [vmem:[#allocation10 + $0x10ec] sm:$0xf0] }
 0x483   :  { %v11762_v24 = vld [vmem:[#allocation10 + $0x12d0] sm:$0xf]  ;;  %v11507_v8 = vor.u32 %v14495_v57, %v11506_v21  ;;  %7588 = vmatpush.bf16.msra.mxu3 %v12307_v28 }
 0x484   :  { %v14559_v36 = vld [vmem:[#allocation10 + $0x12ec] sm:$0xf0] }
 0x485   :  { %v12018_v42 = vld [vmem:[#allocation10 + $0x14d0] sm:$0xf]  ;;  %v11763_v34 = vor.u32 %v14559_v36, %v11762_v24  ;;  %7550 = vmatpush.bf16.msra.mxu0 %v11507_v8 }
 0x486   :  { %v14623_v29 = vld [vmem:[#allocation10 + $0x14ec] sm:$0xf0] }
 0x487   :  { %v12274_v38 = vld [vmem:[#allocation10 + $0x16d0] sm:$0xf]  ;;  %v12019_v16 = vor.u32 %v14623_v29, %v12018_v42  ;;  %7563 = vmatpush.bf16.msra.mxu1 %v11763_v34  ;;  %v7336_v29 = vpop.f32.mrf.mxu3 }
 0x488   :  { %v14687_v31 = vld [vmem:[#allocation10 + $0x16ec] sm:$0xf0] }
 0x489   :  { %v11474_v2 = vld [vmem:[#allocation10 + $0x1090] sm:$0xf]  ;;  %v12275_v37 = vor.u32 %v14687_v31, %v12274_v38  ;;  %7576 = vmatpush.bf16.msra.mxu2 %v12019_v16 }
 0x48a   :  { %v14487_v11 = vld [vmem:[#allocation10 + $0x10ac] sm:$0xf0] }
 0x48b   :  { %v11730_v39 = vld [vmem:[#allocation10 + $0x1290] sm:$0xf]  ;;  %v11475_v46 = vor.u32 %v14487_v11, %v11474_v2  ;;  %7589 = vmatpush.bf16.msra.mxu3 %v12275_v37 }
 0x48c   :  { %v14551_v4 = vld [vmem:[#allocation10 + $0x12ac] sm:$0xf0] }
 0x48d   :  { %v11986_v25 = vld [vmem:[#allocation10 + $0x1490] sm:$0xf]  ;;  %v11731_v51 = vor.u32 %v14551_v4, %v11730_v39  ;;  %7551 = vmatpush.bf16.msra.mxu0 %v11475_v46 }
 0x48e   :  { %v14615_v14 = vld [vmem:[#allocation10 + $0x14ac] sm:$0xf0] }
 0x48f   :  { %v12242_v43 = vld [vmem:[#allocation10 + $0x1690] sm:$0xf]  ;;  %v11987_v47 = vor.u32 %v14615_v14, %v11986_v25  ;;  %7564 = vmatpush.bf16.msra.mxu1 %v11731_v51 }
 0x490   :  { %v14679_v15 = vld [vmem:[#allocation10 + $0x16ac] sm:$0xf0] }
 0x491   :  { %v11442_v19 = vld [vmem:[#allocation10 + $0x1050] sm:$0xf]  ;;  %v12243_v18 = vor.u32 %v14679_v15, %v12242_v43  ;;  %7577 = vmatpush.bf16.msra.mxu2 %v11987_v47 }
 0x492   :  { %v14479_v27 = vld [vmem:[#allocation10 + $0x106c] sm:$0xf0] }
 0x493   :  { %v11698_v49 = vld [vmem:[#allocation10 + $0x1250] sm:$0xf]  ;;  %v11443_v22 = vor.u32 %v14479_v27, %v11442_v19  ;;  %7590 = vmatpush.bf16.msra.mxu3 %v12243_v18 }
 0x494   :  { %v14543_v50 = vld [vmem:[#allocation10 + $0x126c] sm:$0xf0] }
 0x495   :  { %v11954_v54 = vld [vmem:[#allocation10 + $0x1450] sm:$0xf]  ;;  %v11699_v10 = vor.u32 %v14543_v50, %v11698_v49  ;;  %7552 = vmatpush.bf16.msra.mxu0 %v11443_v22 }
 0x496   :  { %v14607_v58 = vld [vmem:[#allocation10 + $0x146c] sm:$0xf0] }
 0x497   :  { %v12210_v9 = vld [vmem:[#allocation10 + $0x1650] sm:$0xf]  ;;  %v11955_v32 = vor.u32 %v14607_v58, %v11954_v54  ;;  %7565 = vmatpush.bf16.msra.mxu1 %v11699_v10 }
 0x498   :  { %v14671_v40 = vld [vmem:[#allocation10 + $0x166c] sm:$0xf0] }
 0x499   :  { %v11410_v6 = vld [vmem:[#allocation10 + $0x1010] sm:$0xf]  ;;  %v12211_v28 = vor.u32 %v14671_v40, %v12210_v9  ;;  %7578 = vmatpush.bf16.msra.mxu2 %v11955_v32 }
 0x49a   :  { %v14471_v30 = vld [vmem:[#allocation10 + $0x102c] sm:$0xf0] }
 0x49b   :  { %v11666_v21 = vld [vmem:[#allocation10 + $0x1210] sm:$0xf]  ;;  %v11411_v16 = vor.u32 %v14471_v30, %v11410_v6  ;;  %7591 = vmatpush.bf16.msra.mxu3 %v12211_v28 }
 0x49c   :  { %v14535_v57 = vld [vmem:[#allocation10 + $0x122c] sm:$0xf0] }
 0x49d   :  { %v11922_v24 = vld [vmem:[#allocation10 + $0x1410] sm:$0xf]  ;;  %v11667_v37 = vor.u32 %v14535_v57, %v11666_v21  ;;  %7553 = vmatpush.bf16.msra.mxu0 %v11411_v16  ;;  %v7360_v16 = vpop.f32.mrf.mxu1 }
 0x49e   :  { %v14599_v36 = vld [vmem:[#allocation10 + $0x142c] sm:$0xf0] }
 0x49f   :  { %v12178_v42 = vld [vmem:[#allocation10 + $0x1610] sm:$0xf]  ;;  %v11923_v41 = vor.u32 %v14599_v36, %v11922_v24  ;;  %7566 = vmatpush.bf16.msra.mxu1 %v11667_v37 }
 0x4a0   :  { %v14663_v38 = vld [vmem:[#allocation10 + $0x162c] sm:$0xf0]  ;;  %7554 = vmatmul.bf16.vlgmr.msra.gmra.mxu0 %v15617_v55 }
 0x4a1   :  { %v12658_v31 = vld [vmem:[#allocation10 + $0x19d0] sm:$0xf]  ;;  %v12179_v59 = vor.u32 %v14663_v38, %v12178_v42  ;;  %7579 = vmatpush.bf16.msra.mxu2 %v11923_v41 }
 0x4a2   :  { %v14783_v8 = vld [vmem:[#allocation10 + $0x19ec] sm:$0xf0]  ;;  %7567 = vmatmul.bf16.vlgmr.msra.gmra.mxu1 %v15619_v60 }
 0x4a3   :  { %v12914_v34 = vld [vmem:[#allocation10 + $0x1bd0] sm:$0xf]  ;;  %v12659_v14 = vor.u32 %v14783_v8, %v12658_v31  ;;  %7592 = vmatpush.bf16.msra.mxu3 %v12179_v59 }
 0x4a4   :  { %v14847_v2 = vld [vmem:[#allocation10 + $0x1bec] sm:$0xf0]  ;;  %7580 = vmatmul.bf16.vlgmr.msra.gmra.mxu2 %v15621_v13 }
 0x4a5   :  { %v13170_v11 = vld [vmem:[#allocation10 + $0x1dd0] sm:$0xf]  ;;  %v12915_v43 = vor.u32 %v14847_v2, %v12914_v34  ;;  %7598 = vmatpush.bf16.msrb.mxu0 %v12659_v14 }
 0x4a6   :  { %v14911_v39 = vld [vmem:[#allocation10 + $0x1dec] sm:$0xf0]  ;;  %7593 = vmatmul.bf16.vlgmr.msra.gmra.mxu3 %v15623_v61 }
 0x4a7   :  { %v13426_v4 = vld [vmem:[#allocation10 + $0x1fd0] sm:$0xf]  ;;  %v13171_v45 = vor.u32 %v14911_v39, %v13170_v11  ;;  %7611 = vmatpush.bf16.msrb.mxu1 %v12915_v43  ;;  %v7347_v11 = vpop.f32.mrf.mxu0 }
 0x4a8   :  { %v14975_v25 = vld [vmem:[#allocation10 + $0x1fec] sm:$0xf0]  ;;  %v7348_v37 = vadd.f32 %v7347_v11, %v15735_v48 }
 0x4a9   :  { %v12626_v15 = vld [vmem:[#allocation10 + $0x1990] sm:$0xf]  ;;  %v13427_v17 = vor.u32 %v14975_v25, %v13426_v4  ;;  %7624 = vmatpush.bf16.msrb.mxu2 %v13171_v45 }
 0x4aa   :  { %v14775_v44 = vld [vmem:[#allocation10 + $0x19ac] sm:$0xf0]  ;;  %v7361_v45 = vadd.f32 %v7360_v16, %v7348_v37 }
 0x4ab   :  { %v12882_v46 = vld [vmem:[#allocation10 + $0x1b90] sm:$0xf]  ;;  %v12627_v49 = vor.u32 %v14775_v44, %v12626_v15  ;;  %7637 = vmatpush.bf16.msrb.mxu3 %v13427_v17 }
 0x4ac   :  { %v14839_v51 = vld [vmem:[#allocation10 + $0x1bac] sm:$0xf0] }
 0x4ad   :  { %v13138_v19 = vld [vmem:[#allocation10 + $0x1d90] sm:$0xf]  ;;  %v12883_v50 = vor.u32 %v14839_v51, %v12882_v46  ;;  %7599 = vmatpush.bf16.msrb.mxu0 %v12627_v49 }
 0x4ae   :  { %v14903_v27 = vld [vmem:[#allocation10 + $0x1dac] sm:$0xf0] }
 0x4af   :  { %v13394_v47 = vld [vmem:[#allocation10 + $0x1f90] sm:$0xf]  ;;  %v13139_v9 = vor.u32 %v14903_v27, %v13138_v19  ;;  %7612 = vmatpush.bf16.msrb.mxu1 %v12883_v50 }
 0x4b0   :  { %v14967_v18 = vld [vmem:[#allocation10 + $0x1fac] sm:$0xf0] }
 0x4b1   :  { %v12594_v54 = vld [vmem:[#allocation10 + $0x1950] sm:$0xf]  ;;  %v13395_v40 = vor.u32 %v14967_v18, %v13394_v47  ;;  %7625 = vmatpush.bf16.msrb.mxu2 %v13139_v9  ;;  %v7373_v9 = vpop.f32.mrf.mxu2 }
 0x4b2   :  { %v14767_v58 = vld [vmem:[#allocation10 + $0x196c] sm:$0xf0] }
 0x4b3   :  { %v12850_v6 = vld [vmem:[#allocation10 + $0x1b50] sm:$0xf]  ;;  %v12595_v32 = vor.u32 %v14767_v58, %v12594_v54  ;;  %7638 = vmatpush.bf16.msrb.mxu3 %v13395_v40  ;;  %v7386_v40 = vpop.f32.mrf.mxu3 }
 0x4b4   :  { %v14831_v22 = vld [vmem:[#allocation10 + $0x1b6c] sm:$0xf0] }
 0x4b5   :  { %v13106_v10 = vld [vmem:[#allocation10 + $0x1d50] sm:$0xf]  ;;  %v12851_v28 = vor.u32 %v14831_v22, %v12850_v6  ;;  %7600 = vmatpush.bf16.msrb.mxu0 %v12595_v32 }
 0x4b6   :  { %v14895_v30 = vld [vmem:[#allocation10 + $0x1d6c] sm:$0xf0] }
 0x4b7   :  { %v13362_v21 = vld [vmem:[#allocation10 + $0x1f50] sm:$0xf]  ;;  %v13107_v42 = vor.u32 %v14895_v30, %v13106_v10  ;;  %7613 = vmatpush.bf16.msrb.mxu1 %v12851_v28  ;;  %v7374_v30 = vadd.f32 %v7373_v9, %v7361_v45 }
 0x4b8   :  { %v14959_v57 = vld [vmem:[#allocation10 + $0x1f6c] sm:$0xf0] }
 0x4b9   :  { %v12562_v24 = vld [vmem:[#allocation10 + $0x1910] sm:$0xf]  ;;  %v13363_v5 = vor.u32 %v14959_v57, %v13362_v21  ;;  %7626 = vmatpush.bf16.msrb.mxu2 %v13107_v42  ;;  %v7349_v21 = vpop.f32.mrf.mxu0  ;;  %v7362_v57 = vpop.f32.mrf.mxu1  ;;  %v15742_v42 = vadd.f32 %v7386_v40, %v7374_v30  ;;  %v9556_v30 = vld [vmem:[#allocation10 + $0x1b0] sm:$0xf0] }
 0x4ba   :  { %v14759_v36 = vld [vmem:[#allocation10 + $0x192c] sm:$0xf0]  ;;  %v7375_v45 = vpop.f32.mrf.mxu2 }
 0x4bb   :  { %v12818_v29 = vld [vmem:[#allocation10 + $0x1b10] sm:$0xf]  ;;  %v12563_v39 = vor.u32 %v14759_v36, %v12562_v24  ;;  %7639 = vmatpush.bf16.msrb.mxu3 %v13363_v5 }
 0x4bc   :  { %v14823_v38 = vld [vmem:[#allocation10 + $0x1b2c] sm:$0xf0] }
 0x4bd   :  { %v13074_v31 = vld [vmem:[#allocation10 + $0x1d10] sm:$0xf]  ;;  %v12819_v4 = vor.u32 %v14823_v38, %v12818_v29  ;;  %7601 = vmatpush.bf16.msrb.mxu0 %v12563_v39 }
 0x4be   :  { %v14887_v8 = vld [vmem:[#allocation10 + $0x1d2c] sm:$0xf0] }
 0x4bf   :  { %v13330_v34 = vld [vmem:[#allocation10 + $0x1f10] sm:$0xf]  ;;  %v13075_v59 = vor.u32 %v14887_v8, %v13074_v31  ;;  %7614 = vmatpush.bf16.msrb.mxu1 %v12819_v4 }
 0x4c0   :  { %v14951_v2 = vld [vmem:[#allocation10 + $0x1f2c] sm:$0xf0] }
 0x4c1   :  { %v12530_v25 = vld [vmem:[#allocation10 + $0x18d0] sm:$0xf]  ;;  %v13331_v14 = vor.u32 %v14951_v2, %v13330_v34  ;;  %7627 = vmatpush.bf16.msrb.mxu2 %v13075_v59 }
 0x4c2   :  { %v14751_v41 = vld [vmem:[#allocation10 + $0x18ec] sm:$0xf0] }
 0x4c3   :  { %v12786_v43 = vld [vmem:[#allocation10 + $0x1ad0] sm:$0xf]  ;;  %v12531_v19 = vor.u32 %v14751_v41, %v12530_v25  ;;  %7640 = vmatpush.bf16.msrb.mxu3 %v13331_v14 }
 0x4c4   :  { %v14815_v15 = vld [vmem:[#allocation10 + $0x1aec] sm:$0xf0] }
 0x4c5   :  { %v13042_v44 = vld [vmem:[#allocation10 + $0x1cd0] sm:$0xf]  ;;  %v12787_v27 = vor.u32 %v14815_v15, %v12786_v43  ;;  %7602 = vmatpush.bf16.msrb.mxu0 %v12531_v19  ;;  %v9588_v19 = vld [vmem:[#allocation10 + $0x1f0] sm:$0xf0] }
 0x4c6   :  { %v14879_v17 = vld [vmem:[#allocation10 + $0x1cec] sm:$0xf0] }
 0x4c7   :  { %v13298_v46 = vld [vmem:[#allocation10 + $0x1ed0] sm:$0xf]  ;;  %v13043_v18 = vor.u32 %v14879_v17, %v13042_v44  ;;  %7615 = vmatpush.bf16.msrb.mxu1 %v12787_v27  ;;  %v7388_v17 = vpop.f32.mrf.mxu3  ;;  %v14075_v27 = vld [vmem:[#allocation10 + $0x3d4] sm:$0xf] }
 0x4c8   :  { %v14943_v51 = vld [vmem:[#allocation10 + $0x1eec] sm:$0xf0]  ;;  %v14051_v17 = vld [vmem:[#allocation10 + $0x314] sm:$0xf] }
 0x4c9   :  { %v12498_v48 = vld [vmem:[#allocation10 + $0x1890] sm:$0xf]  ;;  %v13299_v49 = vor.u32 %v14943_v51, %v13298_v46  ;;  %7628 = vmatpush.bf16.msrb.mxu2 %v13043_v18  ;;  %v14011_v51 = vld [vmem:[#allocation10 + $0x1d4] sm:$0xf] }
 0x4ca   :  { %v14743_v47 = vld [vmem:[#allocation10 + $0x18ac] sm:$0xf0] }
 0x4cb   :  { %v12754_v50 = vld [vmem:[#allocation10 + $0x1a90] sm:$0xf]  ;;  %v12499_v32 = vor.u32 %v14743_v47, %v12498_v48  ;;  %7641 = vmatpush.bf16.msrb.mxu3 %v13299_v49  ;;  %v9844_v48 = vld [vmem:[#allocation10 + $0x3f0] sm:$0xf0] }
 0x4cc   :  { %v14807_v54 = vld [vmem:[#allocation10 + $0x1aac] sm:$0xf0]  ;;  %v14139_v47 = vld [vmem:[#allocation10 + $0x5d4] sm:$0xf] }
 0x4cd   :  { %v13010_v58 = vld [vmem:[#allocation10 + $0x1c90] sm:$0xf]  ;;  %v12755_v28 = vor.u32 %v14807_v54, %v12754_v50  ;;  %7603 = vmatpush.bf16.msrb.mxu0 %v12499_v32  ;;  %v10100_v50 = vld [vmem:[#allocation10 + $0x5f0] sm:$0xf0] }
 0x4ce   :  { %v14871_v6 = vld [vmem:[#allocation10 + $0x1cac] sm:$0xf0]  ;;  %v14203_v54 = vld [vmem:[#allocation10 + $0x7d4] sm:$0xf]  ;;  %v10103_v21 = vor.u32 %v14139_v47, %v10100_v50  ;;  %v7399_v47 = vpop.f32.mrf.mxu0 }
 0x4cf   :  { %v13266_v22 = vld [vmem:[#allocation10 + $0x1e90] sm:$0xf]  ;;  %v13011_v5 = vor.u32 %v14871_v6, %v13010_v58  ;;  %7616 = vmatpush.bf16.msrb.mxu1 %v12755_v28  ;;  %v10356_v58 = vld [vmem:[#allocation10 + $0x7f0] sm:$0xf0]  ;;  %v9591_v6 = vor.u32 %v14011_v51, %v9588_v19 }
 0x4d0   :  { %v14935_v10 = vld [vmem:[#allocation10 + $0x1eac] sm:$0xf0]  ;;  %v10359_v57 = vor.u32 %v14203_v54, %v10356_v58  ;;  %v14067_v32 = vld [vmem:[#allocation10 + $0x394] sm:$0xf] }
 0x4d1   :  { %v12466_v24 = vld [vmem:[#allocation10 + $0x1850] sm:$0xf]  ;;  %v13267_v29 = vor.u32 %v14935_v10, %v13266_v22  ;;  %7629 = vmatpush.bf16.msrb.mxu2 %v13011_v5  ;;  %v9847_v22 = vor.u32 %v14075_v27, %v9844_v48  ;;  %v14003_v10 = vld [vmem:[#allocation10 + $0x194] sm:$0xf] }
 0x4d2   :  { %v14735_v36 = vld [vmem:[#allocation10 + $0x186c] sm:$0xf0]  ;;  %v9812_v28 = vld [vmem:[#allocation10 + $0x3b0] sm:$0xf0] }
 0x4d3   :  { %v12722_v38 = vld [vmem:[#allocation10 + $0x1a50] sm:$0xf]  ;;  %v12467_v37 = vor.u32 %v14735_v36, %v12466_v24  ;;  %7642 = vmatpush.bf16.msrb.mxu3 %v13267_v29  ;;  %v14131_v24 = vld [vmem:[#allocation10 + $0x594] sm:$0xf] }
 0x4d4   :  { %v14799_v31 = vld [vmem:[#allocation10 + $0x1a6c] sm:$0xf0]  ;;  %v10068_v36 = vld [vmem:[#allocation10 + $0x5b0] sm:$0xf0] }
 0x4d5   :  { %v12978_v8 = vld [vmem:[#allocation10 + $0x1c50] sm:$0xf]  ;;  %v12723_v39 = vor.u32 %v14799_v31, %v12722_v38  ;;  %7604 = vmatpush.bf16.msrb.mxu0 %v12467_v37  ;;  %v14195_v5 = vld [vmem:[#allocation10 + $0x794] sm:$0xf]  ;;  %v9559_v38 = vor.u32 %v14003_v10, %v9556_v30  ;;  %v9815_v31 = vor.u32 %v14067_v32, %v9812_v28 }
 0x4d6   :  { %v14863_v34 = vld [vmem:[#allocation10 + $0x1c6c] sm:$0xf0]  ;;  %v10324_v29 = vld [vmem:[#allocation10 + $0x7b0] sm:$0xf0] }
 0x4d7   :  { %v13234_v2 = vld [vmem:[#allocation10 + $0x1e50] sm:$0xf]  ;;  %v12979_v59 = vor.u32 %v14863_v34, %v12978_v8  ;;  %7617 = vmatpush.bf16.msrb.mxu1 %v12723_v39  ;;  %v13995_v8 = vld [vmem:[#allocation10 + $0x154] sm:$0xf] }
 0x4d8   :  { %v14927_v11 = vld [vmem:[#allocation10 + $0x1e6c] sm:$0xf0]  ;;  %v9524_v34 = vld [vmem:[#allocation10 + $0x170] sm:$0xf0] }
 0x4d9   :  { %v12434_v16 = vld [vmem:[#allocation10 + $0x1810] sm:$0xf]  ;;  %v13235_v14 = vor.u32 %v14927_v11, %v13234_v2  ;;  %7630 = vmatpush.bf16.msrb.mxu2 %v12979_v59  ;;  %v10071_v2 = vor.u32 %v14131_v24, %v10068_v36  ;;  %v10327_v11 = vor.u32 %v14195_v5, %v10324_v29  ;;  %v9780_v37 = vld [vmem:[#allocation10 + $0x370] sm:$0xf0]  ;;  %v9527_v59 = vor.u32 %v13995_v8, %v9524_v34 }
 0x4da   :  { %v14727_v4 = vld [vmem:[#allocation10 + $0x182c] sm:$0xf0]  ;;  %v14123_v39 = vld [vmem:[#allocation10 + $0x554] sm:$0xf] }
 0x4db   :  { %v12690_v25 = vld [vmem:[#allocation10 + $0x1a10] sm:$0xf]  ;;  %v12435_v18 = vor.u32 %v14727_v4, %v12434_v16  ;;  %7643 = vmatpush.bf16.msrb.mxu3 %v13235_v14  ;;  %v14059_v16 = vld [vmem:[#allocation10 + $0x354] sm:$0xf] }
 0x4dc   :  { %v14791_v41 = vld [vmem:[#allocation10 + $0x1a2c] sm:$0xf0]  ;;  %v10036_v4 = vld [vmem:[#allocation10 + $0x570] sm:$0xf0]  ;;  %v9783_v14 = vor.u32 %v14059_v16, %v9780_v37 }
 0x4dd   :  { %v12946_v43 = vld [vmem:[#allocation10 + $0x1c10] sm:$0xf]  ;;  %v12691_v49 = vor.u32 %v14791_v41, %v12690_v25  ;;  %7605 = vmatpush.bf16.msrb.mxu0 %v12435_v18  ;;  %v14187_v25 = vld [vmem:[#allocation10 + $0x754] sm:$0xf]  ;;  %v7412_v18 = vpop.f32.mrf.mxu1 }
 0x4de   :  { %v14855_v15 = vld [vmem:[#allocation10 + $0x1c2c] sm:$0xf0]  ;;  %v10292_v41 = vld [vmem:[#allocation10 + $0x770] sm:$0xf0] }
 0x4df   :  { %v13202_v44 = vld [vmem:[#allocation10 + $0x1e10] sm:$0xf]  ;;  %v12947_v9 = vor.u32 %v14855_v15, %v12946_v43  ;;  %7618 = vmatpush.bf16.msrb.mxu1 %v12691_v49  ;;  %v13987_v43 = vld [vmem:[#allocation10 + $0x114] sm:$0xf]  ;;  %v10295_v45 = vor.u32 %v14187_v25, %v10292_v41  ;;  %v7400_v49 = vadd.f32 %v7399_v47, %v15742_v42  ;;  %v7401_v25 = vpop.f32.mrf.mxu0 }
 0x4e0   :  { %v14919_v46 = vld [vmem:[#allocation10 + $0x1e2c] sm:$0xf0]  ;;  %7606 = vmatmul.bf16.vlgmr.msrb.gmra.mxu0 %v15633_v1  ;;  %v9492_v15 = vld [vmem:[#allocation10 + $0x130] sm:$0xf0] }
 0x4e1   :  { %v13203_v40 = vor.u32 %v14919_v46, %v13202_v44  ;;  %7631 = vmatpush.bf16.msrb.mxu2 %v12947_v9  ;;  %7650 = vmatpush.bf16.msra.mxu0 %v9591_v6  ;;  %v10039_v44 = vor.u32 %v14123_v39, %v10036_v4  ;;  %v9748_v46 = vld [vmem:[#allocation10 + $0x330] sm:$0xf0]  ;;  %v9495_v50 = vor.u32 %v13987_v43, %v9492_v15 }
 0x4e2   :  { %7619 = vmatmul.bf16.vlgmr.msrb.gmra.mxu1 %v15635_v63  ;;  %v14115_v51 = vld [vmem:[#allocation10 + $0x514] sm:$0xf]  ;;  %v9751_v54 = vor.u32 %v14051_v17, %v9748_v46 }
 0x4e3   :  { %7644 = vmatpush.bf16.msrb.mxu3 %v13203_v40  ;;  %7663 = vmatpush.bf16.msra.mxu1 %v9847_v22  ;;  %v10004_v19 = vld [vmem:[#allocation10 + $0x530] sm:$0xf0] }
 0x4e4   :  { %7632 = vmatmul.bf16.vlgmr.msrb.gmra.mxu2 %v15637_v0  ;;  %v14179_v27 = vld [vmem:[#allocation10 + $0x714] sm:$0xf]  ;;  %v10007_v40 = vor.u32 %v14115_v51, %v10004_v19 }
 0x4e5   :  { %7676 = vmatpush.bf16.msra.mxu2 %v10103_v21  ;;  %7651 = vmatpush.bf16.msra.mxu0 %v9559_v38  ;;  %v10260_v48 = vld [vmem:[#allocation10 + $0x730] sm:$0xf0]  ;;  %v7413_v21 = vadd.f32 %v7412_v18, %v7400_v49  ;;  %v7414_v41 = vpop.f32.mrf.mxu1 }
 0x4e6   :  { %7645 = vmatmul.bf16.vlgmr.msrb.gmra.mxu3 %v15639_v23  ;;  %v13979_v58 = vld [vmem:[#allocation10 + $0xd4] sm:$0xf]  ;;  %v10263_v6 = vor.u32 %v14179_v27, %v10260_v48 }
 0x4e7   :  { %7689 = vmatpush.bf16.msra.mxu3 %v10359_v57  ;;  %7664 = vmatpush.bf16.msra.mxu1 %v9815_v31  ;;  %v9460_v9 = vld [vmem:[#allocation10 + $0xf0] sm:$0xf0] }
 0x4e8   :  { %v14043_v22 = vld [vmem:[#allocation10 + $0x2d4] sm:$0xf]  ;;  %v9463_v24 = vor.u32 %v13979_v58, %v9460_v9 }
 0x4e9   :  { %7677 = vmatpush.bf16.msra.mxu2 %v10071_v2  ;;  %7652 = vmatpush.bf16.msra.mxu0 %v9527_v59  ;;  %v9716_v10 = vld [vmem:[#allocation10 + $0x2f0] sm:$0xf0]  ;;  %v7425_v2 = vpop.f32.mrf.mxu2 }
 0x4ea   :  { %v14107_v30 = vld [vmem:[#allocation10 + $0x4d4] sm:$0xf]  ;;  %v9719_v36 = vor.u32 %v14043_v22, %v9716_v10  ;;  %v7426_v4 = vadd.f32 %v7425_v2, %v7413_v21 }
 0x4eb   :  { %7690 = vmatpush.bf16.msra.mxu3 %v10327_v11  ;;  %7665 = vmatpush.bf16.msra.mxu1 %v9783_v14  ;;  %v9972_v57 = vld [vmem:[#allocation10 + $0x4f0] sm:$0xf0]  ;;  %v7438_v11 = vpop.f32.mrf.mxu3 }
 0x4ec   :  { %v14171_v32 = vld [vmem:[#allocation10 + $0x6d4] sm:$0xf]  ;;  %v9975_v29 = vor.u32 %v14107_v30, %v9972_v57 }
 0x4ed   :  { %7678 = vmatpush.bf16.msra.mxu2 %v10039_v44  ;;  %v10228_v28 = vld [vmem:[#allocation10 + $0x6f0] sm:$0xf0]  ;;  %7653 = vmatpush.bf16.msra.mxu0 %v9495_v50  ;;  %v15749_v44 = vadd.f32 %v7438_v11, %v7426_v4 }
 0x4ee   :  { %v13971_v42 = vld [vmem:[#allocation10 + $0x94] sm:$0xf]  ;;  %v10231_v38 = vor.u32 %v14171_v32, %v10228_v28 }
 0x4ef   :  { %7691 = vmatpush.bf16.msra.mxu3 %v10295_v45  ;;  %7666 = vmatpush.bf16.msra.mxu1 %v9751_v54  ;;  %v9428_v5 = vld [vmem:[#allocation10 + $0xb0] sm:$0xf0] }
 0x4f0   :  { %v14035_v31 = vld [vmem:[#allocation10 + $0x294] sm:$0xf]  ;;  %v9431_v59 = vor.u32 %v13971_v42, %v9428_v5 }
 0x4f1   :  { %7679 = vmatpush.bf16.msra.mxu2 %v10007_v40  ;;  %v9684_v8 = vld [vmem:[#allocation10 + $0x2b0] sm:$0xf0]  ;;  %7654 = vmatpush.bf16.msra.mxu0 %v9463_v24  ;;  %v7427_v21 = vpop.f32.mrf.mxu2 }
 0x4f2   :  { %v14099_v34 = vld [vmem:[#allocation10 + $0x494] sm:$0xf]  ;;  %v9687_v14 = vor.u32 %v14035_v31, %v9684_v8 }
 0x4f3   :  { %7692 = vmatpush.bf16.msra.mxu3 %v10263_v6  ;;  %v9940_v16 = vld [vmem:[#allocation10 + $0x4b0] sm:$0xf0]  ;;  %7667 = vmatpush.bf16.msra.mxu1 %v9719_v36  ;;  %v7440_v57 = vpop.f32.mrf.mxu3 }
 0x4f4   :  { %v14163_v37 = vld [vmem:[#allocation10 + $0x694] sm:$0xf]  ;;  %v9943_v45 = vor.u32 %v14099_v34, %v9940_v16 }
 0x4f5   :  { %v10196_v39 = vld [vmem:[#allocation10 + $0x6b0] sm:$0xf0]  ;;  %7680 = vmatpush.bf16.msra.mxu2 %v9975_v29  ;;  %7655 = vmatpush.bf16.msra.mxu0 %v9431_v59 }
 0x4f6   :  { %v13963_v43 = vld [vmem:[#allocation10 + $0x54] sm:$0xf]  ;;  %v10199_v17 = vor.u32 %v14163_v37, %v10196_v39 }
 0x4f7   :  { %v9396_v15 = vld [vmem:[#allocation10 + $0x70] sm:$0xf0]  ;;  %7693 = vmatpush.bf16.msra.mxu3 %v10231_v38  ;;  %7668 = vmatpush.bf16.msra.mxu1 %v9687_v14 }
 0x4f8   :  { %v14027_v46 = vld [vmem:[#allocation10 + $0x254] sm:$0xf]  ;;  %v9399_v49 = vor.u32 %v13963_v43, %v9396_v15 }
 0x4f9   :  { %v9652_v51 = vld [vmem:[#allocation10 + $0x270] sm:$0xf0]  ;;  %7681 = vmatpush.bf16.msra.mxu2 %v9943_v45 }
 0x4fa   :  { %v14091_v19 = vld [vmem:[#allocation10 + $0x454] sm:$0xf]  ;;  %v9655_v50 = vor.u32 %v14027_v46, %v9652_v51  ;;  %7656 = vmatpush.bf16.msra.mxu0 %v9399_v49 }
 0x4fb   :  { %v9908_v27 = vld [vmem:[#allocation10 + $0x470] sm:$0xf0]  ;;  %7694 = vmatpush.bf16.msra.mxu3 %v10199_v17 }
 0x4fc   :  { %v14155_v48 = vld [vmem:[#allocation10 + $0x654] sm:$0xf]  ;;  %v9911_v40 = vor.u32 %v14091_v19, %v9908_v27  ;;  %7669 = vmatpush.bf16.msra.mxu1 %v9655_v50 }
 0x4fd   :  { %v10164_v47 = vld [vmem:[#allocation10 + $0x670] sm:$0xf0] }
 0x4fe   :  { %v13955_v18 = vld [vmem:[#allocation10 + $0x14] sm:$0xf]  ;;  %v10167_v6 = vor.u32 %v14155_v48, %v10164_v47  ;;  %7682 = vmatpush.bf16.msra.mxu2 %v9911_v40 }
 0x4ff   :  { %v9364_v54 = vld [vmem:[#allocation10 + $0x30] sm:$0xf0] }
 0x500   :  { %v14019_v58 = vld [vmem:[#allocation10 + $0x214] sm:$0xf]  ;;  %v9367_v29 = vor.u32 %v13955_v18, %v9364_v54  ;;  %7695 = vmatpush.bf16.msra.mxu3 %v10167_v6 }
 0x501   :  { %v9620_v9 = vld [vmem:[#allocation10 + $0x230] sm:$0xf0] }
 0x502   :  { %v14083_v22 = vld [vmem:[#allocation10 + $0x414] sm:$0xf]  ;;  %v9623_v38 = vor.u32 %v14019_v58, %v9620_v9  ;;  %7657 = vmatpush.bf16.msra.mxu0 %v9367_v29 }
 0x503   :  { %v9876_v10 = vld [vmem:[#allocation10 + $0x430] sm:$0xf0] }
 0x504   :  { %v14147_v30 = vld [vmem:[#allocation10 + $0x614] sm:$0xf]  ;;  %v9879_v2 = vor.u32 %v14083_v22, %v9876_v10  ;;  %7670 = vmatpush.bf16.msra.mxu1 %v9623_v38  ;;  %v15136_v22 = vld [vmem:[#allocation11] sm:$0xff]  ;;  %v7451_v38 = vpop.f32.mrf.mxu0 }
 0x505   :  { %v10132_v32 = vld [vmem:[#allocation10 + $0x630] sm:$0xf0]  ;;  %7658 = vmatmul.bf16.vlgmr.msra.gmra.mxu0 %v15550_v52  ;;  %v1422_v10 = vperm.slane %v15136_v22, 4 }
 0x506   :  { %v14267_v28 = vld [vmem:[#allocation10 + $0x9d4] sm:$0xf]  ;;  %v10135_v11 = vor.u32 %v14147_v30, %v10132_v32  ;;  %7683 = vmatpush.bf16.msra.mxu2 %v9879_v2 }
 0x507   :  { %v10612_v24 = vld [vmem:[#allocation10 + $0x9f0] sm:$0xf0]  ;;  %7671 = vmatmul.bf16.vlgmr.msra.gmra.mxu1 %v15552_v53 }
 0x508   :  { %v14331_v36 = vld [vmem:[#allocation10 + $0xbd4] sm:$0xf]  ;;  %v10615_v16 = vor.u32 %v14267_v28, %v10612_v24  ;;  %7696 = vmatpush.bf16.msra.mxu3 %v10135_v11 }
 0x509   :  { %v10868_v42 = vld [vmem:[#allocation10 + $0xbf0] sm:$0xf0]  ;;  %7684 = vmatmul.bf16.vlgmr.msra.gmra.mxu2 %v15554_v26 }
 0x50a   :  { %v14395_v5 = vld [vmem:[#allocation10 + $0xdd4] sm:$0xf]  ;;  %v10871_v37 = vor.u32 %v14331_v36, %v10868_v42  ;;  %7702 = vmatpush.bf16.msrb.mxu0 %v10615_v16 }
 0x50b   :  { %v11124_v31 = vld [vmem:[#allocation10 + $0xdf0] sm:$0xf0]  ;;  %7697 = vmatmul.bf16.vlgmr.msra.gmra.mxu3 %v15556_v56 }
 0x50c   :  { %v14459_v8 = vld [vmem:[#allocation10 + $0xfd4] sm:$0xf]  ;;  %v11127_v25 = vor.u32 %v14395_v5, %v11124_v31  ;;  %7715 = vmatpush.bf16.msrb.mxu1 %v10871_v37  ;;  %v7464_v31 = vpop.f32.mrf.mxu1 }
 0x50d   :  { %v11380_v34 = vld [vmem:[#allocation10 + $0xff0] sm:$0xf0] }
 0x50e   :  { %v14259_v39 = vld [vmem:[#allocation10 + $0x994] sm:$0xf]  ;;  %v11383_v41 = vor.u32 %v14459_v8, %v11380_v34  ;;  %7728 = vmatpush.bf16.msrb.mxu2 %v11127_v25  ;;  %v7452_v8 = vadd.f32 %v7451_v38, %v1422_v10 }
 0x50f   :  { %v10580_v4 = vld [vmem:[#allocation10 + $0x9b0] sm:$0xf0] }
 0x510   :  { %v14323_v59 = vld [vmem:[#allocation10 + $0xb94] sm:$0xf]  ;;  %v10583_v46 = vor.u32 %v14259_v39, %v10580_v4  ;;  %7741 = vmatpush.bf16.msrb.mxu3 %v11383_v41 }
 0x511   :  { %v10836_v14 = vld [vmem:[#allocation10 + $0xbb0] sm:$0xf0] }
 0x512   :  { %v14387_v43 = vld [vmem:[#allocation10 + $0xd94] sm:$0xf]  ;;  %v10839_v51 = vor.u32 %v14323_v59, %v10836_v14  ;;  %7703 = vmatpush.bf16.msrb.mxu0 %v10583_v46  ;;  %v7465_v59 = vadd.f32 %v7464_v31, %v7452_v8 }
 0x513   :  { %v11092_v15 = vld [vmem:[#allocation10 + $0xdb0] sm:$0xf0] }
 0x514   :  { %v14451_v45 = vld [vmem:[#allocation10 + $0xf94] sm:$0xf]  ;;  %v11095_v48 = vor.u32 %v14387_v43, %v11092_v15  ;;  %7716 = vmatpush.bf16.msrb.mxu1 %v10839_v51  ;;  %v7466_v22 = vpop.f32.mrf.mxu1 }
 0x515   :  { %v11348_v17 = vld [vmem:[#allocation10 + $0xfb0] sm:$0xf0] }
 0x516   :  { %v14251_v19 = vld [vmem:[#allocation10 + $0x954] sm:$0xf]  ;;  %v11351_v47 = vor.u32 %v14451_v45, %v11348_v17  ;;  %7729 = vmatpush.bf16.msrb.mxu2 %v11095_v48 }
 0x517   :  { %v10548_v27 = vld [vmem:[#allocation10 + $0x970] sm:$0xf0] }
 0x518   :  { %v14315_v18 = vld [vmem:[#allocation10 + $0xb54] sm:$0xf]  ;;  %v10551_v40 = vor.u32 %v14251_v19, %v10548_v27  ;;  %7742 = vmatpush.bf16.msrb.mxu3 %v11351_v47 }
 0x519   :  { %v10804_v49 = vld [vmem:[#allocation10 + $0xb70] sm:$0xf0] }
 0x51a   :  { %v14379_v50 = vld [vmem:[#allocation10 + $0xd54] sm:$0xf]  ;;  %v10807_v6 = vor.u32 %v14315_v18, %v10804_v49  ;;  %7704 = vmatpush.bf16.msrb.mxu0 %v10551_v40  ;;  %v7477_v49 = vpop.f32.mrf.mxu2 }
 0x51b   :  { %v11060_v54 = vld [vmem:[#allocation10 + $0xd70] sm:$0xf0]  ;;  %v7478_v40 = vadd.f32 %v7477_v49, %v7465_v59 }
 0x51c   :  { %v14443_v58 = vld [vmem:[#allocation10 + $0xf54] sm:$0xf]  ;;  %v11063_v57 = vor.u32 %v14379_v50, %v11060_v54  ;;  %7717 = vmatpush.bf16.msrb.mxu1 %v10807_v6  ;;  %v7490_v50 = vpop.f32.mrf.mxu3  ;;  %v7453_v6 = vpop.f32.mrf.mxu0 }
 0x51d   :  { %v11316_v9 = vld [vmem:[#allocation10 + $0xf70] sm:$0xf0] }
 0x51e   :  { %v14243_v30 = vld [vmem:[#allocation10 + $0x914] sm:$0xf]  ;;  %v11319_v32 = vor.u32 %v14443_v58, %v11316_v9  ;;  %7730 = vmatpush.bf16.msrb.mxu2 %v11063_v57 }
 0x51f   :  { %v10516_v21 = vld [vmem:[#allocation10 + $0x930] sm:$0xf0] }
 0x520   :  { %v14307_v28 = vld [vmem:[#allocation10 + $0xb14] sm:$0xf]  ;;  %v10519_v34 = vor.u32 %v14243_v30, %v10516_v21  ;;  %7743 = vmatpush.bf16.msrb.mxu3 %v11319_v32  ;;  %v15755_v32 = vadd.f32 %v7490_v50, %v7478_v40 }
 0x521   :  { %v10772_v24 = vld [vmem:[#allocation10 + $0xb30] sm:$0xf0] }
 0x522   :  { %v14371_v36 = vld [vmem:[#allocation10 + $0xd14] sm:$0xf]  ;;  %v10775_v2 = vor.u32 %v14307_v28, %v10772_v24  ;;  %7705 = vmatpush.bf16.msrb.mxu0 %v10519_v34 }
 0x523   :  { %v11028_v42 = vld [vmem:[#allocation10 + $0xd30] sm:$0xf0] }
 0x524   :  { %v14435_v5 = vld [vmem:[#allocation10 + $0xf14] sm:$0xf]  ;;  %v11031_v37 = vor.u32 %v14371_v36, %v11028_v42  ;;  %7718 = vmatpush.bf16.msrb.mxu1 %v10775_v2 }
 0x525   :  { %v11284_v29 = vld [vmem:[#allocation10 + $0xf30] sm:$0xf0] }
 0x526   :  { %v14235_v11 = vld [vmem:[#allocation10 + $0x8d4] sm:$0xf]  ;;  %v11287_v39 = vor.u32 %v14435_v5, %v11284_v29  ;;  %7731 = vmatpush.bf16.msrb.mxu2 %v11031_v37 }
 0x527   :  { %v10484_v16 = vld [vmem:[#allocation10 + $0x8f0] sm:$0xf0] }
 0x528   :  { %v14299_v4 = vld [vmem:[#allocation10 + $0xad4] sm:$0xf]  ;;  %v10487_v45 = vor.u32 %v14235_v11, %v10484_v16  ;;  %7744 = vmatpush.bf16.msrb.mxu3 %v11287_v39 }
 0x529   :  { %v10740_v25 = vld [vmem:[#allocation10 + $0xaf0] sm:$0xf0] }
 0x52a   :  { %v14363_v41 = vld [vmem:[#allocation10 + $0xcd4] sm:$0xf]  ;;  %v10743_v17 = vor.u32 %v14299_v4, %v10740_v25  ;;  %7706 = vmatpush.bf16.msrb.mxu0 %v10487_v45 }
 0x52b   :  { %v10996_v14 = vld [vmem:[#allocation10 + $0xcf0] sm:$0xf0] }
 0x52c   :  { %v14427_v43 = vld [vmem:[#allocation10 + $0xed4] sm:$0xf]  ;;  %v10999_v19 = vor.u32 %v14363_v41, %v10996_v14  ;;  %7719 = vmatpush.bf16.msrb.mxu1 %v10743_v17  ;;  %v7479_v14 = vpop.f32.mrf.mxu2 }
 0x52d   :  { %v11252_v15 = vld [vmem:[#allocation10 + $0xef0] sm:$0xf0] }
 0x52e   :  { %v14227_v46 = vld [vmem:[#allocation10 + $0x894] sm:$0xf]  ;;  %v11255_v27 = vor.u32 %v14427_v43, %v11252_v15  ;;  %7732 = vmatpush.bf16.msrb.mxu2 %v10999_v19  ;;  %v7492_v43 = vpop.f32.mrf.mxu3 }
 0x52f   :  { %v10452_v51 = vld [vmem:[#allocation10 + $0x8b0] sm:$0xf0] }
 0x530   :  { %v14291_v48 = vld [vmem:[#allocation10 + $0xa94] sm:$0xf]  ;;  %v10455_v10 = vor.u32 %v14227_v46, %v10452_v51  ;;  %7745 = vmatpush.bf16.msrb.mxu3 %v11255_v27 }
 0x531   :  { %v10708_v47 = vld [vmem:[#allocation10 + $0xab0] sm:$0xf0] }
 0x532   :  { %v14355_v18 = vld [vmem:[#allocation10 + $0xc94] sm:$0xf]  ;;  %v10711_v30 = vor.u32 %v14291_v48, %v10708_v47  ;;  %7707 = vmatpush.bf16.msrb.mxu0 %v10455_v10 }
 0x533   :  { %v10964_v54 = vld [vmem:[#allocation10 + $0xcb0] sm:$0xf0] }
 0x534   :  { %v14419_v58 = vld [vmem:[#allocation10 + $0xe94] sm:$0xf]  ;;  %v10967_v28 = vor.u32 %v14355_v18, %v10964_v54  ;;  %7720 = vmatpush.bf16.msrb.mxu1 %v10711_v30 }
 0x535   :  { %v11220_v9 = vld [vmem:[#allocation10 + $0xeb0] sm:$0xf0] }
 0x536   :  { %v14219_v21 = vld [vmem:[#allocation10 + $0x854] sm:$0xf]  ;;  %v11223_v24 = vor.u32 %v14419_v58, %v11220_v9  ;;  %7733 = vmatpush.bf16.msrb.mxu2 %v10967_v28 }
 0x537   :  { %v10420_v57 = vld [vmem:[#allocation10 + $0x870] sm:$0xf0] }
 0x538   :  { %v14283_v36 = vld [vmem:[#allocation10 + $0xa54] sm:$0xf]  ;;  %v10423_v34 = vor.u32 %v14219_v21, %v10420_v57  ;;  %7746 = vmatpush.bf16.msrb.mxu3 %v11223_v24 }
 0x539   :  { %v10676_v42 = vld [vmem:[#allocation10 + $0xa70] sm:$0xf0] }
 0x53a   :  { %v14347_v5 = vld [vmem:[#allocation10 + $0xc54] sm:$0xf]  ;;  %v10679_v2 = vor.u32 %v14283_v36, %v10676_v42  ;;  %7708 = vmatpush.bf16.msrb.mxu0 %v10423_v34 }
 0x53b   :  { %v10932_v29 = vld [vmem:[#allocation10 + $0xc70] sm:$0xf0] }
 0x53c   :  { %v14411_v38 = vld [vmem:[#allocation10 + $0xe54] sm:$0xf]  ;;  %v10935_v39 = vor.u32 %v14347_v5, %v10932_v29  ;;  %7721 = vmatpush.bf16.msrb.mxu1 %v10679_v2 }
 0x53d   :  { %v11188_v31 = vld [vmem:[#allocation10 + $0xe70] sm:$0xf0] }
 0x53e   :  { %v14211_v8 = vld [vmem:[#allocation10 + $0x814] sm:$0xf]  ;;  %v11191_v4 = vor.u32 %v14411_v38, %v11188_v31  ;;  %7734 = vmatpush.bf16.msrb.mxu2 %v10935_v39 }
 0x53f   :  { %v10388_v11 = vld [vmem:[#allocation10 + $0x830] sm:$0xf0] }
 0x540   :  { %v14275_v16 = vld [vmem:[#allocation10 + $0xa14] sm:$0xf]  ;;  %v10391_v27 = vor.u32 %v14211_v8, %v10388_v11  ;;  %7747 = vmatpush.bf16.msrb.mxu3 %v11191_v4 }
 0x541   :  { %v10644_v37 = vld [vmem:[#allocation10 + $0xa30] sm:$0xf0] }
 0x542   :  { %v14339_v25 = vld [vmem:[#allocation10 + $0xc14] sm:$0xf]  ;;  %v10647_v48 = vor.u32 %v14275_v16, %v10644_v37  ;;  %7709 = vmatpush.bf16.msrb.mxu0 %v10391_v27  ;;  %v7503_v27 = vpop.f32.mrf.mxu0 }
 0x543   :  { %v10900_v41 = vld [vmem:[#allocation10 + $0xc30] sm:$0xf0] }
 0x544   :  { %v14403_v59 = vld [vmem:[#allocation10 + $0xe14] sm:$0xf]  ;;  %v10903_v50 = vor.u32 %v14339_v25, %v10900_v41  ;;  %7722 = vmatpush.bf16.msrb.mxu1 %v10647_v48  ;;  %v7516_v48 = vpop.f32.mrf.mxu1 }
 0x545   :  { %v11156_v15 = vld [vmem:[#allocation10 + $0xe30] sm:$0xf0]  ;;  %7710 = vmatmul.bf16.vlgmr.msrb.gmra.mxu0 %v15592_v7 }
 0x546   :  { %v14523_v45 = vld [vmem:[#allocation10 + $0x11d4] sm:$0xf]  ;;  %v11159_v54 = vor.u32 %v14403_v59, %v11156_v15  ;;  %7735 = vmatpush.bf16.msrb.mxu2 %v10903_v50 }
 0x547   :  { %v11636_v17 = vld [vmem:[#allocation10 + $0x11f0] sm:$0xf0]  ;;  %7723 = vmatmul.bf16.vlgmr.msrb.gmra.mxu1 %v15594_v35 }
 0x548   :  { %v14587_v46 = vld [vmem:[#allocation10 + $0x13d4] sm:$0xf]  ;;  %v11639_v58 = vor.u32 %v14523_v45, %v11636_v17  ;;  %7748 = vmatpush.bf16.msrb.mxu3 %v11159_v54 }
 0x549   :  { %v11892_v51 = vld [vmem:[#allocation10 + $0x13f0] sm:$0xf0]  ;;  %7736 = vmatmul.bf16.vlgmr.msrb.gmra.mxu2 %v15596_v12 }
 0x54a   :  { %v14651_v19 = vld [vmem:[#allocation10 + $0x15d4] sm:$0xf]  ;;  %v11895_v9 = vor.u32 %v14587_v46, %v11892_v51  ;;  %7754 = vmatpush.bf16.msra.mxu0 %v11639_v58 }
 0x54b   :  { %v12148_v47 = vld [vmem:[#allocation10 + $0x15f0] sm:$0xf0]  ;;  %7749 = vmatmul.bf16.vlgmr.msrb.gmra.mxu3 %v15598_v20 }
 0x54c   :  { %v14715_v18 = vld [vmem:[#allocation10 + $0x17d4] sm:$0xf]  ;;  %v12151_v22 = vor.u32 %v14651_v19, %v12148_v47  ;;  %7767 = vmatpush.bf16.msra.mxu1 %v11895_v9  ;;  %v7504_v47 = vadd.f32 %v7503_v27, %v15755_v32 }
 0x54d   :  { %v12404_v49 = vld [vmem:[#allocation10 + $0x17f0] sm:$0xf0] }
 0x54e   :  { %v14515_v40 = vld [vmem:[#allocation10 + $0x1194] sm:$0xf]  ;;  %v12407_v10 = vor.u32 %v14715_v18, %v12404_v49  ;;  %7780 = vmatpush.bf16.msra.mxu2 %v12151_v22 }
 0x54f   :  { %v11604_v6 = vld [vmem:[#allocation10 + $0x11b0] sm:$0xf0] }
 0x550   :  { %v14579_v30 = vld [vmem:[#allocation10 + $0x1394] sm:$0xf]  ;;  %v11607_v42 = vor.u32 %v14515_v40, %v11604_v6  ;;  %7793 = vmatpush.bf16.msra.mxu3 %v12407_v10  ;;  %v7517_v10 = vadd.f32 %v7516_v48, %v7504_v47 }
 0x551   :  { %v11860_v21 = vld [vmem:[#allocation10 + $0x13b0] sm:$0xf0] }
 0x552   :  { %v14643_v57 = vld [vmem:[#allocation10 + $0x1594] sm:$0xf]  ;;  %v11863_v5 = vor.u32 %v14579_v30, %v11860_v21  ;;  %7755 = vmatpush.bf16.msra.mxu0 %v11607_v42 }
 0x553   :  { %v12116_v28 = vld [vmem:[#allocation10 + $0x15b0] sm:$0xf0] }
 0x554   :  { %v14707_v24 = vld [vmem:[#allocation10 + $0x1794] sm:$0xf]  ;;  %v12119_v31 = vor.u32 %v14643_v57, %v12116_v28  ;;  %7768 = vmatpush.bf16.msra.mxu1 %v11863_v5 }
 0x555   :  { %v12372_v36 = vld [vmem:[#allocation10 + $0x17b0] sm:$0xf0] }
 0x556   :  { %v14507_v29 = vld [vmem:[#allocation10 + $0x1154] sm:$0xf]  ;;  %v12375_v8 = vor.u32 %v14707_v24, %v12372_v36  ;;  %7781 = vmatpush.bf16.msra.mxu2 %v12119_v31 }
 0x557   :  { %v11572_v38 = vld [vmem:[#allocation10 + $0x1170] sm:$0xf0] }
 0x558   :  { %v14571_v34 = vld [vmem:[#allocation10 + $0x1354] sm:$0xf]  ;;  %v11575_v4 = vor.u32 %v14507_v29, %v11572_v38  ;;  %7794 = vmatpush.bf16.msra.mxu3 %v12375_v8  ;;  %v7529_v8 = vpop.f32.mrf.mxu2 }
 0x559   :  { %v11828_v2 = vld [vmem:[#allocation10 + $0x1370] sm:$0xf0] }
 0x55a   :  { %v14635_v11 = vld [vmem:[#allocation10 + $0x1554] sm:$0xf]  ;;  %v11831_v25 = vor.u32 %v14571_v34, %v11828_v2  ;;  %7756 = vmatpush.bf16.msra.mxu0 %v11575_v4  ;;  %v7542_v34 = vpop.f32.mrf.mxu3  ;;  %v7518_v4 = vpop.f32.mrf.mxu1 }
 0x55b   :  { %v12084_v16 = vld [vmem:[#allocation10 + $0x1570] sm:$0xf0] }
 0x55c   :  { %v14699_v37 = vld [vmem:[#allocation10 + $0x1754] sm:$0xf]  ;;  %v12087_v14 = vor.u32 %v14635_v11, %v12084_v16  ;;  %7769 = vmatpush.bf16.msra.mxu1 %v11831_v25 }
 0x55d   :  { %v12340_v39 = vld [vmem:[#allocation10 + $0x1770] sm:$0xf0] }
 0x55e   :  { %v14499_v41 = vld [vmem:[#allocation10 + $0x1114] sm:$0xf]  ;;  %v12343_v43 = vor.u32 %v14699_v37, %v12340_v39  ;;  %7782 = vmatpush.bf16.msra.mxu2 %v12087_v14  ;;  %v7530_v37 = vadd.f32 %v7529_v8, %v7517_v10  ;;  %v7505_v39 = vpop.f32.mrf.mxu0 }
 0x55f   :  { %v11540_v59 = vld [vmem:[#allocation10 + $0x1130] sm:$0xf0] }
 0x560   :  { %v14563_v15 = vld [vmem:[#allocation10 + $0x1314] sm:$0xf]  ;;  %v11543_v18 = vor.u32 %v14499_v41, %v11540_v59  ;;  %7795 = vmatpush.bf16.msra.mxu3 %v12343_v43  ;;  %v15762_v43 = vadd.f32 %v7542_v34, %v7530_v37 }
 0x561   :  { %v11796_v45 = vld [vmem:[#allocation10 + $0x1330] sm:$0xf0] }
 0x562   :  { %v14627_v17 = vld [vmem:[#allocation10 + $0x1514] sm:$0xf]  ;;  %v11799_v49 = vor.u32 %v14563_v15, %v11796_v45  ;;  %7757 = vmatpush.bf16.msra.mxu0 %v11543_v18 }
 0x563   :  { %v12052_v46 = vld [vmem:[#allocation10 + $0x1530] sm:$0xf0] }
 0x564   :  { %v14691_v51 = vld [vmem:[#allocation10 + $0x1714] sm:$0xf]  ;;  %v12055_v58 = vor.u32 %v14627_v17, %v12052_v46  ;;  %7770 = vmatpush.bf16.msra.mxu1 %v11799_v49 }
 0x565   :  { %v12308_v19 = vld [vmem:[#allocation10 + $0x1730] sm:$0xf0] }
 0x566   :  { %v14491_v50 = vld [vmem:[#allocation10 + $0x10d4] sm:$0xf]  ;;  %v12311_v9 = vor.u32 %v14691_v51, %v12308_v19  ;;  %7783 = vmatpush.bf16.msra.mxu2 %v12055_v58 }
 0x567   :  { %v11508_v54 = vld [vmem:[#allocation10 + $0x10f0] sm:$0xf0] }
 0x568   :  { %v14555_v40 = vld [vmem:[#allocation10 + $0x12d4] sm:$0xf]  ;;  %v11511_v28 = vor.u32 %v14491_v50, %v11508_v54  ;;  %7796 = vmatpush.bf16.msra.mxu3 %v12311_v9 }
 0x569   :  { %v11764_v6 = vld [vmem:[#allocation10 + $0x12f0] sm:$0xf0] }
 0x56a   :  { %v14619_v22 = vld [vmem:[#allocation10 + $0x14d4] sm:$0xf]  ;;  %v11767_v24 = vor.u32 %v14555_v40, %v11764_v6  ;;  %7758 = vmatpush.bf16.msra.mxu0 %v11511_v28 }
 0x56b   :  { %v12020_v30 = vld [vmem:[#allocation10 + $0x14f0] sm:$0xf0] }
 0x56c   :  { %v14683_v21 = vld [vmem:[#allocation10 + $0x16d4] sm:$0xf]  ;;  %v12023_v42 = vor.u32 %v14619_v22, %v12020_v30  ;;  %7771 = vmatpush.bf16.msra.mxu1 %v11767_v24  ;;  %v7531_v30 = vpop.f32.mrf.mxu2 }
 0x56d   :  { %v12276_v57 = vld [vmem:[#allocation10 + $0x16f0] sm:$0xf0] }
 0x56e   :  { %v14483_v32 = vld [vmem:[#allocation10 + $0x1094] sm:$0xf]  ;;  %v12279_v5 = vor.u32 %v14683_v21, %v12276_v57  ;;  %7784 = vmatpush.bf16.msra.mxu2 %v12023_v42  ;;  %v7544_v21 = vpop.f32.mrf.mxu3 }
 0x56f   :  { %v11476_v36 = vld [vmem:[#allocation10 + $0x10b0] sm:$0xf0] }
 0x570   :  { %v14547_v29 = vld [vmem:[#allocation10 + $0x1294] sm:$0xf]  ;;  %v11479_v25 = vor.u32 %v14483_v32, %v11476_v36  ;;  %7797 = vmatpush.bf16.msra.mxu3 %v12279_v5 }
 0x571   :  { %v11732_v38 = vld [vmem:[#allocation10 + $0x12b0] sm:$0xf0] }
 0x572   :  { %v14611_v31 = vld [vmem:[#allocation10 + $0x1494] sm:$0xf]  ;;  %v11735_v41 = vor.u32 %v14547_v29, %v11732_v38  ;;  %7759 = vmatpush.bf16.msra.mxu0 %v11479_v25 }
 0x573   :  { %v11988_v2 = vld [vmem:[#allocation10 + $0x14b0] sm:$0xf0] }
 0x574   :  { %v14675_v11 = vld [vmem:[#allocation10 + $0x1694] sm:$0xf]  ;;  %v11991_v15 = vor.u32 %v14611_v31, %v11988_v2  ;;  %7772 = vmatpush.bf16.msra.mxu1 %v11735_v41 }
 0x575   :  { %v12244_v16 = vld [vmem:[#allocation10 + $0x16b0] sm:$0xf0] }
 0x576   :  { %v14475_v59 = vld [vmem:[#allocation10 + $0x1054] sm:$0xf]  ;;  %v12247_v45 = vor.u32 %v14675_v11, %v12244_v16  ;;  %7785 = vmatpush.bf16.msra.mxu2 %v11991_v15 }
 0x577   :  { %v11444_v14 = vld [vmem:[#allocation10 + $0x1070] sm:$0xf0] }
 0x578   :  { %v14539_v17 = vld [vmem:[#allocation10 + $0x1254] sm:$0xf]  ;;  %v11447_v18 = vor.u32 %v14475_v59, %v11444_v14  ;;  %7798 = vmatpush.bf16.msra.mxu3 %v12247_v45 }
 0x579   :  { %v11700_v46 = vld [vmem:[#allocation10 + $0x1270] sm:$0xf0] }
 0x57a   :  { %v14603_v51 = vld [vmem:[#allocation10 + $0x1454] sm:$0xf]  ;;  %v11703_v49 = vor.u32 %v14539_v17, %v11700_v46  ;;  %7760 = vmatpush.bf16.msra.mxu0 %v11447_v18 }
 0x57b   :  { %v11956_v19 = vld [vmem:[#allocation10 + $0x1470] sm:$0xf0] }
 0x57c   :  { %v14667_v27 = vld [vmem:[#allocation10 + $0x1654] sm:$0xf]  ;;  %v11959_v9 = vor.u32 %v14603_v51, %v11956_v19  ;;  %7773 = vmatpush.bf16.msra.mxu1 %v11703_v49 }
 0x57d   :  { %v12212_v48 = vld [vmem:[#allocation10 + $0x1670] sm:$0xf0] }
 0x57e   :  { %v14467_v47 = vld [vmem:[#allocation10 + $0x1014] sm:$0xf]  ;;  %v12215_v40 = vor.u32 %v14667_v27, %v12212_v48  ;;  %7786 = vmatpush.bf16.msra.mxu2 %v11959_v9 }
 0x57f   :  { %v11412_v50 = vld [vmem:[#allocation10 + $0x1030] sm:$0xf0] }
 0x580   :  { %v14531_v54 = vld [vmem:[#allocation10 + $0x1214] sm:$0xf]  ;;  %v11415_v5 = vor.u32 %v14467_v47, %v11412_v50  ;;  %7799 = vmatpush.bf16.msra.mxu3 %v12215_v40 }
 0x581   :  { %v11668_v58 = vld [vmem:[#allocation10 + $0x1230] sm:$0xf0] }
 0x582   :  { %v14595_v6 = vld [vmem:[#allocation10 + $0x1414] sm:$0xf]  ;;  %v11671_v29 = vor.u32 %v14531_v54, %v11668_v58  ;;  %7761 = vmatpush.bf16.msra.mxu0 %v11415_v5  ;;  %v7555_v5 = vpop.f32.mrf.mxu0 }
 0x583   :  { %v11924_v22 = vld [vmem:[#allocation10 + $0x1430] sm:$0xf0] }
 0x584   :  { %v14659_v10 = vld [vmem:[#allocation10 + $0x1614] sm:$0xf]  ;;  %v11927_v34 = vor.u32 %v14595_v6, %v11924_v22  ;;  %7774 = vmatpush.bf16.msra.mxu1 %v11671_v29  ;;  %v7568_v29 = vpop.f32.mrf.mxu1 }
 0x585   :  { %v12180_v57 = vld [vmem:[#allocation10 + $0x1630] sm:$0xf0]  ;;  %7762 = vmatmul.bf16.vlgmr.msra.gmra.mxu0 %v15617_v55 }
 0x586   :  { %v14779_v28 = vld [vmem:[#allocation10 + $0x19d4] sm:$0xf]  ;;  %v12183_v2 = vor.u32 %v14659_v10, %v12180_v57  ;;  %7787 = vmatpush.bf16.msra.mxu2 %v11927_v34 }
 0x587   :  { %v12660_v24 = vld [vmem:[#allocation10 + $0x19f0] sm:$0xf0]  ;;  %7775 = vmatmul.bf16.vlgmr.msra.gmra.mxu1 %v15619_v60 }
 0x588   :  { %v14843_v32 = vld [vmem:[#allocation10 + $0x1bd4] sm:$0xf]  ;;  %v12663_v11 = vor.u32 %v14779_v28, %v12660_v24  ;;  %7800 = vmatpush.bf16.msra.mxu3 %v12183_v2 }
 0x589   :  { %v12916_v36 = vld [vmem:[#allocation10 + $0x1bf0] sm:$0xf0]  ;;  %7788 = vmatmul.bf16.vlgmr.msra.gmra.mxu2 %v15621_v13 }
 0x58a   :  { %v14907_v42 = vld [vmem:[#allocation10 + $0x1dd4] sm:$0xf]  ;;  %v12919_v16 = vor.u32 %v14843_v32, %v12916_v36  ;;  %7806 = vmatpush.bf16.msrb.mxu0 %v12663_v11 }
 0x58b   :  { %v13172_v38 = vld [vmem:[#allocation10 + $0x1df0] sm:$0xf0]  ;;  %7801 = vmatmul.bf16.vlgmr.msra.gmra.mxu3 %v15623_v61 }
 0x58c   :  { %v14971_v31 = vld [vmem:[#allocation10 + $0x1fd4] sm:$0xf]  ;;  %v13175_v4 = vor.u32 %v14907_v42, %v13172_v38  ;;  %7819 = vmatpush.bf16.msrb.mxu1 %v12919_v16  ;;  %v7556_v38 = vadd.f32 %v7555_v5, %v15762_v43 }
 0x58d   :  { %v13428_v8 = vld [vmem:[#allocation10 + $0x1ff0] sm:$0xf0] }
 0x58e   :  { %v14771_v37 = vld [vmem:[#allocation10 + $0x1994] sm:$0xf]  ;;  %v13431_v25 = vor.u32 %v14971_v31, %v13428_v8  ;;  %7832 = vmatpush.bf16.msrb.mxu2 %v13175_v4 }
 0x58f   :  { %v12628_v39 = vld [vmem:[#allocation10 + $0x19b0] sm:$0xf0] }
 0x590   :  { %v14835_v41 = vld [vmem:[#allocation10 + $0x1b94] sm:$0xf]  ;;  %v12631_v46 = vor.u32 %v14771_v37, %v12628_v39  ;;  %7845 = vmatpush.bf16.msrb.mxu3 %v13431_v25  ;;  %v7569_v25 = vadd.f32 %v7568_v29, %v7556_v38 }
 0x591   :  { %v12884_v59 = vld [vmem:[#allocation10 + $0x1bb0] sm:$0xf0] }
 0x592   :  { %v14899_v14 = vld [vmem:[#allocation10 + $0x1d94] sm:$0xf]  ;;  %v12887_v51 = vor.u32 %v14835_v41, %v12884_v59  ;;  %7807 = vmatpush.bf16.msrb.mxu0 %v12631_v46 }
 0x593   :  { %v13140_v15 = vld [vmem:[#allocation10 + $0x1db0] sm:$0xf0] }
 0x594   :  { %v14963_v45 = vld [vmem:[#allocation10 + $0x1f94] sm:$0xf]  ;;  %v13143_v48 = vor.u32 %v14899_v14, %v13140_v15  ;;  %7820 = vmatpush.bf16.msrb.mxu1 %v12887_v51 }
 0x595   :  { %v13396_v17 = vld [vmem:[#allocation10 + $0x1fb0] sm:$0xf0] }
 0x596   :  { %v14763_v19 = vld [vmem:[#allocation10 + $0x1954] sm:$0xf]  ;;  %v13399_v47 = vor.u32 %v14963_v45, %v13396_v17  ;;  %7833 = vmatpush.bf16.msrb.mxu2 %v13143_v48 }
 0x597   :  { %v12596_v27 = vld [vmem:[#allocation10 + $0x1970] sm:$0xf0] }
 0x598   :  { %v14827_v18 = vld [vmem:[#allocation10 + $0x1b54] sm:$0xf]  ;;  %v12599_v40 = vor.u32 %v14763_v19, %v12596_v27  ;;  %7846 = vmatpush.bf16.msrb.mxu3 %v13399_v47  ;;  %v7581_v47 = vpop.f32.mrf.mxu2 }
 0x599   :  { %v12852_v49 = vld [vmem:[#allocation10 + $0x1b70] sm:$0xf0] }
 0x59a   :  { %v14891_v50 = vld [vmem:[#allocation10 + $0x1d54] sm:$0xf]  ;;  %v12855_v6 = vor.u32 %v14827_v18, %v12852_v49  ;;  %7808 = vmatpush.bf16.msrb.mxu0 %v12599_v40  ;;  %v7594_v18 = vpop.f32.mrf.mxu3  ;;  %v7570_v40 = vpop.f32.mrf.mxu1 }
 0x59b   :  { %v13108_v54 = vld [vmem:[#allocation10 + $0x1d70] sm:$0xf0] }
 0x59c   :  { %v14955_v58 = vld [vmem:[#allocation10 + $0x1f54] sm:$0xf]  ;;  %v13111_v30 = vor.u32 %v14891_v50, %v13108_v54  ;;  %7821 = vmatpush.bf16.msrb.mxu1 %v12855_v6 }
 0x59d   :  { %v13364_v9 = vld [vmem:[#allocation10 + $0x1f70] sm:$0xf0] }
 0x59e   :  { %v14755_v22 = vld [vmem:[#allocation10 + $0x1914] sm:$0xf]  ;;  %v13367_v21 = vor.u32 %v14955_v58, %v13364_v9  ;;  %7834 = vmatpush.bf16.msrb.mxu2 %v13111_v30  ;;  %v7582_v58 = vadd.f32 %v7581_v47, %v7569_v25  ;;  %v7557_v9 = vpop.f32.mrf.mxu0  ;;  %v14208_v47 = vld [vmem:[#allocation10 + $0x7f4] sm:$0xf0] }
 0x59f   :  { %v12564_v10 = vld [vmem:[#allocation10 + $0x1930] sm:$0xf0]  ;;  %v14008_v9 = vld [vmem:[#allocation10 + $0x1b4] sm:$0xf0] }
 0x5a0   :  { %v14819_v57 = vld [vmem:[#allocation10 + $0x1b14] sm:$0xf]  ;;  %v12567_v31 = vor.u32 %v14755_v22, %v12564_v10  ;;  %7847 = vmatpush.bf16.msrb.mxu3 %v13367_v21  ;;  %v15769_v21 = vadd.f32 %v7594_v18, %v7582_v58  ;;  %v9562_v58 = vld [vmem:[#allocation10 + $0x198] sm:$0xf] }
 0x5a1   :  { %v12820_v28 = vld [vmem:[#allocation10 + $0x1b30] sm:$0xf0] }
 0x5a2   :  { %v14883_v24 = vld [vmem:[#allocation10 + $0x1d14] sm:$0xf]  ;;  %v12823_v8 = vor.u32 %v14819_v57, %v12820_v28  ;;  %7809 = vmatpush.bf16.msrb.mxu0 %v12567_v31 }
 0x5a3   :  { %v13076_v32 = vld [vmem:[#allocation10 + $0x1d30] sm:$0xf0] }
 0x5a4   :  { %v14947_v36 = vld [vmem:[#allocation10 + $0x1f14] sm:$0xf]  ;;  %v13079_v11 = vor.u32 %v14883_v24, %v13076_v32  ;;  %7822 = vmatpush.bf16.msrb.mxu1 %v12823_v8 }
 0x5a5   :  { %v13332_v42 = vld [vmem:[#allocation10 + $0x1f30] sm:$0xf0] }
 0x5a6   :  { %v14747_v34 = vld [vmem:[#allocation10 + $0x18d4] sm:$0xf]  ;;  %v13335_v16 = vor.u32 %v14947_v36, %v13332_v42  ;;  %7835 = vmatpush.bf16.msrb.mxu2 %v13079_v11 }
 0x5a7   :  { %v12532_v2 = vld [vmem:[#allocation10 + $0x18f0] sm:$0xf0] }
 0x5a8   :  { %v14811_v37 = vld [vmem:[#allocation10 + $0x1ad4] sm:$0xf]  ;;  %v12535_v15 = vor.u32 %v14747_v34, %v12532_v2  ;;  %7848 = vmatpush.bf16.msrb.mxu3 %v13335_v16 }
 0x5a9   :  { %v12788_v39 = vld [vmem:[#allocation10 + $0x1af0] sm:$0xf0] }
 0x5aa   :  { %v14875_v4 = vld [vmem:[#allocation10 + $0x1cd4] sm:$0xf]  ;;  %v12791_v45 = vor.u32 %v14811_v37, %v12788_v39  ;;  %7810 = vmatpush.bf16.msrb.mxu0 %v12535_v15  ;;  %v9594_v15 = vld [vmem:[#allocation10 + $0x1d8] sm:$0xf] }
 0x5ab   :  { %v13044_v41 = vld [vmem:[#allocation10 + $0x1cf0] sm:$0xf0] }
 0x5ac   :  { %v14939_v59 = vld [vmem:[#allocation10 + $0x1ed4] sm:$0xf]  ;;  %v13047_v46 = vor.u32 %v14875_v4, %v13044_v41  ;;  %7823 = vmatpush.bf16.msrb.mxu1 %v12791_v45  ;;  %v7583_v41 = vpop.f32.mrf.mxu2  ;;  %v14016_v45 = vld [vmem:[#allocation10 + $0x1f4] sm:$0xf0] }
 0x5ad   :  { %v13300_v14 = vld [vmem:[#allocation10 + $0x1ef0] sm:$0xf0] }
 0x5ae   :  { %v14739_v43 = vld [vmem:[#allocation10 + $0x1894] sm:$0xf]  ;;  %v13303_v51 = vor.u32 %v14939_v59, %v13300_v14  ;;  %7836 = vmatpush.bf16.msrb.mxu2 %v13047_v46  ;;  %v7596_v59 = vpop.f32.mrf.mxu3  ;;  %v10106_v46 = vld [vmem:[#allocation10 + $0x5d8] sm:$0xf] }
 0x5af   :  { %v12500_v17 = vld [vmem:[#allocation10 + $0x18b0] sm:$0xf0] }
 0x5b0   :  { %v14803_v19 = vld [vmem:[#allocation10 + $0x1a94] sm:$0xf]  ;;  %v12503_v6 = vor.u32 %v14739_v43, %v12500_v17  ;;  %7849 = vmatpush.bf16.msrb.mxu3 %v13303_v51  ;;  %v9850_v43 = vld [vmem:[#allocation10 + $0x3d8] sm:$0xf] }
 0x5b1   :  { %v12756_v27 = vld [vmem:[#allocation10 + $0x1ab0] sm:$0xf0]  ;;  %v14080_v17 = vld [vmem:[#allocation10 + $0x3f4] sm:$0xf0] }
 0x5b2   :  { %v14867_v48 = vld [vmem:[#allocation10 + $0x1c94] sm:$0xf]  ;;  %v12759_v22 = vor.u32 %v14803_v19, %v12756_v27  ;;  %7811 = vmatpush.bf16.msrb.mxu0 %v12503_v6  ;;  %v14144_v27 = vld [vmem:[#allocation10 + $0x5f4] sm:$0xf0] }
 0x5b3   :  { %v13012_v49 = vld [vmem:[#allocation10 + $0x1cb0] sm:$0xf0]  ;;  %v10107_v40 = vor.u32 %v14144_v27, %v10106_v46  ;;  %v14184_v46 = vld [vmem:[#allocation10 + $0x734] sm:$0xf0] }
 0x5b4   :  { %v14931_v50 = vld [vmem:[#allocation10 + $0x1e94] sm:$0xf]  ;;  %v13015_v57 = vor.u32 %v14867_v48, %v13012_v49  ;;  %7824 = vmatpush.bf16.msrb.mxu1 %v12759_v22  ;;  %v10362_v48 = vld [vmem:[#allocation10 + $0x7d8] sm:$0xf] }
 0x5b5   :  { %v13268_v54 = vld [vmem:[#allocation10 + $0x1eb0] sm:$0xf0]  ;;  %v10363_v6 = vor.u32 %v14208_v47, %v10362_v48  ;;  %v9818_v22 = vld [vmem:[#allocation10 + $0x398] sm:$0xf] }
 0x5b6   :  { %v14731_v10 = vld [vmem:[#allocation10 + $0x1854] sm:$0xf]  ;;  %v13271_v28 = vor.u32 %v14931_v50, %v13268_v54  ;;  %7837 = vmatpush.bf16.msrb.mxu2 %v13015_v57  ;;  %v9595_v50 = vor.u32 %v14016_v45, %v9594_v15  ;;  %v9851_v54 = vor.u32 %v14080_v17, %v9850_v43  ;;  %v14136_v57 = vld [vmem:[#allocation10 + $0x5b4] sm:$0xf0] }
 0x5b7   :  { %v12468_v30 = vld [vmem:[#allocation10 + $0x1870] sm:$0xf0]  ;;  %v14056_v15 = vld [vmem:[#allocation10 + $0x334] sm:$0xf0] }
 0x5b8   :  { %v14795_v24 = vld [vmem:[#allocation10 + $0x1a54] sm:$0xf]  ;;  %v12471_v31 = vor.u32 %v14731_v10, %v12468_v30  ;;  %7850 = vmatpush.bf16.msrb.mxu3 %v13271_v28  ;;  %v14072_v10 = vld [vmem:[#allocation10 + $0x3b4] sm:$0xf0] }
 0x5b9   :  { %v12724_v32 = vld [vmem:[#allocation10 + $0x1a70] sm:$0xf0]  ;;  %v10074_v30 = vld [vmem:[#allocation10 + $0x598] sm:$0xf] }
 0x5ba   :  { %v14859_v36 = vld [vmem:[#allocation10 + $0x1c54] sm:$0xf]  ;;  %v12727_v8 = vor.u32 %v14795_v24, %v12724_v32  ;;  %7812 = vmatpush.bf16.msrb.mxu0 %v12471_v31  ;;  %v10330_v28 = vld [vmem:[#allocation10 + $0x798] sm:$0xf]  ;;  %v9563_v32 = vor.u32 %v14008_v9, %v9562_v58 }
 0x5bb   :  { %v12980_v42 = vld [vmem:[#allocation10 + $0x1c70] sm:$0xf0]  ;;  %v14200_v24 = vld [vmem:[#allocation10 + $0x7b4] sm:$0xf0] }
 0x5bc   :  { %v14923_v5 = vld [vmem:[#allocation10 + $0x1e54] sm:$0xf]  ;;  %v12983_v16 = vor.u32 %v14859_v36, %v12980_v42  ;;  %7825 = vmatpush.bf16.msrb.mxu1 %v12727_v8  ;;  %v9819_v36 = vor.u32 %v14072_v10, %v9818_v22  ;;  %v9530_v42 = vld [vmem:[#allocation10 + $0x158] sm:$0xf] }
 0x5bd   :  { %v13236_v29 = vld [vmem:[#allocation10 + $0x1e70] sm:$0xf0]  ;;  %v9786_v31 = vld [vmem:[#allocation10 + $0x358] sm:$0xf] }
 0x5be   :  { %v14723_v38 = vld [vmem:[#allocation10 + $0x1814] sm:$0xf]  ;;  %v13239_v37 = vor.u32 %v14923_v5, %v13236_v29  ;;  %7838 = vmatpush.bf16.msrb.mxu2 %v12983_v16  ;;  %v14000_v5 = vld [vmem:[#allocation10 + $0x174] sm:$0xf0]  ;;  %v10075_v29 = vor.u32 %v14136_v57, %v10074_v30 }
 0x5bf   :  { %v12436_v34 = vld [vmem:[#allocation10 + $0x1830] sm:$0xf0]  ;;  %v14064_v8 = vld [vmem:[#allocation10 + $0x374] sm:$0xf0] }
 0x5c0   :  { %v14787_v2 = vld [vmem:[#allocation10 + $0x1a14] sm:$0xf]  ;;  %v12439_v51 = vor.u32 %v14723_v38, %v12436_v34  ;;  %7851 = vmatpush.bf16.msrb.mxu3 %v13239_v37  ;;  %v10331_v38 = vor.u32 %v14200_v24, %v10330_v28  ;;  %v10042_v34 = vld [vmem:[#allocation10 + $0x558] sm:$0xf]  ;;  %v9531_v37 = vor.u32 %v14000_v5, %v9530_v42 }
 0x5c1   :  { %v12692_v11 = vld [vmem:[#allocation10 + $0x1a30] sm:$0xf0]  ;;  %v14192_v16 = vld [vmem:[#allocation10 + $0x774] sm:$0xf0] }
 0x5c2   :  { %v14851_v39 = vld [vmem:[#allocation10 + $0x1c14] sm:$0xf]  ;;  %v12695_v19 = vor.u32 %v14787_v2, %v12692_v11  ;;  %7813 = vmatpush.bf16.msrb.mxu0 %v12439_v51  ;;  %v14128_v2 = vld [vmem:[#allocation10 + $0x574] sm:$0xf0]  ;;  %v7607_v51 = vpop.f32.mrf.mxu0 }
 0x5c3   :  { %v12948_v4 = vld [vmem:[#allocation10 + $0x1c30] sm:$0xf0]  ;;  %v10298_v11 = vld [vmem:[#allocation10 + $0x758] sm:$0xf]  ;;  %v10043_v41 = vor.u32 %v14128_v2, %v10042_v34  ;;  %v7608_v27 = vadd.f32 %v7607_v51, %v15769_v21 }
 0x5c4   :  { %v14915_v25 = vld [vmem:[#allocation10 + $0x1e14] sm:$0xf]  ;;  %v12951_v18 = vor.u32 %v14851_v39, %v12948_v4  ;;  %7826 = vmatpush.bf16.msrb.mxu1 %v12695_v19  ;;  %v9787_v39 = vor.u32 %v14064_v8, %v9786_v31  ;;  %v9498_v4 = vld [vmem:[#allocation10 + $0x118] sm:$0xf]  ;;  %v10299_v59 = vor.u32 %v14192_v16, %v10298_v11  ;;  %v7620_v19 = vpop.f32.mrf.mxu1  ;;  %v7646_v31 = vpop.f32.mrf.mxu3 }
 0x5c5   :  { %v13204_v14 = vld [vmem:[#allocation10 + $0x1e30] sm:$0xf0]  ;;  %7814 = vmatmul.bf16.vlgmr.msrb.gmra.mxu0 %v15633_v1  ;;  %v10010_v45 = vld [vmem:[#allocation10 + $0x518] sm:$0xf] }
 0x5c6   :  { %v13207_v49 = vor.u32 %v14915_v25, %v13204_v14  ;;  %7839 = vmatpush.bf16.msrb.mxu2 %v12951_v18  ;;  %7858 = vmatpush.bf16.msra.mxu0 %v9595_v50  ;;  %v13992_v25 = vld [vmem:[#allocation10 + $0x134] sm:$0xf0] }
 0x5c7   :  { %7827 = vmatmul.bf16.vlgmr.msrb.gmra.mxu1 %v15635_v63  ;;  %v9754_v14 = vld [vmem:[#allocation10 + $0x318] sm:$0xf]  ;;  %v9499_v48 = vor.u32 %v13992_v25, %v9498_v4 }
 0x5c8   :  { %7852 = vmatpush.bf16.msrb.mxu3 %v13207_v49  ;;  %7871 = vmatpush.bf16.msra.mxu1 %v9851_v54  ;;  %v14120_v43 = vld [vmem:[#allocation10 + $0x534] sm:$0xf0]  ;;  %v9755_v47 = vor.u32 %v14056_v15, %v9754_v14 }
 0x5c9   :  { %7840 = vmatmul.bf16.vlgmr.msrb.gmra.mxu2 %v15637_v0  ;;  %v10266_v17 = vld [vmem:[#allocation10 + $0x718] sm:$0xf]  ;;  %v10011_v50 = vor.u32 %v14120_v43, %v10010_v45 }
 0x5ca   :  { %7884 = vmatpush.bf16.msra.mxu2 %v10107_v40  ;;  %7859 = vmatpush.bf16.msra.mxu0 %v9563_v32  ;;  %v9466_v18 = vld [vmem:[#allocation10 + $0xd8] sm:$0xf]  ;;  %v10267_v54 = vor.u32 %v14184_v46, %v10266_v17  ;;  %v7609_v16 = vpop.f32.mrf.mxu0 }
 0x5cb   :  { %7853 = vmatmul.bf16.vlgmr.msrb.gmra.mxu3 %v15639_v23  ;;  %v13984_v49 = vld [vmem:[#allocation10 + $0xf4] sm:$0xf0] }
 0x5cc   :  { %7897 = vmatpush.bf16.msra.mxu3 %v10363_v6  ;;  %7872 = vmatpush.bf16.msra.mxu1 %v9819_v36  ;;  %v9722_v58 = vld [vmem:[#allocation10 + $0x2d8] sm:$0xf]  ;;  %v7621_v6 = vadd.f32 %v7620_v19, %v7608_v27  ;;  %v9467_v57 = vor.u32 %v13984_v49, %v9466_v18 }
 0x5cd   :  { %v14048_v9 = vld [vmem:[#allocation10 + $0x2f4] sm:$0xf0] }
 0x5ce   :  { %7885 = vmatpush.bf16.msra.mxu2 %v10075_v29  ;;  %7860 = vmatpush.bf16.msra.mxu0 %v9531_v37  ;;  %v9978_v40 = vld [vmem:[#allocation10 + $0x4d8] sm:$0xf]  ;;  %v9723_v28 = vor.u32 %v14048_v9, %v9722_v58  ;;  %v7622_v37 = vpop.f32.mrf.mxu1 }
 0x5cf   :  { %v14112_v22 = vld [vmem:[#allocation10 + $0x4f4] sm:$0xf0] }
 0x5d0   :  { %7898 = vmatpush.bf16.msra.mxu3 %v10331_v38  ;;  %7873 = vmatpush.bf16.msra.mxu1 %v9787_v39  ;;  %v10234_v10 = vld [vmem:[#allocation10 + $0x6d8] sm:$0xf]  ;;  %v9979_v32 = vor.u32 %v14112_v22, %v9978_v40  ;;  %v7633_v38 = vpop.f32.mrf.mxu2 }
 0x5d1   :  { %v14176_v30 = vld [vmem:[#allocation10 + $0x6f4] sm:$0xf0]  ;;  %v7634_v11 = vadd.f32 %v7633_v38, %v7621_v6 }
 0x5d2   :  { %7886 = vmatpush.bf16.msra.mxu2 %v10043_v41  ;;  %7861 = vmatpush.bf16.msra.mxu0 %v9499_v48  ;;  %v9434_v21 = vld [vmem:[#allocation10 + $0x98] sm:$0xf]  ;;  %v10235_v36 = vor.u32 %v14176_v30, %v10234_v10  ;;  %v7648_v10 = vpop.f32.mrf.mxu3 }
 0x5d3   :  { %v13976_v24 = vld [vmem:[#allocation10 + $0xb4] sm:$0xf0] }
 0x5d4   :  { %7899 = vmatpush.bf16.msra.mxu3 %v10299_v59  ;;  %7874 = vmatpush.bf16.msra.mxu1 %v9755_v47  ;;  %v9690_v42 = vld [vmem:[#allocation10 + $0x298] sm:$0xf]  ;;  %v9435_v39 = vor.u32 %v13976_v24, %v9434_v21  ;;  %v15776_v59 = vadd.f32 %v7646_v31, %v7634_v11 }
 0x5d5   :  { %v14040_v5 = vld [vmem:[#allocation10 + $0x2b4] sm:$0xf0] }
 0x5d6   :  { %7887 = vmatpush.bf16.msra.mxu2 %v10011_v50  ;;  %v9946_v29 = vld [vmem:[#allocation10 + $0x498] sm:$0xf]  ;;  %7862 = vmatpush.bf16.msra.mxu0 %v9467_v57  ;;  %v9691_v4 = vor.u32 %v14040_v5, %v9690_v42 }
 0x5d7   :  { %v14104_v8 = vld [vmem:[#allocation10 + $0x4b4] sm:$0xf0] }
 0x5d8   :  { %7900 = vmatpush.bf16.msra.mxu3 %v10267_v54  ;;  %v10202_v34 = vld [vmem:[#allocation10 + $0x698] sm:$0xf]  ;;  %7875 = vmatpush.bf16.msra.mxu1 %v9723_v28  ;;  %v9947_v14 = vor.u32 %v14104_v8, %v9946_v29  ;;  %v7635_v22 = vpop.f32.mrf.mxu2 }
 0x5d9   :  { %v14168_v2 = vld [vmem:[#allocation10 + $0x6b4] sm:$0xf0] }
 0x5da   :  { %v9402_v25 = vld [vmem:[#allocation10 + $0x58] sm:$0xf]  ;;  %7888 = vmatpush.bf16.msra.mxu2 %v9979_v32  ;;  %v10203_v15 = vor.u32 %v14168_v2, %v10202_v34  ;;  %7863 = vmatpush.bf16.msra.mxu0 %v9435_v39 }
 0x5db   :  { %v13968_v41 = vld [vmem:[#allocation10 + $0x74] sm:$0xf0] }
 0x5dc   :  { %7901 = vmatpush.bf16.msra.mxu3 %v10235_v36  ;;  %v9658_v45 = vld [vmem:[#allocation10 + $0x258] sm:$0xf]  ;;  %7876 = vmatpush.bf16.msra.mxu1 %v9691_v4  ;;  %v9403_v48 = vor.u32 %v13968_v41, %v9402_v25 }
 0x5dd   :  { %v14032_v43 = vld [vmem:[#allocation10 + $0x274] sm:$0xf0] }
 0x5de   :  { %v9914_v17 = vld [vmem:[#allocation10 + $0x458] sm:$0xf]  ;;  %v9659_v47 = vor.u32 %v14032_v43, %v9658_v45  ;;  %7889 = vmatpush.bf16.msra.mxu2 %v9947_v14  ;;  %7864 = vmatpush.bf16.msra.mxu0 %v9403_v48 }
 0x5df   :  { %v14096_v46 = vld [vmem:[#allocation10 + $0x474] sm:$0xf0] }
 0x5e0   :  { %v10170_v51 = vld [vmem:[#allocation10 + $0x658] sm:$0xf]  ;;  %7902 = vmatpush.bf16.msra.mxu3 %v10203_v15  ;;  %v9915_v54 = vor.u32 %v14096_v46, %v9914_v17  ;;  %7877 = vmatpush.bf16.msra.mxu1 %v9659_v47 }
 0x5e1   :  { %v14160_v19 = vld [vmem:[#allocation10 + $0x674] sm:$0xf0] }
 0x5e2   :  { %v9370_v27 = vld [vmem:[#allocation10 + $0x18] sm:$0xf]  ;;  %v10171_v58 = vor.u32 %v14160_v19, %v10170_v51  ;;  %7890 = vmatpush.bf16.msra.mxu2 %v9915_v54 }
 0x5e3   :  { %v13960_v18 = vld [vmem:[#allocation10 + $0x34] sm:$0xf0] }
 0x5e4   :  { %v9626_v49 = vld [vmem:[#allocation10 + $0x218] sm:$0xf]  ;;  %v9371_v36 = vor.u32 %v13960_v18, %v9370_v27  ;;  %7903 = vmatpush.bf16.msra.mxu3 %v10171_v58 }
 0x5e5   :  { %v14024_v50 = vld [vmem:[#allocation10 + $0x234] sm:$0xf0] }
 0x5e6   :  { %v9882_v9 = vld [vmem:[#allocation10 + $0x418] sm:$0xf]  ;;  %v9627_v42 = vor.u32 %v14024_v50, %v9626_v49  ;;  %7865 = vmatpush.bf16.msra.mxu0 %v9371_v36 }
 0x5e7   :  { %v14088_v40 = vld [vmem:[#allocation10 + $0x434] sm:$0xf0] }
 0x5e8   :  { %v10138_v6 = vld [vmem:[#allocation10 + $0x618] sm:$0xf]  ;;  %v9883_v31 = vor.u32 %v14088_v40, %v9882_v9  ;;  %7878 = vmatpush.bf16.msra.mxu1 %v9627_v42  ;;  %v15137_v40 = vld [vmem:[#allocation11] sm:$0xff] }
 0x5e9   :  { %v14152_v30 = vld [vmem:[#allocation10 + $0x634] sm:$0xf0]  ;;  %7866 = vmatmul.bf16.vlgmr.msra.gmra.mxu0 %v15550_v52 }
 0x5ea   :  { %v10618_v57 = vld [vmem:[#allocation10 + $0x9d8] sm:$0xf]  ;;  %v10139_v8 = vor.u32 %v14152_v30, %v10138_v6  ;;  %7891 = vmatpush.bf16.msra.mxu2 %v9883_v31  ;;  %v1423_v6 = vperm.slane %v15137_v40, 5 }
 0x5eb   :  { %v14272_v28 = vld [vmem:[#allocation10 + $0x9f4] sm:$0xf0]  ;;  %7879 = vmatmul.bf16.vlgmr.msra.gmra.mxu1 %v15552_v53 }
 0x5ec   :  { %v10874_v21 = vld [vmem:[#allocation10 + $0xbd8] sm:$0xf]  ;;  %v10619_v34 = vor.u32 %v14272_v28, %v10618_v57  ;;  %7904 = vmatpush.bf16.msra.mxu3 %v10139_v8 }
 0x5ed   :  { %v14336_v24 = vld [vmem:[#allocation10 + $0xbf4] sm:$0xf0]  ;;  %7892 = vmatmul.bf16.vlgmr.msra.gmra.mxu2 %v15554_v26 }
 0x5ee   :  { %v11130_v32 = vld [vmem:[#allocation10 + $0xdd8] sm:$0xf]  ;;  %v10875_v2 = vor.u32 %v14336_v24, %v10874_v21  ;;  %7910 = vmatpush.bf16.msrb.mxu0 %v10619_v34 }
 0x5ef   :  { %v14400_v5 = vld [vmem:[#allocation10 + $0xdf4] sm:$0xf0]  ;;  %7905 = vmatmul.bf16.vlgmr.msra.gmra.mxu3 %v15556_v56 }
 0x5f0   :  { %v11386_v29 = vld [vmem:[#allocation10 + $0xfd8] sm:$0xf]  ;;  %v11131_v37 = vor.u32 %v14400_v5, %v11130_v32  ;;  %7923 = vmatpush.bf16.msrb.mxu1 %v10875_v2  ;;  %v7659_v5 = vpop.f32.mrf.mxu0 }
 0x5f1   :  { %v14464_v38 = vld [vmem:[#allocation10 + $0xff4] sm:$0xf0] }
 0x5f2   :  { %v10586_v11 = vld [vmem:[#allocation10 + $0x998] sm:$0xf]  ;;  %v11387_v39 = vor.u32 %v14464_v38, %v11386_v29  ;;  %7936 = vmatpush.bf16.msrb.mxu2 %v11131_v37  ;;  %v7672_v29 = vpop.f32.mrf.mxu1  ;;  %v7660_v38 = vadd.f32 %v7659_v5, %v1423_v6 }
 0x5f3   :  { %v14264_v16 = vld [vmem:[#allocation10 + $0x9b4] sm:$0xf0] }
 0x5f4   :  { %v10842_v4 = vld [vmem:[#allocation10 + $0xb98] sm:$0xf]  ;;  %v10587_v43 = vor.u32 %v14264_v16, %v10586_v11  ;;  %7949 = vmatpush.bf16.msrb.mxu3 %v11387_v39 }
 0x5f5   :  { %v14328_v25 = vld [vmem:[#allocation10 + $0xbb4] sm:$0xf0] }
 0x5f6   :  { %v11098_v41 = vld [vmem:[#allocation10 + $0xd98] sm:$0xf]  ;;  %v10843_v17 = vor.u32 %v14328_v25, %v10842_v4  ;;  %7911 = vmatpush.bf16.msrb.mxu0 %v10587_v43  ;;  %v7673_v25 = vadd.f32 %v7672_v29, %v7660_v38 }
 0x5f7   :  { %v14392_v14 = vld [vmem:[#allocation10 + $0xdb4] sm:$0xf0] }
 0x5f8   :  { %v11354_v15 = vld [vmem:[#allocation10 + $0xf98] sm:$0xf]  ;;  %v11099_v19 = vor.u32 %v14392_v14, %v11098_v41  ;;  %7924 = vmatpush.bf16.msrb.mxu1 %v10843_v17  ;;  %v7661_v40 = vpop.f32.mrf.mxu0 }
 0x5f9   :  { %v14456_v45 = vld [vmem:[#allocation10 + $0xfb4] sm:$0xf0] }
 0x5fa   :  { %v10554_v46 = vld [vmem:[#allocation10 + $0x958] sm:$0xf]  ;;  %v11355_v27 = vor.u32 %v14456_v45, %v11354_v15  ;;  %7937 = vmatpush.bf16.msrb.mxu2 %v11099_v19  ;;  %v7674_v6 = vpop.f32.mrf.mxu1 }
 0x5fb   :  { %v14256_v51 = vld [vmem:[#allocation10 + $0x974] sm:$0xf0] }
 0x5fc   :  { %v10810_v48 = vld [vmem:[#allocation10 + $0xb58] sm:$0xf]  ;;  %v10555_v58 = vor.u32 %v14256_v51, %v10554_v46  ;;  %7950 = vmatpush.bf16.msrb.mxu3 %v11355_v27 }
 0x5fd   :  { %v14320_v47 = vld [vmem:[#allocation10 + $0xb74] sm:$0xf0] }
 0x5fe   :  { %v11066_v18 = vld [vmem:[#allocation10 + $0xd58] sm:$0xf]  ;;  %v10811_v9 = vor.u32 %v14320_v47, %v10810_v48  ;;  %7912 = vmatpush.bf16.msrb.mxu0 %v10555_v58 }
 0x5ff   :  { %v14384_v49 = vld [vmem:[#allocation10 + $0xd74] sm:$0xf0] }
 0x600   :  { %v11322_v50 = vld [vmem:[#allocation10 + $0xf58] sm:$0xf]  ;;  %v11067_v30 = vor.u32 %v14384_v49, %v11066_v18  ;;  %7925 = vmatpush.bf16.msrb.mxu1 %v10811_v9  ;;  %v7685_v18 = vpop.f32.mrf.mxu2  ;;  %v7698_v49 = vpop.f32.mrf.mxu3 }
 0x601   :  { %v14448_v54 = vld [vmem:[#allocation10 + $0xf74] sm:$0xf0]  ;;  %v7686_v9 = vadd.f32 %v7685_v18, %v7673_v25 }
 0x602   :  { %v10522_v22 = vld [vmem:[#allocation10 + $0x918] sm:$0xf]  ;;  %v11323_v57 = vor.u32 %v14448_v54, %v11322_v50  ;;  %7938 = vmatpush.bf16.msrb.mxu2 %v11067_v30 }
 0x603   :  { %v14248_v10 = vld [vmem:[#allocation10 + $0x934] sm:$0xf0] }
 0x604   :  { %v10778_v28 = vld [vmem:[#allocation10 + $0xb18] sm:$0xf]  ;;  %v10523_v31 = vor.u32 %v14248_v10, %v10522_v22  ;;  %7951 = vmatpush.bf16.msrb.mxu3 %v11323_v57 }
 0x605   :  { %v14312_v21 = vld [vmem:[#allocation10 + $0xb34] sm:$0xf0] }
 0x606   :  { %v11034_v24 = vld [vmem:[#allocation10 + $0xd18] sm:$0xf]  ;;  %v10779_v8 = vor.u32 %v14312_v21, %v10778_v28  ;;  %7913 = vmatpush.bf16.msrb.mxu0 %v10523_v31  ;;  %v15782_v28 = vadd.f32 %v7698_v49, %v7686_v9 }
 0x607   :  { %v14376_v32 = vld [vmem:[#allocation10 + $0xd34] sm:$0xf0] }
 0x608   :  { %v11290_v36 = vld [vmem:[#allocation10 + $0xf18] sm:$0xf]  ;;  %v11035_v11 = vor.u32 %v14376_v32, %v11034_v24  ;;  %7926 = vmatpush.bf16.msrb.mxu1 %v10779_v8 }
 0x609   :  { %v14440_v42 = vld [vmem:[#allocation10 + $0xf34] sm:$0xf0] }
 0x60a   :  { %v10490_v34 = vld [vmem:[#allocation10 + $0x8d8] sm:$0xf]  ;;  %v11291_v16 = vor.u32 %v14440_v42, %v11290_v36  ;;  %7939 = vmatpush.bf16.msrb.mxu2 %v11035_v11 }
 0x60b   :  { %v14240_v2 = vld [vmem:[#allocation10 + $0x8f4] sm:$0xf0] }
 0x60c   :  { %v10746_v37 = vld [vmem:[#allocation10 + $0xad8] sm:$0xf]  ;;  %v10491_v45 = vor.u32 %v14240_v2, %v10490_v34  ;;  %7952 = vmatpush.bf16.msrb.mxu3 %v11291_v16 }
 0x60d   :  { %v14304_v39 = vld [vmem:[#allocation10 + $0xaf4] sm:$0xf0] }
 0x60e   :  { %v11002_v4 = vld [vmem:[#allocation10 + $0xcd8] sm:$0xf]  ;;  %v10747_v43 = vor.u32 %v14304_v39, %v10746_v37  ;;  %7914 = vmatpush.bf16.msrb.mxu0 %v10491_v45 }
 0x60f   :  { %v14368_v41 = vld [vmem:[#allocation10 + $0xcf4] sm:$0xf0] }
 0x610   :  { %v11258_v14 = vld [vmem:[#allocation10 + $0xed8] sm:$0xf]  ;;  %v11003_v51 = vor.u32 %v14368_v41, %v11002_v4  ;;  %7927 = vmatpush.bf16.msrb.mxu1 %v10747_v43 }
 0x611   :  { %v14432_v15 = vld [vmem:[#allocation10 + $0xef4] sm:$0xf0] }
 0x612   :  { %v10458_v17 = vld [vmem:[#allocation10 + $0x898] sm:$0xf]  ;;  %v11259_v19 = vor.u32 %v14432_v15, %v11258_v14  ;;  %7940 = vmatpush.bf16.msrb.mxu2 %v11003_v51  ;;  %v7687_v14 = vpop.f32.mrf.mxu2  ;;  %v7700_v15 = vpop.f32.mrf.mxu3 }
 0x613   :  { %v14232_v46 = vld [vmem:[#allocation10 + $0x8b4] sm:$0xf0] }
 0x614   :  { %v10714_v27 = vld [vmem:[#allocation10 + $0xa98] sm:$0xf]  ;;  %v10459_v22 = vor.u32 %v14232_v46, %v10458_v17  ;;  %7953 = vmatpush.bf16.msrb.mxu3 %v11259_v19 }
 0x615   :  { %v14296_v48 = vld [vmem:[#allocation10 + $0xab4] sm:$0xf0] }
 0x616   :  { %v10970_v47 = vld [vmem:[#allocation10 + $0xc98] sm:$0xf]  ;;  %v10715_v10 = vor.u32 %v14296_v48, %v10714_v27  ;;  %7915 = vmatpush.bf16.msrb.mxu0 %v10459_v22 }
 0x617   :  { %v14360_v50 = vld [vmem:[#allocation10 + $0xcb4] sm:$0xf0] }
 0x618   :  { %v11226_v54 = vld [vmem:[#allocation10 + $0xe98] sm:$0xf]  ;;  %v10971_v21 = vor.u32 %v14360_v50, %v10970_v47  ;;  %7928 = vmatpush.bf16.msrb.mxu1 %v10715_v10 }
 0x619   :  { %v14424_v58 = vld [vmem:[#allocation10 + $0xeb4] sm:$0xf0] }
 0x61a   :  { %v10426_v30 = vld [vmem:[#allocation10 + $0x858] sm:$0xf]  ;;  %v11227_v24 = vor.u32 %v14424_v58, %v11226_v54  ;;  %7941 = vmatpush.bf16.msrb.mxu2 %v10971_v21 }
 0x61b   :  { %v14224_v57 = vld [vmem:[#allocation10 + $0x874] sm:$0xf0] }
 0x61c   :  { %v10682_v32 = vld [vmem:[#allocation10 + $0xa58] sm:$0xf]  ;;  %v10427_v8 = vor.u32 %v14224_v57, %v10426_v30  ;;  %7954 = vmatpush.bf16.msrb.mxu3 %v11227_v24 }
 0x61d   :  { %v14288_v36 = vld [vmem:[#allocation10 + $0xa74] sm:$0xf0] }
 0x61e   :  { %v10938_v42 = vld [vmem:[#allocation10 + $0xc58] sm:$0xf]  ;;  %v10683_v34 = vor.u32 %v14288_v36, %v10682_v32  ;;  %7916 = vmatpush.bf16.msrb.mxu0 %v10427_v8 }
 0x61f   :  { %v14352_v5 = vld [vmem:[#allocation10 + $0xc74] sm:$0xf0] }
 0x620   :  { %v11194_v29 = vld [vmem:[#allocation10 + $0xe58] sm:$0xf]  ;;  %v10939_v37 = vor.u32 %v14352_v5, %v10938_v42  ;;  %7929 = vmatpush.bf16.msrb.mxu1 %v10683_v34 }
 0x621   :  { %v14416_v38 = vld [vmem:[#allocation10 + $0xe74] sm:$0xf0] }
 0x622   :  { %v10394_v31 = vld [vmem:[#allocation10 + $0x818] sm:$0xf]  ;;  %v11195_v39 = vor.u32 %v14416_v38, %v11194_v29  ;;  %7942 = vmatpush.bf16.msrb.mxu2 %v10939_v37 }
 0x623   :  { %v14216_v2 = vld [vmem:[#allocation10 + $0x834] sm:$0xf0] }
 0x624   :  { %v10650_v11 = vld [vmem:[#allocation10 + $0xa18] sm:$0xf]  ;;  %v10395_v27 = vor.u32 %v14216_v2, %v10394_v31  ;;  %7955 = vmatpush.bf16.msrb.mxu3 %v11195_v39 }
 0x625   :  { %v14280_v16 = vld [vmem:[#allocation10 + $0xa34] sm:$0xf0] }
 0x626   :  { %v10906_v4 = vld [vmem:[#allocation10 + $0xc18] sm:$0xf]  ;;  %v10651_v48 = vor.u32 %v14280_v16, %v10650_v11  ;;  %7917 = vmatpush.bf16.msrb.mxu0 %v10395_v27 }
 0x627   :  { %v14344_v25 = vld [vmem:[#allocation10 + $0xc34] sm:$0xf0] }
 0x628   :  { %v11162_v41 = vld [vmem:[#allocation10 + $0xe18] sm:$0xf]  ;;  %v10907_v50 = vor.u32 %v14344_v25, %v10906_v4  ;;  %7930 = vmatpush.bf16.msrb.mxu1 %v10651_v48  ;;  %v7711_v48 = vpop.f32.mrf.mxu0 }
 0x629   :  { %v14408_v45 = vld [vmem:[#allocation10 + $0xe34] sm:$0xf0]  ;;  %7918 = vmatmul.bf16.vlgmr.msrb.gmra.mxu0 %v15592_v7 }
 0x62a   :  { %v11642_v43 = vld [vmem:[#allocation10 + $0x11d8] sm:$0xf]  ;;  %v11163_v54 = vor.u32 %v14408_v45, %v11162_v41  ;;  %7943 = vmatpush.bf16.msrb.mxu2 %v10907_v50 }
 0x62b   :  { %v14528_v17 = vld [vmem:[#allocation10 + $0x11f4] sm:$0xf0]  ;;  %7931 = vmatmul.bf16.vlgmr.msrb.gmra.mxu1 %v15594_v35 }
 0x62c   :  { %v11898_v46 = vld [vmem:[#allocation10 + $0x13d8] sm:$0xf]  ;;  %v11643_v58 = vor.u32 %v14528_v17, %v11642_v43  ;;  %7956 = vmatpush.bf16.msrb.mxu3 %v11163_v54 }
 0x62d   :  { %v14592_v51 = vld [vmem:[#allocation10 + $0x13f4] sm:$0xf0]  ;;  %7944 = vmatmul.bf16.vlgmr.msrb.gmra.mxu2 %v15596_v12 }
 0x62e   :  { %v12154_v19 = vld [vmem:[#allocation10 + $0x15d8] sm:$0xf]  ;;  %v11899_v9 = vor.u32 %v14592_v51, %v11898_v46  ;;  %7962 = vmatpush.bf16.msra.mxu0 %v11643_v58 }
 0x62f   :  { %v14656_v47 = vld [vmem:[#allocation10 + $0x15f4] sm:$0xf0]  ;;  %7957 = vmatmul.bf16.vlgmr.msrb.gmra.mxu3 %v15598_v20 }
 0x630   :  { %v12410_v18 = vld [vmem:[#allocation10 + $0x17d8] sm:$0xf]  ;;  %v12155_v22 = vor.u32 %v14656_v47, %v12154_v19  ;;  %7975 = vmatpush.bf16.msra.mxu1 %v11899_v9  ;;  %v7724_v47 = vpop.f32.mrf.mxu1 }
 0x631   :  { %v14720_v49 = vld [vmem:[#allocation10 + $0x17f4] sm:$0xf0] }
 0x632   :  { %v11610_v40 = vld [vmem:[#allocation10 + $0x1198] sm:$0xf]  ;;  %v12411_v10 = vor.u32 %v14720_v49, %v12410_v18  ;;  %7988 = vmatpush.bf16.msra.mxu2 %v12155_v22  ;;  %v7712_v18 = vadd.f32 %v7711_v48, %v15782_v28 }
 0x633   :  { %v14520_v6 = vld [vmem:[#allocation10 + $0x11b4] sm:$0xf0] }
 0x634   :  { %v11866_v30 = vld [vmem:[#allocation10 + $0x1398] sm:$0xf]  ;;  %v11611_v42 = vor.u32 %v14520_v6, %v11610_v40  ;;  %8001 = vmatpush.bf16.msra.mxu3 %v12411_v10 }
 0x635   :  { %v14584_v57 = vld [vmem:[#allocation10 + $0x13b4] sm:$0xf0] }
 0x636   :  { %v12122_v21 = vld [vmem:[#allocation10 + $0x1598] sm:$0xf]  ;;  %v11867_v5 = vor.u32 %v14584_v57, %v11866_v30  ;;  %7963 = vmatpush.bf16.msra.mxu0 %v11611_v42  ;;  %v7725_v30 = vadd.f32 %v7724_v47, %v7712_v18 }
 0x637   :  { %v14648_v24 = vld [vmem:[#allocation10 + $0x15b4] sm:$0xf0] }
 0x638   :  { %v12378_v32 = vld [vmem:[#allocation10 + $0x1798] sm:$0xf]  ;;  %v12123_v31 = vor.u32 %v14648_v24, %v12122_v21  ;;  %7976 = vmatpush.bf16.msra.mxu1 %v11867_v5 }
 0x639   :  { %v14712_v36 = vld [vmem:[#allocation10 + $0x17b4] sm:$0xf0] }
 0x63a   :  { %v11578_v29 = vld [vmem:[#allocation10 + $0x1158] sm:$0xf]  ;;  %v12379_v8 = vor.u32 %v14712_v36, %v12378_v32  ;;  %7989 = vmatpush.bf16.msra.mxu2 %v12123_v31 }
 0x63b   :  { %v14512_v38 = vld [vmem:[#allocation10 + $0x1174] sm:$0xf0] }
 0x63c   :  { %v11834_v34 = vld [vmem:[#allocation10 + $0x1358] sm:$0xf]  ;;  %v11579_v4 = vor.u32 %v14512_v38, %v11578_v29  ;;  %8002 = vmatpush.bf16.msra.mxu3 %v12379_v8 }
 0x63d   :  { %v14576_v2 = vld [vmem:[#allocation10 + $0x1374] sm:$0xf0] }
 0x63e   :  { %v12090_v11 = vld [vmem:[#allocation10 + $0x1558] sm:$0xf]  ;;  %v11835_v25 = vor.u32 %v14576_v2, %v11834_v34  ;;  %7964 = vmatpush.bf16.msra.mxu0 %v11579_v4  ;;  %v7737_v34 = vpop.f32.mrf.mxu2  ;;  %v7750_v2 = vpop.f32.mrf.mxu3 }
 0x63f   :  { %v14640_v16 = vld [vmem:[#allocation10 + $0x1574] sm:$0xf0]  ;;  %v7713_v4 = vpop.f32.mrf.mxu0 }
 0x640   :  { %v12346_v37 = vld [vmem:[#allocation10 + $0x1758] sm:$0xf]  ;;  %v12091_v15 = vor.u32 %v14640_v16, %v12090_v11  ;;  %7977 = vmatpush.bf16.msra.mxu1 %v11835_v25  ;;  %v7726_v25 = vpop.f32.mrf.mxu1 }
 0x641   :  { %v14704_v39 = vld [vmem:[#allocation10 + $0x1774] sm:$0xf0] }
 0x642   :  { %v11546_v41 = vld [vmem:[#allocation10 + $0x1118] sm:$0xf]  ;;  %v12347_v45 = vor.u32 %v14704_v39, %v12346_v37  ;;  %7990 = vmatpush.bf16.msra.mxu2 %v12091_v15  ;;  %v7738_v39 = vadd.f32 %v7737_v34, %v7725_v30 }
 0x643   :  { %v14504_v14 = vld [vmem:[#allocation10 + $0x1134] sm:$0xf0] }
 0x644   :  { %v11802_v43 = vld [vmem:[#allocation10 + $0x1318] sm:$0xf]  ;;  %v11547_v49 = vor.u32 %v14504_v14, %v11546_v41  ;;  %8003 = vmatpush.bf16.msra.mxu3 %v12347_v45 }
 0x645   :  { %v14568_v17 = vld [vmem:[#allocation10 + $0x1334] sm:$0xf0] }
 0x646   :  { %v12058_v46 = vld [vmem:[#allocation10 + $0x1518] sm:$0xf]  ;;  %v11803_v50 = vor.u32 %v14568_v17, %v11802_v43  ;;  %7965 = vmatpush.bf16.msra.mxu0 %v11547_v49  ;;  %v15789_v43 = vadd.f32 %v7750_v2, %v7738_v39 }
 0x647   :  { %v14632_v51 = vld [vmem:[#allocation10 + $0x1534] sm:$0xf0] }
 0x648   :  { %v12314_v19 = vld [vmem:[#allocation10 + $0x1718] sm:$0xf]  ;;  %v12059_v9 = vor.u32 %v14632_v51, %v12058_v46  ;;  %7978 = vmatpush.bf16.msra.mxu1 %v11803_v50 }
 0x649   :  { %v14696_v27 = vld [vmem:[#allocation10 + $0x1734] sm:$0xf0] }
 0x64a   :  { %v11514_v54 = vld [vmem:[#allocation10 + $0x10d8] sm:$0xf]  ;;  %v12315_v40 = vor.u32 %v14696_v27, %v12314_v19  ;;  %7991 = vmatpush.bf16.msra.mxu2 %v12059_v9 }
 0x64b   :  { %v14496_v58 = vld [vmem:[#allocation10 + $0x10f4] sm:$0xf0] }
 0x64c   :  { %v11770_v6 = vld [vmem:[#allocation10 + $0x12d8] sm:$0xf]  ;;  %v11515_v32 = vor.u32 %v14496_v58, %v11514_v54  ;;  %8004 = vmatpush.bf16.msra.mxu3 %v12315_v40 }
 0x64d   :  { %v14560_v22 = vld [vmem:[#allocation10 + $0x12f4] sm:$0xf0] }
 0x64e   :  { %v12026_v10 = vld [vmem:[#allocation10 + $0x14d8] sm:$0xf]  ;;  %v11771_v36 = vor.u32 %v14560_v22, %v11770_v6  ;;  %7966 = vmatpush.bf16.msra.mxu0 %v11515_v32 }
 0x64f   :  { %v14624_v57 = vld [vmem:[#allocation10 + $0x14f4] sm:$0xf0] }
 0x650   :  { %v12282_v21 = vld [vmem:[#allocation10 + $0x16d8] sm:$0xf]  ;;  %v12027_v5 = vor.u32 %v14624_v57, %v12026_v10  ;;  %7979 = vmatpush.bf16.msra.mxu1 %v11771_v36 }
 0x651   :  { %v14688_v24 = vld [vmem:[#allocation10 + $0x16f4] sm:$0xf0] }
 0x652   :  { %v11482_v28 = vld [vmem:[#allocation10 + $0x1098] sm:$0xf]  ;;  %v12283_v29 = vor.u32 %v14688_v24, %v12282_v21  ;;  %7992 = vmatpush.bf16.msra.mxu2 %v12027_v5  ;;  %v7739_v21 = vpop.f32.mrf.mxu2  ;;  %v7752_v24 = vpop.f32.mrf.mxu3 }
 0x653   :  { %v14488_v42 = vld [vmem:[#allocation10 + $0x10b4] sm:$0xf0] }
 0x654   :  { %v11738_v38 = vld [vmem:[#allocation10 + $0x1298] sm:$0xf]  ;;  %v11483_v41 = vor.u32 %v14488_v42, %v11482_v28  ;;  %8005 = vmatpush.bf16.msra.mxu3 %v12283_v29 }
 0x655   :  { %v14552_v31 = vld [vmem:[#allocation10 + $0x12b4] sm:$0xf0] }
 0x656   :  { %v11994_v8 = vld [vmem:[#allocation10 + $0x1498] sm:$0xf]  ;;  %v11739_v14 = vor.u32 %v14552_v31, %v11738_v38  ;;  %7967 = vmatpush.bf16.msra.mxu0 %v11483_v41 }
 0x657   :  { %v14616_v11 = vld [vmem:[#allocation10 + $0x14b4] sm:$0xf0] }
 0x658   :  { %v12250_v16 = vld [vmem:[#allocation10 + $0x1698] sm:$0xf]  ;;  %v11995_v17 = vor.u32 %v14616_v11, %v11994_v8  ;;  %7980 = vmatpush.bf16.msra.mxu1 %v11739_v14 }
 0x659   :  { %v14680_v37 = vld [vmem:[#allocation10 + $0x16b4] sm:$0xf0] }
 0x65a   :  { %v11450_v15 = vld [vmem:[#allocation10 + $0x1058] sm:$0xf]  ;;  %v12251_v46 = vor.u32 %v14680_v37, %v12250_v16  ;;  %7993 = vmatpush.bf16.msra.mxu2 %v11995_v17 }
 0x65b   :  { %v14480_v45 = vld [vmem:[#allocation10 + $0x1074] sm:$0xf0] }
 0x65c   :  { %v11706_v51 = vld [vmem:[#allocation10 + $0x1258] sm:$0xf]  ;;  %v11451_v50 = vor.u32 %v14480_v45, %v11450_v15  ;;  %8006 = vmatpush.bf16.msra.mxu3 %v12251_v46 }
 0x65d   :  { %v14544_v19 = vld [vmem:[#allocation10 + $0x1274] sm:$0xf0] }
 0x65e   :  { %v11962_v27 = vld [vmem:[#allocation10 + $0x1458] sm:$0xf]  ;;  %v11707_v54 = vor.u32 %v14544_v19, %v11706_v51  ;;  %7968 = vmatpush.bf16.msra.mxu0 %v11451_v50 }
 0x65f   :  { %v14608_v48 = vld [vmem:[#allocation10 + $0x1474] sm:$0xf0] }
 0x660   :  { %v12218_v47 = vld [vmem:[#allocation10 + $0x1658] sm:$0xf]  ;;  %v11963_v6 = vor.u32 %v14608_v48, %v11962_v27  ;;  %7981 = vmatpush.bf16.msra.mxu1 %v11707_v54 }
 0x661   :  { %v14672_v18 = vld [vmem:[#allocation10 + $0x1674] sm:$0xf0] }
 0x662   :  { %v11418_v49 = vld [vmem:[#allocation10 + $0x1018] sm:$0xf]  ;;  %v12219_v22 = vor.u32 %v14672_v18, %v12218_v47  ;;  %7994 = vmatpush.bf16.msra.mxu2 %v11963_v6 }
 0x663   :  { %v14472_v58 = vld [vmem:[#allocation10 + $0x1034] sm:$0xf0] }
 0x664   :  { %v11674_v9 = vld [vmem:[#allocation10 + $0x1218] sm:$0xf]  ;;  %v11419_v38 = vor.u32 %v14472_v58, %v11418_v49  ;;  %8007 = vmatpush.bf16.msra.mxu3 %v12219_v22 }
 0x665   :  { %v14536_v40 = vld [vmem:[#allocation10 + $0x1234] sm:$0xf0] }
 0x666   :  { %v11930_v10 = vld [vmem:[#allocation10 + $0x1418] sm:$0xf]  ;;  %v11675_v31 = vor.u32 %v14536_v40, %v11674_v9  ;;  %7969 = vmatpush.bf16.msra.mxu0 %v11419_v38 }
 0x667   :  { %v14600_v30 = vld [vmem:[#allocation10 + $0x1434] sm:$0xf0] }
 0x668   :  { %v12186_v57 = vld [vmem:[#allocation10 + $0x1618] sm:$0xf]  ;;  %v11931_v11 = vor.u32 %v14600_v30, %v11930_v10  ;;  %7982 = vmatpush.bf16.msra.mxu1 %v11675_v31  ;;  %v7763_v31 = vpop.f32.mrf.mxu0 }
 0x669   :  { %v14664_v32 = vld [vmem:[#allocation10 + $0x1634] sm:$0xf0]  ;;  %7970 = vmatmul.bf16.vlgmr.msra.gmra.mxu0 %v15617_v55 }
 0x66a   :  { %v12666_v36 = vld [vmem:[#allocation10 + $0x19d8] sm:$0xf]  ;;  %v12187_v16 = vor.u32 %v14664_v32, %v12186_v57  ;;  %7995 = vmatpush.bf16.msra.mxu2 %v11931_v11 }
 0x66b   :  { %v14784_v28 = vld [vmem:[#allocation10 + $0x19f4] sm:$0xf0]  ;;  %7983 = vmatmul.bf16.vlgmr.msra.gmra.mxu1 %v15619_v60 }
 0x66c   :  { %v12922_v42 = vld [vmem:[#allocation10 + $0x1bd8] sm:$0xf]  ;;  %v12667_v37 = vor.u32 %v14784_v28, %v12666_v36  ;;  %8008 = vmatpush.bf16.msra.mxu3 %v12187_v16 }
 0x66d   :  { %v14848_v5 = vld [vmem:[#allocation10 + $0x1bf4] sm:$0xf0]  ;;  %7996 = vmatmul.bf16.vlgmr.msra.gmra.mxu2 %v15621_v13 }
 0x66e   :  { %v13178_v29 = vld [vmem:[#allocation10 + $0x1dd8] sm:$0xf]  ;;  %v12923_v39 = vor.u32 %v14848_v5, %v12922_v42  ;;  %8014 = vmatpush.bf16.msrb.mxu0 %v12667_v37 }
 0x66f   :  { %v14912_v8 = vld [vmem:[#allocation10 + $0x1df4] sm:$0xf0]  ;;  %8009 = vmatmul.bf16.vlgmr.msra.gmra.mxu3 %v15623_v61 }
 0x670   :  { %v13434_v34 = vld [vmem:[#allocation10 + $0x1fd8] sm:$0xf]  ;;  %v13179_v41 = vor.u32 %v14912_v8, %v13178_v29  ;;  %8027 = vmatpush.bf16.msrb.mxu1 %v12923_v39  ;;  %v7776_v8 = vpop.f32.mrf.mxu1 }
 0x671   :  { %v14976_v2 = vld [vmem:[#allocation10 + $0x1ff4] sm:$0xf0] }
 0x672   :  { %v12634_v4 = vld [vmem:[#allocation10 + $0x1998] sm:$0xf]  ;;  %v13435_v14 = vor.u32 %v14976_v2, %v13434_v34  ;;  %8040 = vmatpush.bf16.msrb.mxu2 %v13179_v41  ;;  %v7764_v34 = vadd.f32 %v7763_v31, %v15789_v43 }
 0x673   :  { %v14776_v25 = vld [vmem:[#allocation10 + $0x19b4] sm:$0xf0] }
 0x674   :  { %v12890_v15 = vld [vmem:[#allocation10 + $0x1b98] sm:$0xf]  ;;  %v12635_v27 = vor.u32 %v14776_v25, %v12634_v4  ;;  %8053 = vmatpush.bf16.msrb.mxu3 %v13435_v14 }
 0x675   :  { %v14840_v45 = vld [vmem:[#allocation10 + $0x1bb4] sm:$0xf0] }
 0x676   :  { %v13146_v17 = vld [vmem:[#allocation10 + $0x1d98] sm:$0xf]  ;;  %v12891_v48 = vor.u32 %v14840_v45, %v12890_v15  ;;  %8015 = vmatpush.bf16.msrb.mxu0 %v12635_v27  ;;  %v7777_v15 = vadd.f32 %v7776_v8, %v7764_v34 }
 0x677   :  { %v14904_v46 = vld [vmem:[#allocation10 + $0x1db4] sm:$0xf0] }
 0x678   :  { %v13402_v51 = vld [vmem:[#allocation10 + $0x1f98] sm:$0xf]  ;;  %v13147_v49 = vor.u32 %v14904_v46, %v13146_v17  ;;  %8028 = vmatpush.bf16.msrb.mxu1 %v12891_v48 }
 0x679   :  { %v14968_v19 = vld [vmem:[#allocation10 + $0x1fb4] sm:$0xf0] }
 0x67a   :  { %v12602_v47 = vld [vmem:[#allocation10 + $0x1958] sm:$0xf]  ;;  %v13403_v50 = vor.u32 %v14968_v19, %v13402_v51  ;;  %8041 = vmatpush.bf16.msrb.mxu2 %v13147_v49 }
 0x67b   :  { %v14768_v18 = vld [vmem:[#allocation10 + $0x1974] sm:$0xf0] }
 0x67c   :  { %v12858_v54 = vld [vmem:[#allocation10 + $0x1b58] sm:$0xf]  ;;  %v12603_v10 = vor.u32 %v14768_v18, %v12602_v47  ;;  %8054 = vmatpush.bf16.msrb.mxu3 %v13403_v50 }
 0x67d   :  { %v14832_v58 = vld [vmem:[#allocation10 + $0x1b74] sm:$0xf0] }
 0x67e   :  { %v13114_v9 = vld [vmem:[#allocation10 + $0x1d58] sm:$0xf]  ;;  %v12859_v30 = vor.u32 %v14832_v58, %v12858_v54  ;;  %8016 = vmatpush.bf16.msrb.mxu0 %v12603_v10  ;;  %v7789_v54 = vpop.f32.mrf.mxu2  ;;  %v7802_v58 = vpop.f32.mrf.mxu3 }
 0x67f   :  { %v14896_v40 = vld [vmem:[#allocation10 + $0x1d74] sm:$0xf0]  ;;  %v7765_v10 = vpop.f32.mrf.mxu0 }
 0x680   :  { %v13370_v6 = vld [vmem:[#allocation10 + $0x1f58] sm:$0xf]  ;;  %v13115_v24 = vor.u32 %v14896_v40, %v13114_v9  ;;  %8029 = vmatpush.bf16.msrb.mxu1 %v12859_v30  ;;  %v7778_v30 = vpop.f32.mrf.mxu1  ;;  %v14004_v10 = vld [vmem:[#allocation10 + $0x19c] sm:$0xf] }
 0x681   :  { %v14960_v22 = vld [vmem:[#allocation10 + $0x1f74] sm:$0xf0]  ;;  %v9564_v30 = vld [vmem:[#allocation10 + $0x1b8] sm:$0xf0] }
 0x682   :  { %v12570_v57 = vld [vmem:[#allocation10 + $0x1918] sm:$0xf]  ;;  %v13371_v32 = vor.u32 %v14960_v22, %v13370_v6  ;;  %8042 = vmatpush.bf16.msrb.mxu2 %v13115_v24  ;;  %v7790_v22 = vadd.f32 %v7789_v54, %v7777_v15  ;;  %v14204_v54 = vld [vmem:[#allocation10 + $0x7dc] sm:$0xf] }
 0x683   :  { %v14760_v21 = vld [vmem:[#allocation10 + $0x1934] sm:$0xf0] }
 0x684   :  { %v12826_v36 = vld [vmem:[#allocation10 + $0x1b18] sm:$0xf]  ;;  %v12571_v2 = vor.u32 %v14760_v21, %v12570_v57  ;;  %8055 = vmatpush.bf16.msrb.mxu3 %v13371_v32 }
 0x685   :  { %v14824_v28 = vld [vmem:[#allocation10 + $0x1b34] sm:$0xf0] }
 0x686   :  { %v13082_v42 = vld [vmem:[#allocation10 + $0x1d18] sm:$0xf]  ;;  %v12827_v11 = vor.u32 %v14824_v28, %v12826_v36  ;;  %8017 = vmatpush.bf16.msrb.mxu0 %v12571_v2  ;;  %v15796_v36 = vadd.f32 %v7802_v58, %v7790_v22  ;;  %v10364_v58 = vld [vmem:[#allocation10 + $0x7f8] sm:$0xf0] }
 0x687   :  { %v14888_v5 = vld [vmem:[#allocation10 + $0x1d34] sm:$0xf0] }
 0x688   :  { %v13338_v29 = vld [vmem:[#allocation10 + $0x1f18] sm:$0xf]  ;;  %v13083_v39 = vor.u32 %v14888_v5, %v13082_v42  ;;  %8030 = vmatpush.bf16.msrb.mxu1 %v12827_v11 }
 0x689   :  { %v14952_v38 = vld [vmem:[#allocation10 + $0x1f34] sm:$0xf0] }
 0x68a   :  { %v12538_v16 = vld [vmem:[#allocation10 + $0x18d8] sm:$0xf]  ;;  %v13339_v4 = vor.u32 %v14952_v38, %v13338_v29  ;;  %8043 = vmatpush.bf16.msrb.mxu2 %v13083_v39 }
 0x68b   :  { %v14752_v37 = vld [vmem:[#allocation10 + $0x18f4] sm:$0xf0] }
 0x68c   :  { %v12794_v25 = vld [vmem:[#allocation10 + $0x1ad8] sm:$0xf]  ;;  %v12539_v51 = vor.u32 %v14752_v37, %v12538_v16  ;;  %8056 = vmatpush.bf16.msrb.mxu3 %v13339_v4 }
 0x68d   :  { %v14816_v41 = vld [vmem:[#allocation10 + $0x1af4] sm:$0xf0] }
 0x68e   :  { %v13050_v14 = vld [vmem:[#allocation10 + $0x1cd8] sm:$0xf]  ;;  %v12795_v19 = vor.u32 %v14816_v41, %v12794_v25  ;;  %8018 = vmatpush.bf16.msrb.mxu0 %v12539_v51 }
 0x68f   :  { %v14880_v45 = vld [vmem:[#allocation10 + $0x1cf4] sm:$0xf0] }
 0x690   :  { %v13306_v17 = vld [vmem:[#allocation10 + $0x1ed8] sm:$0xf]  ;;  %v13051_v48 = vor.u32 %v14880_v45, %v13050_v14  ;;  %8031 = vmatpush.bf16.msrb.mxu1 %v12795_v19  ;;  %v14012_v19 = vld [vmem:[#allocation10 + $0x1dc] sm:$0xf] }
 0x691   :  { %v14944_v46 = vld [vmem:[#allocation10 + $0x1ef4] sm:$0xf0] }
 0x692   :  { %v12506_v43 = vld [vmem:[#allocation10 + $0x1898] sm:$0xf]  ;;  %v13307_v47 = vor.u32 %v14944_v46, %v13306_v17  ;;  %8044 = vmatpush.bf16.msrb.mxu2 %v13051_v48  ;;  %v7791_v17 = vpop.f32.mrf.mxu2  ;;  %v7804_v46 = vpop.f32.mrf.mxu3  ;;  %v9852_v48 = vld [vmem:[#allocation10 + $0x3f8] sm:$0xf0] }
 0x693   :  { %v14744_v27 = vld [vmem:[#allocation10 + $0x18b4] sm:$0xf0]  ;;  %v9500_v17 = vld [vmem:[#allocation10 + $0x138] sm:$0xf0] }
 0x694   :  { %v12762_v18 = vld [vmem:[#allocation10 + $0x1a98] sm:$0xf]  ;;  %v12507_v57 = vor.u32 %v14744_v27, %v12506_v43  ;;  %8057 = vmatpush.bf16.msrb.mxu3 %v13307_v47  ;;  %v9596_v43 = vld [vmem:[#allocation10 + $0x1f8] sm:$0xf0] }
 0x695   :  { %v14808_v49 = vld [vmem:[#allocation10 + $0x1ab4] sm:$0xf0]  ;;  %v14076_v27 = vld [vmem:[#allocation10 + $0x3dc] sm:$0xf] }
 0x696   :  { %v13018_v50 = vld [vmem:[#allocation10 + $0x1c98] sm:$0xf]  ;;  %v12763_v21 = vor.u32 %v14808_v49, %v12762_v18  ;;  %8019 = vmatpush.bf16.msrb.mxu0 %v12507_v57  ;;  %v14140_v47 = vld [vmem:[#allocation10 + $0x5dc] sm:$0xf]  ;;  %v9855_v22 = vor.u32 %v14076_v27, %v9852_v48 }
 0x697   :  { %v14872_v9 = vld [vmem:[#allocation10 + $0x1cb4] sm:$0xf0]  ;;  %v14116_v27 = vld [vmem:[#allocation10 + $0x51c] sm:$0xf] }
 0x698   :  { %v13274_v40 = vld [vmem:[#allocation10 + $0x1e98] sm:$0xf]  ;;  %v13019_v28 = vor.u32 %v14872_v9, %v13018_v50  ;;  %8032 = vmatpush.bf16.msrb.mxu1 %v12763_v21  ;;  %v10108_v50 = vld [vmem:[#allocation10 + $0x5f8] sm:$0xf0]  ;;  %v10367_v21 = vor.u32 %v14204_v54, %v10364_v58 }
 0x699   :  { %v14936_v6 = vld [vmem:[#allocation10 + $0x1eb4] sm:$0xf0]  ;;  %v10111_v57 = vor.u32 %v14140_v47, %v10108_v50  ;;  %v10012_v48 = vld [vmem:[#allocation10 + $0x538] sm:$0xf0]  ;;  %v7828_v50 = vpop.f32.mrf.mxu1 }
 0x69a   :  { %v12474_v24 = vld [vmem:[#allocation10 + $0x1858] sm:$0xf]  ;;  %v13275_v42 = vor.u32 %v14936_v6, %v13274_v40  ;;  %8045 = vmatpush.bf16.msrb.mxu2 %v13019_v28  ;;  %v9599_v6 = vor.u32 %v14012_v19, %v9596_v43  ;;  %v14132_v28 = vld [vmem:[#allocation10 + $0x59c] sm:$0xf] }
 0x69b   :  { %v14736_v32 = vld [vmem:[#allocation10 + $0x1874] sm:$0xf0]  ;;  %v14052_v19 = vld [vmem:[#allocation10 + $0x31c] sm:$0xf] }
 0x69c   :  { %v12730_v5 = vld [vmem:[#allocation10 + $0x1a58] sm:$0xf]  ;;  %v12475_v11 = vor.u32 %v14736_v32, %v12474_v24  ;;  %8058 = vmatpush.bf16.msrb.mxu3 %v13275_v42  ;;  %v14068_v24 = vld [vmem:[#allocation10 + $0x39c] sm:$0xf] }
 0x69d   :  { %v14800_v29 = vld [vmem:[#allocation10 + $0x1a74] sm:$0xf0]  ;;  %v9820_v32 = vld [vmem:[#allocation10 + $0x3b8] sm:$0xf0] }
 0x69e   :  { %v12986_v38 = vld [vmem:[#allocation10 + $0x1c58] sm:$0xf]  ;;  %v12731_v16 = vor.u32 %v14800_v29, %v12730_v5  ;;  %8020 = vmatpush.bf16.msrb.mxu0 %v12475_v11  ;;  %v10076_v42 = vld [vmem:[#allocation10 + $0x5b8] sm:$0xf0] }
 0x69f   :  { %v14864_v31 = vld [vmem:[#allocation10 + $0x1c74] sm:$0xf0]  ;;  %v14196_v5 = vld [vmem:[#allocation10 + $0x79c] sm:$0xf] }
 0x6a0   :  { %v13242_v8 = vld [vmem:[#allocation10 + $0x1e58] sm:$0xf]  ;;  %v12987_v25 = vor.u32 %v14864_v31, %v12986_v38  ;;  %8033 = vmatpush.bf16.msrb.mxu1 %v12731_v16  ;;  %v10332_v29 = vld [vmem:[#allocation10 + $0x7b8] sm:$0xf0]  ;;  %v9567_v38 = vor.u32 %v14004_v10, %v9564_v30  ;;  %v9823_v31 = vor.u32 %v14068_v24, %v9820_v32 }
 0x6a1   :  { %v14928_v34 = vld [vmem:[#allocation10 + $0x1e74] sm:$0xf0]  ;;  %v10335_v11 = vor.u32 %v14196_v5, %v10332_v29  ;;  %v14060_v16 = vld [vmem:[#allocation10 + $0x35c] sm:$0xf] }
 0x6a2   :  { %v12442_v2 = vld [vmem:[#allocation10 + $0x1818] sm:$0xf]  ;;  %v13243_v41 = vor.u32 %v14928_v34, %v13242_v8  ;;  %8046 = vmatpush.bf16.msrb.mxu2 %v12987_v25  ;;  %v13996_v8 = vld [vmem:[#allocation10 + $0x15c] sm:$0xf] }
 0x6a3   :  { %v14728_v37 = vld [vmem:[#allocation10 + $0x1834] sm:$0xf0]  ;;  %v9532_v34 = vld [vmem:[#allocation10 + $0x178] sm:$0xf0] }
 0x6a4   :  { %v12698_v39 = vld [vmem:[#allocation10 + $0x1a18] sm:$0xf]  ;;  %v12443_v18 = vor.u32 %v14728_v37, %v12442_v2  ;;  %8059 = vmatpush.bf16.msrb.mxu3 %v13243_v41  ;;  %v10079_v2 = vor.u32 %v14132_v28, %v10076_v42  ;;  %v9788_v37 = vld [vmem:[#allocation10 + $0x378] sm:$0xf0] }
 0x6a5   :  { %v14792_v4 = vld [vmem:[#allocation10 + $0x1a34] sm:$0xf0]  ;;  %v14188_v25 = vld [vmem:[#allocation10 + $0x75c] sm:$0xf] }
 0x6a6   :  { %v12954_v14 = vld [vmem:[#allocation10 + $0x1c18] sm:$0xf]  ;;  %v12699_v49 = vor.u32 %v14792_v4, %v12698_v39  ;;  %8021 = vmatpush.bf16.msrb.mxu0 %v12443_v18  ;;  %v14124_v39 = vld [vmem:[#allocation10 + $0x55c] sm:$0xf] }
 0x6a7   :  { %v14856_v15 = vld [vmem:[#allocation10 + $0x1c34] sm:$0xf0]  ;;  %v10044_v4 = vld [vmem:[#allocation10 + $0x578] sm:$0xf0] }
 0x6a8   :  { %v13210_v45 = vld [vmem:[#allocation10 + $0x1e18] sm:$0xf]  ;;  %v12955_v9 = vor.u32 %v14856_v15, %v12954_v14  ;;  %8034 = vmatpush.bf16.msrb.mxu1 %v12699_v49  ;;  %v10300_v41 = vld [vmem:[#allocation10 + $0x778] sm:$0xf0]  ;;  %v9535_v14 = vor.u32 %v13996_v8, %v9532_v34  ;;  %v9791_v15 = vor.u32 %v14060_v16, %v9788_v37  ;;  %v10047_v46 = vor.u32 %v14124_v39, %v10044_v4  ;;  %v7815_v49 = vpop.f32.mrf.mxu0  ;;  %v7841_v16 = vpop.f32.mrf.mxu2 }
 0x6a9   :  { %v14920_v51 = vld [vmem:[#allocation10 + $0x1e34] sm:$0xf0]  ;;  %8022 = vmatmul.bf16.vlgmr.msrb.gmra.mxu0 %v15633_v1  ;;  %v9756_v43 = vld [vmem:[#allocation10 + $0x338] sm:$0xf0]  ;;  %v7816_v54 = vadd.f32 %v7815_v49, %v15796_v36  ;;  %v7854_v37 = vpop.f32.mrf.mxu3 }
 0x6aa   :  { %v13211_v40 = vor.u32 %v14920_v51, %v13210_v45  ;;  %8047 = vmatpush.bf16.msrb.mxu2 %v12955_v9  ;;  %8066 = vmatpush.bf16.msra.mxu0 %v9599_v6  ;;  %v13988_v45 = vld [vmem:[#allocation10 + $0x11c] sm:$0xf]  ;;  %v10303_v51 = vor.u32 %v14188_v25, %v10300_v41  ;;  %v9759_v9 = vor.u32 %v14052_v19, %v9756_v43 }
 0x6ab   :  { %8035 = vmatmul.bf16.vlgmr.msrb.gmra.mxu1 %v15635_v63  ;;  %v14180_v47 = vld [vmem:[#allocation10 + $0x71c] sm:$0xf]  ;;  %v9503_v58 = vor.u32 %v13988_v45, %v9500_v17  ;;  %v7829_v24 = vadd.f32 %v7828_v50, %v7816_v54 }
 0x6ac   :  { %8060 = vmatpush.bf16.msrb.mxu3 %v13211_v40  ;;  %8079 = vmatpush.bf16.msra.mxu1 %v9855_v22  ;;  %v10268_v18 = vld [vmem:[#allocation10 + $0x738] sm:$0xf0]  ;;  %v10015_v22 = vor.u32 %v14116_v27, %v10012_v48 }
 0x6ad   :  { %8048 = vmatmul.bf16.vlgmr.msrb.gmra.mxu2 %v15637_v0  ;;  %v13980_v40 = vld [vmem:[#allocation10 + $0xdc] sm:$0xf]  ;;  %v10271_v10 = vor.u32 %v14180_v47, %v10268_v18  ;;  %v7842_v41 = vadd.f32 %v7841_v16, %v7829_v24 }
 0x6ae   :  { %8092 = vmatpush.bf16.msra.mxu2 %v10111_v57  ;;  %8067 = vmatpush.bf16.msra.mxu0 %v9567_v38  ;;  %v9468_v6 = vld [vmem:[#allocation10 + $0xf8] sm:$0xf0] }
 0x6af   :  { %8061 = vmatmul.bf16.vlgmr.msrb.gmra.mxu3 %v15639_v23  ;;  %v14044_v30 = vld [vmem:[#allocation10 + $0x2dc] sm:$0xf]  ;;  %v9471_v5 = vor.u32 %v13980_v40, %v9468_v6  ;;  %v15803_v19 = vadd.f32 %v7854_v37, %v7842_v41 }
 0x6b0   :  { %8105 = vmatpush.bf16.msra.mxu3 %v10367_v21  ;;  %8080 = vmatpush.bf16.msra.mxu1 %v9823_v31  ;;  %v9724_v57 = vld [vmem:[#allocation10 + $0x2f8] sm:$0xf0] }
 0x6b1   :  { %v14108_v21 = vld [vmem:[#allocation10 + $0x4dc] sm:$0xf]  ;;  %v9727_v29 = vor.u32 %v14044_v30, %v9724_v57 }
 0x6b2   :  { %8093 = vmatpush.bf16.msra.mxu2 %v10079_v2  ;;  %8068 = vmatpush.bf16.msra.mxu0 %v9535_v14  ;;  %v9980_v32 = vld [vmem:[#allocation10 + $0x4f8] sm:$0xf0]  ;;  %v7817_v14 = vpop.f32.mrf.mxu0 }
 0x6b3   :  { %v14172_v28 = vld [vmem:[#allocation10 + $0x6dc] sm:$0xf]  ;;  %v9983_v31 = vor.u32 %v14108_v21, %v9980_v32 }
 0x6b4   :  { %8106 = vmatpush.bf16.msra.mxu3 %v10335_v11  ;;  %8081 = vmatpush.bf16.msra.mxu1 %v9791_v15  ;;  %v10236_v42 = vld [vmem:[#allocation10 + $0x6f8] sm:$0xf0]  ;;  %v7830_v15 = vpop.f32.mrf.mxu1 }
 0x6b5   :  { %v13972_v36 = vld [vmem:[#allocation10 + $0x9c] sm:$0xf]  ;;  %v10239_v8 = vor.u32 %v14172_v28, %v10236_v42  ;;  %v7843_v28 = vpop.f32.mrf.mxu2  ;;  %v7856_v42 = vpop.f32.mrf.mxu3 }
 0x6b6   :  { %8094 = vmatpush.bf16.msra.mxu2 %v10047_v46  ;;  %8069 = vmatpush.bf16.msra.mxu0 %v9503_v58  ;;  %v9436_v38 = vld [vmem:[#allocation10 + $0xb8] sm:$0xf0] }
 0x6b7   :  { %v14036_v34 = vld [vmem:[#allocation10 + $0x29c] sm:$0xf]  ;;  %v9439_v45 = vor.u32 %v13972_v36, %v9436_v38 }
 0x6b8   :  { %8107 = vmatpush.bf16.msra.mxu3 %v10303_v51  ;;  %8082 = vmatpush.bf16.msra.mxu1 %v9759_v9  ;;  %v9692_v2 = vld [vmem:[#allocation10 + $0x2b8] sm:$0xf0] }
 0x6b9   :  { %v14100_v11 = vld [vmem:[#allocation10 + $0x49c] sm:$0xf]  ;;  %v9695_v17 = vor.u32 %v14036_v34, %v9692_v2 }
 0x6ba   :  { %8095 = vmatpush.bf16.msra.mxu2 %v10015_v22  ;;  %v9948_v39 = vld [vmem:[#allocation10 + $0x4b8] sm:$0xf0]  ;;  %8070 = vmatpush.bf16.msra.mxu0 %v9471_v5 }
 0x6bb   :  { %v14164_v4 = vld [vmem:[#allocation10 + $0x69c] sm:$0xf]  ;;  %v9951_v43 = vor.u32 %v14100_v11, %v9948_v39 }
 0x6bc   :  { %8108 = vmatpush.bf16.msra.mxu3 %v10271_v10  ;;  %v10204_v25 = vld [vmem:[#allocation10 + $0x6b8] sm:$0xf0]  ;;  %8083 = vmatpush.bf16.msra.mxu1 %v9727_v29 }
 0x6bd   :  { %v13964_v46 = vld [vmem:[#allocation10 + $0x5c] sm:$0xf]  ;;  %v10207_v27 = vor.u32 %v14164_v4, %v10204_v25 }
 0x6be   :  { %v9404_v51 = vld [vmem:[#allocation10 + $0x78] sm:$0xf0]  ;;  %8096 = vmatpush.bf16.msra.mxu2 %v9983_v31  ;;  %8071 = vmatpush.bf16.msra.mxu0 %v9439_v45 }
 0x6bf   :  { %v14028_v48 = vld [vmem:[#allocation10 + $0x25c] sm:$0xf]  ;;  %v9407_v9 = vor.u32 %v13964_v46, %v9404_v51 }
 0x6c0   :  { %8109 = vmatpush.bf16.msra.mxu3 %v10239_v8  ;;  %v9660_v47 = vld [vmem:[#allocation10 + $0x278] sm:$0xf0]  ;;  %8084 = vmatpush.bf16.msra.mxu1 %v9695_v17 }
 0x6c1   :  { %v14092_v18 = vld [vmem:[#allocation10 + $0x45c] sm:$0xf]  ;;  %v9663_v40 = vor.u32 %v14028_v48, %v9660_v47 }
 0x6c2   :  { %v9916_v49 = vld [vmem:[#allocation10 + $0x478] sm:$0xf0]  ;;  %8097 = vmatpush.bf16.msra.mxu2 %v9951_v43  ;;  %8072 = vmatpush.bf16.msra.mxu0 %v9407_v9 }
 0x6c3   :  { %v14156_v50 = vld [vmem:[#allocation10 + $0x65c] sm:$0xf]  ;;  %v9919_v30 = vor.u32 %v14092_v18, %v9916_v49 }
 0x6c4   :  { %v10172_v54 = vld [vmem:[#allocation10 + $0x678] sm:$0xf0]  ;;  %8110 = vmatpush.bf16.msra.mxu3 %v10207_v27  ;;  %8085 = vmatpush.bf16.msra.mxu1 %v9663_v40 }
 0x6c5   :  { %v13956_v58 = vld [vmem:[#allocation10 + $0x1c] sm:$0xf]  ;;  %v10175_v57 = vor.u32 %v14156_v50, %v10172_v54 }
 0x6c6   :  { %v9372_v6 = vld [vmem:[#allocation10 + $0x38] sm:$0xf0]  ;;  %8098 = vmatpush.bf16.msra.mxu2 %v9919_v30 }
 0x6c7   :  { %v14020_v22 = vld [vmem:[#allocation10 + $0x21c] sm:$0xf]  ;;  %v9375_v34 = vor.u32 %v13956_v58, %v9372_v6 }
 0x6c8   :  { %v9628_v10 = vld [vmem:[#allocation10 + $0x238] sm:$0xf0]  ;;  %8111 = vmatpush.bf16.msra.mxu3 %v10175_v57 }
 0x6c9   :  { %v14084_v21 = vld [vmem:[#allocation10 + $0x41c] sm:$0xf]  ;;  %v9631_v2 = vor.u32 %v14020_v22, %v9628_v10  ;;  %8073 = vmatpush.bf16.msra.mxu0 %v9375_v34  ;;  %v7867_v34 = vpop.f32.mrf.mxu0 }
 0x6ca   :  { %v9884_v24 = vld [vmem:[#allocation10 + $0x438] sm:$0xf0] }
 0x6cb   :  { %v14148_v32 = vld [vmem:[#allocation10 + $0x61c] sm:$0xf]  ;;  %v9887_v39 = vor.u32 %v14084_v21, %v9884_v24  ;;  %8086 = vmatpush.bf16.msra.mxu1 %v9631_v2 }
 0x6cc   :  { %v10140_v5 = vld [vmem:[#allocation10 + $0x638] sm:$0xf0]  ;;  %8074 = vmatmul.bf16.vlgmr.msra.gmra.mxu0 %v15550_v52 }
 0x6cd   :  { %v14268_v29 = vld [vmem:[#allocation10 + $0x9dc] sm:$0xf]  ;;  %v10143_v4 = vor.u32 %v14148_v32, %v10140_v5  ;;  %8099 = vmatpush.bf16.msra.mxu2 %v9887_v39  ;;  %v15138_v32 = vld [vmem:[#allocation11] sm:$0xff] }
 0x6ce   :  { %v10620_v36 = vld [vmem:[#allocation10 + $0x9f8] sm:$0xf0]  ;;  %8087 = vmatmul.bf16.vlgmr.msra.gmra.mxu1 %v15552_v53  ;;  %v1424_v28 = vperm.slane %v15138_v32, 6 }
 0x6cf   :  { %v14332_v38 = vld [vmem:[#allocation10 + $0xbdc] sm:$0xf]  ;;  %v10623_v25 = vor.u32 %v14268_v29, %v10620_v36  ;;  %8112 = vmatpush.bf16.msra.mxu3 %v10143_v4 }
 0x6d0   :  { %v10876_v31 = vld [vmem:[#allocation10 + $0xbf8] sm:$0xf0]  ;;  %8100 = vmatmul.bf16.vlgmr.msra.gmra.mxu2 %v15554_v26  ;;  %v7868_v2 = vadd.f32 %v7867_v34, %v1424_v28 }
 0x6d1   :  { %v14396_v8 = vld [vmem:[#allocation10 + $0xddc] sm:$0xf]  ;;  %v10879_v41 = vor.u32 %v14332_v38, %v10876_v31  ;;  %8118 = vmatpush.bf16.msrb.mxu0 %v10623_v25 }
 0x6d2   :  { %v11132_v11 = vld [vmem:[#allocation10 + $0xdf8] sm:$0xf0]  ;;  %8113 = vmatmul.bf16.vlgmr.msra.gmra.mxu3 %v15556_v56  ;;  %v7880_v56 = vpop.f32.mrf.mxu1 }
 0x6d3   :  { %v14460_v16 = vld [vmem:[#allocation10 + $0xfdc] sm:$0xf]  ;;  %v11135_v45 = vor.u32 %v14396_v8, %v11132_v11  ;;  %8131 = vmatpush.bf16.msrb.mxu1 %v10879_v41 }
 0x6d4   :  { %v11388_v37 = vld [vmem:[#allocation10 + $0xff8] sm:$0xf0] }
 0x6d5   :  { %v14260_v14 = vld [vmem:[#allocation10 + $0x99c] sm:$0xf]  ;;  %v11391_v17 = vor.u32 %v14460_v16, %v11388_v37  ;;  %8144 = vmatpush.bf16.msrb.mxu2 %v11135_v45  ;;  %v7881_v45 = vadd.f32 %v7880_v56, %v7868_v2 }
 0x6d6   :  { %v10588_v15 = vld [vmem:[#allocation10 + $0x9b8] sm:$0xf0] }
 0x6d7   :  { %v14324_v46 = vld [vmem:[#allocation10 + $0xb9c] sm:$0xf]  ;;  %v10591_v18 = vor.u32 %v14260_v14, %v10588_v15  ;;  %8157 = vmatpush.bf16.msrb.mxu3 %v11391_v17 }
 0x6d8   :  { %v10844_v51 = vld [vmem:[#allocation10 + $0xbb8] sm:$0xf0] }
 0x6d9   :  { %v14388_v43 = vld [vmem:[#allocation10 + $0xd9c] sm:$0xf]  ;;  %v10847_v49 = vor.u32 %v14324_v46, %v10844_v51  ;;  %8119 = vmatpush.bf16.msrb.mxu0 %v10591_v18 }
 0x6da   :  { %v11100_v27 = vld [vmem:[#allocation10 + $0xdb8] sm:$0xf0] }
 0x6db   :  { %v14452_v48 = vld [vmem:[#allocation10 + $0xf9c] sm:$0xf]  ;;  %v11103_v58 = vor.u32 %v14388_v43, %v11100_v27  ;;  %8132 = vmatpush.bf16.msrb.mxu1 %v10847_v49 }
 0x6dc   :  { %v11356_v47 = vld [vmem:[#allocation10 + $0xfb8] sm:$0xf0] }
 0x6dd   :  { %v14252_v50 = vld [vmem:[#allocation10 + $0x95c] sm:$0xf]  ;;  %v11359_v9 = vor.u32 %v14452_v48, %v11356_v47  ;;  %8145 = vmatpush.bf16.msrb.mxu2 %v11103_v58 }
 0x6de   :  { %v10556_v54 = vld [vmem:[#allocation10 + $0x978] sm:$0xf0] }
 0x6df   :  { %v14316_v40 = vld [vmem:[#allocation10 + $0xb5c] sm:$0xf]  ;;  %v10559_v21 = vor.u32 %v14252_v50, %v10556_v54  ;;  %8158 = vmatpush.bf16.msrb.mxu3 %v11359_v9  ;;  %v7893_v9 = vpop.f32.mrf.mxu2 }
 0x6e0   :  { %v10812_v6 = vld [vmem:[#allocation10 + $0xb78] sm:$0xf0] }
 0x6e1   :  { %v14380_v22 = vld [vmem:[#allocation10 + $0xd5c] sm:$0xf]  ;;  %v10815_v24 = vor.u32 %v14316_v40, %v10812_v6  ;;  %8120 = vmatpush.bf16.msrb.mxu0 %v10559_v21  ;;  %v7906_v40 = vpop.f32.mrf.mxu3  ;;  %v7882_v21 = vpop.f32.mrf.mxu1 }
 0x6e2   :  { %v11068_v10 = vld [vmem:[#allocation10 + $0xd78] sm:$0xf0] }
 0x6e3   :  { %v14444_v30 = vld [vmem:[#allocation10 + $0xf5c] sm:$0xf]  ;;  %v11071_v52 = vor.u32 %v14380_v22, %v11068_v10  ;;  %8133 = vmatpush.bf16.msrb.mxu1 %v10815_v24 }
 0x6e4   :  { %v11324_v57 = vld [vmem:[#allocation10 + $0xf78] sm:$0xf0] }
 0x6e5   :  { %v14244_v42 = vld [vmem:[#allocation10 + $0x91c] sm:$0xf]  ;;  %v11327_v29 = vor.u32 %v14444_v30, %v11324_v57  ;;  %8146 = vmatpush.bf16.msrb.mxu2 %v11071_v52  ;;  %v7894_v30 = vadd.f32 %v7893_v9, %v7881_v45  ;;  %v7869_v57 = vpop.f32.mrf.mxu0 }
 0x6e6   :  { %v10524_v5 = vld [vmem:[#allocation10 + $0x938] sm:$0xf0] }
 0x6e7   :  { %v14308_v53 = vld [vmem:[#allocation10 + $0xb1c] sm:$0xf]  ;;  %v10527_v11 = vor.u32 %v14244_v42, %v10524_v5  ;;  %8159 = vmatpush.bf16.msrb.mxu3 %v11327_v29  ;;  %v15809_v5 = vadd.f32 %v7906_v40, %v7894_v30 }
 0x6e8   :  { %v10780_v36 = vld [vmem:[#allocation10 + $0xb38] sm:$0xf0] }
 0x6e9   :  { %v14372_v38 = vld [vmem:[#allocation10 + $0xd1c] sm:$0xf]  ;;  %v10783_v16 = vor.u32 %v14308_v53, %v10780_v36  ;;  %8121 = vmatpush.bf16.msrb.mxu0 %v10527_v11  ;;  %v7908_v45 = vpop.f32.mrf.mxu3 }
 0x6ea   :  { %v11036_v31 = vld [vmem:[#allocation10 + $0xd38] sm:$0xf0] }
 0x6eb   :  { %v14436_v8 = vld [vmem:[#allocation10 + $0xf1c] sm:$0xf]  ;;  %v11039_v4 = vor.u32 %v14372_v38, %v11036_v31  ;;  %8134 = vmatpush.bf16.msrb.mxu1 %v10783_v16 }
 0x6ec   :  { %v11292_v26 = vld [vmem:[#allocation10 + $0xf38] sm:$0xf0] }
 0x6ed   :  { %v14236_v37 = vld [vmem:[#allocation10 + $0x8dc] sm:$0xf]  ;;  %v11295_v25 = vor.u32 %v14436_v8, %v11292_v26  ;;  %8147 = vmatpush.bf16.msrb.mxu2 %v11039_v4 }
 0x6ee   :  { %v10492_v39 = vld [vmem:[#allocation10 + $0x8f8] sm:$0xf0] }
 0x6ef   :  { %v14300_v41 = vld [vmem:[#allocation10 + $0xadc] sm:$0xf]  ;;  %v10495_v43 = vor.u32 %v14236_v37, %v10492_v39  ;;  %8160 = vmatpush.bf16.msrb.mxu3 %v11295_v25 }
 0x6f0   :  { %v10748_v14 = vld [vmem:[#allocation10 + $0xaf8] sm:$0xf0] }
 0x6f1   :  { %v14364_v15 = vld [vmem:[#allocation10 + $0xcdc] sm:$0xf]  ;;  %v10751_v27 = vor.u32 %v14300_v41, %v10748_v14  ;;  %8122 = vmatpush.bf16.msrb.mxu0 %v10495_v43 }
 0x6f2   :  { %v11004_v17 = vld [vmem:[#allocation10 + $0xcf8] sm:$0xf0] }
 0x6f3   :  { %v14428_v46 = vld [vmem:[#allocation10 + $0xedc] sm:$0xf]  ;;  %v11007_v18 = vor.u32 %v14364_v15, %v11004_v17  ;;  %8135 = vmatpush.bf16.msrb.mxu1 %v10751_v27  ;;  %v7895_v15 = vpop.f32.mrf.mxu2 }
 0x6f4   :  { %v11260_v51 = vld [vmem:[#allocation10 + $0xef8] sm:$0xf0] }
 0x6f5   :  { %v14228_v48 = vld [vmem:[#allocation10 + $0x89c] sm:$0xf]  ;;  %v11263_v49 = vor.u32 %v14428_v46, %v11260_v51  ;;  %8148 = vmatpush.bf16.msrb.mxu2 %v11007_v18 }
 0x6f6   :  { %v10460_v47 = vld [vmem:[#allocation10 + $0x8b8] sm:$0xf0] }
 0x6f7   :  { %v14292_v50 = vld [vmem:[#allocation10 + $0xa9c] sm:$0xf]  ;;  %v10463_v24 = vor.u32 %v14228_v48, %v10460_v47  ;;  %8161 = vmatpush.bf16.msrb.mxu3 %v11263_v49 }
 0x6f8   :  { %v10716_v54 = vld [vmem:[#allocation10 + $0xab8] sm:$0xf0] }
 0x6f9   :  { %v14356_v58 = vld [vmem:[#allocation10 + $0xc9c] sm:$0xf]  ;;  %v10719_v32 = vor.u32 %v14292_v50, %v10716_v54  ;;  %8123 = vmatpush.bf16.msrb.mxu0 %v10463_v24 }
 0x6fa   :  { %v10972_v6 = vld [vmem:[#allocation10 + $0xcb8] sm:$0xf0] }
 0x6fb   :  { %v14420_v22 = vld [vmem:[#allocation10 + $0xe9c] sm:$0xf]  ;;  %v10975_v52 = vor.u32 %v14356_v58, %v10972_v6  ;;  %8136 = vmatpush.bf16.msrb.mxu1 %v10719_v32 }
 0x6fc   :  { %v11228_v10 = vld [vmem:[#allocation10 + $0xeb8] sm:$0xf0] }
 0x6fd   :  { %v14220_v28 = vld [vmem:[#allocation10 + $0x85c] sm:$0xf]  ;;  %v11231_v29 = vor.u32 %v14420_v22, %v11228_v10  ;;  %8149 = vmatpush.bf16.msrb.mxu2 %v10975_v52 }
 0x6fe   :  { %v10428_v42 = vld [vmem:[#allocation10 + $0x878] sm:$0xf0] }
 0x6ff   :  { %v14284_v53 = vld [vmem:[#allocation10 + $0xa5c] sm:$0xf]  ;;  %v10431_v56 = vor.u32 %v14220_v28, %v10428_v42  ;;  %8162 = vmatpush.bf16.msrb.mxu3 %v11231_v29 }
 0x700   :  { %v10684_v36 = vld [vmem:[#allocation10 + $0xa78] sm:$0xf0] }
 0x701   :  { %v14348_v38 = vld [vmem:[#allocation10 + $0xc5c] sm:$0xf]  ;;  %v10687_v2 = vor.u32 %v14284_v53, %v10684_v36  ;;  %8124 = vmatpush.bf16.msrb.mxu0 %v10431_v56 }
 0x702   :  { %v10940_v31 = vld [vmem:[#allocation10 + $0xc78] sm:$0xf0] }
 0x703   :  { %v14412_v8 = vld [vmem:[#allocation10 + $0xe5c] sm:$0xf]  ;;  %v10943_v39 = vor.u32 %v14348_v38, %v10940_v31  ;;  %8137 = vmatpush.bf16.msrb.mxu1 %v10687_v2 }
 0x704   :  { %v11196_v26 = vld [vmem:[#allocation10 + $0xe78] sm:$0xf0] }
 0x705   :  { %v14212_v34 = vld [vmem:[#allocation10 + $0x81c] sm:$0xf]  ;;  %v11199_v4 = vor.u32 %v14412_v8, %v11196_v26  ;;  %8150 = vmatpush.bf16.msrb.mxu2 %v10943_v39 }
 0x706   :  { %v10396_v11 = vld [vmem:[#allocation10 + $0x838] sm:$0xf0] }
 0x707   :  { %v14276_v16 = vld [vmem:[#allocation10 + $0xa1c] sm:$0xf]  ;;  %v10399_v47 = vor.u32 %v14212_v34, %v10396_v11  ;;  %8163 = vmatpush.bf16.msrb.mxu3 %v11199_v4 }
 0x708   :  { %v10652_v37 = vld [vmem:[#allocation10 + $0xa38] sm:$0xf0] }
 0x709   :  { %v14340_v25 = vld [vmem:[#allocation10 + $0xc1c] sm:$0xf]  ;;  %v10655_v18 = vor.u32 %v14276_v16, %v10652_v37  ;;  %8125 = vmatpush.bf16.msrb.mxu0 %v10399_v47 }
 0x70a   :  { %v10908_v41 = vld [vmem:[#allocation10 + $0xc38] sm:$0xf0] }
 0x70b   :  { %v14404_v14 = vld [vmem:[#allocation10 + $0xe1c] sm:$0xf]  ;;  %v10911_v58 = vor.u32 %v14340_v25, %v10908_v41  ;;  %8138 = vmatpush.bf16.msrb.mxu1 %v10655_v18 }
 0x70c   :  { %v11164_v17 = vld [vmem:[#allocation10 + $0xe38] sm:$0xf0]  ;;  %8126 = vmatmul.bf16.vlgmr.msrb.gmra.mxu0 %v15592_v7 }
 0x70d   :  { %v14524_v46 = vld [vmem:[#allocation10 + $0x11dc] sm:$0xf]  ;;  %v11167_v9 = vor.u32 %v14404_v14, %v11164_v17  ;;  %8151 = vmatpush.bf16.msrb.mxu2 %v10911_v58 }
 0x70e   :  { %v11644_v51 = vld [vmem:[#allocation10 + $0x11f8] sm:$0xf0]  ;;  %8139 = vmatmul.bf16.vlgmr.msrb.gmra.mxu1 %v15594_v35 }
 0x70f   :  { %v14588_v43 = vld [vmem:[#allocation10 + $0x13dc] sm:$0xf]  ;;  %v11647_v40 = vor.u32 %v14524_v46, %v11644_v51  ;;  %8164 = vmatpush.bf16.msrb.mxu3 %v11167_v9  ;;  %v7919_v51 = vpop.f32.mrf.mxu0 }
 0x710   :  { %v11900_v27 = vld [vmem:[#allocation10 + $0x13f8] sm:$0xf0]  ;;  %8152 = vmatmul.bf16.vlgmr.msrb.gmra.mxu2 %v15596_v12  ;;  %v7932_v12 = vpop.f32.mrf.mxu1 }
 0x711   :  { %v14652_v48 = vld [vmem:[#allocation10 + $0x15dc] sm:$0xf]  ;;  %v11903_v6 = vor.u32 %v14588_v43, %v11900_v27  ;;  %8170 = vmatpush.bf16.msra.mxu0 %v11647_v40 }
 0x712   :  { %v12156_v49 = vld [vmem:[#allocation10 + $0x15f8] sm:$0xf0]  ;;  %8165 = vmatmul.bf16.vlgmr.msrb.gmra.mxu3 %v15598_v20  ;;  %v7920_v20 = vadd.f32 %v7919_v51, %v15809_v5 }
 0x713   :  { %v14716_v50 = vld [vmem:[#allocation10 + $0x17dc] sm:$0xf]  ;;  %v12159_v30 = vor.u32 %v14652_v48, %v12156_v49  ;;  %8183 = vmatpush.bf16.msra.mxu1 %v11903_v6 }
 0x714   :  { %v12412_v54 = vld [vmem:[#allocation10 + $0x17f8] sm:$0xf0]  ;;  %v7933_v9 = vadd.f32 %v7932_v12, %v7920_v20 }
 0x715   :  { %v14516_v22 = vld [vmem:[#allocation10 + $0x119c] sm:$0xf]  ;;  %v12415_v57 = vor.u32 %v14716_v50, %v12412_v54  ;;  %8196 = vmatpush.bf16.msra.mxu2 %v12159_v30 }
 0x716   :  { %v11612_v10 = vld [vmem:[#allocation10 + $0x11b8] sm:$0xf0] }
 0x717   :  { %v14580_v21 = vld [vmem:[#allocation10 + $0x139c] sm:$0xf]  ;;  %v11615_v29 = vor.u32 %v14516_v22, %v11612_v10  ;;  %8209 = vmatpush.bf16.msra.mxu3 %v12415_v57 }
 0x718   :  { %v11868_v24 = vld [vmem:[#allocation10 + $0x13b8] sm:$0xf0] }
 0x719   :  { %v14644_v32 = vld [vmem:[#allocation10 + $0x159c] sm:$0xf]  ;;  %v11871_v53 = vor.u32 %v14580_v21, %v11868_v24  ;;  %8171 = vmatpush.bf16.msra.mxu0 %v11615_v29  ;;  %v7958_v29 = vpop.f32.mrf.mxu3 }
 0x71a   :  { %v12124_v28 = vld [vmem:[#allocation10 + $0x15b8] sm:$0xf0] }
 0x71b   :  { %v14708_v42 = vld [vmem:[#allocation10 + $0x179c] sm:$0xf]  ;;  %v12127_v31 = vor.u32 %v14644_v32, %v12124_v28  ;;  %8184 = vmatpush.bf16.msra.mxu1 %v11871_v53 }
 0x71c   :  { %v12380_v52 = vld [vmem:[#allocation10 + $0x17b8] sm:$0xf0] }
 0x71d   :  { %v14508_v36 = vld [vmem:[#allocation10 + $0x115c] sm:$0xf]  ;;  %v12383_v8 = vor.u32 %v14708_v42, %v12380_v52  ;;  %8197 = vmatpush.bf16.msra.mxu2 %v12127_v31  ;;  %v7945_v52 = vpop.f32.mrf.mxu2 }
 0x71e   :  { %v11580_v38 = vld [vmem:[#allocation10 + $0x1178] sm:$0xf0]  ;;  %v7946_v31 = vadd.f32 %v7945_v52, %v7933_v9 }
 0x71f   :  { %v14572_v26 = vld [vmem:[#allocation10 + $0x135c] sm:$0xf]  ;;  %v11583_v37 = vor.u32 %v14508_v36, %v11580_v38  ;;  %8210 = vmatpush.bf16.msra.mxu3 %v12383_v8  ;;  %v7921_v8 = vpop.f32.mrf.mxu0 }
 0x720   :  { %v11836_v34 = vld [vmem:[#allocation10 + $0x1378] sm:$0xf0] }
 0x721   :  { %v14636_v56 = vld [vmem:[#allocation10 + $0x155c] sm:$0xf]  ;;  %v11839_v39 = vor.u32 %v14572_v26, %v11836_v34  ;;  %8172 = vmatpush.bf16.msra.mxu0 %v11583_v37  ;;  %v7934_v26 = vpop.f32.mrf.mxu1 }
 0x722   :  { %v12092_v2 = vld [vmem:[#allocation10 + $0x1578] sm:$0xf0] }
 0x723   :  { %v14700_v11 = vld [vmem:[#allocation10 + $0x175c] sm:$0xf]  ;;  %v12095_v41 = vor.u32 %v14636_v56, %v12092_v2  ;;  %8185 = vmatpush.bf16.msra.mxu1 %v11839_v39 }
 0x724   :  { %v12348_v16 = vld [vmem:[#allocation10 + $0x1778] sm:$0xf0] }
 0x725   :  { %v14500_v4 = vld [vmem:[#allocation10 + $0x111c] sm:$0xf]  ;;  %v12351_v14 = vor.u32 %v14700_v11, %v12348_v16  ;;  %8198 = vmatpush.bf16.msra.mxu2 %v12095_v41  ;;  %v15816_v16 = vadd.f32 %v7958_v29, %v7946_v31 }
 0x726   :  { %v11548_v25 = vld [vmem:[#allocation10 + $0x1138] sm:$0xf0] }
 0x727   :  { %v14564_v7 = vld [vmem:[#allocation10 + $0x131c] sm:$0xf]  ;;  %v11551_v43 = vor.u32 %v14500_v4, %v11548_v25  ;;  %8211 = vmatpush.bf16.msra.mxu3 %v12351_v14 }
 0x728   :  { %v11804_v15 = vld [vmem:[#allocation10 + $0x1338] sm:$0xf0] }
 0x729   :  { %v14628_v35 = vld [vmem:[#allocation10 + $0x151c] sm:$0xf]  ;;  %v11807_v27 = vor.u32 %v14564_v7, %v11804_v15  ;;  %8173 = vmatpush.bf16.msra.mxu0 %v11551_v43 }
 0x72a   :  { %v12060_v45 = vld [vmem:[#allocation10 + $0x1538] sm:$0xf0] }
 0x72b   :  { %v14692_v17 = vld [vmem:[#allocation10 + $0x171c] sm:$0xf]  ;;  %v12063_v18 = vor.u32 %v14628_v35, %v12060_v45  ;;  %8186 = vmatpush.bf16.msra.mxu1 %v11807_v27 }
 0x72c   :  { %v12316_v46 = vld [vmem:[#allocation10 + $0x1738] sm:$0xf0] }
 0x72d   :  { %v14492_v48 = vld [vmem:[#allocation10 + $0x10dc] sm:$0xf]  ;;  %v12319_v49 = vor.u32 %v14692_v17, %v12316_v46  ;;  %8199 = vmatpush.bf16.msra.mxu2 %v12063_v18  ;;  %v7947_v18 = vpop.f32.mrf.mxu2 }
 0x72e   :  { %v11516_v47 = vld [vmem:[#allocation10 + $0x10f8] sm:$0xf0]  ;;  %v7971_v18 = vpop.f32.mrf.mxu0 }
 0x72f   :  { %v14556_v50 = vld [vmem:[#allocation10 + $0x12dc] sm:$0xf]  ;;  %v11519_v10 = vor.u32 %v14492_v48, %v11516_v47  ;;  %8212 = vmatpush.bf16.msra.mxu3 %v12319_v49  ;;  %v7960_v49 = vpop.f32.mrf.mxu3 }
 0x730   :  { %v11772_v54 = vld [vmem:[#allocation10 + $0x12f8] sm:$0xf0] }
 0x731   :  { %v14620_v58 = vld [vmem:[#allocation10 + $0x14dc] sm:$0xf]  ;;  %v11775_v30 = vor.u32 %v14556_v50, %v11772_v54  ;;  %8174 = vmatpush.bf16.msra.mxu0 %v11519_v10 }
 0x732   :  { %v12028_v40 = vld [vmem:[#allocation10 + $0x14f8] sm:$0xf0] }
 0x733   :  { %v14684_v6 = vld [vmem:[#allocation10 + $0x16dc] sm:$0xf]  ;;  %v12031_v21 = vor.u32 %v14620_v58, %v12028_v40  ;;  %8187 = vmatpush.bf16.msra.mxu1 %v11775_v30 }
 0x734   :  { %v12284_v22 = vld [vmem:[#allocation10 + $0x16f8] sm:$0xf0] }
 0x735   :  { %v14484_v5 = vld [vmem:[#allocation10 + $0x109c] sm:$0xf]  ;;  %v12287_v24 = vor.u32 %v14684_v6, %v12284_v22  ;;  %8200 = vmatpush.bf16.msra.mxu2 %v12031_v21 }
 0x736   :  { %v11484_v57 = vld [vmem:[#allocation10 + $0x10b8] sm:$0xf0] }
 0x737   :  { %v14548_v32 = vld [vmem:[#allocation10 + $0x129c] sm:$0xf]  ;;  %v11487_v34 = vor.u32 %v14484_v5, %v11484_v57  ;;  %8213 = vmatpush.bf16.msra.mxu3 %v12287_v24 }
 0x738   :  { %v11740_v28 = vld [vmem:[#allocation10 + $0x12b8] sm:$0xf0] }
 0x739   :  { %v14612_v42 = vld [vmem:[#allocation10 + $0x149c] sm:$0xf]  ;;  %v11743_v56 = vor.u32 %v14548_v32, %v11740_v28  ;;  %8175 = vmatpush.bf16.msra.mxu0 %v11487_v34 }
 0x73a   :  { %v11996_v53 = vld [vmem:[#allocation10 + $0x14b8] sm:$0xf0] }
 0x73b   :  { %v14676_v36 = vld [vmem:[#allocation10 + $0x169c] sm:$0xf]  ;;  %v11999_v37 = vor.u32 %v14612_v42, %v11996_v53  ;;  %8188 = vmatpush.bf16.msra.mxu1 %v11743_v56 }
 0x73c   :  { %v12252_v38 = vld [vmem:[#allocation10 + $0x16b8] sm:$0xf0] }
 0x73d   :  { %v14476_v2 = vld [vmem:[#allocation10 + $0x105c] sm:$0xf]  ;;  %v12255_v39 = vor.u32 %v14676_v36, %v12252_v38  ;;  %8201 = vmatpush.bf16.msra.mxu2 %v11999_v37 }
 0x73e   :  { %v11452_v11 = vld [vmem:[#allocation10 + $0x1078] sm:$0xf0] }
 0x73f   :  { %v14540_v4 = vld [vmem:[#allocation10 + $0x125c] sm:$0xf]  ;;  %v11455_v45 = vor.u32 %v14476_v2, %v11452_v11  ;;  %8214 = vmatpush.bf16.msra.mxu3 %v12255_v39 }
 0x740   :  { %v11708_v25 = vld [vmem:[#allocation10 + $0x1278] sm:$0xf0] }
 0x741   :  { %v14604_v41 = vld [vmem:[#allocation10 + $0x145c] sm:$0xf]  ;;  %v11711_v17 = vor.u32 %v14540_v4, %v11708_v25  ;;  %8176 = vmatpush.bf16.msra.mxu0 %v11455_v45 }
 0x742   :  { %v11964_v14 = vld [vmem:[#allocation10 + $0x1478] sm:$0xf0] }
 0x743   :  { %v14668_v7 = vld [vmem:[#allocation10 + $0x165c] sm:$0xf]  ;;  %v11967_v20 = vor.u32 %v14604_v41, %v11964_v14  ;;  %8189 = vmatpush.bf16.msra.mxu1 %v11711_v17 }
 0x744   :  { %v12220_v15 = vld [vmem:[#allocation10 + $0x1678] sm:$0xf0] }
 0x745   :  { %v14468_v35 = vld [vmem:[#allocation10 + $0x101c] sm:$0xf]  ;;  %v12223_v43 = vor.u32 %v14668_v7, %v12220_v15  ;;  %8202 = vmatpush.bf16.msra.mxu2 %v11967_v20 }
 0x746   :  { %v11420_v46 = vld [vmem:[#allocation10 + $0x1038] sm:$0xf0] }
 0x747   :  { %v14532_v51 = vld [vmem:[#allocation10 + $0x121c] sm:$0xf]  ;;  %v11423_v22 = vor.u32 %v14468_v35, %v11420_v46  ;;  %8215 = vmatpush.bf16.msra.mxu3 %v12223_v43 }
 0x748   :  { %v11676_v12 = vld [vmem:[#allocation10 + $0x1238] sm:$0xf0] }
 0x749   :  { %v14596_v27 = vld [vmem:[#allocation10 + $0x141c] sm:$0xf]  ;;  %v11679_v10 = vor.u32 %v14532_v51, %v11676_v12  ;;  %8177 = vmatpush.bf16.msra.mxu0 %v11423_v22 }
 0x74a   :  { %v11932_v48 = vld [vmem:[#allocation10 + $0x1438] sm:$0xf0] }
 0x74b   :  { %v14660_v47 = vld [vmem:[#allocation10 + $0x161c] sm:$0xf]  ;;  %v11935_v21 = vor.u32 %v14596_v27, %v11932_v48  ;;  %8190 = vmatpush.bf16.msra.mxu1 %v11679_v10 }
 0x74c   :  { %v12188_v50 = vld [vmem:[#allocation10 + $0x1638] sm:$0xf0]  ;;  %8178 = vmatmul.bf16.vlgmr.msra.gmra.mxu0 %v15617_v55 }
 0x74d   :  { %v14780_v54 = vld [vmem:[#allocation10 + $0x19dc] sm:$0xf]  ;;  %v12191_v24 = vor.u32 %v14660_v47, %v12188_v50  ;;  %8203 = vmatpush.bf16.msra.mxu2 %v11935_v21 }
 0x74e   :  { %v12668_v58 = vld [vmem:[#allocation10 + $0x19f8] sm:$0xf0]  ;;  %8191 = vmatmul.bf16.vlgmr.msra.gmra.mxu1 %v15619_v60 }
 0x74f   :  { %v14844_v9 = vld [vmem:[#allocation10 + $0x1bdc] sm:$0xf]  ;;  %v12671_v32 = vor.u32 %v14780_v54, %v12668_v58  ;;  %8216 = vmatpush.bf16.msra.mxu3 %v12191_v24 }
 0x750   :  { %v12924_v40 = vld [vmem:[#allocation10 + $0x1bf8] sm:$0xf0]  ;;  %8204 = vmatmul.bf16.vlgmr.msra.gmra.mxu2 %v15621_v13  ;;  %v7984_v13 = vpop.f32.mrf.mxu1 }
 0x751   :  { %v14908_v6 = vld [vmem:[#allocation10 + $0x1ddc] sm:$0xf]  ;;  %v12927_v28 = vor.u32 %v14844_v9, %v12924_v40  ;;  %8222 = vmatpush.bf16.msrb.mxu0 %v12671_v32 }
 0x752   :  { %v13180_v30 = vld [vmem:[#allocation10 + $0x1df8] sm:$0xf0]  ;;  %8217 = vmatmul.bf16.vlgmr.msra.gmra.mxu3 %v15623_v61  ;;  %v7972_v61 = vadd.f32 %v7971_v18, %v15816_v16 }
 0x753   :  { %v14972_v5 = vld [vmem:[#allocation10 + $0x1fdc] sm:$0xf]  ;;  %v13183_v29 = vor.u32 %v14908_v6, %v13180_v30  ;;  %8235 = vmatpush.bf16.msrb.mxu1 %v12927_v28 }
 0x754   :  { %v13436_v57 = vld [vmem:[#allocation10 + $0x1ff8] sm:$0xf0]  ;;  %v15823_v30 = vadd.f32 %v7984_v13, %v7972_v61 }
 0x755   :  { %v14772_v42 = vld [vmem:[#allocation10 + $0x199c] sm:$0xf]  ;;  %v13439_v53 = vor.u32 %v14972_v5, %v13436_v57  ;;  %8248 = vmatpush.bf16.msrb.mxu2 %v13183_v29 }
 0x756   :  { %v12636_v52 = vld [vmem:[#allocation10 + $0x19b8] sm:$0xf0] }
 0x757   :  { %v14836_v36 = vld [vmem:[#allocation10 + $0x1b9c] sm:$0xf]  ;;  %v12639_v56 = vor.u32 %v14772_v42, %v12636_v52  ;;  %8261 = vmatpush.bf16.msrb.mxu3 %v13439_v53 }
 0x758   :  { %v12892_v38 = vld [vmem:[#allocation10 + $0x1bb8] sm:$0xf0] }
 0x759   :  { %v14900_v31 = vld [vmem:[#allocation10 + $0x1d9c] sm:$0xf]  ;;  %v12895_v2 = vor.u32 %v14836_v36, %v12892_v38  ;;  %8223 = vmatpush.bf16.msrb.mxu0 %v12639_v56  ;;  %v15825_v38 = vpop.f32.mrf.mxu2  ;;  %v7973_v56 = vpop.f32.mrf.mxu0 }
 0x75a   :  { %v13148_v8 = vld [vmem:[#allocation10 + $0x1db8] sm:$0xf0]  ;;  %v15038_v56 = vld [vmem:[#allocation13 + $0x1e4] sm:$0xf0] }
 0x75b   :  { %v14964_v26 = vld [vmem:[#allocation10 + $0x1f9c] sm:$0xf]  ;;  %v13151_v39 = vor.u32 %v14900_v31, %v13148_v8  ;;  %8236 = vmatpush.bf16.msrb.mxu1 %v12895_v2  ;;  %v15827_v31 = vpop.f32.mrf.mxu3  ;;  %v7986_v2 = vpop.f32.mrf.mxu1 }
 0x75c   :  { %v13404_v34 = vld [vmem:[#allocation10 + $0x1fb8] sm:$0xf0] }
 0x75d   :  { %v14764_v11 = vld [vmem:[#allocation10 + $0x195c] sm:$0xf]  ;;  %v13407_v4 = vor.u32 %v14964_v26, %v13404_v34  ;;  %8249 = vmatpush.bf16.msrb.mxu2 %v13151_v39 }
 0x75e   :  { %v12604_v37 = vld [vmem:[#allocation10 + $0x1978] sm:$0xf0] }
 0x75f   :  { %v14828_v25 = vld [vmem:[#allocation10 + $0x1b5c] sm:$0xf]  ;;  %v12607_v45 = vor.u32 %v14764_v11, %v12604_v37  ;;  %8262 = vmatpush.bf16.msrb.mxu3 %v13407_v4 }
 0x760   :  { %v12860_v41 = vld [vmem:[#allocation10 + $0x1b78] sm:$0xf0] }
 0x761   :  { %v14892_v14 = vld [vmem:[#allocation10 + $0x1d5c] sm:$0xf]  ;;  %v12863_v17 = vor.u32 %v14828_v25, %v12860_v41  ;;  %8224 = vmatpush.bf16.msrb.mxu0 %v12607_v45  ;;  %v7999_v13 = vpop.f32.mrf.mxu2 }
 0x762   :  { %v13116_v7 = vld [vmem:[#allocation10 + $0x1d78] sm:$0xf0]  ;;  %v13466_v13 = vld [vmem:[#allocation13 + $0x30] sm:$0xf] }
 0x763   :  { %v14956_v15 = vld [vmem:[#allocation10 + $0x1f5c] sm:$0xf]  ;;  %v13119_v12 = vor.u32 %v14892_v14, %v13116_v7  ;;  %8237 = vmatpush.bf16.msrb.mxu1 %v12863_v17  ;;  %v8012_v61 = vpop.f32.mrf.mxu3 }
 0x764   :  { %v13372_v35 = vld [vmem:[#allocation10 + $0x1f78] sm:$0xf0]  ;;  %v14984_v61 = vld [vmem:[#allocation13 + $0x34] sm:$0xf0] }
 0x765   :  { %v14756_v46 = vld [vmem:[#allocation10 + $0x191c] sm:$0xf]  ;;  %v13375_v20 = vor.u32 %v14956_v15, %v13372_v35  ;;  %8250 = vmatpush.bf16.msrb.mxu2 %v13119_v12 }
 0x766   :  { %v12572_v51 = vld [vmem:[#allocation10 + $0x1938] sm:$0xf0] }
 0x767   :  { %v14820_v55 = vld [vmem:[#allocation10 + $0x1b1c] sm:$0xf]  ;;  %v12575_v49 = vor.u32 %v14756_v46, %v12572_v51  ;;  %8263 = vmatpush.bf16.msrb.mxu3 %v13375_v20 }
 0x768   :  { %v12828_v43 = vld [vmem:[#allocation10 + $0x1b38] sm:$0xf0] }
 0x769   :  { %v14884_v60 = vld [vmem:[#allocation10 + $0x1d1c] sm:$0xf]  ;;  %v12831_v50 = vor.u32 %v14820_v55, %v12828_v43  ;;  %8225 = vmatpush.bf16.msrb.mxu0 %v12575_v49 }
 0x76a   :  { %v13084_v27 = vld [vmem:[#allocation10 + $0x1d38] sm:$0xf0] }
 0x76b   :  { %v14948_v48 = vld [vmem:[#allocation10 + $0x1f1c] sm:$0xf]  ;;  %v13087_v9 = vor.u32 %v14884_v60, %v13084_v27  ;;  %8238 = vmatpush.bf16.msrb.mxu1 %v12831_v50  ;;  %v13498_v50 = vld [vmem:[#allocation13 + $0x70] sm:$0xf] }
 0x76c   :  { %v13340_v47 = vld [vmem:[#allocation10 + $0x1f38] sm:$0xf0] }
 0x76d   :  { %v14748_v54 = vld [vmem:[#allocation10 + $0x18dc] sm:$0xf]  ;;  %v13343_v40 = vor.u32 %v14948_v48, %v13340_v47  ;;  %8251 = vmatpush.bf16.msrb.mxu2 %v13087_v9  ;;  %v15008_v9 = vld [vmem:[#allocation13 + $0xf4] sm:$0xf0] }
 0x76e   :  { %v12540_v58 = vld [vmem:[#allocation10 + $0x18f8] sm:$0xf0] }
 0x76f   :  { %v14812_v6 = vld [vmem:[#allocation10 + $0x1adc] sm:$0xf]  ;;  %v12543_v24 = vor.u32 %v14748_v54, %v12540_v58  ;;  %8264 = vmatpush.bf16.msrb.mxu3 %v13343_v40  ;;  %v14992_v54 = vld [vmem:[#allocation13 + $0x74] sm:$0xf0]  ;;  %v13562_v58 = vld [vmem:[#allocation13 + $0xf0] sm:$0xf] }
 0x770   :  { %v12796_v22 = vld [vmem:[#allocation10 + $0x1af8] sm:$0xf0]  ;;  %v13626_v40 = vld [vmem:[#allocation13 + $0x170] sm:$0xf] }
 0x771   :  { %v14876_v10 = vld [vmem:[#allocation10 + $0x1cdc] sm:$0xf]  ;;  %v12799_v16 = vor.u32 %v14812_v6, %v12796_v22  ;;  %8226 = vmatpush.bf16.msrb.mxu0 %v12543_v24 }
 0x772   :  { %v13052_v5 = vld [vmem:[#allocation10 + $0x1cf8] sm:$0xf0] }
 0x773   :  { %v14940_v57 = vld [vmem:[#allocation10 + $0x1edc] sm:$0xf]  ;;  %v13055_v42 = vor.u32 %v14876_v10, %v13052_v5  ;;  %8239 = vmatpush.bf16.msrb.mxu1 %v12799_v16  ;;  %v15024_v10 = vld [vmem:[#allocation13 + $0x174] sm:$0xf0]  ;;  %v13690_v5 = vld [vmem:[#allocation13 + $0x1f0] sm:$0xf]  ;;  %v13499_v16 = vor.u32 %v14992_v54, %v13498_v50 }
 0x774   :  { %v13308_v21 = vld [vmem:[#allocation10 + $0x1ef8] sm:$0xf0]  ;;  %v13530_v54 = vld [vmem:[#allocation13 + $0xb0] sm:$0xf] }
 0x775   :  { %v14740_v32 = vld [vmem:[#allocation10 + $0x189c] sm:$0xf]  ;;  %v13311_v52 = vor.u32 %v14940_v57, %v13308_v21  ;;  %8252 = vmatpush.bf16.msrb.mxu2 %v13055_v42  ;;  %v15040_v57 = vld [vmem:[#allocation13 + $0x1f4] sm:$0xf0]  ;;  %v14990_v42 = vld [vmem:[#allocation13 + $0x64] sm:$0xf0] }
 0x776   :  { %v12508_v28 = vld [vmem:[#allocation10 + $0x18b8] sm:$0xf0] }
 0x777   :  { %v14804_v29 = vld [vmem:[#allocation10 + $0x1a9c] sm:$0xf]  ;;  %v12511_v11 = vor.u32 %v14740_v32, %v12508_v28  ;;  %8265 = vmatpush.bf16.msrb.mxu3 %v13311_v52  ;;  %v13563_v32 = vor.u32 %v15008_v9, %v13562_v58  ;;  %v13490_v28 = vld [vmem:[#allocation13 + $0x60] sm:$0xf]  ;;  %v13627_v52 = vor.u32 %v15024_v10, %v13626_v40  ;;  %v15000_v58 = vld [vmem:[#allocation13 + $0xb4] sm:$0xf0]  ;;  %v13467_v10 = vor.u32 %v14984_v61, %v13466_v13 }
 0x778   :  { %v12764_v53 = vld [vmem:[#allocation10 + $0x1ab8] sm:$0xf0]  ;;  %v13491_v2 = vor.u32 %v14990_v42, %v13490_v28  ;;  %v13594_v9 = vld [vmem:[#allocation13 + $0x130] sm:$0xf]  ;;  %v15016_v40 = vld [vmem:[#allocation13 + $0x134] sm:$0xf0] }
 0x779   :  { %v14868_v36 = vld [vmem:[#allocation10 + $0x1c9c] sm:$0xf]  ;;  %v12767_v37 = vor.u32 %v14804_v29, %v12764_v53  ;;  %8227 = vmatpush.bf16.msrb.mxu0 %v12511_v11  ;;  %v13691_v29 = vor.u32 %v15040_v57, %v13690_v5  ;;  %v13554_v53 = vld [vmem:[#allocation13 + $0xe0] sm:$0xf]  ;;  %v13531_v5 = vor.u32 %v15000_v58, %v13530_v54  ;;  %v14998_v28 = vld [vmem:[#allocation13 + $0xa4] sm:$0xf0] }
 0x77a   :  { %v13020_v8 = vld [vmem:[#allocation10 + $0x1cb8] sm:$0xf0]  ;;  %v13458_v57 = vld [vmem:[#allocation13 + $0x20] sm:$0xf]  ;;  %v15056_v54 = vld [vmem:[#allocation13 + $0x274] sm:$0xf0] }
 0x77b   :  { %v14932_v26 = vld [vmem:[#allocation10 + $0x1e9c] sm:$0xf]  ;;  %v13023_v25 = vor.u32 %v14868_v36, %v13020_v8  ;;  %8240 = vmatpush.bf16.msrb.mxu1 %v12767_v37  ;;  %v15006_v36 = vld [vmem:[#allocation13 + $0xe4] sm:$0xf0]  ;;  %v13618_v8 = vld [vmem:[#allocation13 + $0x160] sm:$0xf] }
 0x77c   :  { %v13276_v34 = vld [vmem:[#allocation10 + $0x1eb8] sm:$0xf0]  ;;  %v13555_v11 = vor.u32 %v15006_v36, %v13554_v53  ;;  %v13482_v37 = vld [vmem:[#allocation13 + $0x50] sm:$0xf]  ;;  %v13586_v42 = vld [vmem:[#allocation13 + $0x120] sm:$0xf] }
 0x77d   :  { %v14732_v39 = vld [vmem:[#allocation10 + $0x185c] sm:$0xf]  ;;  %v13279_v41 = vor.u32 %v14932_v26, %v13276_v34  ;;  %8253 = vmatpush.bf16.msrb.mxu2 %v13023_v25  ;;  %v15022_v26 = vld [vmem:[#allocation13 + $0x164] sm:$0xf0]  ;;  %v13682_v34 = vld [vmem:[#allocation13 + $0x1e0] sm:$0xf] }
 0x77e   :  { %v12476_v4 = vld [vmem:[#allocation10 + $0x1878] sm:$0xf0]  ;;  %v13683_v25 = vor.u32 %v15038_v56, %v13682_v34  ;;  %v15014_v53 = vld [vmem:[#allocation13 + $0x124] sm:$0xf0]  ;;  %v13650_v36 = vld [vmem:[#allocation13 + $0x1a0] sm:$0xf] }
 0x77f   :  { %v14796_v14 = vld [vmem:[#allocation10 + $0x1a5c] sm:$0xf]  ;;  %v12479_v51 = vor.u32 %v14732_v39, %v12476_v4  ;;  %8266 = vmatpush.bf16.msrb.mxu3 %v13279_v41  ;;  %v14988_v39 = vld [vmem:[#allocation13 + $0x54] sm:$0xf0]  ;;  %v13619_v4 = vor.u32 %v15022_v26, %v13618_v8  ;;  %v13546_v41 = vld [vmem:[#allocation13 + $0xd0] sm:$0xf] }
 0x780   :  { %v12732_v7 = vld [vmem:[#allocation10 + $0x1a78] sm:$0xf0]  ;;  %v15030_v8 = vld [vmem:[#allocation13 + $0x1a4] sm:$0xf0]  ;;  %v8274_v56 = vmul.f32 0.01, %v15667_v33 }
 0x781   :  { %v14860_v15 = vld [vmem:[#allocation10 + $0x1c5c] sm:$0xf]  ;;  %v12735_v12 = vor.u32 %v14796_v14, %v12732_v7  ;;  %8228 = vmatpush.bf16.msrb.mxu0 %v12479_v51  ;;  %v15004_v14 = vld [vmem:[#allocation13 + $0xd4] sm:$0xf0]  ;;  %v13610_v7 = vld [vmem:[#allocation13 + $0x150] sm:$0xf] }
 0x782   :  { %v12988_v35 = vld [vmem:[#allocation10 + $0x1c78] sm:$0xf0]  ;;  %v13474_v51 = vld [vmem:[#allocation13 + $0x40] sm:$0xf]  ;;  %v13818_v58 = vld [vmem:[#allocation13 + $0x2f0] sm:$0xf] }
 0x783   :  { %v14924_v45 = vld [vmem:[#allocation10 + $0x1e5c] sm:$0xf]  ;;  %v12991_v60 = vor.u32 %v14860_v15, %v12988_v35  ;;  %8241 = vmatpush.bf16.msrb.mxu1 %v12735_v12  ;;  %v15020_v15 = vld [vmem:[#allocation13 + $0x154] sm:$0xf0]  ;;  %v13674_v35 = vld [vmem:[#allocation13 + $0x1d0] sm:$0xf] }
 0x784   :  { %v13244_v17 = vld [vmem:[#allocation10 + $0x1e78] sm:$0xf0]  ;;  %v14986_v12 = vld [vmem:[#allocation13 + $0x44] sm:$0xf0]  ;;  %v13634_v61 = vld [vmem:[#allocation13 + $0x180] sm:$0xf] }
 0x785   :  { %v14724_v46 = vld [vmem:[#allocation10 + $0x181c] sm:$0xf]  ;;  %v13247_v27 = vor.u32 %v14924_v45, %v13244_v17  ;;  %8254 = vmatpush.bf16.msrb.mxu2 %v12991_v60  ;;  %v15036_v45 = vld [vmem:[#allocation13 + $0x1d4] sm:$0xf0]  ;;  %v13483_v17 = vor.u32 %v14988_v39, %v13482_v37  ;;  %v15018_v60 = vld [vmem:[#allocation13 + $0x144] sm:$0xf0] }
 0x786   :  { %v12444_v20 = vld [vmem:[#allocation10 + $0x1838] sm:$0xf0]  ;;  %v13450_v37 = vld [vmem:[#allocation13 + $0x10] sm:$0xf]  ;;  %v14980_v39 = vld [vmem:[#allocation13 + $0x14] sm:$0xf0] }
 0x787   :  { %v14788_v55 = vld [vmem:[#allocation10 + $0x1a1c] sm:$0xf]  ;;  %v12447_v6 = vor.u32 %v14724_v46, %v12444_v20  ;;  %8267 = vmatpush.bf16.msrb.mxu3 %v13247_v27  ;;  %v13547_v46 = vor.u32 %v15004_v14, %v13546_v41  ;;  %v13611_v20 = vor.u32 %v15020_v15, %v13610_v7  ;;  %v13666_v27 = vld [vmem:[#allocation13 + $0x1c0] sm:$0xf]  ;;  %v13514_v41 = vld [vmem:[#allocation13 + $0x90] sm:$0xf] }
 0x788   :  { %v12700_v43 = vld [vmem:[#allocation10 + $0x1a38] sm:$0xf0]  ;;  %v14996_v14 = vld [vmem:[#allocation13 + $0x94] sm:$0xf0]  ;;  %v13578_v7 = vld [vmem:[#allocation13 + $0x110] sm:$0xf] }
 0x789   :  { %v14852_v48 = vld [vmem:[#allocation10 + $0x1c1c] sm:$0xf]  ;;  %v12703_v22 = vor.u32 %v14788_v55, %v12700_v43  ;;  %8229 = vmatpush.bf16.msrb.mxu0 %v12447_v6  ;;  %v13675_v55 = vor.u32 %v15036_v45, %v13674_v35  ;;  %v15002_v43 = vld [vmem:[#allocation13 + $0xc4] sm:$0xf0]  ;;  %v13658_v6 = vld [vmem:[#allocation13 + $0x1b0] sm:$0xf] }
 0x78a   :  { %v12956_v47 = vld [vmem:[#allocation10 + $0x1c38] sm:$0xf0]  ;;  %v15012_v15 = vld [vmem:[#allocation13 + $0x114] sm:$0xf0]  ;;  %v13642_v35 = vld [vmem:[#allocation13 + $0x190] sm:$0xf] }
 0x78b   :  { %v14916_v18 = vld [vmem:[#allocation10 + $0x1e1c] sm:$0xf]  ;;  %v12959_v21 = vor.u32 %v14852_v48, %v12956_v47  ;;  %8242 = vmatpush.bf16.msrb.mxu1 %v12703_v22  ;;  %v15034_v48 = vld [vmem:[#allocation13 + $0x1c4] sm:$0xf0]  ;;  %v15833_v47 = vpop.f32.mrf.mxu0  ;;  %v15032_v22 = vld [vmem:[#allocation13 + $0x1b4] sm:$0xf0] }
 0x78c   :  { %v13212_v49 = vld [vmem:[#allocation10 + $0x1e38] sm:$0xf0]  ;;  %8230 = vmatmul.bf16.vlgmr.msrb.gmra.mxu0 %v15633_v1  ;;  %v13538_v1 = vld [vmem:[#allocation13 + $0xc0] sm:$0xf]  ;;  %v13667_v50 = vor.u32 %v15034_v48, %v13666_v27  ;;  %v15028_v45 = vld [vmem:[#allocation13 + $0x194] sm:$0xf0] }
 0x78d   :  { %v13215_v24 = vor.u32 %v14916_v18, %v13212_v49  ;;  %8255 = vmatpush.bf16.msrb.mxu2 %v12959_v21  ;;  %9068 = vmatpush.bf16.msra.mxu0 %v13499_v16  ;;  %v13539_v18 = vor.u32 %v15002_v43, %v13538_v1  ;;  %v14982_v21 = vld [vmem:[#allocation13 + $0x24] sm:$0xf0]  ;;  %v13659_v16 = vor.u32 %v15032_v22, %v13658_v6  ;;  %v13506_v43 = vld [vmem:[#allocation13 + $0x80] sm:$0xf] }
 0x78e   :  { %8243 = vmatmul.bf16.vlgmr.msrb.gmra.mxu1 %v15635_v63  ;;  %v13602_v63 = vld [vmem:[#allocation13 + $0x140] sm:$0xf]  ;;  %v14978_v1 = vld [vmem:[#allocation13 + $0x4] sm:$0xf0] }
 0x78f   :  { %8268 = vmatpush.bf16.msrb.mxu3 %v13215_v24  ;;  %9081 = vmatpush.bf16.msra.mxu1 %v13563_v32  ;;  %v13603_v49 = vor.u32 %v15018_v60, %v13602_v63  ;;  %v13595_v24 = vor.u32 %v15016_v40, %v13594_v9  ;;  %v13522_v32 = vld [vmem:[#allocation13 + $0xa0] sm:$0xf]  ;;  %v13579_v63 = vor.u32 %v15012_v15, %v13578_v7  ;;  %v14994_v27 = vld [vmem:[#allocation13 + $0x84] sm:$0xf0]  ;;  %v15072_v9 = vld [vmem:[#allocation13 + $0x2f4] sm:$0xf0] }
 0x790   :  { %8256 = vmatmul.bf16.vlgmr.msrb.gmra.mxu2 %v15637_v0  ;;  %v15835_v0 = vpop.f32.mrf.mxu1  ;;  %v13643_v60 = vor.u32 %v15028_v45, %v13642_v35  ;;  %v13570_v48 = vld [vmem:[#allocation13 + $0x100] sm:$0xf]  ;;  %v8282_v40 = vmax.f32 %v15667_v33, %v8274_v56  ;;  %v13507_v22 = vor.u32 %v14994_v27, %v13506_v43  ;;  %v15086_v56 = vld [vmem:[#allocation13 + $0x364] sm:$0xf0]  ;;  %v15068_v7 = vld [vmem:[#allocation13 + $0x2d4] sm:$0xf0] }
 0x791   :  { %9094 = vmatpush.bf16.msra.mxu2 %v13627_v52  ;;  %9069 = vmatpush.bf16.msra.mxu0 %v13491_v2  ;;  %v15837_v52 = vpop.f32.mrf.mxu2  ;;  %v13459_v2 = vor.u32 %v14982_v21, %v13458_v57  ;;  %v15066_v43 = vld [vmem:[#allocation13 + $0x2c4] sm:$0xf0] }
 0x792   :  { %8269 = vmatmul.bf16.vlgmr.msrb.gmra.mxu3 %v15639_v23  ;;  %v13475_v23 = vor.u32 %v14986_v12, %v13474_v51  ;;  %v8277_v51 = vmul.f32 0.01, %v15749_v44  ;;  %v13451_v12 = vor.u32 %v14980_v39, %v13450_v37  ;;  %v13738_v39 = vld [vmem:[#allocation13 + $0x250] sm:$0xf] }
 0x793   :  { %9107 = vmatpush.bf16.msra.mxu3 %v13691_v29  ;;  %9082 = vmatpush.bf16.msra.mxu1 %v13555_v11  ;;  %v15839_v29 = vpop.f32.mrf.mxu3  ;;  %v8025_v26 = vpop.f32.mrf.mxu0  ;;  %v13523_v11 = vor.u32 %v14998_v28, %v13522_v32  ;;  %v13819_v28 = vor.u32 %v15072_v9, %v13818_v58  ;;  %v13850_v9 = vld [vmem:[#allocation13 + $0x330] sm:$0xf] }
 0x794   :  { %v15070_v26 = vld [vmem:[#allocation13 + $0x2e4] sm:$0xf0] }
 0x795   :  { %9095 = vmatpush.bf16.msra.mxu2 %v13619_v4  ;;  %9070 = vmatpush.bf16.msra.mxu0 %v13483_v17  ;;  %v13587_v4 = vor.u32 %v15014_v53, %v13586_v42  ;;  %v8275_v17 = vmul.f32 0.01, %v15695_v3  ;;  %v13746_v42 = vld [vmem:[#allocation13 + $0x260] sm:$0xf]  ;;  %v8285_v53 = vmax.f32 %v15749_v44, %v8277_v51 }
 0x796   :  { %v13730_v51 = vld [vmem:[#allocation13 + $0x240] sm:$0xf] }
 0x797   :  { %9108 = vmatpush.bf16.msra.mxu3 %v13683_v25  ;;  %9083 = vmatpush.bf16.msra.mxu1 %v13547_v46  ;;  %v13651_v25 = vor.u32 %v15030_v8, %v13650_v36  ;;  %v8276_v46 = vmul.f32 0.01, %v15722_v62  ;;  %v8283_v57 = vmax.f32 %v15695_v3, %v8275_v17  ;;  %v15054_v36 = vld [vmem:[#allocation13 + $0x264] sm:$0xf0]  ;;  %v13810_v8 = vld [vmem:[#allocation13 + $0x2e0] sm:$0xf]  ;;  %v15849_v3 = vpack.c.bf16 %v8282_v40, %v8282_v40 }
 0x798   :  { %v8038_v34 = vpop.f32.mrf.mxu1  ;;  %v13747_v44 = vor.u32 %v15054_v36, %v13746_v42  ;;  %v13811_v37 = vor.u32 %v15070_v26, %v13810_v8  ;;  %v15139_v17 = vld [vmem:[#allocation11] sm:$0xff]  ;;  %v15078_v42 = vld [vmem:[#allocation13 + $0x324] sm:$0xf0] }
 0x799   :  { %9096 = vmatpush.bf16.msra.mxu2 %v13611_v20  ;;  %9071 = vmatpush.bf16.msra.mxu0 %v13475_v23  ;;  %v13515_v20 = vor.u32 %v14996_v14, %v13514_v41  ;;  %v15010_v23 = vld [vmem:[#allocation13 + $0x104] sm:$0xf0]  ;;  %v13874_v34 = vld [vmem:[#allocation13 + $0x360] sm:$0xf]  ;;  %v15052_v41 = vld [vmem:[#allocation13 + $0x254] sm:$0xf0] }
 0x79a   :  { %v13571_v21 = vor.u32 %v15010_v23, %v13570_v48  ;;  %v13802_v14 = vld [vmem:[#allocation13 + $0x2d0] sm:$0xf]  ;;  %v13739_v35 = vor.u32 %v15052_v41, %v13738_v39  ;;  %v15080_v40 = vld [vmem:[#allocation13 + $0x334] sm:$0xf0] }
 0x79b   :  { %9109 = vmatpush.bf16.msra.mxu3 %v13675_v55  ;;  %9084 = vmatpush.bf16.msra.mxu1 %v13539_v18  ;;  %v13442_v55 = vld [vmem:[#allocation13] sm:$0xf]  ;;  %v8051_v18 = vpop.f32.mrf.mxu2  ;;  %v8064_v13 = vpop.f32.mrf.mxu3  ;;  %v13803_v45 = vor.u32 %v15068_v7, %v13802_v14  ;;  %v15060_v39 = vld [vmem:[#allocation13 + $0x294] sm:$0xf0]  ;;  %v8278_v14 = vmul.f32 0.01, %v15776_v59 }
 0x79c   :  { %v13443_v6 = vor.u32 %v14978_v1, %v13442_v55  ;;  %v15050_v55 = vld [vmem:[#allocation13 + $0x244] sm:$0xf0]  ;;  %v13794_v1 = vld [vmem:[#allocation13 + $0x2c0] sm:$0xf]  ;;  %v8075_v27 = vpop.f32.mrf.mxu0  ;;  %v13722_v13 = vld [vmem:[#allocation13 + $0x230] sm:$0xf] }
 0x79d   :  { %9097 = vmatpush.bf16.msra.mxu2 %v13603_v49  ;;  %9072 = vmatpush.bf16.msra.mxu0 %v13467_v10  ;;  %v15026_v49 = vld [vmem:[#allocation13 + $0x184] sm:$0xf0]  ;;  %v13882_v10 = vld [vmem:[#allocation13 + $0x370] sm:$0xf]  ;;  %v13731_v23 = vor.u32 %v15050_v55, %v13730_v51  ;;  %v13795_v18 = vor.u32 %v15066_v43, %v13794_v1  ;;  %v15076_v41 = vld [vmem:[#allocation13 + $0x314] sm:$0xf0] }
 0x79e   :  { %v13826_v51 = vld [vmem:[#allocation13 + $0x300] sm:$0xf]  ;;  %v14991_v1 = vld [vmem:[#allocation13 + $0x74] sm:$0xf]  ;;  %v13500_v43 = vld [vmem:[#allocation13 + $0x78] sm:$0xf0] }
 0x79f   :  { %9110 = vmatpush.bf16.msra.mxu3 %v13667_v50  ;;  %9085 = vmatpush.bf16.msra.mxu1 %v13531_v5  ;;  %v13754_v50 = vld [vmem:[#allocation13 + $0x270] sm:$0xf]  ;;  %v15088_v5 = vld [vmem:[#allocation13 + $0x374] sm:$0xf0] }
 0x7a0   :  { %v13755_v32 = vor.u32 %v15056_v54, %v13754_v50  ;;  %v13883_v33 = vor.u32 %v15088_v5, %v13882_v10  ;;  %v13786_v50 = vld [vmem:[#allocation13 + $0x2b0] sm:$0xf]  ;;  %v15064_v54 = vld [vmem:[#allocation13 + $0x2b4] sm:$0xf0]  ;;  %v13714_v5 = vld [vmem:[#allocation13 + $0x220] sm:$0xf] }
 0x7a1   :  { %9098 = vmatpush.bf16.msra.mxu2 %v13595_v24  ;;  %9073 = vmatpush.bf16.msra.mxu0 %v13459_v2  ;;  %v13635_v24 = vor.u32 %v15026_v49, %v13634_v61  ;;  %v15851_v2 = vpack.c.bf16 %v8283_v57, %v8283_v57  ;;  %v13787_v10 = vor.u32 %v15064_v54, %v13786_v50 }
 0x7a2   :  { %v13851_v57 = vor.u32 %v15080_v40, %v13850_v9  ;;  %v13503_v54 = vor.u32 %v14991_v1, %v13500_v43  ;;  %v13468_v1 = vld [vmem:[#allocation13 + $0x38] sm:$0xf0]  ;;  %v14999_v43 = vld [vmem:[#allocation13 + $0xb4] sm:$0xf] }
 0x7a3   :  { %9111 = vmatpush.bf16.msra.mxu3 %v13659_v16  ;;  %9086 = vmatpush.bf16.msra.mxu1 %v13523_v11  ;;  %v8284_v16 = vmax.f32 %v15722_v62, %v8276_v46  ;;  %v7998_v62 = vadd.f32 %v15825_v38, %v15823_v30  ;;  %v13866_v30 = vld [vmem:[#allocation13 + $0x350] sm:$0xf]  ;;  %v15084_v38 = vld [vmem:[#allocation13 + $0x354] sm:$0xf0]  ;;  %v1425_v46 = vperm.slane %v15139_v17, 7 }
 0x7a4   :  { %v8077_v36 = vpop.f32.mrf.mxu0 }
 0x7a5   :  { %9099 = vmatpush.bf16.msra.mxu2 %v13587_v4  ;;  %9074 = vmatpush.bf16.msra.mxu0 %v13451_v12  ;;  %v15855_v11 = vpack.c.bf16 %v8284_v16, %v8284_v16  ;;  %v15857_v4 = vpack.c.bf16 %v8285_v53, %v8285_v53  ;;  %v8011_v15 = vadd.f32 %v15827_v31, %v7998_v62  ;;  %v8088_v31 = vpop.f32.mrf.mxu1  ;;  %v8101_v16 = vpop.f32.mrf.mxu2  ;;  %v15003_v36 = vld [vmem:[#allocation13 + $0xd4] sm:$0xf] }
 0x7a6   :  { %v8076_v48 = vadd.f32 %v8075_v27, %v1425_v46  ;;  %v15058_v46 = vld [vmem:[#allocation13 + $0x284] sm:$0xf0]  ;;  %v13564_v27 = vld [vmem:[#allocation13 + $0xf8] sm:$0xf0] }
 0x7a7   :  { %9112 = vmatpush.bf16.msra.mxu3 %v13651_v25  ;;  %9087 = vmatpush.bf16.msra.mxu1 %v13515_v20  ;;  %v13875_v25 = vor.u32 %v15086_v56, %v13874_v34  ;;  %v8024_v12 = vadd.f32 %v15833_v47, %v8011_v15  ;;  %v13867_v20 = vor.u32 %v15084_v38, %v13866_v30  ;;  %v15048_v47 = vld [vmem:[#allocation13 + $0x234] sm:$0xf0]  ;;  %v13706_v34 = vld [vmem:[#allocation13 + $0x210] sm:$0xf]  ;;  %v13698_v15 = vld [vmem:[#allocation13 + $0x200] sm:$0xf] }
 0x7a8   :  { %v8089_v58 = vadd.f32 %v8088_v31, %v8076_v48  ;;  %v15023_v31 = vld [vmem:[#allocation13 + $0x174] sm:$0xf]  ;;  %v13628_v48 = vld [vmem:[#allocation13 + $0x178] sm:$0xf0] }
 0x7a9   :  { %9100 = vmatpush.bf16.msra.mxu2 %v13579_v63  ;;  %9075 = vmatpush.bf16.msra.mxu0 %v13443_v6  ;;  %v13858_v63 = vld [vmem:[#allocation13 + $0x340] sm:$0xf]  ;;  %v8037_v61 = vadd.f32 %v15835_v0, %v8024_v12  ;;  %v15062_v0 = vld [vmem:[#allocation13 + $0x2a4] sm:$0xf0]  ;;  %v13631_v40 = vor.u32 %v15023_v31, %v13628_v48  ;;  %v13596_v31 = vld [vmem:[#allocation13 + $0x138] sm:$0xf0] }
 0x7aa   :  { %v15074_v12 = vld [vmem:[#allocation13 + $0x304] sm:$0xf0]  ;;  %v13914_v48 = vld [vmem:[#allocation13 + $0x3b0] sm:$0xf] }
 0x7ab   :  { %9113 = vmatpush.bf16.msra.mxu3 %v13643_v60  ;;  %9088 = vmatpush.bf16.msra.mxu1 %v13507_v22  ;;  %v15082_v60 = vld [vmem:[#allocation13 + $0x344] sm:$0xf0]  ;;  %v8050_v6 = vadd.f32 %v15837_v52, %v8037_v61  ;;  %v13723_v22 = vor.u32 %v15048_v47, %v13722_v13  ;;  %v13946_v61 = vld [vmem:[#allocation13 + $0x3f0] sm:$0xf]  ;;  %v13827_v50 = vor.u32 %v15074_v12, %v13826_v51 }
 0x7ac   :  { %9076 = vmatmul.bf16.vlgmr.msra.gmra.mxu0 %v15849_v3  ;;  %v13859_v49 = vor.u32 %v15082_v60, %v13858_v63  ;;  %v15007_v63 = vld [vmem:[#allocation13 + $0xf4] sm:$0xf]  ;;  %v8286_v60 = vmax.f32 %v15776_v59, %v8278_v14  ;;  %v13492_v59 = vld [vmem:[#allocation13 + $0x68] sm:$0xf0]  ;;  %v14985_v14 = vld [vmem:[#allocation13 + $0x44] sm:$0xf] }
 0x7ad   :  { %9101 = vmatpush.bf16.msra.mxu2 %v13571_v21  ;;  %9120 = vmatpush.bf16.msrb.mxu0 %v13755_v32  ;;  %v15046_v21 = vld [vmem:[#allocation13 + $0x224] sm:$0xf0]  ;;  %v8114_v32 = vpop.f32.mrf.mxu3  ;;  %v8063_v53 = vadd.f32 %v15839_v29, %v8050_v6  ;;  %v8090_v8 = vpop.f32.mrf.mxu1  ;;  %v8279_v29 = vmul.f32 0.01, %v15803_v19  ;;  %v13567_v9 = vor.u32 %v15007_v63, %v13564_v27  ;;  %v14989_v6 = vld [vmem:[#allocation13 + $0x64] sm:$0xf] }
 0x7ae   :  { %9089 = vmatmul.bf16.vlgmr.msra.gmra.mxu1 %v15851_v2  ;;  %v13715_v52 = vor.u32 %v15046_v21, %v13714_v5  ;;  %v15021_v5 = vld [vmem:[#allocation13 + $0x164] sm:$0xf]  ;;  %v15098_v51 = vld [vmem:[#allocation13 + $0x3c4] sm:$0xf0]  ;;  %v15015_v27 = vld [vmem:[#allocation13 + $0x134] sm:$0xf] }
 0x7af   :  { %9114 = vmatpush.bf16.msra.mxu3 %v13635_v24  ;;  %9133 = vmatpush.bf16.msrb.mxu1 %v13819_v28  ;;  %v13778_v24 = vld [vmem:[#allocation13 + $0x2a0] sm:$0xf]  ;;  %v8280_v7 = vmul.f32 0.01, %v8063_v53 }
 0x7b0   :  { %9102 = vmatmul.bf16.vlgmr.msra.gmra.mxu2 %v15855_v11  ;;  %v13842_v28 = vld [vmem:[#allocation13 + $0x320] sm:$0xf]  ;;  %v13779_v26 = vor.u32 %v15062_v0, %v13778_v24  ;;  %v13495_v0 = vor.u32 %v14989_v6, %v13492_v59 }
 0x7b1   :  { %9146 = vmatpush.bf16.msrb.mxu2 %v13883_v33  ;;  %9121 = vmatpush.bf16.msrb.mxu0 %v13747_v44  ;;  %v8102_v33 = vadd.f32 %v8101_v16, %v8089_v58  ;;  %v13843_v62 = vor.u32 %v15078_v42, %v13842_v28  ;;  %v15044_v44 = vld [vmem:[#allocation13 + $0x214] sm:$0xf0]  ;;  %v8288_v47 = vmax.f32 %v8063_v53, %v8280_v7  ;;  %v13938_v16 = vld [vmem:[#allocation13 + $0x3e0] sm:$0xf]  ;;  %v14987_v53 = vld [vmem:[#allocation13 + $0x54] sm:$0xf] }
 0x7b2   :  { %9115 = vmatmul.bf16.vlgmr.msra.gmra.mxu3 %v15857_v4  ;;  %v13707_v30 = vor.u32 %v15044_v44, %v13706_v34  ;;  %v13612_v34 = vld [vmem:[#allocation13 + $0x158] sm:$0xf0]  ;;  %v15100_v44 = vld [vmem:[#allocation13 + $0x3d4] sm:$0xf0]  ;;  %v15001_v7 = vld [vmem:[#allocation13 + $0xc4] sm:$0xf] }
 0x7b3   :  { %9134 = vmatpush.bf16.msrb.mxu1 %v13811_v37  ;;  %v15868_v56 = vadd.f32 %v8114_v32, %v8102_v33  ;;  %v13770_v37 = vld [vmem:[#allocation13 + $0x290] sm:$0xf]  ;;  %v15878_v24 = vpack.c.bf16 %v8288_v47, %v8288_v47  ;;  %v15102_v32 = vld [vmem:[#allocation13 + $0x3e4] sm:$0xf0]  ;;  %v13484_v33 = vld [vmem:[#allocation13 + $0x58] sm:$0xf0] }
 0x7b4   :  { %v13771_v38 = vor.u32 %v15060_v39, %v13770_v37  ;;  %v13939_v8 = vor.u32 %v15102_v32, %v13938_v16  ;;  %v13487_v37 = vor.u32 %v14987_v53, %v13484_v33  ;;  %v14981_v47 = vld [vmem:[#allocation13 + $0x24] sm:$0xf]  ;;  %v14995_v53 = vld [vmem:[#allocation13 + $0x94] sm:$0xf] }
 0x7b5   :  { %9147 = vmatpush.bf16.msrb.mxu2 %v13875_v25  ;;  %9122 = vmatpush.bf16.msrb.mxu0 %v13739_v35  ;;  %v13834_v25 = vld [vmem:[#allocation13 + $0x310] sm:$0xf]  ;;  %v15042_v35 = vld [vmem:[#allocation13 + $0x204] sm:$0xf0]  ;;  %v8116_v55 = vpop.f32.mrf.mxu3 }
 0x7b6   :  { %v13835_v17 = vor.u32 %v15076_v41, %v13834_v25  ;;  %v14983_v55 = vld [vmem:[#allocation13 + $0x34] sm:$0xf] }
 0x7b7   :  { %9135 = vmatpush.bf16.msrb.mxu1 %v13803_v45  ;;  %v13762_v45 = vld [vmem:[#allocation13 + $0x280] sm:$0xf] }
 0x7b8   :  { %v13763_v13 = vor.u32 %v15058_v46, %v13762_v45  ;;  %v15885_v45 = vpop.f32.mrf.mxu1  ;;  %v13922_v46 = vld [vmem:[#allocation13 + $0x3c0] sm:$0xf] }
 0x7b9   :  { %9148 = vmatpush.bf16.msrb.mxu2 %v13867_v20  ;;  %9123 = vmatpush.bf16.msrb.mxu0 %v13731_v23  ;;  %v8103_v20 = vpop.f32.mrf.mxu2  ;;  %v8287_v23 = vmax.f32 %v15803_v19, %v8279_v29  ;;  %v15874_v19 = vpack.c.bf16 %v8286_v60, %v8286_v60  ;;  %v13476_v29 = vld [vmem:[#allocation13 + $0x48] sm:$0xf0]  ;;  %v13923_v63 = vor.u32 %v15098_v51, %v13922_v46  ;;  %v13532_v60 = vld [vmem:[#allocation13 + $0xb8] sm:$0xf0] }
 0x7bb   :  { %9136 = vmatpush.bf16.msrb.mxu1 %v13795_v18  ;;  %v13699_v18 = vor.u32 %v15042_v35, %v13698_v15  ;;  %v15876_v21 = vpack.c.bf16 %v8287_v23, %v8287_v23  ;;  %v13604_v15 = vld [vmem:[#allocation13 + $0x148] sm:$0xf0]  ;;  %v15883_v35 = vpop.f32.mrf.mxu0  ;;  %v15096_v23 = vld [vmem:[#allocation13 + $0x3b4] sm:$0xf0] }
 0x7bd   :  { %9149 = vmatpush.bf16.msrb.mxu2 %v13859_v49  ;;  %9124 = vmatpush.bf16.msrb.mxu0 %v13723_v22  ;;  %v15104_v49 = vld [vmem:[#allocation13 + $0x3f4] sm:$0xf0]  ;;  %v15005_v22 = vld [vmem:[#allocation13 + $0xe4] sm:$0xf]  ;;  %v15889_v59 = vpop.f32.mrf.mxu3 }
 0x7be   :  { %v13947_v58 = vor.u32 %v15104_v49, %v13946_v61  ;;  %v13535_v61 = vor.u32 %v14999_v43, %v13532_v60  ;;  %v13599_v49 = vor.u32 %v15015_v27, %v13596_v31  ;;  %v15087_v43 = vld [vmem:[#allocation13 + $0x374] sm:$0xf] }
 0x7bf   :  { %9137 = vmatpush.bf16.msrb.mxu1 %v13787_v10  ;;  %v13556_v10 = vld [vmem:[#allocation13 + $0xe8] sm:$0xf0] }
 0x7c0   :  { %9159 = vmatpush.bf16.msrb.mxu3 %v13947_v58  ;;  %v13559_v28 = vor.u32 %v15005_v22, %v13556_v10  ;;  %v13524_v58 = vld [vmem:[#allocation13 + $0xa8] sm:$0xf0]  ;;  %v8142_v10 = vpop.f32.mrf.mxu1 }
 0x7c1   :  { %9150 = vmatpush.bf16.msrb.mxu2 %v13851_v57  ;;  %9125 = vmatpush.bf16.msrb.mxu0 %v13715_v52  ;;  %v13620_v57 = vld [vmem:[#allocation13 + $0x168] sm:$0xf0]  ;;  %v13548_v52 = vld [vmem:[#allocation13 + $0xd8] sm:$0xf0]  ;;  %v15887_v6 = vpop.f32.mrf.mxu2 }
 0x7c2   :  { %v13623_v42 = vor.u32 %v15021_v5, %v13620_v57  ;;  %v13551_v25 = vor.u32 %v15003_v36, %v13548_v52  ;;  %v13906_v57 = vld [vmem:[#allocation13 + $0x3a0] sm:$0xf]  ;;  %v13516_v36 = vld [vmem:[#allocation13 + $0x98] sm:$0xf0] }
 0x7c3   :  { %9138 = vmatpush.bf16.msrb.mxu1 %v13779_v26  ;;  %v15019_v26 = vld [vmem:[#allocation13 + $0x154] sm:$0xf]  ;;  %v8129_v22 = vpop.f32.mrf.mxu0  ;;  %v13580_v52 = vld [vmem:[#allocation13 + $0x118] sm:$0xf0] }
 0x7c4   :  { %9160 = vmatpush.bf16.msrb.mxu3 %v13939_v8  ;;  %v13615_v41 = vor.u32 %v15019_v26, %v13612_v34  ;;  %v15011_v8 = vld [vmem:[#allocation13 + $0x114] sm:$0xf]  ;;  %v13898_v26 = vld [vmem:[#allocation13 + $0x390] sm:$0xf]  ;;  %v15092_v34 = vld [vmem:[#allocation13 + $0x394] sm:$0xf0] }
 0x7c5   :  { %9151 = vmatpush.bf16.msrb.mxu2 %v13843_v62  ;;  %9126 = vmatpush.bf16.msrb.mxu0 %v13707_v30  ;;  %v13930_v62 = vld [vmem:[#allocation13 + $0x3d0] sm:$0xf]  ;;  %v13540_v30 = vld [vmem:[#allocation13 + $0xc8] sm:$0xf0]  ;;  %v8168_v51 = vpop.f32.mrf.mxu3 }
 0x7c6   :  { %v13931_v39 = vor.u32 %v15100_v44, %v13930_v62  ;;  %v13543_v12 = vor.u32 %v15001_v7, %v13540_v30  ;;  %v14977_v44 = vld [vmem:[#allocation13 + $0x4] sm:$0xf]  ;;  %v13572_v30 = vld [vmem:[#allocation13 + $0x108] sm:$0xf0]  ;;  %v15063_v51 = vld [vmem:[#allocation13 + $0x2b4] sm:$0xf] }
 0x7c7   :  { %9139 = vmatpush.bf16.msrb.mxu1 %v13771_v38  ;;  %v15017_v38 = vld [vmem:[#allocation13 + $0x144] sm:$0xf] }
 0x7c8   :  { %9161 = vmatpush.bf16.msrb.mxu3 %v13931_v39  ;;  %v13607_v20 = vor.u32 %v15017_v38, %v13604_v15  ;;  %v14993_v39 = vld [vmem:[#allocation13 + $0x84] sm:$0xf]  ;;  %v15055_v38 = vld [vmem:[#allocation13 + $0x274] sm:$0xf]  ;;  %v13756_v15 = vld [vmem:[#allocation13 + $0x278] sm:$0xf0] }
 0x7c9   :  { %9152 = vmatpush.bf16.msrb.mxu2 %v13835_v17  ;;  %9127 = vmatpush.bf16.msrb.mxu0 %v13699_v18  ;;  %v13479_v17 = vor.u32 %v14985_v14, %v13476_v29  ;;  %v13471_v18 = vor.u32 %v14983_v55, %v13468_v1  ;;  %v13583_v14 = vor.u32 %v15011_v8, %v13580_v52  ;;  %v13508_v29 = vld [vmem:[#allocation13 + $0x88] sm:$0xf0]  ;;  %v15009_v7 = vld [vmem:[#allocation13 + $0x104] sm:$0xf]  ;;  %v8155_v46 = vpop.f32.mrf.mxu2  ;;  %v15090_v55 = vld [vmem:[#allocation13 + $0x384] sm:$0xf0] }
 0x7ca   :  { %v13511_v27 = vor.u32 %v14993_v39, %v13508_v29  ;;  %v13575_v31 = vor.u32 %v15009_v7, %v13572_v30  ;;  %v13796_v39 = vld [vmem:[#allocation13 + $0x2c8] sm:$0xf0]  ;;  %v15047_v30 = vld [vmem:[#allocation13 + $0x234] sm:$0xf]  ;;  %v13724_v46 = vld [vmem:[#allocation13 + $0x238] sm:$0xf0] }
 0x7cb   :  { %9140 = vmatpush.bf16.msrb.mxu1 %v13763_v13  ;;  %v13915_v13 = vor.u32 %v15096_v23, %v13914_v48  ;;  %v13759_v48 = vor.u32 %v15055_v38, %v13756_v15  ;;  %v15033_v38 = vld [vmem:[#allocation13 + $0x1c4] sm:$0xf]  ;;  %v13668_v15 = vld [vmem:[#allocation13 + $0x1c8] sm:$0xf0] }
 0x7cc   :  { %9128 = vmatmul.bf16.vlgmr.msrb.gmra.mxu0 %v15874_v19  ;;  %9162 = vmatpush.bf16.msrb.mxu3 %v13923_v63  ;;  %v13884_v63 = vld [vmem:[#allocation13 + $0x378] sm:$0xf0] }
 0x7cd   :  { %9153 = vmatpush.bf16.msrb.mxu2 %v13827_v50  ;;  %9172 = vmatpush.bf16.msra.mxu0 %v13503_v54  ;;  %v13460_v50 = vld [vmem:[#allocation13 + $0x28] sm:$0xf0]  ;;  %v14997_v54 = vld [vmem:[#allocation13 + $0xa4] sm:$0xf] }
 0x7ce   :  { %9141 = vmatmul.bf16.vlgmr.msrb.gmra.mxu1 %v15876_v21  ;;  %v13463_v5 = vor.u32 %v14981_v47, %v13460_v50  ;;  %v13527_v16 = vor.u32 %v14997_v54, %v13524_v58  ;;  %v13748_v47 = vld [vmem:[#allocation13 + $0x268] sm:$0xf0]  ;;  %v15069_v50 = vld [vmem:[#allocation13 + $0x2e4] sm:$0xf] }
 0x7cf   :  { %9185 = vmatpush.bf16.msra.mxu1 %v13567_v9  ;;  %v15013_v9 = vld [vmem:[#allocation13 + $0x124] sm:$0xf]  ;;  %v13812_v54 = vld [vmem:[#allocation13 + $0x2e8] sm:$0xf0] }
 0x7d0   :  { %9154 = vmatmul.bf16.vlgmr.msrb.gmra.mxu2 %v15878_v24  ;;  %9163 = vmatpush.bf16.msrb.mxu3 %v13915_v13  ;;  %v15039_v13 = vld [vmem:[#allocation13 + $0x1f4] sm:$0xf]  ;;  %v15085_v58 = vld [vmem:[#allocation13 + $0x364] sm:$0xf]  ;;  %v13815_v10 = vor.u32 %v15069_v50, %v13812_v54 }
 0x7d1   :  { %9198 = vmatpush.bf16.msra.mxu2 %v13631_v40  ;;  %9173 = vmatpush.bf16.msra.mxu0 %v13495_v0  ;;  %v13588_v40 = vld [vmem:[#allocation13 + $0x128] sm:$0xf0]  ;;  %v15094_v0 = vld [vmem:[#allocation13 + $0x3a4] sm:$0xf0] }
 0x7d2   :  { %v13591_v32 = vor.u32 %v15013_v9, %v13588_v40  ;;  %v13907_v33 = vor.u32 %v15094_v0, %v13906_v57  ;;  %v13876_v9 = vld [vmem:[#allocation13 + $0x368] sm:$0xf0]  ;;  %v15037_v57 = vld [vmem:[#allocation13 + $0x1e4] sm:$0xf] }
 0x7d3   :  { %9186 = vmatpush.bf16.msra.mxu1 %v13559_v28  ;;  %v14979_v28 = vld [vmem:[#allocation13 + $0x14] sm:$0xf]  ;;  %v13684_v0 = vld [vmem:[#allocation13 + $0x1e8] sm:$0xf0] }
 0x7d4   :  { %9164 = vmatpush.bf16.msrb.mxu3 %v13907_v33  ;;  %v13868_v33 = vld [vmem:[#allocation13 + $0x358] sm:$0xf0] }
 0x7d5   :  { %9199 = vmatpush.bf16.msra.mxu2 %v13623_v42  ;;  %9174 = vmatpush.bf16.msra.mxu0 %v13487_v37  ;;  %v13452_v42 = vld [vmem:[#allocation13 + $0x18] sm:$0xf0]  ;;  %v13444_v37 = vld [vmem:[#allocation13 + $0x8] sm:$0xf0]  ;;  %v15900_v50 = vpop.f32.mrf.mxu3 }
 0x7d6   :  { %v13455_v62 = vor.u32 %v14979_v28, %v13452_v42  ;;  %v13447_v1 = vor.u32 %v14977_v44, %v13444_v37  ;;  %v15067_v28 = vld [vmem:[#allocation13 + $0x2d4] sm:$0xf]  ;;  %v13804_v42 = vld [vmem:[#allocation13 + $0x2d8] sm:$0xf0]  ;;  %v13732_v44 = vld [vmem:[#allocation13 + $0x248] sm:$0xf0] }
 0x7d7   :  { %9187 = vmatpush.bf16.msra.mxu1 %v13551_v25  ;;  %v13899_v25 = vor.u32 %v15092_v34, %v13898_v26  ;;  %v13807_v52 = vor.u32 %v15067_v28, %v13804_v42  ;;  %v15049_v26 = vld [vmem:[#allocation13 + $0x244] sm:$0xf]  ;;  %v15035_v34 = vld [vmem:[#allocation13 + $0x1d4] sm:$0xf]  ;;  %v13772_v42 = vld [vmem:[#allocation13 + $0x298] sm:$0xf0] }
 0x7d8   :  { %v15065_v37 = vld [vmem:[#allocation13 + $0x2c4] sm:$0xf]  ;;  %v13735_v29 = vor.u32 %v15049_v26, %v13732_v44  ;;  %v15059_v28 = vld [vmem:[#allocation13 + $0x294] sm:$0xf] }
 0x7d9   :  { %9200 = vmatpush.bf16.msra.mxu2 %v13615_v41  ;;  %9175 = vmatpush.bf16.msra.mxu0 %v13479_v17  ;;  %v13519_v41 = vor.u32 %v14995_v53, %v13516_v36  ;;  %v15071_v17 = vld [vmem:[#allocation13 + $0x2f4] sm:$0xf]  ;;  %v13687_v36 = vor.u32 %v15037_v57, %v13684_v0  ;;  %v13799_v7 = vor.u32 %v15065_v37, %v13796_v39  ;;  %v15029_v57 = vld [vmem:[#allocation13 + $0x1a4] sm:$0xf]  ;;  %v13652_v0 = vld [vmem:[#allocation13 + $0x1a8] sm:$0xf0] }
 0x7da   :  { %9165 = vmatpush.bf16.msrb.mxu3 %v13899_v25  ;;  %v15083_v53 = vld [vmem:[#allocation13 + $0x354] sm:$0xf]  ;;  %v15081_v25 = vld [vmem:[#allocation13 + $0x344] sm:$0xf]  ;;  %v13764_v37 = vld [vmem:[#allocation13 + $0x288] sm:$0xf0] }
 0x7db   :  { %9188 = vmatpush.bf16.msra.mxu1 %v13543_v12  ;;  %v13820_v12 = vld [vmem:[#allocation13 + $0x2f8] sm:$0xf0]  ;;  %v15027_v26 = vld [vmem:[#allocation13 + $0x194] sm:$0xf]  ;;  %v15057_v44 = vld [vmem:[#allocation13 + $0x284] sm:$0xf] }
 0x7dc   :  { %v13823_v23 = vor.u32 %v15071_v17, %v13820_v12  ;;  %v13788_v12 = vld [vmem:[#allocation13 + $0x2b8] sm:$0xf0] }
 0x7dd   :  { %9201 = vmatpush.bf16.msra.mxu2 %v13607_v20  ;;  %9176 = vmatpush.bf16.msra.mxu0 %v13471_v18  ;;  %v13890_v20 = vld [vmem:[#allocation13 + $0x380] sm:$0xf]  ;;  %v15053_v18 = vld [vmem:[#allocation13 + $0x264] sm:$0xf] }
 0x7de   :  { %v13891_v60 = vor.u32 %v15090_v55, %v13890_v20  ;;  %v13751_v22 = vor.u32 %v15053_v18, %v13748_v47  ;;  %v15079_v20 = vld [vmem:[#allocation13 + $0x334] sm:$0xf]  ;;  %v13852_v55 = vld [vmem:[#allocation13 + $0x338] sm:$0xf0]  ;;  %v15061_v18 = vld [vmem:[#allocation13 + $0x2a4] sm:$0xf]  ;;  %v15898_v47 = vpop.f32.mrf.mxu2 }
 0x7df   :  { %9189 = vmatpush.bf16.msra.mxu1 %v13535_v61  ;;  %v13692_v61 = vld [vmem:[#allocation13 + $0x1f8] sm:$0xf0] }
 0x7e0   :  { %9166 = vmatpush.bf16.msrb.mxu3 %v13891_v60  ;;  %v13695_v40 = vor.u32 %v15039_v13, %v13692_v61  ;;  %v15045_v60 = vld [vmem:[#allocation13 + $0x224] sm:$0xf]  ;;  %v13780_v13 = vld [vmem:[#allocation13 + $0x2a8] sm:$0xf0] }
 0x7e1   :  { %9202 = vmatpush.bf16.msra.mxu2 %v13599_v49  ;;  %9177 = vmatpush.bf16.msra.mxu0 %v13463_v5  ;;  %v13887_v49 = vor.u32 %v15087_v43, %v13884_v63  ;;  %v15051_v5 = vld [vmem:[#allocation13 + $0x254] sm:$0xf]  ;;  %v13727_v43 = vor.u32 %v15047_v30, %v13724_v46  ;;  %v13791_v63 = vor.u32 %v15063_v51, %v13788_v12  ;;  %v15077_v61 = vld [vmem:[#allocation13 + $0x324] sm:$0xf] }
 0x7e2   :  { %v13767_v30 = vor.u32 %v15057_v44, %v13764_v37  ;;  %v15089_v37 = vld [vmem:[#allocation13 + $0x384] sm:$0xf] }
 0x7e3   :  { %9190 = vmatpush.bf16.msra.mxu1 %v13527_v16  ;;  %v13879_v16 = vor.u32 %v15085_v58, %v13876_v9  ;;  %v8128_v58 = vadd.f32 %v15883_v35, %v15868_v56 }
 0x7e4   :  { %9211 = vmatpush.bf16.msra.mxu3 %v13695_v40 }
 0x7e5   :  { %9203 = vmatpush.bf16.msra.mxu2 %v13591_v32  ;;  %9178 = vmatpush.bf16.msra.mxu0 %v13455_v62  ;;  %v13740_v32 = vld [vmem:[#allocation13 + $0x258] sm:$0xf0]  ;;  %v8141_v56 = vadd.f32 %v15885_v45, %v8128_v58  ;;  %v15099_v58 = vld [vmem:[#allocation13 + $0x3d4] sm:$0xf] }
 0x7e6   :  { %v13743_v8 = vor.u32 %v15051_v5, %v13740_v32  ;;  %v13676_v62 = vld [vmem:[#allocation13 + $0x1d8] sm:$0xf0]  ;;  %v15043_v5 = vld [vmem:[#allocation13 + $0x214] sm:$0xf] }
 0x7e7   :  { %9191 = vmatpush.bf16.msra.mxu1 %v13519_v41  ;;  %v15894_v41 = vpop.f32.mrf.mxu0  ;;  %v13708_v32 = vld [vmem:[#allocation13 + $0x218] sm:$0xf0]  ;;  %v8154_v39 = vadd.f32 %v15887_v6, %v8141_v56 }
 0x7e8   :  { %9212 = vmatpush.bf16.msra.mxu3 %v13687_v36  ;;  %v13655_v36 = vor.u32 %v15029_v57, %v13652_v0  ;;  %v13711_v35 = vor.u32 %v15043_v5, %v13708_v32  ;;  %v15095_v57 = vld [vmem:[#allocation13 + $0x3b4] sm:$0xf]  ;;  %v13916_v0 = vld [vmem:[#allocation13 + $0x3b8] sm:$0xf0] }
 0x7e9   :  { %9204 = vmatpush.bf16.msra.mxu2 %v13583_v14  ;;  %9179 = vmatpush.bf16.msra.mxu0 %v13447_v1  ;;  %v15896_v14 = vpop.f32.mrf.mxu1  ;;  %v13671_v1 = vor.u32 %v15033_v38, %v13668_v15  ;;  %v15025_v15 = vld [vmem:[#allocation13 + $0x184] sm:$0xf]  ;;  %v8167_v46 = vadd.f32 %v15889_v59, %v8154_v39  ;;  %v13892_v39 = vld [vmem:[#allocation13 + $0x388] sm:$0xf0] }
 0x7eb   :  { %9192 = vmatpush.bf16.msra.mxu1 %v13511_v27  ;;  %v15031_v27 = vld [vmem:[#allocation13 + $0x1b4] sm:$0xf]  ;;  %v8180_v51 = vadd.f32 %v15894_v41, %v8167_v46 }
 0x7ec   :  { %9180 = vmatmul.bf16.vlgmr.msra.gmra.mxu0 %v15849_v3  ;;  %v13871_v3 = vor.u32 %v15083_v53, %v13868_v33  ;;  %v15075_v53 = vld [vmem:[#allocation13 + $0x314] sm:$0xf]  ;;  %v13836_v33 = vld [vmem:[#allocation13 + $0x318] sm:$0xf0] }
 0x7ed   :  { %9205 = vmatpush.bf16.msra.mxu2 %v13575_v31  ;;  %9224 = vmatpush.bf16.msrb.mxu0 %v13759_v48  ;;  %v13660_v31 = vld [vmem:[#allocation13 + $0x1b8] sm:$0xf0]  ;;  %v13855_v48 = vor.u32 %v15079_v20, %v13852_v55  ;;  %v8193_v12 = vadd.f32 %v15896_v14, %v8180_v51 }
 0x7ee   :  { %9193 = vmatmul.bf16.vlgmr.msra.gmra.mxu1 %v15851_v2  ;;  %v13860_v2 = vld [vmem:[#allocation13 + $0x348] sm:$0xf0]  ;;  %v13663_v54 = vor.u32 %v15031_v27, %v13660_v31  ;;  %v13948_v14 = vld [vmem:[#allocation13 + $0x3f8] sm:$0xf0] }
 0x7ef   :  { %9237 = vmatpush.bf16.msrb.mxu1 %v13823_v23  ;;  %v13863_v17 = vor.u32 %v15081_v25, %v13860_v2  ;;  %v13716_v23 = vld [vmem:[#allocation13 + $0x228] sm:$0xf0]  ;;  %v8181_v9 = vpop.f32.mrf.mxu0  ;;  %v15073_v25 = vld [vmem:[#allocation13 + $0x304] sm:$0xf]  ;;  %v8206_v20 = vadd.f32 %v15898_v47, %v8193_v12 }
 0x7f0   :  { %9206 = vmatmul.bf16.vlgmr.msra.gmra.mxu2 %v15855_v11  ;;  %v13679_v11 = vor.u32 %v15035_v34, %v13676_v62  ;;  %v13644_v34 = vld [vmem:[#allocation13 + $0x198] sm:$0xf0]  ;;  %v13839_v62 = vor.u32 %v15075_v53, %v13836_v33  ;;  %v13828_v2 = vld [vmem:[#allocation13 + $0x308] sm:$0xf0]  ;;  %v15101_v47 = vld [vmem:[#allocation13 + $0x3e4] sm:$0xf] }
 0x7f1   :  { %9250 = vmatpush.bf16.msrb.mxu2 %v13887_v49  ;;  %9225 = vmatpush.bf16.msrb.mxu0 %v13751_v22  ;;  %v13844_v49 = vld [vmem:[#allocation13 + $0x328] sm:$0xf0]  ;;  %v8194_v40 = vpop.f32.mrf.mxu1  ;;  %v13719_v22 = vor.u32 %v15045_v60, %v13716_v23  ;;  %v13647_v45 = vor.u32 %v15027_v26, %v13644_v34  ;;  %v13831_v38 = vor.u32 %v15073_v25, %v13828_v2  ;;  %v15103_v23 = vld [vmem:[#allocation13 + $0x3f4] sm:$0xf]  ;;  %v13932_v9 = vld [vmem:[#allocation13 + $0x3d8] sm:$0xf0] }
 0x7f2   :  { %9213 = vmatpush.bf16.msra.mxu3 %v13679_v11  ;;  %v8207_v11 = vpop.f32.mrf.mxu2  ;;  %v8219_v59 = vadd.f32 %v15900_v50, %v8206_v20  ;;  %v13940_v50 = vld [vmem:[#allocation13 + $0x3e8] sm:$0xf0]  ;;  %v13935_v40 = vor.u32 %v15099_v58, %v13932_v9  ;;  %v15093_v53 = vld [vmem:[#allocation13 + $0x3a4] sm:$0xf]  ;;  %v13895_v25 = vor.u32 %v15089_v37, %v13892_v39 }
 0x7f3   :  { %9238 = vmatpush.bf16.msrb.mxu1 %v13815_v10  ;;  %v13783_v10 = vor.u32 %v15061_v18, %v13780_v13  ;;  %v13908_v33 = vld [vmem:[#allocation13 + $0x3a8] sm:$0xf0] }
 0x7f5   :  { %9251 = vmatpush.bf16.msrb.mxu2 %v13879_v16  ;;  %9226 = vmatpush.bf16.msrb.mxu0 %v13743_v8  ;;  %v13847_v16 = vor.u32 %v15077_v61, %v13844_v49  ;;  %v13775_v8 = vor.u32 %v15059_v28, %v13772_v42  ;;  %v13951_v61 = vor.u32 %v15103_v23, %v13948_v14 }
 0x7f6   :  { %9214 = vmatpush.bf16.msra.mxu3 %v13671_v1  ;;  %v13919_v42 = vor.u32 %v15095_v57, %v13916_v0 }
 0x7f7   :  { %9239 = vmatpush.bf16.msrb.mxu1 %v13807_v52  ;;  %v15041_v52 = vld [vmem:[#allocation13 + $0x204] sm:$0xf] }
 0x7f9   :  { %9252 = vmatpush.bf16.msrb.mxu2 %v13871_v3  ;;  %9227 = vmatpush.bf16.msrb.mxu0 %v13735_v29  ;;  %v13700_v3 = vld [vmem:[#allocation13 + $0x208] sm:$0xf0]  ;;  %v8220_v29 = vpop.f32.mrf.mxu3 }
 0x7fa   :  { %9215 = vmatpush.bf16.msra.mxu3 %v13663_v54  ;;  %v13943_v54 = vor.u32 %v15101_v47, %v13940_v50 }
 0x7fb   :  { %9240 = vmatpush.bf16.msrb.mxu1 %v13799_v7  ;;  %v13703_v7 = vor.u32 %v15041_v52, %v13700_v3 }
 0x7fd   :  { %9253 = vmatpush.bf16.msrb.mxu2 %v13863_v17  ;;  %9228 = vmatpush.bf16.msrb.mxu0 %v13727_v43  ;;  %v13636_v17 = vld [vmem:[#allocation13 + $0x188] sm:$0xf0] }
 0x7fe   :  { %9216 = vmatpush.bf16.msra.mxu3 %v13655_v36  ;;  %v13639_v6 = vor.u32 %v15025_v15, %v13636_v17  ;;  %v13911_v36 = vor.u32 %v15093_v53, %v13908_v33 }
 0x7ff   :  { %9241 = vmatpush.bf16.msrb.mxu1 %v13791_v63 }
 0x801   :  { %9254 = vmatpush.bf16.msrb.mxu2 %v13855_v48  ;;  %9229 = vmatpush.bf16.msrb.mxu0 %v13719_v22  ;;  %v15097_v22 = vld [vmem:[#allocation13 + $0x3c4] sm:$0xf] }
 0x802   :  { %9217 = vmatpush.bf16.msra.mxu3 %v13647_v45 }
 0x803   :  { %9242 = vmatpush.bf16.msrb.mxu1 %v13783_v10  ;;  %v13924_v10 = vld [vmem:[#allocation13 + $0x3c8] sm:$0xf0] }
 0x804   :  { %v13927_v5 = vor.u32 %v15097_v22, %v13924_v10  ;;  %v9297_v10 = vld [vmem:[#allocation16] sm:$0x3] }
 0x805   :  { %9255 = vmatpush.bf16.msrb.mxu2 %v13847_v16  ;;  %9230 = vmatpush.bf16.msrb.mxu0 %v13711_v35  ;;  %v15091_v35 = vld [vmem:[#allocation13 + $0x394] sm:$0xf] }
 0x806   :  { %9218 = vmatpush.bf16.msra.mxu3 %v13639_v6 }
 0x807   :  { %9243 = vmatpush.bf16.msrb.mxu1 %v13775_v8  ;;  %v13900_v8 = vld [vmem:[#allocation13 + $0x398] sm:$0xf0] }
 0x808   :  { %v13903_v44 = vor.u32 %v15091_v35, %v13900_v8 }
 0x809   :  { %9256 = vmatpush.bf16.msrb.mxu2 %v13839_v62  ;;  %9231 = vmatpush.bf16.msrb.mxu0 %v13703_v7  ;;  %v8231_v55 = vpop.f32.mrf.mxu0 }
 0x80a   :  { %v8232_v41 = vadd.f32 %v8231_v55, %v8219_v59 }
 0x80b   :  { %9244 = vmatpush.bf16.msrb.mxu1 %v13767_v30  ;;  %v8244_v1 = vpop.f32.mrf.mxu1 }
 0x80c   :  { %9232 = vmatmul.bf16.vlgmr.msrb.gmra.mxu0 %v15874_v19  ;;  %v8245_v43 = vadd.f32 %v8244_v1, %v8232_v41 }
 0x80d   :  { %9257 = vmatpush.bf16.msrb.mxu2 %v13831_v38 }
 0x80e   :  { %9245 = vmatmul.bf16.vlgmr.msrb.gmra.mxu1 %v15876_v21 }
 0x810   :  { %9258 = vmatmul.bf16.vlgmr.msrb.gmra.mxu2 %v15878_v24 }
 0x811   :  { %v8233_v31 = vpop.f32.mrf.mxu0 }
 0x813   :  { %v8257_v63 = vpop.f32.mrf.mxu2  ;;  %v8246_v19 = vpop.f32.mrf.mxu1 }
 0x814   :  { %v8258_v27 = vadd.f32 %v8257_v63, %v8245_v43 }
 0x815   :  { %v8270_v60 = vpop.f32.mrf.mxu3 }
 0x816   :  { %v8271_v48 = vadd.f32 %v8270_v60, %v8258_v27 }
 0x818   :  { %v8281_v21 = vmul.f32 0.01, %v8271_v48 }
 0x81a   :  { %v8289_v18 = vmax.f32 %v8271_v48, %v8281_v21 }
 0x81b   :  { %v8259_v24 = vpop.f32.mrf.mxu2 }
 0x81c   :  { %v8297_v49 = vpack.c.bf16 %v8289_v18, %v8289_v18  ;;  %v9285_v18 = vld [vmem:[#allocation14] sm:$0x3] }
 0x81d   :  { %v8272_v13 = vpop.f32.mrf.mxu3  ;;  %v9288_v58 = vperm.slane %v9285_v18, 1 }
 0x81e   :  { %9167 = vmatmul.bf16.vlgmr.msrb.gmra.mxu3 %v8297_v49 }
 0x81f   :  { %9263 = vmatpush.bf16.msrb.mxu3 %v13951_v61 }
 0x823   :  { %9264 = vmatpush.bf16.msrb.mxu3 %v13943_v54 }
 0x827   :  { %9265 = vmatpush.bf16.msrb.mxu3 %v13935_v40 }
 0x829   :  { %v9077_v16 = vpop.f32.mrf.mxu0 }
 0x82b   :  { %v9090_v32 = vpop.f32.mrf.mxu1  ;;  %9266 = vmatpush.bf16.msrb.mxu3 %v13927_v5 }
 0x82c   :  { %v9091_v28 = vadd.f32 %v9090_v32, %v9077_v16  ;;  %v9299_v16 = vperm.slane %v9297_v10, 0  ;;  %v9300_v32 = vperm.slane %v9297_v10, 1 }
 0x82e   :  { %9219 = vmatmul.bf16.vlgmr.msra.gmra.mxu3 %v15857_v4 }
 0x82f   :  { %9267 = vmatpush.bf16.msrb.mxu3 %v13919_v42 }
 0x831   :  { %v9079_v34 = vpop.f32.mrf.mxu0 }
 0x833   :  { %v9103_v56 = vpop.f32.mrf.mxu2  ;;  %v9092_v62 = vpop.f32.mrf.mxu1  ;;  %9268 = vmatpush.bf16.msrb.mxu3 %v13911_v36 }
 0x834   :  { %v9104_v52 = vadd.f32 %v9103_v56, %v9091_v28  ;;  %v15116_v56 = vld [vmem:[#allocation5] ss:$0 sm:$0xff] }
 0x835   :  { %v9116_v26 = vpop.f32.mrf.mxu3 }
 0x836   :  { %v9117_v3 = vadd.f32 %v9116_v26, %v9104_v52 }
 0x837   :  { %9269 = vmatpush.bf16.msrb.mxu3 %v13903_v44 }
 0x83b   :  { %v9105_v2 = vpop.f32.mrf.mxu2  ;;  %9270 = vmatpush.bf16.msrb.mxu3 %v13895_v25 }
 0x83d   :  { %v9118_v11 = vpop.f32.mrf.mxu3 }
 0x83e   :  { %9271 = vmatmul.bf16.vlgmr.msrb.gmra.mxu3 %v8297_v49  ;;  %v9287_v49 = vperm.slane %v9285_v18, 0 }
 0x849   :  { %v9129_v4 = vpop.f32.mrf.mxu0 }
 0x84a   :  { %v9130_v45 = vadd.f32 %v9129_v4, %v9117_v3 }
 0x84b   :  { %v9142_v29 = vpop.f32.mrf.mxu1 }
 0x84c   :  { %v9143_v7 = vadd.f32 %v9142_v29, %v9130_v45 }
 0x851   :  { %v9131_v15 = vpop.f32.mrf.mxu0 }
 0x853   :  { %v9155_v30 = vpop.f32.mrf.mxu2  ;;  %v9144_v17 = vpop.f32.mrf.mxu1 }
 0x854   :  { %v9156_v38 = vadd.f32 %v9155_v30, %v9143_v7 }
 0x85b   :  { %v9157_v46 = vpop.f32.mrf.mxu2 }
 0x869   :  { %v9181_v51 = vpop.f32.mrf.mxu0 }
 0x86b   :  { %v9194_v6 = vpop.f32.mrf.mxu1 }
 0x86c   :  { %v9195_v12 = vadd.f32 %v9194_v6, %v9181_v51 }
 0x871   :  { %v9183_v55 = vpop.f32.mrf.mxu0 }
 0x873   :  { %v9207_v20 = vpop.f32.mrf.mxu2  ;;  %v9196_v1 = vpop.f32.mrf.mxu1 }
 0x874   :  { %v9208_v59 = vadd.f32 %v9207_v20, %v9195_v12 }
 0x87b   :  { %v9209_v41 = vpop.f32.mrf.mxu2 }
 0x889   :  { %v9233_v43 = vpop.f32.mrf.mxu0 }
 0x88b   :  { %v9246_v63 = vpop.f32.mrf.mxu1 }
 0x891   :  { %v9235_v27 = vpop.f32.mrf.mxu0 }
 0x893   :  { %v9259_v60 = vpop.f32.mrf.mxu2  ;;  %v9248_v31 = vpop.f32.mrf.mxu1 }
 0x89b   :  { %v9261_v19 = vpop.f32.mrf.mxu2 }
 0x8a1   :  { %v9168_v48 = vpop.f32.mrf.mxu3 }
 0x8a2   :  { %v9169_v61 = vadd.f32 %v9168_v48, %v9156_v38 }
 0x8a4   :  { %v9291_v50 = vadd.f32 %v9287_v49, %v9169_v61 }
 0x8a6   :  { %v9293_v40 = vmul.f32 0.01, %v9291_v50 }
 0x8a8   :  { %v9295_v0 = vmax.f32 %v9291_v50, %v9293_v40 }
 0x8a9   :  { %v9170_v21 = vpop.f32.mrf.mxu3 }
 0x8aa   :  { %v9303_v53 = vmul.f32 %v9299_v16, %v9295_v0 }
 0x8b1   :  { %v9220_v23 = vpop.f32.mrf.mxu3 }
 0x8b2   :  { %v9221_v14 = vadd.f32 %v9220_v23, %v9208_v59 }
 0x8b4   :  { %v9234_v24 = vadd.f32 %v9233_v43, %v9221_v14 }
 0x8b6   :  { %v9247_v47 = vadd.f32 %v9246_v63, %v9234_v24 }
 0x8b8   :  { %v9260_v54 = vadd.f32 %v9259_v60, %v9247_v47 }
 0x8b9   :  { %v9222_v13 = vpop.f32.mrf.mxu3 }
 0x8c1   :  { %v9272_v9 = vpop.f32.mrf.mxu3 }
 0x8c2   :  { %v9273_v22 = vadd.f32 %v9272_v9, %v9260_v54 }
 0x8c4   :  { %v9292_v5 = vadd.f32 %v9288_v58, %v9273_v22 }
 0x8c6   :  { %v9294_v57 = vmul.f32 0.01, %v9292_v5 }
 0x8c8   :  { %v9296_v28 = vmax.f32 %v9292_v5, %v9294_v57 }
 0x8c9   :  { %v9274_v42 = vpop.f32.mrf.mxu3 }
 0x8ca   :  { %v9304_v33 = vmul.f32 %v9300_v32, %v9296_v28 }
 0x8cc   :  { %v9305_v36 = vadd.f32 %v9304_v33, %v9303_v53 }
 0x8ce   :  { %9306 = vadd.xlane.f32.xlu1 %v9305_v36 }
 0x941   :  { %v9307_v35 = vpop.xlane.xlu1 %9306 }
 0x942   :  { %v9312_v8 = vadd.f32 %v15116_v56, %v9307_v35 }
 0x944   :  { %v9313_v52 = vmul.f32 0.01, %v9312_v8 }
 0x946   :  { %v9314_v26 = vmax.f32 %v9312_v8, %v9313_v52 }
 0x948   :  { %v13952_v34 = vmul.f32 -1.442695, %v9314_v26 }
 0x94a   :  { %15125 = vpow2.f32 %v13952_v34 }
 0x950   :  { %v15126_v62 = vpop.eup %15125 }
 0x951   :  { %v9318_v3 = vadd.f32 1.0, %v15126_v62 }
 0x953   :  { %15127 = vrcp.f32 %v9318_v3  ;;  %v9330_v25 = vand.u32 2147483648, %v9318_v3  ;;  %v9328_v11 = vand.u32 2147483647, %v9318_v3  ;;  %vm9324_vm13 = vweird.f32 %v9318_v3 }
 0x955   :  { %v9331_v29 = vor.u32 1.1754944e-38, %v9330_v25  ;;  %vm9329_vm0 = vcmp.eq.f32.partialorder %v9328_v11, 8.507059e+37 }
 0x959   :  { %v15128_v44 = vpop.eup %15127 }
 0x95a   :  { %v9320_v37 = vmul.f32 %v15128_v44, %v9318_v3  ;;  %vm9325_vm12 = vweird.f32 %v15128_v44 }
 0x95b   :  { %vm9326_vm15 = vmor %vm9324_vm13, %vm9325_vm12 }
 0x95c   :  { %v9321_v39 = vsub.f32 1.0, %v9320_v37 }
 0x95e   :  { %v9322_v2 = vmul.f32 %v15128_v44, %v9321_v39 }
 0x960   :  { %v9323_v4 = vadd.f32 %v15128_v44, %v9322_v2 }
 0x962   :  { %v9327_v45 = vsel %vm9326_vm15, %v15128_v44, %v9323_v4 }
 0x963   :  { %v9332_v7 = vsel %vm9329_vm0, %v9331_v29, %v9327_v45 }
 0x964   :  { %9335 = vst.msk [vmem:[%s15926_s8] sm:$0xff] %vm9334_vm14, %v9332_v7 }
 0x965   :  { %9340 = vsyncpa [#allocation7], 1 }
 0x966   :  { %9341 = vsyncpa [#allocation9], 1 }
 0x967   :  { %9342 = vsyncpa [#allocation12], 1 }
 0x968   :  { %9343 = vsyncpa [#allocation15], 1 }

</bundles_post_ra>
